<compile_context>
chip_gen: v6e
topology: v6e:2x2x1
jax: 0.10.0
libtpu: 0.0.40
codegen_flags: <defaults>
</compile_context>

<pallas_src>
import functools

import jax
import jax.numpy as jnp
from jax import lax
from jax.experimental import pallas as pl
from jax.experimental.pallas import tpu as pltpu

EPS = 1e-5
LANE = 128


# ------------------------------ helpers ------------------------------------ #

def _round_up(x, m):
    return (x + m - 1) // m * m


def _fold_bn(bn):
    gamma, beta, mean, var = bn
    scale = gamma / jnp.sqrt(var + EPS)
    bias = beta - mean * scale
    return scale, bias


def _pad_lane(a, cp):
    """Zero-pad the last (output-channel / lane) dim up to cp."""
    pad = cp - a.shape[-1]
    if pad == 0:
        return a
    cfg = [(0, 0)] * (a.ndim - 1) + [(0, pad)]
    return jnp.pad(a, cfg)


def _pick_row_tile(H, W, row_tile):
    """Rows per output tile: only needs to divide H (output block is 4-D)."""
    if row_tile is not None and H % int(row_tile) == 0:
        return int(row_tile)
    target = max(1, 256 // max(W, 1))
    for th in range(min(H, target), 0, -1):
        if H % th == 0:
            return th
    return H


# ------------------------------ fused kernel -------------------------------- #

def _aspp_fused_kernel(xp_ref, w0_ref, wd_ref, wproj_ref, bbr_ref, pool_ref,
                       o_ref, proj_sc, *, rates, W, TH, maxd, cin):
    """One (image n, row-tile h) grid step of the fused ASPP forward.

    xp_ref    : (1, Hp, Wp, Cin)     bf16  padded NHWC image (resident per image)
    w0_ref    : (Cin, Cp)            bf16  1x1 branch weight (BN scale folded)
    wd_ref    : (3, 3, 3, Cin, Cp)   bf16  dilated 3x3 weights (BN scale folded)
    wproj_ref : (4, Cp, Cp)          bf16  projection weight per branch (proj-BN
                                           scale folded); pooled block consumed
                                           in the wrapper.
    bbr_ref   : (4, 1, Cp)           f32   branch BN biases (br0..br3)
    pool_ref  : (1, 1, Cp)           f32   pooled-branch projection contribution
                                           (+ projection bias pre-added)
    o_ref     : (1, TH, W, Cp)       f32   output row tile
    proj_sc   : (TH*W, Cp)           f32   projection accumulator scratch
    """
    h = pl.program_id(1)
    row0 = pl.multiple_of(h * TH, TH)
    cp = o_ref.shape[-1]

    # ---- branch 0: 1x1 conv (scale pre-folded) + bias + ReLU ----------------
    x0 = xp_ref[0, pl.ds(row0 + maxd, TH), pl.ds(maxd, W), :].reshape(TH * W, cin)
    br = jnp.maximum(
        jnp.dot(x0, w0_ref[...], preferred_element_type=jnp.float32) + bbr_ref[0],
        0.0)
    # init projection accumulator; pooled contribution already carries proj bias
    proj_sc[...] = pool_ref[0] + jnp.dot(
        br.astype(jnp.bfloat16), wproj_ref[0], preferred_element_type=jnp.float32)

    # ---- dilated 3x3 branches: per-tap MXU dots into one f32 accumulator ----
    for bi, d in enumerate(rates):
        acc = jnp.zeros((TH * W, cp), jnp.float32)
        for ky in range(3):
            # one H-slab per (branch, ky): dynamic start along H only; the
            # three kx shifts below are static sub-slices of this loaded slab.
            slab = xp_ref[0, pl.ds(row0 + maxd + (ky - 1) * d, TH),
                          pl.ds(maxd - d, W + 2 * d), :]
            for kx in range(3):
                xt = slab[:, kx * d:kx * d + W, :].reshape(TH * W, cin)
                acc = acc + jnp.dot(xt, wd_ref[bi, ky, kx],
                                    preferred_element_type=jnp.float32)
        br = jnp.maximum(acc + bbr_ref[bi + 1], 0.0)
        proj_sc[...] += jnp.dot(br.astype(jnp.bfloat16), wproj_ref[bi + 1],
                                preferred_element_type=jnp.float32)

    # ---- projection ReLU (scale folded into wproj, bias already added) ------
    o_ref[0] = jnp.maximum(proj_sc[...], 0.0).reshape(TH, W, cp)


# ------------------------------ public wrapper ------------------------------ #

@functools.partial(jax.jit, static_argnames=("rates", "row_tile"))
def aspp_forward(x_nchw, params, rates, row_tile=None):
    N, Cin, H, W = x_nchw.shape
    Cout = params["w0"].shape[0]
    Cp = _round_up(Cout, LANE)          # lane-dense output channels
    maxd = max(rates)
    TH = _pick_row_tile(H, W, row_tile)
    n_ht = H // TH

    # NHWC f32; pad spatially ONCE by the max dilation; bf16 feeds the MXU.
    x = jnp.transpose(x_nchw, (0, 2, 3, 1)).astype(jnp.float32)
    xp = jnp.pad(x, ((0, 0), (maxd, maxd), (maxd, maxd), (0, 0))).astype(jnp.bfloat16)
    Hp, Wp = H + 2 * maxd, W + 2 * maxd
    # TODO(synk): at production sizes (Cin~2048) on v7x (64 MiB VMEM) stream
    # halo'd row slabs of xp with manual double-buffered DMA (and single-buffer
    # the grid-invariant weights) instead of keeping the padded image resident.

    # ---- fold BN scales into weight columns (biases stay separate) ----------
    s_pr, b_pr = _fold_bn(params["bnproj"])
    wproj2d = params["wproj"][:, :, 0, 0].T * s_pr[None, :]            # (5*Cout, Cout)

    s0, b0 = _fold_bn(params["bn0"])
    w0 = _pad_lane(params["w0"][:, :, 0, 0].T * s0[None, :], Cp).astype(jnp.bfloat16)

    wd_list, bbr_list = [], [_pad_lane(b0, Cp)]
    for i in range(3):
        si, bdi = _fold_bn(params[f"bn{i + 1}"])
        w = jnp.transpose(params[f"w{i + 1}"], (2, 3, 1, 0)) * si       # (3,3,Cin,Cout)
        wd_list.append(_pad_lane(w, Cp))
        bbr_list.append(_pad_lane(bdi, Cp))
    wd = jnp.stack(wd_list).astype(jnp.bfloat16)                        # (3,3,3,Cin,Cp)
    bbr = jnp.stack(bbr_list)[:, None, :].astype(jnp.float32)           # (4,1,Cp)

    wproj = jnp.stack([
        jnp.pad(wproj2d[b * Cout:(b + 1) * Cout, :],
                ((0, Cp - Cout), (0, Cp - Cout)))
        for b in range(4)]).astype(jnp.bfloat16)                        # (4,Cp,Cp)

    # ---- global-average-pool branch: tiny per-image vectors, done in XLA ----
    # (its 1x1-source bilinear upsample is a spatial broadcast, so its whole
    #  projection contribution is a constant (1, Cp) vector per image)
    s_p, b_p = _fold_bn(params["bnp"])
    pooled = jnp.mean(x, axis=(1, 2))                                   # (N, Cin) f32
    pbr = jnp.maximum(pooled @ (params["wp"][:, :, 0, 0].T * s_p) + b_p, 0.0)
    pool_c = pbr @ wproj2d[4 * Cout:, :] + b_pr                         # (N, Cout)
    pool_c = _pad_lane(pool_c, Cp)[:, None, :].astype(jnp.float32)      # (N,1,Cp)

    # ---- per-generation VMEM budget ------------------------------------------
    try:
        vmem_cap = int(pltpu.get_tpu_info().vmem_capacity_bytes)
    except Exception:
        vmem_cap = 64 * 1024 * 1024
    est = (2 * Hp * Wp * Cin * 2                                  # xp, double-buffered bf16
           + 2 * (Cin * Cp + 27 * Cin * Cp + 4 * Cp * Cp) * 2     # weights (bf16)
           + 2 * 6 * Cp * 4                                       # biases + pooled vector
           + 3 * TH * W * Cp * 4                                  # out block x2 + proj scratch
           + 12 * TH * (W + 2 * maxd) * max(Cin, Cp) * 4)         # in-kernel temporaries
    vmem_limit = int(min(max(est, 32 * 1024 * 1024), 0.75 * vmem_cap))

    kernel = functools.partial(_aspp_fused_kernel, rates=tuple(rates), W=W,
                               TH=TH, maxd=maxd, cin=Cin)

    out = pl.pallas_call(
        kernel,
        out_shape=jax.ShapeDtypeStruct((N, H, W, Cp), jnp.float32),
        grid=(N, n_ht),
        in_specs=[
            pl.BlockSpec((1, Hp, Wp, Cin), lambda n, h: (n, 0, 0, 0)),
            pl.BlockSpec((Cin, Cp), lambda n, h: (0, 0)),
            pl.BlockSpec((3, 3, 3, Cin, Cp), lambda n, h: (0, 0, 0, 0, 0)),
            pl.BlockSpec((4, Cp, Cp), lambda n, h: (0, 0, 0)),
            pl.BlockSpec((4, 1, Cp), lambda n, h: (0, 0, 0)),
            pl.BlockSpec((1, 1, Cp), lambda n, h: (n, 0, 0)),
        ],
        out_specs=pl.BlockSpec((1, TH, W, Cp), lambda n, h: (n, h, 0, 0)),
        scratch_shapes=[pltpu.VMEM((TH * W, Cp), jnp.float32)],
        compiler_params=pltpu.CompilerParams(
            dimension_semantics=("parallel", "parallel"),
            vmem_limit_bytes=vmem_limit),
    )(xp, w0, wd, wproj, bbr, pool_c)

    # strip channel padding, back to NCHW
    y = out[..., :Cout]
    # TODO(synk): training-mode dropout (random mask + 1/(1-p) scaling) not
    # implemented; Dropout is identity at inference.
    return jnp.transpose(y, (0, 3, 1, 2))


# ----------------------- pure-JAX reference (checks) ------------------------ #

def aspp_reference(x, params, rates):
    dn = ("NCHW", "OIHW", "NCHW")

    def bnrelu(y, bn):
        gamma, beta, mean, var = bn
        s = gamma / jnp.sqrt(var + EPS)
        b = beta - mean * s
        return jnp.maximum(y * s[None, :, None, None] + b[None, :, None, None], 0.0)

    r = [bnrelu(lax.conv_general_dilated(x, params["w0"], (1, 1), "VALID",
                                         dimension_numbers=dn), params["bn0"])]
    for i, d in enumerate(rates):
        y = lax.conv_general_dilated(x, params[f"w{i + 1}"], (1, 1),
                                     [(d, d), (d, d)], rhs_dilation=(d, d),
                                     dimension_numbers=dn)
        r.append(bnrelu(y, params[f"bn{i + 1}"]))
    pooled = jnp.mean(x, axis=(2, 3), keepdims=True)
    y = lax.conv_general_dilated(pooled, params["wp"], (1, 1), "VALID",
                                 dimension_numbers=dn)
    y = bnrelu(y, params["bnp"])
    r.append(jnp.broadcast_to(y, (x.shape[0], y.shape[1], x.shape[2], x.shape[3])))
    cat = jnp.concatenate(r, axis=1)
    y = lax.conv_general_dilated(cat, params["wproj"], (1, 1), "VALID",
                                 dimension_numbers=dn)
    return bnrelu(y, params["bnproj"])


# --------------------------------- main ------------------------------------ #

def make_params(key, cin, cout):
    ks = jax.random.split(key, 16)

    def bn(k):
        k1, k2, k3, k4 = jax.random.split(k, 4)
        gamma = 1.0 + 0.1 * jax.random.normal(k1, (cout,), jnp.float32)
        beta = 0.05 * jax.random.normal(k2, (cout,), jnp.float32)
        mean = 0.1 * jax.random.normal(k3, (cout,), jnp.float32)
        var = 0.5 + jnp.abs(jax.random.normal(k4, (cout,), jnp.float32)) * 0.1
        return (gamma, beta, mean, var)

    return {
        "w0": 0.1 * jax.random.normal(ks[0], (cout, cin, 1, 1), jnp.float32),
        "bn0": bn(ks[1]),
        "w1": 0.1 * jax.random.normal(ks[2], (cout, cin, 3, 3), jnp.float32),
        "bn1": bn(ks[3]),
        "w2": 0.1 * jax.random.normal(ks[4], (cout, cin, 3, 3), jnp.float32),
        "bn2": bn(ks[5]),
        "w3": 0.1 * jax.random.normal(ks[6], (cout, cin, 3, 3), jnp.float32),
        "bn3": bn(ks[7]),
        "wp": 0.1 * jax.random.normal(ks[8], (cout, cin, 1, 1), jnp.float32),
        "bnp": bn(ks[9]),
        "wproj": 0.1 * jax.random.normal(ks[10], (cout, 5 * cout, 1, 1), jnp.float32),
        "bnproj": bn(ks[11]),
    }


if __name__ == "__main__":
    N, Cin, H, W = 2, 4, 16, 16
    Cout = 8
    rates = (1, 2, 3)

    key = jax.random.PRNGKey(0)
    kx_, kp_ = jax.random.split(key)
    x = jax.random.normal(kx_, (N, Cin, H, W), jnp.float32)
    params = make_params(kp_, Cin, Cout)

    out = aspp_forward(x, params, rates=rates, row_tile=8)   # grid = (2, 2)
    out = jax.block_until_ready(out)

    ref = aspp_reference(x, params, rates)
    assert out.shape == (N, Cout, H, W), out.shape
    max_err = float(jnp.max(jnp.abs(out - ref)))
    # bf16 MXU operands with f32 accumulation -> compare loosely vs f32 reference
    assert jnp.allclose(out, ref, atol=1e-1, rtol=1e-1), max_err

    print("KERNEL_OK")
</pallas_src>

<mosaic_0001>
module attributes {stable_mosaic.version = 11 : i64} {
  func.func @_aspp_fused_kernel(%arg0: i32, %arg1: i32, %arg2: memref<1x22x22x4xbf16, #tpu.memory_space<vmem>>, %arg3: memref<4x128xbf16, #tpu.memory_space<vmem>>, %arg4: memref<3x3x3x4x128xbf16, #tpu.memory_space<vmem>>, %arg5: memref<4x128x128xbf16, #tpu.memory_space<vmem>>, %arg6: memref<4x1x128xf32, #tpu.memory_space<vmem>>, %arg7: memref<1x1x128xf32, #tpu.memory_space<vmem>>, %arg8: memref<1x8x16x128xf32, #tpu.memory_space<vmem>>, %arg9: memref<128x128xf32, #tpu.memory_space<vmem>>) attributes {dimension_semantics = [#tpu.dimension_semantics<parallel>, #tpu.dimension_semantics<parallel>], iteration_bounds = array<i64: 2, 2>, scalar_prefetch = 0 : i64, scratch_operands = 1 : i64, tpu.core_type = #tpu.core_type<tc>, window_params = [{transform_indices = @transform_0, window_bounds = array<i64: 1, 22, 22, 4>}, {pipeline_mode = #tpu.pipeline_mode<synchronous>, transform_indices = @transform_1, window_bounds = array<i64: 4, 128>}, {pipeline_mode = #tpu.pipeline_mode<synchronous>, transform_indices = @transform_2, window_bounds = array<i64: 3, 3, 3, 4, 128>}, {pipeline_mode = #tpu.pipeline_mode<synchronous>, transform_indices = @transform_3, window_bounds = array<i64: 4, 128, 128>}, {pipeline_mode = #tpu.pipeline_mode<synchronous>, transform_indices = @transform_4, window_bounds = array<i64: 4, 1, 128>}, {transform_indices = @transform_5, window_bounds = array<i64: 1, 1, 128>}, {transform_indices = @transform_6, window_bounds = array<i64: 1, 8, 16, 128>}]} {
    %c8_i32 = arith.constant 8 : i32
    %0 = arith.muli %arg1, %c8_i32 : i32
    %1 = tpu.assume_multiple %0, 8 : i32
    %c3_i32 = arith.constant 3 : i32
    %2 = arith.addi %1, %c3_i32 : i32
    %c0 = arith.constant 0 : index
    %3 = arith.index_cast %2 : i32 to index
    %c3 = arith.constant 3 : index
    %c0_0 = arith.constant 0 : index
    %4 = vector.load %arg2[%c0, %3, %c3, %c0_0] : memref<1x22x22x4xbf16, #tpu.memory_space<vmem>>, vector<1x8x16x4xbf16>
    %5 = vector.shape_cast %4 : vector<1x8x16x4xbf16> to vector<8x16x4xbf16>
    %6 = vector.shape_cast %5 : vector<8x16x4xbf16> to vector<128x4xbf16>
    %c0_1 = arith.constant 0 : index
    %c0_2 = arith.constant 0 : index
    %7 = vector.load %arg3[%c0_1, %c0_2] : memref<4x128xbf16, #tpu.memory_space<vmem>>, vector<4x128xbf16>
    %cst = arith.constant dense<0.000000e+00> : vector<128x128xf32>
    %8 = tpu.matmul %6, %7, %cst {dimension_numbers = #tpu.dot_dimension_numbers<[1], [0], [0], [1], [0, 0, 1, 1], [], []>} : vector<128x4xbf16>, vector<4x128xbf16>, vector<128x128xf32> -> vector<128x128xf32>
    %c0_3 = arith.constant 0 : index
    %c0_4 = arith.constant 0 : index
    %c0_5 = arith.constant 0 : index
    %9 = vector.load %arg6[%c0_3, %c0_4, %c0_5] : memref<4x1x128xf32, #tpu.memory_space<vmem>>, vector<1x1x128xf32>
    %10 = vector.shape_cast %9 : vector<1x1x128xf32> to vector<1x128xf32>
    %11 = vector.broadcast %10 : vector<1x128xf32> to vector<128x128xf32>
    %12 = arith.addf %8, %11 : vector<128x128xf32>
    %cst_6 = arith.constant 0.000000e+00 : f32
    %13 = vector.broadcast %cst_6 : f32 to vector<128x128xf32>
    %14 = arith.maximumf %12, %13 : vector<128x128xf32>
    %c0_7 = arith.constant 0 : index
    %c0_8 = arith.constant 0 : index
    %c0_9 = arith.constant 0 : index
    %15 = vector.load %arg7[%c0_7, %c0_8, %c0_9] : memref<1x1x128xf32, #tpu.memory_space<vmem>>, vector<1x1x128xf32>
    %16 = vector.shape_cast %15 : vector<1x1x128xf32> to vector<1x128xf32>
    %17 = arith.truncf %14 : vector<128x128xf32> to vector<128x128xbf16>
    %c0_10 = arith.constant 0 : index
    %c0_11 = arith.constant 0 : index
    %c0_12 = arith.constant 0 : index
    %18 = vector.load %arg5[%c0_10, %c0_11, %c0_12] : memref<4x128x128xbf16, #tpu.memory_space<vmem>>, vector<1x128x128xbf16>
    %19 = vector.shape_cast %18 : vector<1x128x128xbf16> to vector<128x128xbf16>
    %cst_13 = arith.constant dense<0.000000e+00> : vector<128x128xf32>
    %20 = tpu.matmul %17, %19, %cst_13 {dimension_numbers = #tpu.dot_dimension_numbers<[1], [0], [0], [1], [0, 0, 1, 1], [], []>} : vector<128x128xbf16>, vector<128x128xbf16>, vector<128x128xf32> -> vector<128x128xf32>
    %21 = vector.broadcast %16 : vector<1x128xf32> to vector<128x128xf32>
    %22 = arith.addf %21, %20 : vector<128x128xf32>
    %c0_14 = arith.constant 0 : index
    %c0_15 = arith.constant 0 : index
    %23 = vector.load %arg9[%c0_14, %c0_15] : memref<128x128xf32, #tpu.memory_space<vmem>>, vector<128x128xf32>
    tpu.vector_store %arg9[%c0_14, %c0_15], %22 {strides = array<i32>} : memref<128x128xf32, #tpu.memory_space<vmem>>, vector<128x128xf32>,
    %cst_16 = arith.constant 0.000000e+00 : f32
    %24 = vector.broadcast %cst_16 : f32 to vector<128x128xf32>
    %c3_i32_17 = arith.constant 3 : i32
    %25 = arith.addi %1, %c3_i32_17 : i32
    %c-1_i32 = arith.constant -1 : i32
    %26 = arith.addi %25, %c-1_i32 : i32
    %c0_18 = arith.constant 0 : index
    %27 = arith.index_cast %26 : i32 to index
    %c2 = arith.constant 2 : index
    %c0_19 = arith.constant 0 : index
    %28 = vector.load %arg2[%c0_18, %27, %c2, %c0_19] : memref<1x22x22x4xbf16, #tpu.memory_space<vmem>>, vector<1x8x18x4xbf16>
    %29 = vector.shape_cast %28 : vector<1x8x18x4xbf16> to vector<8x18x4xbf16>
    %30 = vector.extract_strided_slice %29 {offsets = [0, 0, 0], sizes = [8, 16, 4], strides = [1, 1, 1]} : vector<8x18x4xbf16> to vector<8x16x4xbf16>
    %31 = vector.shape_cast %30 : vector<8x16x4xbf16> to vector<128x4xbf16>
    %c0_20 = arith.constant 0 : index
    %c0_21 = arith.constant 0 : index
    %c0_22 = arith.constant 0 : index
    %c0_23 = arith.constant 0 : index
    %c0_24 = arith.constant 0 : index
    %32 = vector.load %arg4[%c0_20, %c0_21, %c0_22, %c0_23, %c0_24] : memref<3x3x3x4x128xbf16, #tpu.memory_space<vmem>>, vector<1x1x1x4x128xbf16>
    %33 = vector.shape_cast %32 : vector<1x1x1x4x128xbf16> to vector<4x128xbf16>
    %cst_25 = arith.constant dense<0.000000e+00> : vector<128x128xf32>
    %34 = tpu.matmul %31, %33, %cst_25 {dimension_numbers = #tpu.dot_dimension_numbers<[1], [0], [0], [1], [0, 0, 1, 1], [], []>} : vector<128x4xbf16>, vector<4x128xbf16>, vector<128x128xf32> -> vector<128x128xf32>
    %35 = arith.addf %24, %34 : vector<128x128xf32>
    %36 = vector.extract_strided_slice %29 {offsets = [0, 1, 0], sizes = [8, 16, 4], strides = [1, 1, 1]} : vector<8x18x4xbf16> to vector<8x16x4xbf16>
    %37 = vector.shape_cast %36 : vector<8x16x4xbf16> to vector<128x4xbf16>
    %c0_26 = arith.constant 0 : index
    %c0_27 = arith.constant 0 : index
    %c1 = arith.constant 1 : index
    %c0_28 = arith.constant 0 : index
    %c0_29 = arith.constant 0 : index
    %38 = vector.load %arg4[%c0_26, %c0_27, %c1, %c0_28, %c0_29] : memref<3x3x3x4x128xbf16, #tpu.memory_space<vmem>>, vector<1x1x1x4x128xbf16>
    %39 = vector.shape_cast %38 : vector<1x1x1x4x128xbf16> to vector<4x128xbf16>
    %cst_30 = arith.constant dense<0.000000e+00> : vector<128x128xf32>
    %40 = tpu.matmul %37, %39, %cst_30 {dimension_numbers = #tpu.dot_dimension_numbers<[1], [0], [0], [1], [0, 0, 1, 1], [], []>} : vector<128x4xbf16>, vector<4x128xbf16>, vector<128x128xf32> -> vector<128x128xf32>
    %41 = arith.addf %35, %40 : vector<128x128xf32>
    %42 = vector.extract_strided_slice %29 {offsets = [0, 2, 0], sizes = [8, 16, 4], strides = [1, 1, 1]} : vector<8x18x4xbf16> to vector<8x16x4xbf16>
    %43 = vector.shape_cast %42 : vector<8x16x4xbf16> to vector<128x4xbf16>
    %c0_31 = arith.constant 0 : index
    %c0_32 = arith.constant 0 : index
    %c2_33 = arith.constant 2 : index
    %c0_34 = arith.constant 0 : index
    %c0_35 = arith.constant 0 : index
    %44 = vector.load %arg4[%c0_31, %c0_32, %c2_33, %c0_34, %c0_35] : memref<3x3x3x4x128xbf16, #tpu.memory_space<vmem>>, vector<1x1x1x4x128xbf16>
    %45 = vector.shape_cast %44 : vector<1x1x1x4x128xbf16> to vector<4x128xbf16>
    %cst_36 = arith.constant dense<0.000000e+00> : vector<128x128xf32>
    %46 = tpu.matmul %43, %45, %cst_36 {dimension_numbers = #tpu.dot_dimension_numbers<[1], [0], [0], [1], [0, 0, 1, 1], [], []>} : vector<128x4xbf16>, vector<4x128xbf16>, vector<128x128xf32> -> vector<128x128xf32>
    %47 = arith.addf %41, %46 : vector<128x128xf32>
    %c3_i32_37 = arith.constant 3 : i32
    %48 = arith.addi %1, %c3_i32_37 : i32
    %c0_i32 = arith.constant 0 : i32
    %49 = arith.addi %48, %c0_i32 : i32
    %c0_38 = arith.constant 0 : index
    %50 = arith.index_cast %49 : i32 to index
    %c2_39 = arith.constant 2 : index
    %c0_40 = arith.constant 0 : index
    %51 = vector.load %arg2[%c0_38, %50, %c2_39, %c0_40] : memref<1x22x22x4xbf16, #tpu.memory_space<vmem>>, vector<1x8x18x4xbf16>
    %52 = vector.shape_cast %51 : vector<1x8x18x4xbf16> to vector<8x18x4xbf16>
    %53 = vector.extract_strided_slice %52 {offsets = [0, 0, 0], sizes = [8, 16, 4], strides = [1, 1, 1]} : vector<8x18x4xbf16> to vector<8x16x4xbf16>
    %54 = vector.shape_cast %53 : vector<8x16x4xbf16> to vector<128x4xbf16>
    %c0_41 = arith.constant 0 : index
    %c1_42 = arith.constant 1 : index
    %c0_43 = arith.constant 0 : index
    %c0_44 = arith.constant 0 : index
    %c0_45 = arith.constant 0 : index
    %55 = vector.load %arg4[%c0_41, %c1_42, %c0_43, %c0_44, %c0_45] : memref<3x3x3x4x128xbf16, #tpu.memory_space<vmem>>, vector<1x1x1x4x128xbf16>
    %56 = vector.shape_cast %55 : vector<1x1x1x4x128xbf16> to vector<4x128xbf16>
    %cst_46 = arith.constant dense<0.000000e+00> : vector<128x128xf32>
    %57 = tpu.matmul %54, %56, %cst_46 {dimension_numbers = #tpu.dot_dimension_numbers<[1], [0], [0], [1], [0, 0, 1, 1], [], []>} : vector<128x4xbf16>, vector<4x128xbf16>, vector<128x128xf32> -> vector<128x128xf32>
    %58 = arith.addf %47, %57 : vector<128x128xf32>
    %59 = vector.extract_strided_slice %52 {offsets = [0, 1, 0], sizes = [8, 16, 4], strides = [1, 1, 1]} : vector<8x18x4xbf16> to vector<8x16x4xbf16>
    %60 = vector.shape_cast %59 : vector<8x16x4xbf16> to vector<128x4xbf16>
    %c0_47 = arith.constant 0 : index
    %c1_48 = arith.constant 1 : index
    %c1_49 = arith.constant 1 : index
    %c0_50 = arith.constant 0 : index
    %c0_51 = arith.constant 0 : index
    %61 = vector.load %arg4[%c0_47, %c1_48, %c1_49, %c0_50, %c0_51] : memref<3x3x3x4x128xbf16, #tpu.memory_space<vmem>>, vector<1x1x1x4x128xbf16>
    %62 = vector.shape_cast %61 : vector<1x1x1x4x128xbf16> to vector<4x128xbf16>
    %cst_52 = arith.constant dense<0.000000e+00> : vector<128x128xf32>
    %63 = tpu.matmul %60, %62, %cst_52 {dimension_numbers = #tpu.dot_dimension_numbers<[1], [0], [0], [1], [0, 0, 1, 1], [], []>} : vector<128x4xbf16>, vector<4x128xbf16>, vector<128x128xf32> -> vector<128x128xf32>
    %64 = arith.addf %58, %63 : vector<128x128xf32>
    %65 = vector.extract_strided_slice %52 {offsets = [0, 2, 0], sizes = [8, 16, 4], strides = [1, 1, 1]} : vector<8x18x4xbf16> to vector<8x16x4xbf16>
    %66 = vector.shape_cast %65 : vector<8x16x4xbf16> to vector<128x4xbf16>
    %c0_53 = arith.constant 0 : index
    %c1_54 = arith.constant 1 : index
    %c2_55 = arith.constant 2 : index
    %c0_56 = arith.constant 0 : index
    %c0_57 = arith.constant 0 : index
    %67 = vector.load %arg4[%c0_53, %c1_54, %c2_55, %c0_56, %c0_57] : memref<3x3x3x4x128xbf16, #tpu.memory_space<vmem>>, vector<1x1x1x4x128xbf16>
    %68 = vector.shape_cast %67 : vector<1x1x1x4x128xbf16> to vector<4x128xbf16>
    %cst_58 = arith.constant dense<0.000000e+00> : vector<128x128xf32>
    %69 = tpu.matmul %66, %68, %cst_58 {dimension_numbers = #tpu.dot_dimension_numbers<[1], [0], [0], [1], [0, 0, 1, 1], [], []>} : vector<128x4xbf16>, vector<4x128xbf16>, vector<128x128xf32> -> vector<128x128xf32>
    %70 = arith.addf %64, %69 : vector<128x128xf32>
    %c3_i32_59 = arith.constant 3 : i32
    %71 = arith.addi %1, %c3_i32_59 : i32
    %c1_i32 = arith.constant 1 : i32
    %72 = arith.addi %71, %c1_i32 : i32
    %c0_60 = arith.constant 0 : index
    %73 = arith.index_cast %72 : i32 to index
    %c2_61 = arith.constant 2 : index
    %c0_62 = arith.constant 0 : index
    %74 = vector.load %arg2[%c0_60, %73, %c2_61, %c0_62] : memref<1x22x22x4xbf16, #tpu.memory_space<vmem>>, vector<1x8x18x4xbf16>
    %75 = vector.shape_cast %74 : vector<1x8x18x4xbf16> to vector<8x18x4xbf16>
    %76 = vector.extract_strided_slice %75 {offsets = [0, 0, 0], sizes = [8, 16, 4], strides = [1, 1, 1]} : vector<8x18x4xbf16> to vector<8x16x4xbf16>
    %77 = vector.shape_cast %76 : vector<8x16x4xbf16> to vector<128x4xbf16>
    %c0_63 = arith.constant 0 : index
    %c2_64 = arith.constant 2 : index
    %c0_65 = arith.constant 0 : index
    %c0_66 = arith.constant 0 : index
    %c0_67 = arith.constant 0 : index
    %78 = vector.load %arg4[%c0_63, %c2_64, %c0_65, %c0_66, %c0_67] : memref<3x3x3x4x128xbf16, #tpu.memory_space<vmem>>, vector<1x1x1x4x128xbf16>
    %79 = vector.shape_cast %78 : vector<1x1x1x4x128xbf16> to vector<4x128xbf16>
    %cst_68 = arith.constant dense<0.000000e+00> : vector<128x128xf32>
    %80 = tpu.matmul %77, %79, %cst_68 {dimension_numbers = #tpu.dot_dimension_numbers<[1], [0], [0], [1], [0, 0, 1, 1], [], []>} : vector<128x4xbf16>, vector<4x128xbf16>, vector<128x128xf32> -> vector<128x128xf32>
    %81 = arith.addf %70, %80 : vector<128x128xf32>
    %82 = vector.extract_strided_slice %75 {offsets = [0, 1, 0], sizes = [8, 16, 4], strides = [1, 1, 1]} : vector<8x18x4xbf16> to vector<8x16x4xbf16>
    %83 = vector.shape_cast %82 : vector<8x16x4xbf16> to vector<128x4xbf16>
    %c0_69 = arith.constant 0 : index
    %c2_70 = arith.constant 2 : index
    %c1_71 = arith.constant 1 : index
    %c0_72 = arith.constant 0 : index
    %c0_73 = arith.constant 0 : index
    %84 = vector.load %arg4[%c0_69, %c2_70, %c1_71, %c0_72, %c0_73] : memref<3x3x3x4x128xbf16, #tpu.memory_space<vmem>>, vector<1x1x1x4x128xbf16>
    %85 = vector.shape_cast %84 : vector<1x1x1x4x128xbf16> to vector<4x128xbf16>
    %cst_74 = arith.constant dense<0.000000e+00> : vector<128x128xf32>
    %86 = tpu.matmul %83, %85, %cst_74 {dimension_numbers = #tpu.dot_dimension_numbers<[1], [0], [0], [1], [0, 0, 1, 1], [], []>} : vector<128x4xbf16>, vector<4x128xbf16>, vector<128x128xf32> -> vector<128x128xf32>
    %87 = arith.addf %81, %86 : vector<128x128xf32>
    %88 = vector.extract_strided_slice %75 {offsets = [0, 2, 0], sizes = [8, 16, 4], strides = [1, 1, 1]} : vector<8x18x4xbf16> to vector<8x16x4xbf16>
    %89 = vector.shape_cast %88 : vector<8x16x4xbf16> to vector<128x4xbf16>
    %c0_75 = arith.constant 0 : index
    %c2_76 = arith.constant 2 : index
    %c2_77 = arith.constant 2 : index
    %c0_78 = arith.constant 0 : index
    %c0_79 = arith.constant 0 : index
    %90 = vector.load %arg4[%c0_75, %c2_76, %c2_77, %c0_78, %c0_79] : memref<3x3x3x4x128xbf16, #tpu.memory_space<vmem>>, vector<1x1x1x4x128xbf16>
    %91 = vector.shape_cast %90 : vector<1x1x1x4x128xbf16> to vector<4x128xbf16>
    %cst_80 = arith.constant dense<0.000000e+00> : vector<128x128xf32>
    %92 = tpu.matmul %89, %91, %cst_80 {dimension_numbers = #tpu.dot_dimension_numbers<[1], [0], [0], [1], [0, 0, 1, 1], [], []>} : vector<128x4xbf16>, vector<4x128xbf16>, vector<128x128xf32> -> vector<128x128xf32>
    %93 = arith.addf %87, %92 : vector<128x128xf32>
    %c1_81 = arith.constant 1 : index
    %c0_82 = arith.constant 0 : index
    %c0_83 = arith.constant 0 : index
    %94 = vector.load %arg6[%c1_81, %c0_82, %c0_83] : memref<4x1x128xf32, #tpu.memory_space<vmem>>, vector<1x1x128xf32>
    %95 = vector.shape_cast %94 : vector<1x1x128xf32> to vector<1x128xf32>
    %96 = vector.broadcast %95 : vector<1x128xf32> to vector<128x128xf32>
    %97 = arith.addf %93, %96 : vector<128x128xf32>
    %cst_84 = arith.constant 0.000000e+00 : f32
    %98 = vector.broadcast %cst_84 : f32 to vector<128x128xf32>
    %99 = arith.maximumf %97, %98 : vector<128x128xf32>
    %c0_85 = arith.constant 0 : index
    %c0_86 = arith.constant 0 : index
    %100 = vector.load %arg9[%c0_85, %c0_86] : memref<128x128xf32, #tpu.memory_space<vmem>>, vector<128x128xf32>
    %101 = arith.truncf %99 : vector<128x128xf32> to vector<128x128xbf16>
    %c1_87 = arith.constant 1 : index
    %c0_88 = arith.constant 0 : index
    %c0_89 = arith.constant 0 : index
    %102 = vector.load %arg5[%c1_87, %c0_88, %c0_89] : memref<4x128x128xbf16, #tpu.memory_space<vmem>>, vector<1x128x128xbf16>
    %103 = vector.shape_cast %102 : vector<1x128x128xbf16> to vector<128x128xbf16>
    %cst_90 = arith.constant dense<0.000000e+00> : vector<128x128xf32>
    %104 = tpu.matmul %101, %103, %cst_90 {dimension_numbers = #tpu.dot_dimension_numbers<[1], [0], [0], [1], [0, 0, 1, 1], [], []>} : vector<128x128xbf16>, vector<128x128xbf16>, vector<128x128xf32> -> vector<128x128xf32>
    %105 = arith.addf %100, %104 : vector<128x128xf32>
    %c0_91 = arith.constant 0 : index
    %c0_92 = arith.constant 0 : index
    %106 = vector.load %arg9[%c0_91, %c0_92] : memref<128x128xf32, #tpu.memory_space<vmem>>, vector<128x128xf32>
    tpu.vector_store %arg9[%c0_91, %c0_92], %105 {strides = array<i32>} : memref<128x128xf32, #tpu.memory_space<vmem>>, vector<128x128xf32>,
    %cst_93 = arith.constant 0.000000e+00 : f32
    %107 = vector.broadcast %cst_93 : f32 to vector<128x128xf32>
    %c3_i32_94 = arith.constant 3 : i32
    %108 = arith.addi %1, %c3_i32_94 : i32
    %c-2_i32 = arith.constant -2 : i32
    %109 = arith.addi %108, %c-2_i32 : i32
    %c0_95 = arith.constant 0 : index
    %110 = arith.index_cast %109 : i32 to index
    %c1_96 = arith.constant 1 : index
    %c0_97 = arith.constant 0 : index
    %111 = vector.load %arg2[%c0_95, %110, %c1_96, %c0_97] : memref<1x22x22x4xbf16, #tpu.memory_space<vmem>>, vector<1x8x20x4xbf16>
    %112 = vector.shape_cast %111 : vector<1x8x20x4xbf16> to vector<8x20x4xbf16>
    %113 = vector.extract_strided_slice %112 {offsets = [0, 0, 0], sizes = [8, 16, 4], strides = [1, 1, 1]} : vector<8x20x4xbf16> to vector<8x16x4xbf16>
    %114 = vector.shape_cast %113 : vector<8x16x4xbf16> to vector<128x4xbf16>
    %c1_98 = arith.constant 1 : index
    %c0_99 = arith.constant 0 : index
    %c0_100 = arith.constant 0 : index
    %c0_101 = arith.constant 0 : index
    %c0_102 = arith.constant 0 : index
    %115 = vector.load %arg4[%c1_98, %c0_99, %c0_100, %c0_101, %c0_102] : memref<3x3x3x4x128xbf16, #tpu.memory_space<vmem>>, vector<1x1x1x4x128xbf16>
    %116 = vector.shape_cast %115 : vector<1x1x1x4x128xbf16> to vector<4x128xbf16>
    %cst_103 = arith.constant dense<0.000000e+00> : vector<128x128xf32>
    %117 = tpu.matmul %114, %116, %cst_103 {dimension_numbers = #tpu.dot_dimension_numbers<[1], [0], [0], [1], [0, 0, 1, 1], [], []>} : vector<128x4xbf16>, vector<4x128xbf16>, vector<128x128xf32> -> vector<128x128xf32>
    %118 = arith.addf %107, %117 : vector<128x128xf32>
    %119 = vector.extract_strided_slice %112 {offsets = [0, 2, 0], sizes = [8, 16, 4], strides = [1, 1, 1]} : vector<8x20x4xbf16> to vector<8x16x4xbf16>
    %120 = vector.shape_cast %119 : vector<8x16x4xbf16> to vector<128x4xbf16>
    %c1_104 = arith.constant 1 : index
    %c0_105 = arith.constant 0 : index
    %c1_106 = arith.constant 1 : index
    %c0_107 = arith.constant 0 : index
    %c0_108 = arith.constant 0 : index
    %121 = vector.load %arg4[%c1_104, %c0_105, %c1_106, %c0_107, %c0_108] : memref<3x3x3x4x128xbf16, #tpu.memory_space<vmem>>, vector<1x1x1x4x128xbf16>
    %122 = vector.shape_cast %121 : vector<1x1x1x4x128xbf16> to vector<4x128xbf16>
    %cst_109 = arith.constant dense<0.000000e+00> : vector<128x128xf32>
    %123 = tpu.matmul %120, %122, %cst_109 {dimension_numbers = #tpu.dot_dimension_numbers<[1], [0], [0], [1], [0, 0, 1, 1], [], []>} : vector<128x4xbf16>, vector<4x128xbf16>, vector<128x128xf32> -> vector<128x128xf32>
    %124 = arith.addf %118, %123 : vector<128x128xf32>
    %125 = vector.extract_strided_slice %112 {offsets = [0, 4, 0], sizes = [8, 16, 4], strides = [1, 1, 1]} : vector<8x20x4xbf16> to vector<8x16x4xbf16>
    %126 = vector.shape_cast %125 : vector<8x16x4xbf16> to vector<128x4xbf16>
    %c1_110 = arith.constant 1 : index
    %c0_111 = arith.constant 0 : index
    %c2_112 = arith.constant 2 : index
    %c0_113 = arith.constant 0 : index
    %c0_114 = arith.constant 0 : index
    %127 = vector.load %arg4[%c1_110, %c0_111, %c2_112, %c0_113, %c0_114] : memref<3x3x3x4x128xbf16, #tpu.memory_space<vmem>>, vector<1x1x1x4x128xbf16>
    %128 = vector.shape_cast %127 : vector<1x1x1x4x128xbf16> to vector<4x128xbf16>
    %cst_115 = arith.constant dense<0.000000e+00> : vector<128x128xf32>
    %129 = tpu.matmul %126, %128, %cst_115 {dimension_numbers = #tpu.dot_dimension_numbers<[1], [0], [0], [1], [0, 0, 1, 1], [], []>} : vector<128x4xbf16>, vector<4x128xbf16>, vector<128x128xf32> -> vector<128x128xf32>
    %130 = arith.addf %124, %129 : vector<128x128xf32>
    %c3_i32_116 = arith.constant 3 : i32
    %131 = arith.addi %1, %c3_i32_116 : i32
    %c0_i32_117 = arith.constant 0 : i32
    %132 = arith.addi %131, %c0_i32_117 : i32
    %c0_118 = arith.constant 0 : index
    %133 = arith.index_cast %132 : i32 to index
    %c1_119 = arith.constant 1 : index
    %c0_120 = arith.constant 0 : index
    %134 = vector.load %arg2[%c0_118, %133, %c1_119, %c0_120] : memref<1x22x22x4xbf16, #tpu.memory_space<vmem>>, vector<1x8x20x4xbf16>
    %135 = vector.shape_cast %134 : vector<1x8x20x4xbf16> to vector<8x20x4xbf16>
    %136 = vector.extract_strided_slice %135 {offsets = [0, 0, 0], sizes = [8, 16, 4], strides = [1, 1, 1]} : vector<8x20x4xbf16> to vector<8x16x4xbf16>
    %137 = vector.shape_cast %136 : vector<8x16x4xbf16> to vector<128x4xbf16>
    %c1_121 = arith.constant 1 : index
    %c1_122 = arith.constant 1 : index
    %c0_123 = arith.constant 0 : index
    %c0_124 = arith.constant 0 : index
    %c0_125 = arith.constant 0 : index
    %138 = vector.load %arg4[%c1_121, %c1_122, %c0_123, %c0_124, %c0_125] : memref<3x3x3x4x128xbf16, #tpu.memory_space<vmem>>, vector<1x1x1x4x128xbf16>
    %139 = vector.shape_cast %138 : vector<1x1x1x4x128xbf16> to vector<4x128xbf16>
    %cst_126 = arith.constant dense<0.000000e+00> : vector<128x128xf32>
    %140 = tpu.matmul %137, %139, %cst_126 {dimension_numbers = #tpu.dot_dimension_numbers<[1], [0], [0], [1], [0, 0, 1, 1], [], []>} : vector<128x4xbf16>, vector<4x128xbf16>, vector<128x128xf32> -> vector<128x128xf32>
    %141 = arith.addf %130, %140 : vector<128x128xf32>
    %142 = vector.extract_strided_slice %135 {offsets = [0, 2, 0], sizes = [8, 16, 4], strides = [1, 1, 1]} : vector<8x20x4xbf16> to vector<8x16x4xbf16>
    %143 = vector.shape_cast %142 : vector<8x16x4xbf16> to vector<128x4xbf16>
    %c1_127 = arith.constant 1 : index
    %c1_128 = arith.constant 1 : index
    %c1_129 = arith.constant 1 : index
    %c0_130 = arith.constant 0 : index
    %c0_131 = arith.constant 0 : index
    %144 = vector.load %arg4[%c1_127, %c1_128, %c1_129, %c0_130, %c0_131] : memref<3x3x3x4x128xbf16, #tpu.memory_space<vmem>>, vector<1x1x1x4x128xbf16>
    %145 = vector.shape_cast %144 : vector<1x1x1x4x128xbf16> to vector<4x128xbf16>
    %cst_132 = arith.constant dense<0.000000e+00> : vector<128x128xf32>
    %146 = tpu.matmul %143, %145, %cst_132 {dimension_numbers = #tpu.dot_dimension_numbers<[1], [0], [0], [1], [0, 0, 1, 1], [], []>} : vector<128x4xbf16>, vector<4x128xbf16>, vector<128x128xf32> -> vector<128x128xf32>
    %147 = arith.addf %141, %146 : vector<128x128xf32>
    %148 = vector.extract_strided_slice %135 {offsets = [0, 4, 0], sizes = [8, 16, 4], strides = [1, 1, 1]} : vector<8x20x4xbf16> to vector<8x16x4xbf16>
    %149 = vector.shape_cast %148 : vector<8x16x4xbf16> to vector<128x4xbf16>
    %c1_133 = arith.constant 1 : index
    %c1_134 = arith.constant 1 : index
    %c2_135 = arith.constant 2 : index
    %c0_136 = arith.constant 0 : index
    %c0_137 = arith.constant 0 : index
    %150 = vector.load %arg4[%c1_133, %c1_134, %c2_135, %c0_136, %c0_137] : memref<3x3x3x4x128xbf16, #tpu.memory_space<vmem>>, vector<1x1x1x4x128xbf16>
    %151 = vector.shape_cast %150 : vector<1x1x1x4x128xbf16> to vector<4x128xbf16>
    %cst_138 = arith.constant dense<0.000000e+00> : vector<128x128xf32>
    %152 = tpu.matmul %149, %151, %cst_138 {dimension_numbers = #tpu.dot_dimension_numbers<[1], [0], [0], [1], [0, 0, 1, 1], [], []>} : vector<128x4xbf16>, vector<4x128xbf16>, vector<128x128xf32> -> vector<128x128xf32>
    %153 = arith.addf %147, %152 : vector<128x128xf32>
    %c3_i32_139 = arith.constant 3 : i32
    %154 = arith.addi %1, %c3_i32_139 : i32
    %c2_i32 = arith.constant 2 : i32
    %155 = arith.addi %154, %c2_i32 : i32
    %c0_140 = arith.constant 0 : index
    %156 = arith.index_cast %155 : i32 to index
    %c1_141 = arith.constant 1 : index
    %c0_142 = arith.constant 0 : index
    %157 = vector.load %arg2[%c0_140, %156, %c1_141, %c0_142] : memref<1x22x22x4xbf16, #tpu.memory_space<vmem>>, vector<1x8x20x4xbf16>
    %158 = vector.shape_cast %157 : vector<1x8x20x4xbf16> to vector<8x20x4xbf16>
    %159 = vector.extract_strided_slice %158 {offsets = [0, 0, 0], sizes = [8, 16, 4], strides = [1, 1, 1]} : vector<8x20x4xbf16> to vector<8x16x4xbf16>
    %160 = vector.shape_cast %159 : vector<8x16x4xbf16> to vector<128x4xbf16>
    %c1_143 = arith.constant 1 : index
    %c2_144 = arith.constant 2 : index
    %c0_145 = arith.constant 0 : index
    %c0_146 = arith.constant 0 : index
    %c0_147 = arith.constant 0 : index
    %161 = vector.load %arg4[%c1_143, %c2_144, %c0_145, %c0_146, %c0_147] : memref<3x3x3x4x128xbf16, #tpu.memory_space<vmem>>, vector<1x1x1x4x128xbf16>
    %162 = vector.shape_cast %161 : vector<1x1x1x4x128xbf16> to vector<4x128xbf16>
    %cst_148 = arith.constant dense<0.000000e+00> : vector<128x128xf32>
    %163 = tpu.matmul %160, %162, %cst_148 {dimension_numbers = #tpu.dot_dimension_numbers<[1], [0], [0], [1], [0, 0, 1, 1], [], []>} : vector<128x4xbf16>, vector<4x128xbf16>, vector<128x128xf32> -> vector<128x128xf32>
    %164 = arith.addf %153, %163 : vector<128x128xf32>
    %165 = vector.extract_strided_slice %158 {offsets = [0, 2, 0], sizes = [8, 16, 4], strides = [1, 1, 1]} : vector<8x20x4xbf16> to vector<8x16x4xbf16>
    %166 = vector.shape_cast %165 : vector<8x16x4xbf16> to vector<128x4xbf16>
    %c1_149 = arith.constant 1 : index
    %c2_150 = arith.constant 2 : index
    %c1_151 = arith.constant 1 : index
    %c0_152 = arith.constant 0 : index
    %c0_153 = arith.constant 0 : index
    %167 = vector.load %arg4[%c1_149, %c2_150, %c1_151, %c0_152, %c0_153] : memref<3x3x3x4x128xbf16, #tpu.memory_space<vmem>>, vector<1x1x1x4x128xbf16>
    %168 = vector.shape_cast %167 : vector<1x1x1x4x128xbf16> to vector<4x128xbf16>
    %cst_154 = arith.constant dense<0.000000e+00> : vector<128x128xf32>
    %169 = tpu.matmul %166, %168, %cst_154 {dimension_numbers = #tpu.dot_dimension_numbers<[1], [0], [0], [1], [0, 0, 1, 1], [], []>} : vector<128x4xbf16>, vector<4x128xbf16>, vector<128x128xf32> -> vector<128x128xf32>
    %170 = arith.addf %164, %169 : vector<128x128xf32>
    %171 = vector.extract_strided_slice %158 {offsets = [0, 4, 0], sizes = [8, 16, 4], strides = [1, 1, 1]} : vector<8x20x4xbf16> to vector<8x16x4xbf16>
    %172 = vector.shape_cast %171 : vector<8x16x4xbf16> to vector<128x4xbf16>
    %c1_155 = arith.constant 1 : index
    %c2_156 = arith.constant 2 : index
    %c2_157 = arith.constant 2 : index
    %c0_158 = arith.constant 0 : index
    %c0_159 = arith.constant 0 : index
    %173 = vector.load %arg4[%c1_155, %c2_156, %c2_157, %c0_158, %c0_159] : memref<3x3x3x4x128xbf16, #tpu.memory_space<vmem>>, vector<1x1x1x4x128xbf16>
    %174 = vector.shape_cast %173 : vector<1x1x1x4x128xbf16> to vector<4x128xbf16>
    %cst_160 = arith.constant dense<0.000000e+00> : vector<128x128xf32>
    %175 = tpu.matmul %172, %174, %cst_160 {dimension_numbers = #tpu.dot_dimension_numbers<[1], [0], [0], [1], [0, 0, 1, 1], [], []>} : vector<128x4xbf16>, vector<4x128xbf16>, vector<128x128xf32> -> vector<128x128xf32>
    %176 = arith.addf %170, %175 : vector<128x128xf32>
    %c2_161 = arith.constant 2 : index
    %c0_162 = arith.constant 0 : index
    %c0_163 = arith.constant 0 : index
    %177 = vector.load %arg6[%c2_161, %c0_162, %c0_163] : memref<4x1x128xf32, #tpu.memory_space<vmem>>, vector<1x1x128xf32>
    %178 = vector.shape_cast %177 : vector<1x1x128xf32> to vector<1x128xf32>
    %179 = vector.broadcast %178 : vector<1x128xf32> to vector<128x128xf32>
    %180 = arith.addf %176, %179 : vector<128x128xf32>
    %cst_164 = arith.constant 0.000000e+00 : f32
    %181 = vector.broadcast %cst_164 : f32 to vector<128x128xf32>
    %182 = arith.maximumf %180, %181 : vector<128x128xf32>
    %c0_165 = arith.constant 0 : index
    %c0_166 = arith.constant 0 : index
    %183 = vector.load %arg9[%c0_165, %c0_166] : memref<128x128xf32, #tpu.memory_space<vmem>>, vector<128x128xf32>
    %184 = arith.truncf %182 : vector<128x128xf32> to vector<128x128xbf16>
    %c2_167 = arith.constant 2 : index
    %c0_168 = arith.constant 0 : index
    %c0_169 = arith.constant 0 : index
    %185 = vector.load %arg5[%c2_167, %c0_168, %c0_169] : memref<4x128x128xbf16, #tpu.memory_space<vmem>>, vector<1x128x128xbf16>
    %186 = vector.shape_cast %185 : vector<1x128x128xbf16> to vector<128x128xbf16>
    %cst_170 = arith.constant dense<0.000000e+00> : vector<128x128xf32>
    %187 = tpu.matmul %184, %186, %cst_170 {dimension_numbers = #tpu.dot_dimension_numbers<[1], [0], [0], [1], [0, 0, 1, 1], [], []>} : vector<128x128xbf16>, vector<128x128xbf16>, vector<128x128xf32> -> vector<128x128xf32>
    %188 = arith.addf %183, %187 : vector<128x128xf32>
    %c0_171 = arith.constant 0 : index
    %c0_172 = arith.constant 0 : index
    %189 = vector.load %arg9[%c0_171, %c0_172] : memref<128x128xf32, #tpu.memory_space<vmem>>, vector<128x128xf32>
    tpu.vector_store %arg9[%c0_171, %c0_172], %188 {strides = array<i32>} : memref<128x128xf32, #tpu.memory_space<vmem>>, vector<128x128xf32>,
    %cst_173 = arith.constant 0.000000e+00 : f32
    %190 = vector.broadcast %cst_173 : f32 to vector<128x128xf32>
    %c3_i32_174 = arith.constant 3 : i32
    %191 = arith.addi %1, %c3_i32_174 : i32
    %c-3_i32 = arith.constant -3 : i32
    %192 = arith.addi %191, %c-3_i32 : i32
    %c0_175 = arith.constant 0 : index
    %193 = arith.index_cast %192 : i32 to index
    %c0_176 = arith.constant 0 : index
    %c0_177 = arith.constant 0 : index
    %194 = vector.load %arg2[%c0_175, %193, %c0_176, %c0_177] : memref<1x22x22x4xbf16, #tpu.memory_space<vmem>>, vector<1x8x22x4xbf16>
    %195 = vector.shape_cast %194 : vector<1x8x22x4xbf16> to vector<8x22x4xbf16>
    %196 = vector.extract_strided_slice %195 {offsets = [0, 0, 0], sizes = [8, 16, 4], strides = [1, 1, 1]} : vector<8x22x4xbf16> to vector<8x16x4xbf16>
    %197 = vector.shape_cast %196 : vector<8x16x4xbf16> to vector<128x4xbf16>
    %c2_178 = arith.constant 2 : index
    %c0_179 = arith.constant 0 : index
    %c0_180 = arith.constant 0 : index
    %c0_181 = arith.constant 0 : index
    %c0_182 = arith.constant 0 : index
    %198 = vector.load %arg4[%c2_178, %c0_179, %c0_180, %c0_181, %c0_182] : memref<3x3x3x4x128xbf16, #tpu.memory_space<vmem>>, vector<1x1x1x4x128xbf16>
    %199 = vector.shape_cast %198 : vector<1x1x1x4x128xbf16> to vector<4x128xbf16>
    %cst_183 = arith.constant dense<0.000000e+00> : vector<128x128xf32>
    %200 = tpu.matmul %197, %199, %cst_183 {dimension_numbers = #tpu.dot_dimension_numbers<[1], [0], [0], [1], [0, 0, 1, 1], [], []>} : vector<128x4xbf16>, vector<4x128xbf16>, vector<128x128xf32> -> vector<128x128xf32>
    %201 = arith.addf %190, %200 : vector<128x128xf32>
    %202 = vector.extract_strided_slice %195 {offsets = [0, 3, 0], sizes = [8, 16, 4], strides = [1, 1, 1]} : vector<8x22x4xbf16> to vector<8x16x4xbf16>
    %203 = vector.shape_cast %202 : vector<8x16x4xbf16> to vector<128x4xbf16>
    %c2_184 = arith.constant 2 : index
    %c0_185 = arith.constant 0 : index
    %c1_186 = arith.constant 1 : index
    %c0_187 = arith.constant 0 : index
    %c0_188 = arith.constant 0 : index
    %204 = vector.load %arg4[%c2_184, %c0_185, %c1_186, %c0_187, %c0_188] : memref<3x3x3x4x128xbf16, #tpu.memory_space<vmem>>, vector<1x1x1x4x128xbf16>
    %205 = vector.shape_cast %204 : vector<1x1x1x4x128xbf16> to vector<4x128xbf16>
    %cst_189 = arith.constant dense<0.000000e+00> : vector<128x128xf32>
    %206 = tpu.matmul %203, %205, %cst_189 {dimension_numbers = #tpu.dot_dimension_numbers<[1], [0], [0], [1], [0, 0, 1, 1], [], []>} : vector<128x4xbf16>, vector<4x128xbf16>, vector<128x128xf32> -> vector<128x128xf32>
    %207 = arith.addf %201, %206 : vector<128x128xf32>
    %208 = vector.extract_strided_slice %195 {offsets = [0, 6, 0], sizes = [8, 16, 4], strides = [1, 1, 1]} : vector<8x22x4xbf16> to vector<8x16x4xbf16>
    %209 = vector.shape_cast %208 : vector<8x16x4xbf16> to vector<128x4xbf16>
    %c2_190 = arith.constant 2 : index
    %c0_191 = arith.constant 0 : index
    %c2_192 = arith.constant 2 : index
    %c0_193 = arith.constant 0 : index
    %c0_194 = arith.constant 0 : index
    %210 = vector.load %arg4[%c2_190, %c0_191, %c2_192, %c0_193, %c0_194] : memref<3x3x3x4x128xbf16, #tpu.memory_space<vmem>>, vector<1x1x1x4x128xbf16>
    %211 = vector.shape_cast %210 : vector<1x1x1x4x128xbf16> to vector<4x128xbf16>
    %cst_195 = arith.constant dense<0.000000e+00> : vector<128x128xf32>
    %212 = tpu.matmul %209, %211, %cst_195 {dimension_numbers = #tpu.dot_dimension_numbers<[1], [0], [0], [1], [0, 0, 1, 1], [], []>} : vector<128x4xbf16>, vector<4x128xbf16>, vector<128x128xf32> -> vector<128x128xf32>
    %213 = arith.addf %207, %212 : vector<128x128xf32>
    %c3_i32_196 = arith.constant 3 : i32
    %214 = arith.addi %1, %c3_i32_196 : i32
    %c0_i32_197 = arith.constant 0 : i32
    %215 = arith.addi %214, %c0_i32_197 : i32
    %c0_198 = arith.constant 0 : index
    %216 = arith.index_cast %215 : i32 to index
    %c0_199 = arith.constant 0 : index
    %c0_200 = arith.constant 0 : index
    %217 = vector.load %arg2[%c0_198, %216, %c0_199, %c0_200] : memref<1x22x22x4xbf16, #tpu.memory_space<vmem>>, vector<1x8x22x4xbf16>
    %218 = vector.shape_cast %217 : vector<1x8x22x4xbf16> to vector<8x22x4xbf16>
    %219 = vector.extract_strided_slice %218 {offsets = [0, 0, 0], sizes = [8, 16, 4], strides = [1, 1, 1]} : vector<8x22x4xbf16> to vector<8x16x4xbf16>
    %220 = vector.shape_cast %219 : vector<8x16x4xbf16> to vector<128x4xbf16>
    %c2_201 = arith.constant 2 : index
    %c1_202 = arith.constant 1 : index
    %c0_203 = arith.constant 0 : index
    %c0_204 = arith.constant 0 : index
    %c0_205 = arith.constant 0 : index
    %221 = vector.load %arg4[%c2_201, %c1_202, %c0_203, %c0_204, %c0_205] : memref<3x3x3x4x128xbf16, #tpu.memory_space<vmem>>, vector<1x1x1x4x128xbf16>
    %222 = vector.shape_cast %221 : vector<1x1x1x4x128xbf16> to vector<4x128xbf16>
    %cst_206 = arith.constant dense<0.000000e+00> : vector<128x128xf32>
    %223 = tpu.matmul %220, %222, %cst_206 {dimension_numbers = #tpu.dot_dimension_numbers<[1], [0], [0], [1], [0, 0, 1, 1], [], []>} : vector<128x4xbf16>, vector<4x128xbf16>, vector<128x128xf32> -> vector<128x128xf32>
    %224 = arith.addf %213, %223 : vector<128x128xf32>
    %225 = vector.extract_strided_slice %218 {offsets = [0, 3, 0], sizes = [8, 16, 4], strides = [1, 1, 1]} : vector<8x22x4xbf16> to vector<8x16x4xbf16>
    %226 = vector.shape_cast %225 : vector<8x16x4xbf16> to vector<128x4xbf16>
    %c2_207 = arith.constant 2 : index
    %c1_208 = arith.constant 1 : index
    %c1_209 = arith.constant 1 : index
    %c0_210 = arith.constant 0 : index
    %c0_211 = arith.constant 0 : index
    %227 = vector.load %arg4[%c2_207, %c1_208, %c1_209, %c0_210, %c0_211] : memref<3x3x3x4x128xbf16, #tpu.memory_space<vmem>>, vector<1x1x1x4x128xbf16>
    %228 = vector.shape_cast %227 : vector<1x1x1x4x128xbf16> to vector<4x128xbf16>
    %cst_212 = arith.constant dense<0.000000e+00> : vector<128x128xf32>
    %229 = tpu.matmul %226, %228, %cst_212 {dimension_numbers = #tpu.dot_dimension_numbers<[1], [0], [0], [1], [0, 0, 1, 1], [], []>} : vector<128x4xbf16>, vector<4x128xbf16>, vector<128x128xf32> -> vector<128x128xf32>
    %230 = arith.addf %224, %229 : vector<128x128xf32>
    %231 = vector.extract_strided_slice %218 {offsets = [0, 6, 0], sizes = [8, 16, 4], strides = [1, 1, 1]} : vector<8x22x4xbf16> to vector<8x16x4xbf16>
    %232 = vector.shape_cast %231 : vector<8x16x4xbf16> to vector<128x4xbf16>
    %c2_213 = arith.constant 2 : index
    %c1_214 = arith.constant 1 : index
    %c2_215 = arith.constant 2 : index
    %c0_216 = arith.constant 0 : index
    %c0_217 = arith.constant 0 : index
    %233 = vector.load %arg4[%c2_213, %c1_214, %c2_215, %c0_216, %c0_217] : memref<3x3x3x4x128xbf16, #tpu.memory_space<vmem>>, vector<1x1x1x4x128xbf16>
    %234 = vector.shape_cast %233 : vector<1x1x1x4x128xbf16> to vector<4x128xbf16>
    %cst_218 = arith.constant dense<0.000000e+00> : vector<128x128xf32>
    %235 = tpu.matmul %232, %234, %cst_218 {dimension_numbers = #tpu.dot_dimension_numbers<[1], [0], [0], [1], [0, 0, 1, 1], [], []>} : vector<128x4xbf16>, vector<4x128xbf16>, vector<128x128xf32> -> vector<128x128xf32>
    %236 = arith.addf %230, %235 : vector<128x128xf32>
    %c3_i32_219 = arith.constant 3 : i32
    %237 = arith.addi %1, %c3_i32_219 : i32
    %c3_i32_220 = arith.constant 3 : i32
    %238 = arith.addi %237, %c3_i32_220 : i32
    %c0_221 = arith.constant 0 : index
    %239 = arith.index_cast %238 : i32 to index
    %c0_222 = arith.constant 0 : index
    %c0_223 = arith.constant 0 : index
    %240 = vector.load %arg2[%c0_221, %239, %c0_222, %c0_223] : memref<1x22x22x4xbf16, #tpu.memory_space<vmem>>, vector<1x8x22x4xbf16>
    %241 = vector.shape_cast %240 : vector<1x8x22x4xbf16> to vector<8x22x4xbf16>
    %242 = vector.extract_strided_slice %241 {offsets = [0, 0, 0], sizes = [8, 16, 4], strides = [1, 1, 1]} : vector<8x22x4xbf16> to vector<8x16x4xbf16>
    %243 = vector.shape_cast %242 : vector<8x16x4xbf16> to vector<128x4xbf16>
    %c2_224 = arith.constant 2 : index
    %c2_225 = arith.constant 2 : index
    %c0_226 = arith.constant 0 : index
    %c0_227 = arith.constant 0 : index
    %c0_228 = arith.constant 0 : index
    %244 = vector.load %arg4[%c2_224, %c2_225, %c0_226, %c0_227, %c0_228] : memref<3x3x3x4x128xbf16, #tpu.memory_space<vmem>>, vector<1x1x1x4x128xbf16>
    %245 = vector.shape_cast %244 : vector<1x1x1x4x128xbf16> to vector<4x128xbf16>
    %cst_229 = arith.constant dense<0.000000e+00> : vector<128x128xf32>
    %246 = tpu.matmul %243, %245, %cst_229 {dimension_numbers = #tpu.dot_dimension_numbers<[1], [0], [0], [1], [0, 0, 1, 1], [], []>} : vector<128x4xbf16>, vector<4x128xbf16>, vector<128x128xf32> -> vector<128x128xf32>
    %247 = arith.addf %236, %246 : vector<128x128xf32>
    %248 = vector.extract_strided_slice %241 {offsets = [0, 3, 0], sizes = [8, 16, 4], strides = [1, 1, 1]} : vector<8x22x4xbf16> to vector<8x16x4xbf16>
    %249 = vector.shape_cast %248 : vector<8x16x4xbf16> to vector<128x4xbf16>
    %c2_230 = arith.constant 2 : index
    %c2_231 = arith.constant 2 : index
    %c1_232 = arith.constant 1 : index
    %c0_233 = arith.constant 0 : index
    %c0_234 = arith.constant 0 : index
    %250 = vector.load %arg4[%c2_230, %c2_231, %c1_232, %c0_233, %c0_234] : memref<3x3x3x4x128xbf16, #tpu.memory_space<vmem>>, vector<1x1x1x4x128xbf16>
    %251 = vector.shape_cast %250 : vector<1x1x1x4x128xbf16> to vector<4x128xbf16>
    %cst_235 = arith.constant dense<0.000000e+00> : vector<128x128xf32>
    %252 = tpu.matmul %249, %251, %cst_235 {dimension_numbers = #tpu.dot_dimension_numbers<[1], [0], [0], [1], [0, 0, 1, 1], [], []>} : vector<128x4xbf16>, vector<4x128xbf16>, vector<128x128xf32> -> vector<128x128xf32>
    %253 = arith.addf %247, %252 : vector<128x128xf32>
    %254 = vector.extract_strided_slice %241 {offsets = [0, 6, 0], sizes = [8, 16, 4], strides = [1, 1, 1]} : vector<8x22x4xbf16> to vector<8x16x4xbf16>
    %255 = vector.shape_cast %254 : vector<8x16x4xbf16> to vector<128x4xbf16>
    %c2_236 = arith.constant 2 : index
    %c2_237 = arith.constant 2 : index
    %c2_238 = arith.constant 2 : index
    %c0_239 = arith.constant 0 : index
    %c0_240 = arith.constant 0 : index
    %256 = vector.load %arg4[%c2_236, %c2_237, %c2_238, %c0_239, %c0_240] : memref<3x3x3x4x128xbf16, #tpu.memory_space<vmem>>, vector<1x1x1x4x128xbf16>
    %257 = vector.shape_cast %256 : vector<1x1x1x4x128xbf16> to vector<4x128xbf16>
    %cst_241 = arith.constant dense<0.000000e+00> : vector<128x128xf32>
    %258 = tpu.matmul %255, %257, %cst_241 {dimension_numbers = #tpu.dot_dimension_numbers<[1], [0], [0], [1], [0, 0, 1, 1], [], []>} : vector<128x4xbf16>, vector<4x128xbf16>, vector<128x128xf32> -> vector<128x128xf32>
    %259 = arith.addf %253, %258 : vector<128x128xf32>
    %c3_242 = arith.constant 3 : index
    %c0_243 = arith.constant 0 : index
    %c0_244 = arith.constant 0 : index
    %260 = vector.load %arg6[%c3_242, %c0_243, %c0_244] : memref<4x1x128xf32, #tpu.memory_space<vmem>>, vector<1x1x128xf32>
    %261 = vector.shape_cast %260 : vector<1x1x128xf32> to vector<1x128xf32>
    %262 = vector.broadcast %261 : vector<1x128xf32> to vector<128x128xf32>
    %263 = arith.addf %259, %262 : vector<128x128xf32>
    %cst_245 = arith.constant 0.000000e+00 : f32
    %264 = vector.broadcast %cst_245 : f32 to vector<128x128xf32>
    %265 = arith.maximumf %263, %264 : vector<128x128xf32>
    %c0_246 = arith.constant 0 : index
    %c0_247 = arith.constant 0 : index
    %266 = vector.load %arg9[%c0_246, %c0_247] : memref<128x128xf32, #tpu.memory_space<vmem>>, vector<128x128xf32>
    %267 = arith.truncf %265 : vector<128x128xf32> to vector<128x128xbf16>
    %c3_248 = arith.constant 3 : index
    %c0_249 = arith.constant 0 : index
    %c0_250 = arith.constant 0 : index
    %268 = vector.load %arg5[%c3_248, %c0_249, %c0_250] : memref<4x128x128xbf16, #tpu.memory_space<vmem>>, vector<1x128x128xbf16>
    %269 = vector.shape_cast %268 : vector<1x128x128xbf16> to vector<128x128xbf16>
    %cst_251 = arith.constant dense<0.000000e+00> : vector<128x128xf32>
    %270 = tpu.matmul %267, %269, %cst_251 {dimension_numbers = #tpu.dot_dimension_numbers<[1], [0], [0], [1], [0, 0, 1, 1], [], []>} : vector<128x128xbf16>, vector<128x128xbf16>, vector<128x128xf32> -> vector<128x128xf32>
    %271 = arith.addf %266, %270 : vector<128x128xf32>
    %c0_252 = arith.constant 0 : index
    %c0_253 = arith.constant 0 : index
    %272 = vector.load %arg9[%c0_252, %c0_253] : memref<128x128xf32, #tpu.memory_space<vmem>>, vector<128x128xf32>
    tpu.vector_store %arg9[%c0_252, %c0_253], %271 {strides = array<i32>} : memref<128x128xf32, #tpu.memory_space<vmem>>, vector<128x128xf32>,
    %c0_254 = arith.constant 0 : index
    %c0_255 = arith.constant 0 : index
    %273 = vector.load %arg9[%c0_254, %c0_255] : memref<128x128xf32, #tpu.memory_space<vmem>>, vector<128x128xf32>
    %cst_256 = arith.constant 0.000000e+00 : f32
    %274 = vector.broadcast %cst_256 : f32 to vector<128x128xf32>
    %275 = arith.maximumf %273, %274 : vector<128x128xf32>
    %276 = vector.shape_cast %275 : vector<128x128xf32> to vector<8x16x128xf32>
    %c0_257 = arith.constant 0 : index
    %c0_258 = arith.constant 0 : index
    %c0_259 = arith.constant 0 : index
    %c0_260 = arith.constant 0 : index
    %277 = vector.load %arg8[%c0_257, %c0_258, %c0_259, %c0_260] : memref<1x8x16x128xf32, #tpu.memory_space<vmem>>, vector<1x8x16x128xf32>
    %278 = vector.shape_cast %277 : vector<1x8x16x128xf32> to vector<8x16x128xf32>
    %279 = vector.shape_cast %276 : vector<8x16x128xf32> to vector<1x8x16x128xf32>
    tpu.vector_store %arg8[%c0_257, %c0_258, %c0_259, %c0_260], %279 {strides = array<i32>} : memref<1x8x16x128xf32, #tpu.memory_space<vmem>>, vector<1x8x16x128xf32>,
    return
  }
  func.func @transform_0(%arg0: i32, %arg1: i32) -> (i32, i32, i32, i32) {
    %c0_i32 = arith.constant 0 : i32
    %c0_i32_0 = arith.constant 0 : i32
    %c0_i32_1 = arith.constant 0 : i32
    %c0_i32_2 = arith.constant 0 : i32
    return %arg0, %c0_i32, %c0_i32_0, %c0_i32_1 : i32, i32, i32, i32
  }
  func.func @transform_1(%arg0: i32, %arg1: i32) -> (i32, i32) {
    %c0_i32 = arith.constant 0 : i32
    %c0_i32_0 = arith.constant 0 : i32
    %c0_i32_1 = arith.constant 0 : i32
    return %c0_i32, %c0_i32_0 : i32, i32
  }
  func.func @transform_2(%arg0: i32, %arg1: i32) -> (i32, i32, i32, i32, i32) {
    %c0_i32 = arith.constant 0 : i32
    %c0_i32_0 = arith.constant 0 : i32
    %c0_i32_1 = arith.constant 0 : i32
    %c0_i32_2 = arith.constant 0 : i32
    %c0_i32_3 = arith.constant 0 : i32
    %c0_i32_4 = arith.constant 0 : i32
    return %c0_i32, %c0_i32_0, %c0_i32_1, %c0_i32_2, %c0_i32_3 : i32, i32, i32, i32, i32
  }
  func.func @transform_3(%arg0: i32, %arg1: i32) -> (i32, i32, i32) {
    %c0_i32 = arith.constant 0 : i32
    %c0_i32_0 = arith.constant 0 : i32
    %c0_i32_1 = arith.constant 0 : i32
    %c0_i32_2 = arith.constant 0 : i32
    return %c0_i32, %c0_i32_0, %c0_i32_1 : i32, i32, i32
  }
  func.func @transform_4(%arg0: i32, %arg1: i32) -> (i32, i32, i32) {
    %c0_i32 = arith.constant 0 : i32
    %c0_i32_0 = arith.constant 0 : i32
    %c0_i32_1 = arith.constant 0 : i32
    %c0_i32_2 = arith.constant 0 : i32
    return %c0_i32, %c0_i32_0, %c0_i32_1 : i32, i32, i32
  }
  func.func @transform_5(%arg0: i32, %arg1: i32) -> (i32, i32, i32) {
    %c0_i32 = arith.constant 0 : i32
    %c0_i32_0 = arith.constant 0 : i32
    %c0_i32_1 = arith.constant 0 : i32
    return %arg0, %c0_i32, %c0_i32_0 : i32, i32, i32
  }
  func.func @transform_6(%arg0: i32, %arg1: i32) -> (i32, i32, i32, i32) {
    %c0_i32 = arith.constant 0 : i32
    %c0_i32_0 = arith.constant 0 : i32
    %c0_i32_1 = arith.constant 0 : i32
    return %arg0, %arg1, %c0_i32, %c0_i32_0 : i32, i32, i32, i32
  }
}

</mosaic_0001>

<bundles_post_ra>
// kernel: aspp_forward.1
= control target key start
LH: loop header
LB: loop body
LE: loop exit
PB: predicated region body
PF: predicated region fallthrough
CT: control target
= control target key end

     0   :  { %s11799_s21 = smov 0   ;;  %s11801_s22 = smov 0   ;;  %s16980_s0 = inlined_call_operand.vmem [shape: bf16[2,22,22,4], index: 0, kind: input, shape index: {}]   ;;  %s16981_s1 = inlined_call_operand.vmem [shape: bf16[4,128], index: 1, kind: input, shape index: {}]   ;;  %s16982_s2 = inlined_call_operand.vmem [shape: bf16[3,3,3,4,128], index: 2, kind: input, shape index: {}]   ;;  %s16983_s3 = inlined_call_operand.vmem [shape: bf16[4,128,128], index: 3, kind: input, shape index: {}]   ;;  %s16984_s4 = inlined_call_operand.vmem [shape: f32[4,1,128], index: 4, kind: input, shape index: {}]   ;;  %s16985_s5 = inlined_call_operand.vmem [shape: f32[2,1,128], index: 5, kind: input, shape index: {}]   ;;  %s16986_s6 = inlined_call_operand.vmem [shape: f32[2,16,16,128], index: 6, kind: output, shape index: {}]  }
   0x1   :  { %s11803_s23 = smov 0   ;;  %s11805_s24 = smov 0  }
   0x2   :  { %s11807_s25 = smov 0  }
   0x3 LB: > { %s25_s26 = sadd.s32 1, %s11754_s23  ;;  %s28_s27 = sadd.s32 1, %s11758_s24  ;;  %s11762_s25 = sphi %s11807_s25, %s16_s25   ;;  %s11758_s24 = sphi %s11805_s24, %s17864_s24   ;;  %s11754_s23 = sphi %s11803_s23, %s17863_s23   ;;  %s11750_s22 = sphi %s11801_s22, %s17862_s22   ;;  %s11746_s21 = sphi %s11799_s21, %s17861_s21  }
   0x4   : > { %p26_p0 = scmp.ge.s32.totalorder %s25_s26, 2  ;;  %p9760_p1 = scmp.ge.s32.totalorder %s11762_s25, 1 }
   0x5   : > { %p234_p2 = scmp.lt.s32.totalorder %s11762_s25, 5 }
   0x6   : > { %s17866_s26 = smov (%p26_p0, %s25_s26), 0  ;;  %s17868_s27 = smov (!%p26_p0, %s28_s27), %s11758_s24 }
   0x7   : > { %p235_p3 = pnand %p9760_p1, %p234_p2  ;;  %p30_p4 = scmp.ge.s32.totalorder %s17868_s27, 2 }
   0x9   : > { %s17870_s27 = smov (%p30_p4, %s17868_s27), 0  ;;  %238 = sbr.rel (%p235_p3) target bundleno = 1543 (0x607), region = 44 }
   0xe   : > { %v548_v0 = vld [vmem:[%s16981_s1] sm:$0x3]  ;;  %vm605_vm0 = vcmask 1041408   ;;  %p272_p5 = scmp.lt.s32.totalorder %s11750_s22, 1  ;;  %v11839_v2 = vld [vmem:[%s16983_s3 + $0x38] sm:$0xff]   ;;  %s9768_s8 = smul.u32 96, %s11746_s21 }
   0xf   : > { %11598 = vmatprep.subr.msk.bf16.mxu0 %vm605_vm0, %v548_v0  ;;  %v607_v1 = vsel %vm605_vm0, %v548_v0, 0  ;;  %vm321_vm1 = vsmask.f32 2304  ;;  %v11848_v3 = vld [vmem:[%s16983_s3 + $0x30] sm:$0xff]   ;;  %11582 = vmatprep.subr.bf16.mxu1 %v11839_v2  ;;  %vm322_vm2 = vsmask.f32 6416 }
  0x10   : > { %10951 = vmatpush3.bf16.msra.mxu0 %v607_v1  ;;  %s17872_s22 = smov (!%p272_p5, %s11750_s22), 1  ;;  %11590 = vmatpush3.bf16.msra.mxu1 %v11839_v2  ;;  %v11860_v4 = vld [vmem:[%s16983_s3 + $0x28] sm:$0xff]   ;;  %vm580_vm3 = vcmask 31744   ;;  %v11874_v16 = vld [vmem:[%s16983_s3 + $0x20] sm:$0xff]   ;;  %vm11882_vm4 = vmor %vm321_vm1, %vm322_vm2  ;;  %v17204_v31 = vmov 0  ;;  %vm982_vm5 = vcmask 1042432  }
  0x11   : > { %10968 = vmatprep.subr.bf16.mxu0 %v11839_v2  ;;  %s11626_s11 = smul.u32 264, %s17872_s22  ;;  %11583 = vmatprep.subr.bf16.mxu1 %v11848_v3  ;;  %v17205_v31 = vsel %vm11882_vm4, 4294967295, %v17204_v31  ;;  %v11889_v40 = vld [vmem:[%s16983_s3 + $0x18] sm:$0xff]   ;;  %vm983_vm6 = vcmask 1046532   ;;  %vm1565_vm8 = vcmask 1045508   ;;  %s15196_s7 = scalar_lea.vmem %s16985_s5, %s17872_s22  ;;  %vm7444_vm1 = vcmask 1040384  }
  0x12   : > { %17206 = vst [vmem:[#allocation3_spill] sm:$0xff] %v17205_v31  ;;  %vm12146_vm7 = vmor %vm982_vm5, %vm983_vm6  ;;  %vm4458_vm10 = vsmask.f32 1280  ;;  %vm4459_vm11 = vsmask.f32 5392  ;;  %vm7445_vm2 = vcmask 1044484  }
  0x13   : > { %s276_s14 = scalar_lea.vmem %s16980_s0, %s11626_s11  ;;  %vm12238_vm9 = vmor %vm605_vm0, %vm1565_vm8  ;;  %vm3843_vm13 = vsmask.f32 3328  ;;  %vm3844_vm14 = vsmask.f32 7440  ;;  %s9762_s13 = sshll.u32 %s11746_s21, 3 }
  0x14   : > { %s11862_s17 = scalar_lea.vmem %s276_s14, %s9768_s8  ;;  %11591 = vmatpush3.bf16.msra.mxu1 %v11848_v3  ;;  %vm13830_vm12 = vmor %vm4458_vm10, %vm4459_vm11  ;;  %p283_p6 = scmp.lt.s32.totalorder %s9762_s13, 15 }
  0x15   : > { %v9769_v5 = vld [vmem:[%s11862_s17 + $0x24] sm:$0xe]  ;;  %v9770_v6 = vld [vmem:[%s11862_s17 + $0x28] sm:$0xf]  ;;  %v9771_v7 = vld [vmem:[%s11862_s17 + $0x2c] sm:$0x3]  ;;  %11584 = vmatprep.subr.bf16.mxu1 %v11860_v4 }
  0x16   : > { %v325_v8 = vshrl.u32 %v9769_v5, 16  ;;  %v328_v9 = vshll.u32 %v9769_v5, 16  ;;  %v334_v10 = vshrl.u32 %v9770_v6, 16  ;;  %v337_v11 = vshll.u32 %v9770_v6, 16  ;;  %v9772_v12 = vld [vmem:[%s11862_s17 + $0x30] sm:$0xe]  ;;  %vm13874_vm15 = vmor %vm3843_vm13, %vm3844_vm14 }
  0x17   : > { %v344_v13 = vshrl.u32 %v9771_v7, 16  ;;  %v347_v14 = vshll.u32 %v9771_v7, 16  ;;  %v9773_v15 = vld [vmem:[%s11862_s17 + $0x34] sm:$0xf]  ;;  %v9774_v21 = vld [vmem:[%s11862_s17 + $0x38] sm:$0x3]  ;;  %vm15618_vm5 = vmor %vm7444_vm1, %vm7445_vm2 }
  0x18   : > { %v327_v17 = vrot.slane %v325_v8, 5  ;;  %v330_v18 = vrot.slane %v328_v9, 6  ;;  %v336_v19 = vrot.slane %v334_v10, 5  ;;  %v339_v20 = vrot.slane %v337_v11, 6  ;;  %11592 = vmatpush3.bf16.msra.mxu1 %v11860_v4  ;;  %v9775_v30 = vld [vmem:[%s11862_s17 + $0x3c] sm:$0xe] }
  0x19   : > { %v346_v22 = vrot.slane %v344_v13, 5  ;;  %v349_v23 = vrot.slane %v347_v14, 6  ;;  %v353_v24 = vshrl.u32 %v9772_v12, 16  ;;  %v356_v25 = vshll.u32 %v9772_v12, 16  ;;  %11585 = vmatprep.subr.bf16.mxu1 %v11874_v16  ;;  %v9776_v44 = vld [vmem:[%s11862_s17 + $0x40] sm:$0xf] }
  0x1a   : > { %v331_v26 = vor.u32 %v330_v18, %v327_v17  ;;  %v340_v27 = vor.u32 %v339_v20, %v336_v19  ;;  %v362_v28 = vshrl.u32 %v9773_v15, 16  ;;  %v365_v29 = vshll.u32 %v9773_v15, 16  ;;  %v9777_v49 = vld [vmem:[%s11862_s17 + $0x44] sm:$0x3]  ;;  %v9778_v55 = vld [vmem:[%s11862_s17 + $0x48] sm:$0xe] }
  0x1b   : > { %v350_v32 = vor.u32 %v349_v23, %v346_v22  ;;  %v355_v33 = vrot.slane %v353_v24, 5  ;;  %v358_v34 = vrot.slane %v356_v25, 6  ;;  %v372_v35 = vshrl.u32 %v9774_v21, 16  ;;  %v9779_v6 = vld [vmem:[%s11862_s17 + $0x4c] sm:$0xf]  ;;  %s17874_s13 = smov (!%p283_p6, %s9762_s13), 15 }
  0x1c   : > { %v332_v36 = vrot.slane %v331_v26, 4  ;;  %v342_v37 = vrot.slane %v340_v27, 4  ;;  %v364_v38 = vrot.slane %v362_v28, 5  ;;  %v367_v39 = vrot.slane %v365_v29, 6  ;;  %11593 = vmatpush3.bf16.msra.mxu1 %v11874_v16  ;;  %v9780_v11 = vld [vmem:[%s11862_s17 + $0x50] sm:$0x3] }
  0x1d   : > { %v359_v41 = vor.u32 %v358_v34, %v355_v33  ;;  %v374_v42 = vrot.slane %v372_v35, 5  ;;  %v375_v43 = vshll.u32 %v9774_v21, 16  ;;  %v381_v45 = vshrl.u32 %v9775_v30, 16  ;;  %11586 = vmatprep.subr.bf16.mxu1 %v11889_v40  ;;  %v9781_v18 = vld [vmem:[%s11862_s17 + $0x54] sm:$0xe]  ;;  %s9763_s14 = sshll.u32 %s17874_s13, 1 }
  0x1e   : > { %v341_v46 = vsel %vm11882_vm4, %v332_v36, %v340_v27  ;;  %v351_v47 = vsel %vm11882_vm4, %v342_v37, %v350_v32  ;;  %v368_v48 = vor.u32 %v367_v39, %v364_v38  ;;  %v384_v50 = vshll.u32 %v9775_v30, 16  ;;  %v9782_v23 = vld [vmem:[%s11862_s17 + $0x58] sm:$0xf]  ;;  %v9783_v28 = vld [vmem:[%s11862_s17 + $0x5c] sm:$0x3]  ;;  %s9764_s15 = sshll.u32 %s17872_s22, 5 }
  0x1f   : > { %v9794_v51 = vcombine.low %v341_v46, %v351_v47  ;;  %v360_v52 = vrot.slane %v359_v41, 4  ;;  %v377_v53 = vrot.slane %v375_v43, 6  ;;  %v383_v54 = vrot.slane %v381_v45, 5  ;;  %v9784_v34 = vld [vmem:[%s11862_s17 + $0x60] sm:$0xe]  ;;  %s287_s16 = sadd.s32 %s9764_s15, %s9763_s14 }
  0x20   : > { %v370_v56 = vrot.slane %v368_v48, 4  ;;  %v386_v57 = vrot.slane %v384_v50, 6  ;;  %v390_v58 = vshrl.u32 %v9776_v44, 16  ;;  %v393_v59 = vshll.u32 %v9776_v44, 16  ;;  %11594 = vmatpush3.bf16.msra.mxu1 %v11889_v40  ;;  %s9765_s18 = sshll.u32 %s287_s16, 3 }
  0x21   : > { %10952 = vmatprep.mubr.msk.bf16.mxu0 %vm580_vm3, %v9794_v51  ;;  %v369_v60 = vsel %vm11882_vm4, %v360_v52, %v368_v48  ;;  %v378_v61 = vor.u32 %v377_v53, %v374_v42  ;;  %v400_v62 = vshrl.u32 %v9777_v49, 16  ;;  %v403_v63 = vshll.u32 %v9777_v49, 16  ;;  %v9785_v48 = vld [vmem:[%s11862_s17 + $0x64] sm:$0xf]  ;;  %v9786_v52 = vld [vmem:[%s11862_s17 + $0x68] sm:$0x3]  ;;  %s16925_s28 = scalar_lea.vmem %s16986_s6, %s9765_s18 }
  0x22   : > { %v387_v0 = vor.u32 %v386_v57, %v383_v54  ;;  %v392_v1 = vrot.slane %v390_v58, 5  ;;  %v395_v5 = vrot.slane %v393_v59, 6  ;;  %v409_v7 = vshrl.u32 %v9778_v55, 16  ;;  %v9787_v57 = vld [vmem:[%s11862_s17 + $0x6c] sm:$0xe] }
  0x23   : > { %v379_v8 = vsel %vm11882_vm4, %v370_v56, %v378_v61  ;;  %v402_v9 = vrot.slane %v400_v62, 5  ;;  %v405_v10 = vrot.slane %v403_v63, 6  ;;  %v412_v12 = vshll.u32 %v9778_v55, 16 }
  0x24   : > { %v9795_v13 = vcombine.low %v369_v60, %v379_v8  ;;  %v388_v14 = vrot.slane %v387_v0, 4  ;;  %v396_v15 = vor.u32 %v395_v5, %v392_v1  ;;  %v411_v17 = vrot.slane %v409_v7, 5  ;;  %v9788_v8 = vld [vmem:[%s11862_s17 + $0x70] sm:$0xf] }
  0x25   : > { %v406_v19 = vor.u32 %v405_v10, %v402_v9  ;;  %v414_v20 = vrot.slane %v412_v12, 6  ;;  %v418_v21 = vshrl.u32 %v9779_v6, 16  ;;  %v421_v22 = vshll.u32 %v9779_v6, 16 }
  0x26   : > { %10953 = vmatmul.mubr.msk.bf16.vlgmr.msra.gmra.mxu0 %vm580_vm3, %v9795_v13  ;;  %v397_v24 = vsel %vm11882_vm4, %v388_v14, %v396_v15  ;;  %v398_v25 = vrot.slane %v396_v15, 4  ;;  %v428_v26 = vshrl.u32 %v9780_v11, 16  ;;  %v431_v27 = vshll.u32 %v9780_v11, 16  ;;  %v9789_v13 = vld [vmem:[%s11862_s17 + $0x74] sm:$0x3] }
  0x27   : > { %v415_v29 = vor.u32 %v414_v20, %v411_v17  ;;  %v420_v30 = vrot.slane %v418_v21, 5  ;;  %v423_v32 = vrot.slane %v421_v22, 6  ;;  %v437_v33 = vshrl.u32 %v9781_v18, 16  ;;  %10969 = vmatpush3.bf16.msra.mxu0 %v11839_v2 }
  0x28   : > { %v407_v35 = vsel %vm11882_vm4, %v398_v25, %v406_v19  ;;  %v430_v36 = vrot.slane %v428_v26, 5  ;;  %v433_v37 = vrot.slane %v431_v27, 6  ;;  %v440_v38 = vshll.u32 %v9781_v18, 16  ;;  %10970 = vmatprep.subr.bf16.mxu0 %v11848_v3  ;;  %v9790_v19 = vld [vmem:[%s11862_s17 + $0x78] sm:$0xe] }
  0x29   : > { %v9796_v39 = vcombine.low %v397_v24, %v407_v35  ;;  %v416_v41 = vrot.slane %v415_v29, 4  ;;  %v424_v42 = vor.u32 %v423_v32, %v420_v30  ;;  %v439_v43 = vrot.slane %v437_v33, 5  ;;  %v9791_v32 = vld [vmem:[%s11862_s17 + $0x7c] sm:$0xf] }
  0x2a   : > { %v434_v44 = vor.u32 %v433_v37, %v430_v36  ;;  %v442_v45 = vrot.slane %v440_v38, 6  ;;  %v446_v46 = vshrl.u32 %v9782_v23, 16  ;;  %v449_v47 = vshll.u32 %v9782_v23, 16  ;;  %v9792_v37 = vld [vmem:[%s11862_s17 + $0x80] sm:$0x3] }
  0x2b   : > { %10956 = vmatprep.mubr.msk.bf16.mxu0 %vm580_vm3, %v9796_v39  ;;  %v425_v2 = vsel %vm11882_vm4, %v416_v41, %v424_v42  ;;  %v426_v49 = vrot.slane %v424_v42, 4  ;;  %v456_v50 = vshrl.u32 %v9783_v28, 16  ;;  %v459_v51 = vshll.u32 %v9783_v28, 16  ;;  %10971 = vmatpush3.bf16.msra.mxu0 %v11848_v3 }
  0x2c   : > { %v443_v53 = vor.u32 %v442_v45, %v439_v43  ;;  %v448_v54 = vrot.slane %v446_v46, 5  ;;  %v451_v55 = vrot.slane %v449_v47, 6  ;;  %v465_v56 = vshrl.u32 %v9784_v34, 16  ;;  %10972 = vmatprep.subr.bf16.mxu0 %v11860_v4 }
  0x2d   : > { %v435_v58 = vsel %vm11882_vm4, %v426_v49, %v434_v44  ;;  %v458_v59 = vrot.slane %v456_v50, 5  ;;  %v461_v60 = vrot.slane %v459_v51, 6  ;;  %v468_v61 = vshll.u32 %v9784_v34, 16 }
  0x2e   : > { %v9797_v62 = vcombine.low %v425_v2, %v435_v58  ;;  %v444_v63 = vrot.slane %v443_v53, 4  ;;  %v452_v0 = vor.u32 %v451_v55, %v448_v54  ;;  %v467_v1 = vrot.slane %v465_v56, 5 }
  0x2f   : > { %v462_v3 = vor.u32 %v461_v60, %v458_v59  ;;  %v470_v5 = vrot.slane %v468_v61, 6  ;;  %v474_v6 = vshrl.u32 %v9785_v48, 16  ;;  %v477_v7 = vshll.u32 %v9785_v48, 16  ;;  %10973 = vmatpush3.bf16.msra.mxu0 %v11860_v4 }
  0x30   : > { %10957 = vmatmul.mubr.msk.bf16.gmra.mxu0 %vm580_vm3, %v9797_v62  ;;  %v453_v9 = vsel %vm11882_vm4, %v444_v63, %v452_v0  ;;  %v454_v10 = vrot.slane %v452_v0, 4  ;;  %v484_v11 = vshrl.u32 %v9786_v52, 16  ;;  %v487_v12 = vshll.u32 %v9786_v52, 16  ;;  %10974 = vmatprep.subr.bf16.mxu0 %v11874_v16 }
  0x31   : > { %v471_v14 = vor.u32 %v470_v5, %v467_v1  ;;  %v476_v15 = vrot.slane %v474_v6, 5  ;;  %v479_v17 = vrot.slane %v477_v7, 6  ;;  %v493_v18 = vshrl.u32 %v9787_v57, 16 }
  0x32   : > { %v463_v4 = vsel %vm11882_vm4, %v454_v10, %v462_v3  ;;  %v486_v20 = vrot.slane %v484_v11, 5  ;;  %v489_v21 = vrot.slane %v487_v12, 6  ;;  %v496_v22 = vshll.u32 %v9787_v57, 16  ;;  %v11674_v10 = vld [vmem:[%s16983_s3] sm:$0xff]  }
  0x33   : > { %v9798_v23 = vcombine.low %v453_v9, %v463_v4  ;;  %v472_v24 = vrot.slane %v471_v14, 4  ;;  %v480_v25 = vor.u32 %v479_v17, %v476_v15  ;;  %v495_v26 = vrot.slane %v493_v18, 5  ;;  %10975 = vmatpush3.bf16.msra.mxu0 %v11874_v16  ;;  %v11673_v9 = vld [vmem:[%s16983_s3 + $0x8] sm:$0xff]   ;;  %v11972_v11 = vld [vmem:[%s16982_s2 + $0x2] sm:$0x3] }
  0x34   : > { %v490_v27 = vor.u32 %v489_v21, %v486_v20  ;;  %v498_v28 = vrot.slane %v496_v22, 6  ;;  %v502_v29 = vshrl.u32 %v9788_v8, 16  ;;  %v505_v30 = vshll.u32 %v9788_v8, 16  ;;  %10976 = vmatprep.subr.bf16.mxu0 %v11889_v40  ;;  %v11672_v8 = vld [vmem:[%s16983_s3 + $0x10] sm:$0xff]   ;;  %v11979_v12 = vld [vmem:[%s16982_s2] sm:$0x3] }
  0x35   : > { %10960 = vmatprep.mubr.msk.bf16.mxu0 %vm580_vm3, %v9798_v23  ;;  %v481_v33 = vsel %vm11882_vm4, %v472_v24, %v480_v25  ;;  %v482_v34 = vrot.slane %v480_v25, 4  ;;  %v512_v35 = vshrl.u32 %v9789_v13, 16  ;;  %v515_v36 = vshll.u32 %v9789_v13, 16  ;;  %11587 = vmatprep.subr.bf16.mxu1 %v11672_v8  ;;  %v11984_v13 = vld [vmem:[%s11862_s17 + $0x18] sm:$0xe] }
  0x36   : > { %v499_v38 = vor.u32 %v498_v28, %v495_v26  ;;  %v504_v39 = vrot.slane %v502_v29, 5  ;;  %v507_v41 = vrot.slane %v505_v30, 6  ;;  %v521_v16 = vshrl.u32 %v9790_v19, 16  ;;  %11595 = vmatpush3.bf16.msra.mxu1 %v11672_v8  ;;  %v11987_v14 = vld [vmem:[%s11862_s17 + $0x1c] sm:$0xf] }
  0x37   : > { %v491_v42 = vsel %vm11882_vm4, %v482_v34, %v490_v27  ;;  %v514_v43 = vrot.slane %v512_v35, 5  ;;  %v517_v44 = vrot.slane %v515_v36, 6  ;;  %v524_v45 = vshll.u32 %v9790_v19, 16  ;;  %10977 = vmatpush3.bf16.msra.mxu0 %v11889_v40  ;;  %11588 = vmatprep.subr.bf16.mxu1 %v11673_v9  ;;  %v11990_v15 = vld [vmem:[%s11862_s17 + $0x24] sm:$0xe] }
  0x38   : > { %v9799_v46 = vcombine.low %v481_v33, %v491_v42  ;;  %v500_v47 = vrot.slane %v499_v38, 4  ;;  %v508_v48 = vor.u32 %v507_v41, %v504_v39  ;;  %v523_v2 = vrot.slane %v521_v16, 5  ;;  %10978 = vmatprep.subr.bf16.mxu0 %v11672_v8  ;;  %v11993_v17 = vld [vmem:[%s11862_s17 + $0x28] sm:$0xf]  ;;  %v12000_v21 = vld [vmem:[%s11862_s17 + $0x20] sm:$0x3] }
  0x39   : > { %v518_v49 = vor.u32 %v517_v44, %v514_v43  ;;  %v526_v50 = vrot.slane %v524_v45, 6  ;;  %v530_v51 = vshrl.u32 %v9791_v32, 16  ;;  %v533_v52 = vshll.u32 %v9791_v32, 16  ;;  %v12006_v25 = vld [vmem:[%s11862_s17 + $0x2c] sm:$0x3] }
  0x3a   : > { %10961 = vmatmul.mubr.msk.bf16.gmra.mxu0 %vm580_vm3, %v9799_v46  ;;  %v509_v53 = vsel %vm11882_vm4, %v500_v47, %v508_v48  ;;  %v510_v54 = vrot.slane %v508_v48, 4  ;;  %v540_v55 = vshrl.u32 %v9792_v37, 16  ;;  %v543_v56 = vshll.u32 %v9792_v37, 16  ;;  %11596 = vmatpush3.bf16.msra.mxu1 %v11673_v9  ;;  %v12010_v29 = vld [vmem:[%s11862_s17 + $0x30] sm:$0xe] }
  0x3b   : > { %v527_v57 = vor.u32 %v526_v50, %v523_v2  ;;  %v532_v58 = vrot.slane %v530_v51, 5  ;;  %v535_v59 = vrot.slane %v533_v52, 6  ;;  %10979 = vmatpush3.bf16.msra.mxu0 %v11672_v8  ;;  %11589 = vmatprep.subr.bf16.mxu1 %v11674_v10  ;;  %v1043_v18 = vshrl.u32 %v11984_v13, 16  ;;  %v12015_v35 = vld [vmem:[%s11862_s17 + $0x34] sm:$0xf] }
  0x3c   : > { %v519_v40 = vsel %vm11882_vm4, %v510_v54, %v518_v49  ;;  %v542_v60 = vrot.slane %v540_v55, 5  ;;  %v545_v61 = vrot.slane %v543_v56, 6  ;;  %10980 = vmatprep.subr.bf16.mxu0 %v11673_v9  ;;  %v1046_v19 = vshll.u32 %v11984_v13, 16  ;;  %v12024_v48 = vld [vmem:[%s11862_s17 + $0x38] sm:$0x3] }
  0x3d   : > { %v9800_v62 = vcombine.low %v509_v53, %v519_v40  ;;  %v528_v63 = vrot.slane %v527_v57, 4  ;;  %v536_v0 = vor.u32 %v535_v59, %v532_v58  ;;  %v1052_v4 = vshrl.u32 %v11987_v14, 16  ;;  %v12027_v52 = vld [vmem:[%s11862_s17 + $0x3c] sm:$0xe] }
  0x3e   : > { %v546_v1 = vor.u32 %v545_v61, %v542_v60  ;;  %11597 = vmatpush3.bf16.msra.mxu1 %v11674_v10  ;;  %v1055_v20 = vshll.u32 %v11987_v14, 16  ;;  %v1071_v22 = vshrl.u32 %v11990_v15, 16  ;;  %v1074_v23 = vshll.u32 %v11990_v15, 16 }
  0x3f   : > { %10964 = vmatprep.mubr.msk.bf16.mxu0 %vm580_vm3, %v9800_v62  ;;  %v537_v3 = vsel %vm11882_vm4, %v528_v63, %v536_v0  ;;  %v538_v5 = vrot.slane %v536_v0, 4  ;;  %10981 = vmatpush3.bf16.msra.mxu0 %v11673_v9  ;;  %v1080_v24 = vshrl.u32 %v11993_v17, 16  ;;  %v1083_v26 = vshll.u32 %v11993_v17, 16 }
  0x40   : > { %10982 = vmatprep.subr.bf16.mxu0 %v11674_v10  ;;  %11600 = vmatprep.subr.msk.bf16.mxu1 %vm605_vm0, %v11979_v12  ;;  %v1045_v27 = vrot.slane %v1043_v18, 5  ;;  %v1048_v28 = vrot.slane %v1046_v19, 6  ;;  %v1054_v30 = vrot.slane %v1052_v4, 5  ;;  %v1057_v32 = vrot.slane %v1055_v20, 6  ;;  %v12039_v20 = vld [vmem:[%s11862_s17 + $0x44] sm:$0x3] }
  0x41   : > { %v547_v6 = vsel %vm11882_vm4, %v538_v5, %v546_v1  ;;  %v1062_v33 = vshrl.u32 %v12000_v21, 16  ;;  %v1065_v34 = vshll.u32 %v12000_v21, 16  ;;  %v1073_v36 = vrot.slane %v1071_v22, 5  ;;  %v12042_v22 = vld [vmem:[%s11862_s17 + $0x48] sm:$0xe] }
  0x42   : > { %v9801_v7 = vcombine.low %v537_v3, %v547_v6  ;;  %v1076_v37 = vrot.slane %v1074_v23, 6  ;;  %v1082_v38 = vrot.slane %v1080_v24, 5  ;;  %v1090_v39 = vshrl.u32 %v12006_v25, 16 }
  0x43   : > { %10983 = vmatpush3.bf16.msra.mxu0 %v11674_v10  ;;  %v1085_v41 = vrot.slane %v1083_v26, 6  ;;  %v1093_v16 = vshll.u32 %v12006_v25, 16  ;;  %v1099_v42 = vshrl.u32 %v12010_v29, 16  ;;  %v1102_v43 = vshll.u32 %v12010_v29, 16  ;;  %v12034_v10 = vld [vmem:[%s11862_s17 + $0x40] sm:$0xf] }
  0x44   : > { %10965 = vmatmul.mubr.msk.bf16.gmra.mxu0 %vm580_vm3, %v9801_v7  ;;  %11599 = vmatprep.subr.msk.bf16.mxu0 %vm605_vm0, %v11972_v11  ;;  %v1108_v44 = vshrl.u32 %v12015_v35, 16  ;;  %v1111_v45 = vshll.u32 %v12015_v35, 16  ;;  %v1049_v46 = vor.u32 %v1048_v28, %v1045_v27  ;;  %v1058_v47 = vor.u32 %v1057_v32, %v1054_v30  ;;  %v12054_v28 = vld [vmem:[%s16982_s2 + $0x4] sm:$0x3] }
  0x45   : > { %v1064_v2 = vrot.slane %v1062_v33, 5  ;;  %v1067_v49 = vrot.slane %v1065_v34, 6  ;;  %v1077_v50 = vor.u32 %v1076_v37, %v1073_v36  ;;  %v1092_v51 = vrot.slane %v1090_v39, 5 }
  0x46   : > { %v1086_v53 = vor.u32 %v1085_v41, %v1082_v38  ;;  %v1095_v54 = vrot.slane %v1093_v16, 6  ;;  %v1101_v55 = vrot.slane %v1099_v42, 5  ;;  %v1104_v56 = vrot.slane %v1102_v43, 6  ;;  %v12064_v41 = vld [vmem:[%s11862_s17 + $0x4c] sm:$0xf] }
  0x47   : > { %v1110_v57 = vrot.slane %v1108_v44, 5  ;;  %v1113_v58 = vrot.slane %v1111_v45, 6  ;;  %v1118_v59 = vshrl.u32 %v12024_v48, 16  ;;  %v1121_v40 = vshll.u32 %v12024_v48, 16 }
  0x48   : > { %v1127_v60 = vshrl.u32 %v12027_v52, 16  ;;  %v1130_v61 = vshll.u32 %v12027_v52, 16  ;;  %v1050_v62 = vrot.slane %v1049_v46, 4  ;;  %v1060_v63 = vrot.slane %v1058_v47, 4  ;;  %v12077_v46 = vld [vmem:[%s11862_s17 + $0x54] sm:$0xe] }
  0x49   : > { %v1068_v0 = vor.u32 %v1067_v49, %v1064_v2  ;;  %v1078_v1 = vrot.slane %v1077_v50, 4  ;;  %v1088_v3 = vrot.slane %v1086_v53, 4  ;;  %v1096_v5 = vor.u32 %v1095_v54, %v1092_v51  ;;  %v12084_v50 = vld [vmem:[%s11862_s17 + $0x50] sm:$0x3]  ;;  %v12087_v51 = vld [vmem:[%s11862_s17 + $0x58] sm:$0xf] }
  0x4a   : > { %v1105_v6 = vor.u32 %v1104_v56, %v1101_v55  ;;  %v1114_v7 = vor.u32 %v1113_v58, %v1110_v57  ;;  %v1120_v8 = vrot.slane %v1118_v59, 5  ;;  %v1123_v9 = vrot.slane %v1121_v40, 6  ;;  %v12095_v57 = vld [vmem:[%s11862_s17 + $0x60] sm:$0xe] }
  0x4b   : > { %v1129_v18 = vrot.slane %v1127_v60, 5  ;;  %v1132_v19 = vrot.slane %v1130_v61, 6  ;;  %v1059_v4 = vsel %vm11882_vm4, %v1050_v62, %v1058_v47  ;;  %v1069_v23 = vsel %vm11882_vm4, %v1060_v63, %v1068_v0  ;;  %v12101_v61 = vld [vmem:[%s11862_s17 + $0x64] sm:$0xf] }
  0x4c   : > { %v1087_v24 = vsel %vm11882_vm4, %v1078_v1, %v1086_v53  ;;  %v1097_v26 = vsel %vm11882_vm4, %v1088_v3, %v1096_v5  ;;  %v1136_v27 = vshrl.u32 %v12034_v10, 16  ;;  %v1106_v30 = vrot.slane %v1105_v6, 4  ;;  %v12112_v6 = vld [vmem:[%s11862_s17 + $0x5c] sm:$0x3] }
  0x4d   : > { %v1116_v32 = vrot.slane %v1114_v7, 4  ;;  %v1124_v33 = vor.u32 %v1123_v9, %v1120_v8  ;;  %v1139_v34 = vshll.u32 %v12034_v10, 16  ;;  %v1133_v36 = vor.u32 %v1132_v19, %v1129_v18 }
  0x4e   : > { %v1146_v37 = vshrl.u32 %v12039_v20, 16  ;;  %v1155_v38 = vshrl.u32 %v12042_v22, 16  ;;  %v12061_v39 = vsel %vm605_vm0, %v11972_v11, 0  ;;  %v1158_v16 = vshll.u32 %v12042_v22, 16 }
  0x4f   : > { %v12067_v42 = vcombine.low %v1059_v4, %v1069_v23  ;;  %v12069_v43 = vcombine.low %v1087_v24, %v1097_v26  ;;  %v12073_v44 = vsel %vm605_vm0, %v12054_v28, 0  ;;  %v1149_v45 = vshll.u32 %v12039_v20, 16 }
  0x50   : > { %17208 = vst [vmem:[#allocation5_spill] sm:$0xff] %v12073_v44  ;;  %v1115_v11 = vsel %vm11882_vm4, %v1106_v30, %v1114_v7  ;;  %v1125_v47 = vsel %vm11882_vm4, %v1116_v32, %v1124_v33  ;;  %v1138_v2 = vrot.slane %v1136_v27, 5  ;;  %v1141_v49 = vrot.slane %v1139_v34, 6  ;;  %v12121_v30 = vld [vmem:[%s11862_s17 + $0x68] sm:$0x3] }
  0x51   : > { %17207 = vst [vmem:[#allocation4_spill] sm:$0xff] %v12069_v43  ;;  %v12089_v53 = vrot.slane %v1133_v36, 4  ;;  %v12091_v54 = vrot.slane %v1146_v37, 5  ;;  %v1157_v55 = vrot.slane %v1155_v38, 5  ;;  %v1164_v56 = vshrl.u32 %v12064_v41, 16 }
  0x52   : > { %v1160_v58 = vrot.slane %v1158_v16, 6  ;;  %v1167_v59 = vshll.u32 %v12064_v41, 16  ;;  %v1183_v40 = vshrl.u32 %v12077_v46, 16  ;;  %v1186_v60 = vshll.u32 %v12077_v46, 16 }
  0x53   : > { %v12103_v62 = vcombine.low %v1115_v11, %v1125_v47  ;;  %v12105_v63 = vrot.slane %v1149_v45, 6  ;;  %v1192_v0 = vshrl.u32 %v12087_v51, 16  ;;  %v1195_v1 = vshll.u32 %v12087_v51, 16 }
  0x54   : > { %v1174_v3 = vshrl.u32 %v12084_v50, 16  ;;  %v1177_v5 = vshll.u32 %v12084_v50, 16  ;;  %v1211_v7 = vshrl.u32 %v12095_v57, 16  ;;  %v1214_v8 = vshll.u32 %v12095_v57, 16 }
  0x55   : > { %17209 = vst [vmem:[#allocation6_spill] sm:$0xff] %v12103_v62  ;;  %v12116_v9 = vor.u32 %v1141_v49, %v1138_v2  ;;  %v1166_v18 = vrot.slane %v1164_v56, 5  ;;  %v1220_v19 = vshrl.u32 %v12101_v61, 16  ;;  %v1223_v4 = vshll.u32 %v12101_v61, 16 }
  0x56   : > { %v1161_v23 = vor.u32 %v1160_v58, %v1157_v55  ;;  %v1169_v24 = vrot.slane %v1167_v59, 6  ;;  %v1185_v26 = vrot.slane %v1183_v40, 5  ;;  %v1188_v27 = vrot.slane %v1186_v60, 6  ;;  %v12128_v55 = vld [vmem:[%s11862_s17 + $0x6c] sm:$0xe] }
  0x57   : > { %v1194_v32 = vrot.slane %v1192_v0, 5  ;;  %v1197_v33 = vrot.slane %v1195_v1, 6  ;;  %v1202_v34 = vshrl.u32 %v12112_v6, 16  ;;  %v1205_v36 = vshll.u32 %v12112_v6, 16 }
  0x58   : > { %v1176_v37 = vrot.slane %v1174_v3, 5  ;;  %v1179_v38 = vrot.slane %v1177_v5, 6  ;;  %v1213_v16 = vrot.slane %v1211_v7, 5  ;;  %v1216_v45 = vrot.slane %v1214_v8, 6  ;;  %v12134_v5 = vld [vmem:[%s11862_s17 + $0x70] sm:$0xf] }
  0x59   : > { %v1222_v11 = vrot.slane %v1220_v19, 5  ;;  %v1225_v47 = vrot.slane %v1223_v4, 6  ;;  %v1230_v2 = vshrl.u32 %v12121_v30, 16  ;;  %v1233_v49 = vshll.u32 %v12121_v30, 16 }
  0x5a   : > { %v1144_v56 = vrot.slane %v12116_v9, 4  ;;  %v1152_v58 = vor.u32 %v12105_v63, %v12091_v54  ;;  %v1170_v59 = vor.u32 %v1169_v24, %v1166_v18  ;;  %v1189_v40 = vor.u32 %v1188_v27, %v1185_v26 }
  0x5b   : > { %v1162_v60 = vrot.slane %v1161_v23, 4  ;;  %v1198_v0 = vor.u32 %v1197_v33, %v1194_v32  ;;  %v1204_v1 = vrot.slane %v1202_v34, 5  ;;  %v1207_v3 = vrot.slane %v1205_v36, 6  ;;  %v12142_v32 = vld [vmem:[%s11862_s17 + $0x74] sm:$0x3] }
  0x5c   : > { %v1180_v7 = vor.u32 %v1179_v38, %v1176_v37  ;;  %v1217_v8 = vor.u32 %v1216_v45, %v1213_v16  ;;  %v1239_v19 = vshrl.u32 %v12128_v55, 16  ;;  %v1242_v4 = vshll.u32 %v12128_v55, 16 }
  0x5d   : > { %v1226_v62 = vor.u32 %v1225_v47, %v1222_v11  ;;  %v1232_v44 = vrot.slane %v1230_v2, 5  ;;  %v1235_v43 = vrot.slane %v1233_v49, 6  ;;  %v987_v54 = vrot.slane %v11987_v14, 5 }
  0x5e   : > { %v1172_v63 = vrot.slane %v1170_v59, 4  ;;  %v1190_v18 = vrot.slane %v1189_v40, 4  ;;  %v1248_v23 = vshrl.u32 %v12134_v5, 16  ;;  %v1251_v24 = vshll.u32 %v12134_v5, 16 }
  0x5f   : > { %v1200_v26 = vrot.slane %v1198_v0, 4  ;;  %v1208_v27 = vor.u32 %v1207_v3, %v1204_v1  ;;  %v1218_v33 = vrot.slane %v1217_v8, 4  ;;  %v9845_v34 = vrot.slane %v11984_v13, 9 }
  0x60   : > { %v1241_v36 = vrot.slane %v1239_v19, 5  ;;  %v1244_v37 = vrot.slane %v1242_v4, 6  ;;  %v1228_v38 = vrot.slane %v1226_v62, 4  ;;  %v1236_v16 = vor.u32 %v1235_v43, %v1232_v44 }
  0x61   : > { %v989_v45 = vrot.slane %v987_v54, 4  ;;  %v990_v11 = vrot.slane %v12000_v21, 5  ;;  %v1250_v2 = vrot.slane %v1248_v23, 5  ;;  %v1253_v49 = vrot.slane %v1251_v24, 6 }
  0x62   : > { %v1258_v40 = vshrl.u32 %v12142_v32, 16  ;;  %v1261_v1 = vshll.u32 %v12142_v32, 16  ;;  %v1143_v3 = vsel %vm11882_vm4, %v12089_v53, %v12116_v9  ;;  %v1153_v43 = vsel %vm11882_vm4, %v1144_v56, %v1152_v58 }
  0x63   : > { %v1171_v44 = vsel %vm11882_vm4, %v1162_v60, %v1170_v59  ;;  %v1181_v8 = vsel %vm11882_vm4, %v1172_v63, %v1180_v7  ;;  %v1199_v19 = vsel %vm11882_vm4, %v1190_v18, %v1198_v0  ;;  %v1209_v4 = vsel %vm11882_vm4, %v1200_v26, %v1208_v27  ;;  %v12185_v7 = vld [vmem:[%s16982_s2 + $0x6] sm:$0x3] }
  0x64   : > { %v1227_v23 = vsel %vm11882_vm4, %v1218_v33, %v1226_v62  ;;  %v1245_v24 = vor.u32 %v1244_v37, %v1241_v36  ;;  %v1237_v53 = vsel %vm11882_vm4, %v1228_v38, %v1236_v16  ;;  %v12172_v9 = vsel %vm12146_vm7, %v9845_v34, %v987_v54 }
  0x65   : > { %v12176_v56 = vsel %vm12146_vm7, %v989_v45, %v990_v11  ;;  %v994_v58 = vrot.slane %v11993_v17, 5  ;;  %v12179_v59 = vor.u32 %v1253_v49, %v1250_v2  ;;  %v1260_v60 = vrot.slane %v1258_v40, 5 }
  0x66   : > { %v1263_v0 = vrot.slane %v1261_v1, 6  ;;  %v9846_v62 = vrot.slane %v11990_v15, 9  ;;  %v12189_v54 = vsel %vm605_vm0, %v11979_v12, 0  ;;  %v12191_v63 = vcombine.low %v1143_v3, %v1153_v43 }
  0x67   : > { %v12193_v18 = vcombine.low %v1171_v44, %v1181_v8  ;;  %v12195_v26 = vcombine.low %v1199_v19, %v1209_v4  ;;  %v12197_v27 = vcombine.low %v1227_v23, %v1237_v53  ;;  %v1246_v33 = vrot.slane %v1245_v24, 4 }
  0x68   : > { %v9847_v34 = vrot.slane %v12010_v29, 9  ;;  %v1001_v36 = vrot.slane %v12015_v35, 5  ;;  %v996_v38 = vrot.slane %v994_v58, 4  ;;  %v997_v12 = vrot.slane %v12006_v25, 5 }
  0x69   : > { %v12206_v16 = vsel %vm605_vm0, %v12185_v7, 0  ;;  %v1256_v45 = vrot.slane %v12179_v59, 4  ;;  %v1264_v11 = vor.u32 %v1263_v0, %v1260_v60  ;;  %v12211_v2 = vsel %vm12146_vm7, %v9846_v62, %v994_v58 }
  0x6a   : > { %v1569_v49 = vrot.slane %v11987_v14, 6  ;;  %v1004_v40 = vrot.slane %v12024_v48, 5  ;;  %v1008_v1 = vrot.slane %v12034_v10, 5  ;;  %v1576_v3 = vrot.slane %v11993_v17, 6 }
  0x6b   : > { %v1255_v43 = vsel %vm11882_vm4, %v1246_v33, %v12179_v59  ;;  %v12222_v44 = vsel %vm12146_vm7, %v9847_v34, %v1001_v36  ;;  %v1003_v8 = vrot.slane %v1001_v36, 4  ;;  %v1015_v19 = vrot.slane %v12064_v41, 5 }
  0x6c   : > { %v12227_v14 = vsel %vm12146_vm7, %v996_v38, %v997_v12  ;;  %v9886_v4 = vrot.slane %v11984_v13, 10  ;;  %v1572_v23 = vrot.slane %v12000_v21, 6  ;;  %v1583_v17 = vrot.slane %v12015_v35, 6 }
  0x6d   : > { %v1265_v24 = vsel %vm11882_vm4, %v1256_v45, %v1264_v11  ;;  %v1571_v53 = vrot.slane %v1569_v49, 4  ;;  %v9848_v58 = vrot.slane %v12027_v52, 9  ;;  %v9887_v59 = vrot.slane %v11990_v15, 10 }
  0x6e   : > { %v17212_v60 = vmov 0  ;;  %v1010_v0 = vrot.slane %v1008_v1, 4  ;;  %v1011_v13 = vrot.slane %v12039_v20, 5  ;;  %v1578_v21 = vrot.slane %v1576_v3, 4 }
  0x6f   : > { %v17213_v60 = vsel %vm12238_vm9, 4294967295, %v17212_v60  ;;  %v1579_v35 = vrot.slane %v12006_v25, 6  ;;  %v9849_v62 = vrot.slane %v12042_v22, 9  ;;  %v1017_v33 = vrot.slane %v1015_v19, 4 }
  0x70   : > { %17214 = vst [vmem:[#allocation7_spill] sm:$0xff] %v17213_v60  ;;  %v1018_v34 = vrot.slane %v12084_v50, 5  ;;  %v1022_v36 = vrot.slane %v12087_v51, 5  ;;  %v12249_v15 = vsel %vm12146_vm7, %v1003_v8, %v1004_v40  ;;  %v9888_v38 = vrot.slane %v12010_v29, 10 }
  0x71   : > { %v1585_v12 = vrot.slane %v1583_v17, 4  ;;  %v1586_v45 = vrot.slane %v12024_v48, 6  ;;  %v12255_v11 = vsel %vm12238_vm9, %v9886_v4, %v1569_v49  ;;  %v12259_v25 = vsel %vm12238_vm9, %v1571_v53, %v1572_v23 }
  0x72   : > { %v12263_v37 = vsel %vm12146_vm7, %v9848_v58, %v1008_v1  ;;  %v12267_v40 = vsel %vm12238_vm9, %v9887_v59, %v1576_v3  ;;  %v12271_v29 = vsel %vm12146_vm7, %v1010_v0, %v1011_v13  ;;  %v12275_v48 = vsel %vm12238_vm9, %v1578_v21, %v1579_v35 }
  0x73   : > { %17215 = vst [vmem:[#allocation8_spill] sm:$0xff] %v12263_v37  ;;  %17216 = vst [vmem:[#allocation9_spill] sm:$0xff] %v12271_v29  ;;  %v9850_v49 = vrot.slane %v12077_v46, 9  ;;  %v1590_v8 = vrot.slane %v12034_v10, 6  ;;  %v12281_v1 = vsel %vm12146_vm7, %v9849_v62, %v1015_v19  ;;  %v12285_v3 = vsel %vm12146_vm7, %v1017_v33, %v1018_v34 }
  0x74   : > { %17217 = vst [vmem:[#allocation10_spill] sm:$0xff] %v12281_v1  ;;  %17218 = vst [vmem:[#allocation11_spill] sm:$0xff] %v12285_v3  ;;  %v1024_v23 = vrot.slane %v1022_v36, 4  ;;  %v1025_v53 = vrot.slane %v12112_v6, 5  ;;  %v12292_v59 = vsel %vm12238_vm9, %v9888_v38, %v1583_v17  ;;  %v12296_v10 = vsel %vm12238_vm9, %v1585_v12, %v1586_v45  ;;  %v12310_v17 = vld [vmem:[%s16984_s4] ss:$0 sm:$0xff] }
  0x75   : > { %17219 = vst [vmem:[#allocation12_spill] sm:$0xff] %v12292_v59  ;;  %17220 = vst [vmem:[#allocation13_spill] sm:$0xff] %v12296_v10  ;;  %v9889_v19 = vrot.slane %v12027_v52, 10  ;;  %v12299_v13 = vcombine.low %v1255_v43, %v1265_v24  ;;  %v1592_v24 = vrot.slane %v1590_v8, 4  ;;  %v1593_v33 = vrot.slane %v12039_v20, 6 }
  0x76   : > { %v12321_v12 = vsel %vm12146_vm7, %v9850_v49, %v1022_v36  ;;  %v12325_v45 = vsel %vm12146_vm7, %v1024_v23, %v1025_v53  ;;  %v1029_v62 = vrot.slane %v12101_v61, 5  ;;  %v1597_v38 = vrot.slane %v12064_v41, 6 }
  0x77   : > { %17221 = vst [vmem:[#allocation14_spill] sm:$0xff] %v12321_v12  ;;  %17222 = vst [vmem:[#allocation15_spill] sm:$0xff] %v12325_v45  ;;  %v12332_v20 = vsel %vm12238_vm9, %v9889_v19, %v1590_v8  ;;  %v9851_v49 = vrot.slane %v12095_v57, 9  ;;  %v1032_v23 = vrot.slane %v12121_v30, 5  ;;  %v1036_v53 = vrot.slane %v12134_v5, 5 }
  0x78   : > { %v12344_v8 = vsel %vm12238_vm9, %v1592_v24, %v1593_v33  ;;  %v1604_v41 = vrot.slane %v12087_v51, 6  ;;  %v1031_v19 = vrot.slane %v1029_v62, 4  ;;  %v1600_v35 = vrot.slane %v12084_v50, 6  ;;  %v12353_v51 = vld [vmem:[%s11862_s17 + $0x28] sm:$0xf] }
  0x79   : > { %v1599_v29 = vrot.slane %v1597_v38, 4  ;;  %v1038_v45 = vrot.slane %v1036_v53, 4  ;;  %v1039_v12 = vrot.slane %v12142_v32, 5  ;;  %v9891_v24 = vrot.slane %v12077_v46, 10  ;;  %17223 = vst [vmem:[#allocation16_spill] sm:$0xff] %v12353_v51 }
  0x7a   : > { %v1606_v50 = vrot.slane %v1604_v41, 4  ;;  %v12361_v10 = vsel %vm12146_vm7, %v9851_v49, %v1029_v62  ;;  %v1611_v46 = vrot.slane %v12101_v61, 6  ;;  %v1839_v62 = vrot.slane %v12353_v51, 5 }
  0x7b   : > { %v12382_v61 = vsel %vm12238_vm9, %v1599_v29, %v1600_v35  ;;  %v9892_v35 = vrot.slane %v12095_v57, 10  ;;  %v12415_v57 = vld [vmem:[%s11862_s17 + $0x30] sm:$0xe] }
  0x7c   : > { %17230 = vst [vmem:[#allocation23_spill] sm:$0xff] %v12415_v57 }
  0xe6   : > { %v10954_v4 = vpop.f32.mrf.mxu0 }
  0xe7   : > { %v652_v21 = vadd.f32 %v10954_v4, %v12310_v17 }
  0xe8   : > { %v643_v0 = vpop.f32.mrf.mxu0 }
  0xe9   : > { %v644_v52 = vadd.f32 %v12310_v17, %v643_v0  ;;  %v708_v37 = vmax.f32 %v652_v21, 0.0 }
  0xea   : > { %v10955_v34 = vpop.f32.mrf.mxu0 }
  0xeb   : > { %v655_v43 = vadd.f32 %v10955_v34, %v12310_v17  ;;  %v9890_v34 = vrot.slane %v12042_v22, 10  ;;  %v706_v3 = vmax.f32 %v644_v52, 0.0 }
  0xec   : > { %v646_v36 = vpop.f32.mrf.mxu0 }
  0xed   : > { %v647_v58 = vadd.f32 %v12310_v17, %v646_v36  ;;  %v709_v4 = vmax.f32 %v655_v43, 0.0  ;;  %v9852_v36 = vrot.slane %v12128_v55, 9 }
  0xef   : > { %v707_v1 = vmax.f32 %v647_v58, 0.0  ;;  %v1607_v58 = vrot.slane %v12112_v6, 6  ;;  %v724_v52 = vpack.c.bf16 %v709_v4, %v708_v37  ;;  %v12371_v6 = vsel %vm12238_vm9, %v9890_v34, %v1597_v38  ;;  %v12374_v37 = vld [vmem:[%s11862_s17 + $0x24] sm:$0xe]  ;;  %v12411_v34 = vld [vmem:[%s11862_s17 + $0x34] sm:$0xf] }
  0xf0   : > { %v10958_v0 = vpop.f32.mrf.mxu0  ;;  %17224 = vst [vmem:[#allocation17_spill] sm:$0xff] %v12374_v37  ;;  %v12390_v38 = vsel %vm12146_vm7, %v1038_v45, %v1039_v12  ;;  %v1614_v12 = vrot.slane %v12121_v30, 6 }
  0xf1   : > { %v723_v43 = vpack.c.bf16 %v707_v1, %v706_v3  ;;  %v668_v21 = vadd.f32 %v10958_v0, %v12310_v17  ;;  %v12367_v1 = vsel %vm12146_vm7, %v1031_v19, %v1032_v23  ;;  %v12377_v3 = vld [vmem:[%s11862_s17 + $0x2c] sm:$0x3]  ;;  %v12386_v23 = vsel %vm12146_vm7, %v9852_v36, %v1036_v53  ;;  %17227 = vst [vmem:[#allocation20_spill] sm:$0xff] %v12390_v38 }
  0xf2   : > { %v659_v33 = vpop.f32.mrf.mxu0  ;;  %17225 = vst [vmem:[#allocation18_spill] sm:$0xff] %v12377_v3  ;;  %17226 = vst [vmem:[#allocation19_spill] sm:$0xff] %v12386_v23  ;;  %v12394_v0 = vsel %vm12238_vm9, %v9891_v24, %v1604_v41  ;;  %v12402_v29 = vsel %vm12238_vm9, %v1606_v50, %v1607_v58  ;;  %v1613_v41 = vrot.slane %v1611_v46, 4  ;;  %v1842_v19 = vrot.slane %v12377_v3, 5 }
  0xf3   : > { %v660_v59 = vadd.f32 %v12310_v17, %v659_v33  ;;  %10984 = vmatprep.mubr.bf16.mxu0 %v723_v43  ;;  %17228 = vst [vmem:[#allocation21_spill] sm:$0xff] %v12394_v0  ;;  %17229 = vst [vmem:[#allocation22_spill] sm:$0xff] %v12402_v29  ;;  %v712_v45 = vmax.f32 %v668_v21, 0.0  ;;  %v1841_v43 = vrot.slane %v1839_v62, 4  ;;  %v1618_v58 = vrot.slane %v12134_v5, 6 }
  0xf4   : > { %v10959_v49 = vpop.f32.mrf.mxu0  ;;  %10985 = vmatmul.mubr.bf16.vlgmr.msra.gmra.mxu0 %v724_v52  ;;  %v12428_v21 = vsel %vm12238_vm9, %v9892_v35, %v1611_v46  ;;  %v9893_v33 = vrot.slane %v12128_v55, 10  ;;  %v12436_v5 = vsel %vm12238_vm9, %v1613_v41, %v1614_v12  ;;  %v1846_v50 = vrot.slane %v12411_v34, 5 }
  0xf5   : > { %v671_v4 = vadd.f32 %v10959_v49, %v12310_v17  ;;  %11001 = vmatpush3.bf16.msra.mxu0 %v12061_v39  ;;  %11002 = vmatprep.mubr.msk.bf16.mxu0 %vm580_vm3, %v12067_v42  ;;  %v9935_v39 = vrot.slane %v12374_v37, 9  ;;  %v710_v42 = vmax.f32 %v660_v59, 0.0  ;;  %17231 = vst [vmem:[#allocation24_spill] sm:$0xff] %v12428_v21  ;;  %17232 = vst [vmem:[#allocation25_spill] sm:$0xff] %v12436_v5  ;;  %v1621_v35 = vrot.slane %v12142_v32, 6  ;;  %v17236_v32 = vld [vmem:[#allocation5_spill] sm:$0xff] }
  0xf6   : > { %v662_v53 = vpop.f32.mrf.mxu0  ;;  %11601 = vmatprep.subr.msk.bf16.mxu0 %vm605_vm0, %v12054_v28  ;;  %v12446_v55 = vsel %vm12146_vm7, %v1841_v43, %v1842_v19  ;;  %v1620_v30 = vrot.slane %v1618_v58, 4  ;;  %v17237_v28 = vld [vmem:[#allocation6_spill] sm:$0xff]  ;;  %v12520_v21 = vld [vmem:[%s11862_s17 + $0x48] sm:$0xe] }
  0xf7   : > { %v713_v36 = vmax.f32 %v671_v4, 0.0  ;;  %v663_v24 = vadd.f32 %v12310_v17, %v662_v53  ;;  %v9960_v53 = vld [vmem:[%s16982_s2 + $0x8] sm:$0x3]  ;;  %v12442_v46 = vsel %vm12146_vm7, %v9935_v39, %v1839_v62  ;;  %17234 = vst [vmem:[#allocation27_spill] sm:$0xff] %v12446_v55  ;;  %v2060_v62 = vshrl.u32 %v12374_v37, 16  ;;  %17241 = vst [vmem:[#allocation28_spill] sm:$0xff] %v12520_v21 }
  0xf8   : > { %17233 = vst [vmem:[#allocation26_spill] sm:$0xff] %v12442_v46  ;;  %v2063_v39 = vshll.u32 %v12374_v37, 16  ;;  %v12463_v43 = vsel %vm605_vm0, %v9960_v53, 0 }
  0xf9   : > { %v711_v52 = vmax.f32 %v663_v24, 0.0  ;;  %v726_v49 = vpack.c.bf16 %v713_v36, %v712_v45  ;;  %v9936_v24 = vrot.slane %v12415_v57, 9  ;;  %v12450_v45 = vld [vmem:[%s11862_s17 + $0x38] sm:$0x3]  ;;  %v17235_v36 = vld [vmem:[#allocation4_spill] sm:$0xff] }
  0xfa   : > { %v10962_v4 = vpop.f32.mrf.mxu0  ;;  %v1849_v22 = vrot.slane %v12450_v45, 5  ;;  %v2065_v55 = vrot.slane %v2063_v39, 6 }
  0xfb   : > { %v725_v59 = vpack.c.bf16 %v711_v52, %v710_v42  ;;  %v684_v12 = vadd.f32 %v10962_v4, %v12310_v17  ;;  %v12456_v42 = vld [vmem:[%s11862_s17 + $0x40] sm:$0xf]  ;;  %v12469_v4 = vsel %vm12238_vm9, %v9893_v33, %v1618_v58  ;;  %v12483_v58 = vld [vmem:[%s16982_s2 + $0xa] sm:$0x3]  ;;  %v12486_v33 = vld [vmem:[%s11862_s17 + $0x3c] sm:$0xe] }
  0xfc   : > { %v675_v41 = vpop.f32.mrf.mxu0  ;;  %11003 = vmatmul.mubr.msk.bf16.vlgmr.msra.gmra.mxu0 %vm580_vm3, %v17235_v36  ;;  %v12506_v23 = vsel %vm605_vm0, %v12483_v58, 0 }
  0xfd   : > { %v676_v19 = vadd.f32 %v12310_v17, %v675_v41  ;;  %10988 = vmatprep.mubr.bf16.mxu1 %v725_v59  ;;  %11037 = vmatpush3.bf16.msra.mxu0 %v17236_v32  ;;  %v12477_v41 = vsel %vm12146_vm7, %v9936_v24, %v1846_v50  ;;  %v1848_v32 = vrot.slane %v1846_v50, 4  ;;  %v1853_v50 = vrot.slane %v12456_v42, 5  ;;  %17239 = vst [vmem:[#allocation5_spill] sm:$0xff] %v12506_v23 }
  0xfe   : > { %v10963_v36 = vpop.f32.mrf.mxu0  ;;  %10989 = vmatmul.mubr.bf16.vlgmr.msra.gmra.mxu1 %v726_v49  ;;  %11006 = vmatprep.mubr.msk.bf16.mxu0 %vm580_vm3, %v17237_v28  ;;  %v12492_v28 = vld [vmem:[%s11862_s17 + $0x44] sm:$0x3]  ;;  %v2069_v24 = vshrl.u32 %v12353_v51, 16  ;;  %v2072_v59 = vshll.u32 %v12353_v51, 16  ;;  %v716_v52 = vmax.f32 %v684_v12, 0.0  ;;  %v9937_v51 = vrot.slane %v12486_v33, 9 }
  0xff   : > { %v687_v49 = vadd.f32 %v10963_v36, %v12310_v17  ;;  %11019 = vmatpush3.bf16.msra.mxu1 %v12189_v54  ;;  %11603 = vmatprep.subr.msk.bf16.mxu0 %vm605_vm0, %v9960_v53  ;;  %v12501_v36 = vsel %vm12238_vm9, %v1620_v30, %v1621_v35  ;;  %v2062_v54 = vrot.slane %v2060_v62, 5  ;;  %v714_v53 = vmax.f32 %v676_v19, 0.0  ;;  %v12509_v12 = vld [vmem:[%s11862_s17 + $0x4c] sm:$0xf] }
 0x100   : > { %v678_v37 = vpop.f32.mrf.mxu0  ;;  %11602 = vmatprep.subr.msk.bf16.mxu1 %vm605_vm0, %v12185_v7  ;;  %17238 = vst [vmem:[#allocation4_spill] sm:$0xff] %v12501_v36  ;;  %17240 = vst [vmem:[#allocation6_spill] sm:$0xff] %v12509_v12  ;;  %v1856_v7 = vrot.slane %v12492_v28, 5  ;;  %v2079_v30 = vshrl.u32 %v12377_v3, 16  ;;  %v2082_v35 = vshll.u32 %v12377_v3, 16  ;;  %v1855_v39 = vrot.slane %v1853_v50, 4 }
 0x101   : > { %v717_v46 = vmax.f32 %v687_v49, 0.0  ;;  %v679_v38 = vadd.f32 %v12310_v17, %v678_v37  ;;  %v2071_v19 = vrot.slane %v2069_v24, 5  ;;  %v2074_v37 = vrot.slane %v2072_v59, 6 }
 0x102   : > { %v2066_v5 = vor.u32 %v2065_v55, %v2062_v54  ;;  %v1860_v29 = vrot.slane %v12509_v12, 5  ;;  %v12537_v24 = vsel %vm12146_vm7, %v9937_v51, %v1853_v50  ;;  %v2081_v54 = vrot.slane %v2079_v30, 5 }
 0x103   : > { %v715_v62 = vmax.f32 %v679_v38, 0.0  ;;  %v728_v49 = vpack.c.bf16 %v717_v46, %v716_v52  ;;  %v12527_v38 = vsel %vm12146_vm7, %v1848_v32, %v1849_v22  ;;  %v12530_v46 = vld [vmem:[%s11862_s17 + $0x50] sm:$0x3]  ;;  %v2091_v52 = vshll.u32 %v12415_v57, 16  ;;  %17243 = vst [vmem:[#allocation30_spill] sm:$0xff] %v12537_v24 }
 0x104   : > { %v10966_v60 = vpop.f32.mrf.mxu0  ;;  %11007 = vmatmul.mubr.msk.bf16.gmra.mxu0 %vm580_vm3, %v12191_v63  ;;  %17242 = vst [vmem:[#allocation29_spill] sm:$0xff] %v12530_v46  ;;  %v2088_v63 = vshrl.u32 %v12415_v57, 16  ;;  %v12542_v22 = vsel %vm12146_vm7, %v1855_v39, %v1856_v7  ;;  %v12544_v32 = vor.u32 %v2074_v37, %v2071_v19  ;;  %v1862_v57 = vrot.slane %v1860_v29, 4  ;;  %v12578_v37 = vld [vmem:[%s11862_s17 + $0x54] sm:$0xe] }
 0x105   : > { %v727_v0 = vpack.c.bf16 %v715_v62, %v714_v53  ;;  %11010 = vmatprep.mubr.msk.bf16.mxu0 %vm580_vm3, %v12193_v18  ;;  %v700_v55 = vadd.f32 %v10966_v60, %v12310_v17  ;;  %v2084_v53 = vrot.slane %v2082_v35, 6  ;;  %17244 = vst [vmem:[#allocation31_spill] sm:$0xff] %v12542_v22  ;;  %v9938_v62 = vrot.slane %v12520_v21, 9 }
 0x106   : > { %v691_v59 = vpop.f32.mrf.mxu0  ;;  %v12547_v60 = vrot.slane %v2066_v5, 4  ;;  %v1863_v51 = vrot.slane %v12530_v46, 5  ;;  %v2097_v50 = vshrl.u32 %v12411_v34, 16  ;;  %v2090_v7 = vrot.slane %v2088_v63, 5 }
 0x107   : > { %v692_v18 = vadd.f32 %v12310_v17, %v691_v59  ;;  %10992 = vmatprep.mubr.bf16.mxu1 %v727_v0  ;;  %v2093_v35 = vrot.slane %v2091_v52, 6  ;;  %v720_v39 = vmax.f32 %v700_v55, 0.0  ;;  %v2100_v5 = vshll.u32 %v12411_v34, 16  ;;  %v12601_v0 = vld [vmem:[%s11862_s17 + $0x5c] sm:$0x3] }
 0x108   : > { %v10967_v23 = vpop.f32.mrf.mxu0  ;;  %10993 = vmatmul.mubr.bf16.gmra.mxu1 %v728_v49  ;;  %v2085_v49 = vor.u32 %v2084_v53, %v2081_v54  ;;  %v12567_v52 = vsel %vm12146_vm7, %v9938_v62, %v1860_v29  ;;  %v12571_v55 = vsel %vm12146_vm7, %v1862_v57, %v1863_v51  ;;  %v2107_v53 = vshrl.u32 %v12450_v45, 16 }
 0x109   : > { %v703_v30 = vadd.f32 %v10967_v23, %v12310_v17  ;;  %v718_v59 = vmax.f32 %v692_v18, 0.0  ;;  %v2077_v23 = vrot.slane %v12544_v32, 4  ;;  %17245 = vst [vmem:[#allocation32_spill] sm:$0xff] %v12567_v52  ;;  %17246 = vst [vmem:[#allocation33_spill] sm:$0xff] %v12571_v55  ;;  %v2110_v18 = vshll.u32 %v12450_v45, 16 }
 0x10a   : > { %v694_v19 = vpop.f32.mrf.mxu0  ;;  %v2116_v29 = vshrl.u32 %v12486_v33, 16  ;;  %v2119_v62 = vshll.u32 %v12486_v33, 16  ;;  %v2125_v51 = vshrl.u32 %v12456_v42, 16  ;;  %v10036_v55 = vld [vmem:[%s16982_s2 + $0xc] sm:$0x3]  ;;  %v2172_v52 = vshrl.u32 %v12578_v37, 16 }
 0x10b   : > { %v721_v3 = vmax.f32 %v703_v30, 0.0  ;;  %v695_v36 = vadd.f32 %v12310_v17, %v694_v19  ;;  %v2099_v17 = vrot.slane %v2097_v50, 5  ;;  %v2102_v19 = vrot.slane %v2100_v5, 6 }
 0x10c   : > { %11011 = vmatmul.mubr.msk.bf16.gmra.mxu0 %vm580_vm3, %v12195_v26  ;;  %v2094_v26 = vor.u32 %v2093_v35, %v2090_v7  ;;  %v2128_v50 = vshll.u32 %v12456_v42, 16  ;;  %v2147_v7 = vshll.u32 %v12520_v21, 16  ;;  %v2153_v35 = vshrl.u32 %v12509_v12, 16 }
 0x10d   : > { %v719_v54 = vmax.f32 %v695_v36, 0.0  ;;  %11014 = vmatprep.mubr.msk.bf16.mxu0 %vm580_vm3, %v12197_v27  ;;  %v730_v30 = vpack.c.bf16 %v721_v3, %v720_v39  ;;  %v12584_v36 = vsel %vm11882_vm4, %v2077_v23, %v2085_v49  ;;  %v12587_v27 = vld [vmem:[%s11862_s17 + $0x58] sm:$0xf]  ;;  %v2144_v3 = vshrl.u32 %v12520_v21, 16 }
 0x10e   : > { %v2156_v39 = vshll.u32 %v12509_v12, 16  ;;  %v12595_v5 = vrot.slane %v2094_v26, 4  ;;  %v2109_v49 = vrot.slane %v2107_v53, 5  ;;  %v9939_v23 = vrot.slane %v12578_v37, 9 }
 0x10f   : > { %v729_v57 = vpack.c.bf16 %v719_v54, %v718_v59  ;;  %v2112_v59 = vrot.slane %v2110_v18, 6  ;;  %v12598_v54 = vor.u32 %v2102_v19, %v2099_v17  ;;  %v1867_v63 = vrot.slane %v12587_v27, 5  ;;  %v12613_v17 = vld [vmem:[%s11862_s17 + $0x64] sm:$0xf] }
 0x110   : > { %v2118_v21 = vrot.slane %v2116_v29, 5  ;;  %v2121_v22 = vrot.slane %v2119_v62, 6  ;;  %v17247_v12 = vcombine.low %v12172_v9, %v12176_v56  ;;  %v2127_v26 = vrot.slane %v2125_v51, 5 }
 0x111   : > { %10996 = vmatprep.mubr.bf16.mxu1 %v729_v57  ;;  %v2130_v57 = vrot.slane %v2128_v50, 6  ;;  %v2135_v53 = vshrl.u32 %v12492_v28, 16  ;;  %v2138_v18 = vshll.u32 %v12492_v28, 16  ;;  %v2149_v19 = vrot.slane %v2147_v7, 6 }
 0x112   : > { %10997 = vmatmul.mubr.bf16.gmra.mxu1 %v730_v30  ;;  %v2146_v30 = vrot.slane %v2144_v3, 5  ;;  %v2155_v29 = vrot.slane %v2153_v35, 5  ;;  %v2158_v62 = vrot.slane %v2156_v39, 6  ;;  %v17248_v9 = vcombine.low %v12255_v11, %v12259_v25 }
 0x113   : > { %11020 = vmatprep.mubr.msk.bf16.mxu1 %vm580_vm3, %v17247_v12  ;;  %v1870_v12 = vrot.slane %v12601_v0, 5  ;;  %v2166_v51 = vshll.u32 %v12530_v46, 16  ;;  %v2105_v50 = vrot.slane %v12598_v54, 4  ;;  %v2113_v3 = vor.u32 %v2112_v59, %v2109_v49 }
 0x114   : > { %11015 = vmatmul.mubr.msk.bf16.gmra.mxu0 %vm580_vm3, %v12299_v13  ;;  %v2163_v13 = vshrl.u32 %v12530_v46, 16  ;;  %v1869_v7 = vrot.slane %v1867_v63, 4  ;;  %v2122_v35 = vor.u32 %v2121_v22, %v2118_v21  ;;  %v12625_v39 = vor.u32 %v2130_v57, %v2127_v26  ;;  %v12643_v22 = vld [vmem:[%s11862_s17 + $0x68] sm:$0x3] }
 0x115   : > { %11038 = vmatprep.mubr.msk.bf16.mxu0 %vm580_vm3, %v17248_v9  ;;  %v2137_v11 = vrot.slane %v2135_v53, 5  ;;  %v2140_v25 = vrot.slane %v2138_v18, 6  ;;  %v12628_v9 = vld [vmem:[%s11862_s17 + $0x60] sm:$0xe]  ;;  %v1874_v56 = vrot.slane %v12613_v17, 5  ;;  %v2104_v49 = vsel %vm11882_vm4, %v12595_v5, %v12598_v54  ;;  %17250 = vst [vmem:[#allocation35_spill] sm:$0xff] %v12643_v22 }
 0x116   : > { %17249 = vst [vmem:[#allocation34_spill] sm:$0xff] %v12628_v9  ;;  %v12640_v21 = vsel %vm12146_vm7, %v9939_v23, %v1867_v63  ;;  %v2150_v59 = vor.u32 %v2149_v19, %v2146_v30  ;;  %v2159_v26 = vor.u32 %v2158_v62, %v2155_v29  ;;  %v2165_v57 = vrot.slane %v2163_v13, 5  ;;  %v12646_v18 = vld [vmem:[%s11862_s17 + $0x70] sm:$0xf] }
 0x117   : > { %v2168_v53 = vrot.slane %v2166_v51, 6  ;;  %v2175_v46 = vshll.u32 %v12578_v37, 16  ;;  %v17251_v24 = vcombine.low %v12211_v2, %v12227_v14  ;;  %v2114_v63 = vsel %vm11882_vm4, %v2105_v50, %v2113_v3 }
 0x118   : > { %v12658_v5 = vsel %vm12146_vm7, %v1869_v7, %v1870_v12  ;;  %v2123_v23 = vrot.slane %v2122_v35, 4  ;;  %v9940_v54 = vrot.slane %v12628_v9, 9  ;;  %v17252_v30 = vcombine.low %v12222_v44, %v12249_v15  ;;  %v12686_v12 = vld [vmem:[%s11862_s17 + $0x6c] sm:$0xe] }
 0x119   : > { %v2133_v2 = vrot.slane %v12625_v39, 4  ;;  %v2141_v14 = vor.u32 %v2140_v25, %v2137_v11  ;;  %v1877_v19 = vrot.slane %v12643_v22, 5  ;;  %v17253_v29 = vcombine.low %v12267_v40, %v12275_v48  ;;  %17255 = vst [vmem:[#allocation36_spill] sm:$0xff] %v12686_v12  ;;  %v17256_v48 = vld [vmem:[#allocation12_spill] sm:$0xff] }
 0x11a   : > { %11021 = vmatmul.mubr.msk.bf16.vlgmr.msra.gmra.mxu1 %vm580_vm3, %v17251_v24  ;;  %v1876_v24 = vrot.slane %v1874_v56, 4  ;;  %v12683_v15 = vsel %vm605_vm0, %v10036_v55, 0  ;;  %v2151_v62 = vrot.slane %v2150_v59, 4  ;;  %v1881_v40 = vrot.slane %v12646_v18, 5 }
 0x11b   : > { %11055 = vmatpush3.bf16.msra.mxu1 %v12206_v16  ;;  %11024 = vmatprep.mubr.msk.bf16.mxu1 %vm580_vm3, %v17252_v30  ;;  %v17254_v16 = vsel %vm11882_vm4, %v12547_v60, %v12544_v32  ;;  %v2161_v51 = vrot.slane %v2159_v26, 4  ;;  %v2169_v50 = vor.u32 %v2168_v53, %v2165_v57  ;;  %v12695_v32 = vld [vmem:[%s11862_s17 + $0x74] sm:$0x3]  ;;  %v2174_v60 = vrot.slane %v2172_v52, 5 }
 0x11c   : > { %11039 = vmatmul.mubr.msk.bf16.vlgmr.msra.gmra.mxu0 %vm580_vm3, %v17253_v29  ;;  %11604 = vmatprep.subr.msk.bf16.mxu1 %vm605_vm0, %v12483_v58  ;;  %v12680_v44 = vcombine.low %v17254_v16, %v12584_v36  ;;  %v17257_v58 = vld [vmem:[#allocation13_spill] sm:$0xff]  ;;  %v2177_v36 = vrot.slane %v2175_v46, 6  ;;  %v12698_v3 = vcombine.low %v2104_v49, %v2114_v63  ;;  %v12707_v35 = vsel %vm12146_vm7, %v9940_v54, %v1874_v56  ;;  %v17262_v54 = vld [vmem:[#allocation8_spill] sm:$0xff]  ;;  %v17266_v16 = vld [vmem:[#allocation10_spill] sm:$0xff] }
 0x11d   : > { %11073 = vmatpush3.bf16.msra.mxu0 %v12463_v43  ;;  %v17258_v13 = vcombine.low %v17256_v48, %v17257_v58  ;;  %v2132_v43 = vsel %vm11882_vm4, %v2123_v23, %v12625_v39  ;;  %17259 = vst [vmem:[#allocation12_spill] sm:$0xff] %v12707_v35  ;;  %v2142_v46 = vsel %vm11882_vm4, %v2133_v2, %v2141_v14  ;;  %v2181_v11 = vshrl.u32 %v12587_v27, 16  ;;  %v12726_v23 = vld [vmem:[%s11862_s17 + $0x78] sm:$0xe]  ;;  %v17263_v30 = vld [vmem:[#allocation9_spill] sm:$0xff] }
 0x11e   : > { %11605 = vmatprep.subr.msk.bf16.mxu0 %vm605_vm0, %v10036_v55  ;;  %v12713_v52 = vsel %vm12146_vm7, %v1876_v24, %v1877_v19  ;;  %v9941_v55 = vrot.slane %v12686_v12, 9  ;;  %v1883_v25 = vrot.slane %v1881_v40, 4  ;;  %v1884_v49 = vrot.slane %v12695_v32, 5  ;;  %17261 = vst [vmem:[#allocation37_spill] sm:$0xff] %v12726_v23  ;;  %v12735_v24 = vld [vmem:[%s11862_s17 + $0x7c] sm:$0xf] }
 0x11f   : > { %11042 = vmatprep.mubr.msk.bf16.mxu0 %vm580_vm3, %v17258_v13  ;;  %17260 = vst [vmem:[#allocation13_spill] sm:$0xff] %v12713_v52  ;;  %v2184_v39 = vshll.u32 %v12587_v27, 16  ;;  %v2191_v56 = vshrl.u32 %v12601_v0, 16  ;;  %v2160_v59 = vsel %vm11882_vm4, %v2151_v62, %v2159_v26  ;;  %v2170_v57 = vsel %vm11882_vm4, %v2161_v51, %v2169_v50  ;;  %17265 = vst [vmem:[#allocation8_spill] sm:$0xff] %v12735_v24  ;;  %v17267_v62 = vld [vmem:[#allocation11_spill] sm:$0xff] }
 0x120   : > { %v2178_v53 = vor.u32 %v2177_v36, %v2174_v60  ;;  %v2194_v63 = vshll.u32 %v12601_v0, 16  ;;  %v17264_v2 = vcombine.low %v17262_v54, %v17263_v30  ;;  %v2200_v26 = vshrl.u32 %v12628_v9, 16  ;;  %v12768_v30 = vld [vmem:[%s11862_s17 + $0x80] sm:$0x3] }
 0x121   : > { %v2203_v19 = vshll.u32 %v12628_v9, 16  ;;  %v2209_v29 = vshrl.u32 %v12613_v17, 16  ;;  %v17268_v48 = vcombine.low %v17266_v16, %v17267_v62  ;;  %v12744_v58 = vcombine.low %v2132_v43, %v2142_v46 }
 0x122   : > { %11025 = vmatmul.mubr.msk.bf16.gmra.mxu1 %vm580_vm3, %v17264_v2  ;;  %v12748_v13 = vsel %vm12146_vm7, %v9941_v55, %v1881_v40  ;;  %v2183_v51 = vrot.slane %v2181_v11, 5  ;;  %v2212_v50 = vshll.u32 %v12613_v17, 16  ;;  %v17269_v60 = vcombine.low %v12332_v20, %v12344_v8 }
 0x123   : > { %11028 = vmatprep.mubr.msk.bf16.mxu1 %vm580_vm3, %v17268_v48  ;;  %v12755_v36 = vcombine.low %v2160_v59, %v2170_v57  ;;  %v12759_v54 = vsel %vm12146_vm7, %v1883_v25, %v1884_v49  ;;  %v2186_v43 = vrot.slane %v2184_v39, 6  ;;  %v2193_v46 = vrot.slane %v2191_v56, 5  ;;  %v17271_v48 = vld [vmem:[#allocation14_spill] sm:$0xff] }
 0x124   : > { %11043 = vmatmul.mubr.msk.bf16.gmra.mxu0 %vm580_vm3, %v17269_v60  ;;  %v17270_v40 = vcombine.low %v12371_v6, %v12382_v61  ;;  %v12765_v55 = vrot.slane %v2178_v53, 4  ;;  %v2196_v11 = vrot.slane %v2194_v63, 6  ;;  %v9942_v20 = vrot.slane %v12726_v23, 9 }
 0x125   : > { %v1888_v8 = vrot.slane %v12735_v24, 5  ;;  %v2202_v59 = vrot.slane %v2200_v26, 5  ;;  %v2205_v57 = vrot.slane %v2203_v19, 6  ;;  %v2211_v25 = vrot.slane %v2209_v29, 5 }
 0x126   : > { %11046 = vmatprep.mubr.msk.bf16.mxu0 %vm580_vm3, %v17270_v40  ;;  %v2219_v49 = vshrl.u32 %v12643_v22, 16  ;;  %v2214_v39 = vrot.slane %v2212_v50, 6  ;;  %v2222_v56 = vshll.u32 %v12643_v22, 16  ;;  %v2228_v6 = vshrl.u32 %v12686_v12, 16  ;;  %v17272_v50 = vld [vmem:[#allocation15_spill] sm:$0xff]  ;;  %v17275_v22 = vld [vmem:[#allocation21_spill] sm:$0xff] }
 0x127   : > { %v2231_v61 = vshll.u32 %v12686_v12, 16  ;;  %v12776_v53 = vor.u32 %v2186_v43, %v2183_v51  ;;  %v1891_v63 = vrot.slane %v12768_v30, 5  ;;  %v2237_v2 = vshrl.u32 %v12646_v18, 16 }
 0x128   : > { %v2240_v16 = vshll.u32 %v12646_v18, 16  ;;  %v2256_v26 = vshrl.u32 %v12726_v23, 16  ;;  %v2259_v19 = vshll.u32 %v12726_v23, 16  ;;  %v2265_v29 = vshrl.u32 %v12735_v24, 16 }
 0x129   : > { %v2268_v62 = vshll.u32 %v12735_v24, 16  ;;  %v17273_v60 = vcombine.low %v17271_v48, %v17272_v50  ;;  %v2197_v51 = vor.u32 %v2196_v11, %v2193_v46  ;;  %v1890_v43 = vrot.slane %v1888_v8, 4  ;;  %v17276_v24 = vld [vmem:[#allocation22_spill] sm:$0xff] }
 0x12a   : > { %v2206_v40 = vor.u32 %v2205_v57, %v2202_v59  ;;  %v2221_v14 = vrot.slane %v2219_v49, 5  ;;  %v17274_v7 = vcombine.low %v12361_v10, %v12367_v1  ;;  %v2215_v52 = vor.u32 %v2214_v39, %v2211_v25  ;;  %v17278_v59 = vld [vmem:[#allocation24_spill] sm:$0xff]  ;;  %v17279_v57 = vld [vmem:[#allocation25_spill] sm:$0xff] }
 0x12b   : > { %11029 = vmatmul.mubr.msk.bf16.gmra.mxu1 %vm580_vm3, %v17273_v60  ;;  %v2224_v23 = vrot.slane %v2222_v56, 6  ;;  %v2230_v35 = vrot.slane %v2228_v6, 5  ;;  %v2233_v12 = vrot.slane %v2231_v61, 6  ;;  %v17277_v9 = vcombine.low %v17275_v22, %v17276_v24 }
 0x12c   : > { %11032 = vmatprep.mubr.msk.bf16.mxu1 %vm580_vm3, %v17274_v7  ;;  %v2239_v48 = vrot.slane %v2237_v2, 5  ;;  %v2242_v50 = vrot.slane %v2240_v16, 6  ;;  %v2247_v46 = vshrl.u32 %v12695_v32, 16  ;;  %v2250_v11 = vshll.u32 %v12695_v32, 16 }
 0x12d   : > { %11047 = vmatmul.mubr.msk.bf16.gmra.mxu0 %vm580_vm3, %v17277_v9  ;;  %v17280_v10 = vcombine.low %v17278_v59, %v17279_v57  ;;  %v2258_v1 = vrot.slane %v2256_v26, 5  ;;  %v2261_v7 = vrot.slane %v2259_v19, 6  ;;  %v2267_v25 = vrot.slane %v2265_v29, 5  ;;  %v17282_v57 = vld [vmem:[#allocation19_spill] sm:$0xff] }
 0x12e   : > { %v2270_v49 = vrot.slane %v2268_v62, 6  ;;  %v2189_v39 = vrot.slane %v12776_v53, 4  ;;  %v12806_v9 = vsel %vm12146_vm7, %v9942_v20, %v1888_v8  ;;  %v2275_v22 = vshrl.u32 %v12768_v30, 16  ;;  %v17281_v8 = vld [vmem:[#allocation16_spill] sm:$0xff] }
 0x12f   : > { %11050 = vmatprep.mubr.msk.bf16.mxu0 %vm580_vm3, %v17280_v10  ;;  %v2278_v24 = vshll.u32 %v12768_v30, 16  ;;  %v2188_v56 = vsel %vm11882_vm4, %v12765_v55, %v12776_v53  ;;  %v2207_v6 = vrot.slane %v2206_v40, 4  ;;  %v2217_v61 = vrot.slane %v2215_v52, 4  ;;  %v17283_v10 = vld [vmem:[#allocation20_spill] sm:$0xff]  ;;  %v17285_v53 = vld [vmem:[#allocation26_spill] sm:$0xff] }
 0x130   : > { %v2225_v2 = vor.u32 %v2224_v23, %v2221_v14  ;;  %v2234_v16 = vor.u32 %v2233_v12, %v2230_v35  ;;  %v12814_v26 = vor.u32 %v2242_v50, %v2239_v48  ;;  %v2249_v19 = vrot.slane %v2247_v46, 5  ;;  %v17288_v50 = vld [vmem:[#allocation17_spill] sm:$0xff] }
 0x131   : > { %v2252_v29 = vrot.slane %v2250_v11, 6  ;;  %v12818_v20 = vsel %vm12146_vm7, %v1890_v43, %v1891_v63  ;;  %v2451_v62 = vrot.slane %v17281_v8, 6  ;;  %v2262_v60 = vor.u32 %v2261_v7, %v2258_v1  ;;  %v17286_v63 = vld [vmem:[#allocation27_spill] sm:$0xff]  ;;  %v17289_v11 = vld [vmem:[#allocation4_spill] sm:$0xff] }
 0x132   : > { %v12821_v59 = vor.u32 %v2270_v49, %v2267_v25  ;;  %v17284_v55 = vcombine.low %v17282_v57, %v17283_v10  ;;  %v2198_v12 = vsel %vm11882_vm4, %v2189_v39, %v2197_v51  ;;  %v2277_v35 = vrot.slane %v2275_v22, 5  ;;  %v17291_v49 = vld [vmem:[#allocation18_spill] sm:$0xff] }
 0x133   : > { %v2280_v23 = vrot.slane %v2278_v24, 6  ;;  %v2458_v14 = vrot.slane %v12411_v34, 6  ;;  %v17287_v43 = vcombine.low %v17285_v53, %v17286_v63  ;;  %v2216_v40 = vsel %vm11882_vm4, %v2207_v6, %v2215_v52  ;;  %v12892_v63 = vld [vmem:[%s11862_s17 + $0x40] sm:$0xf] }
 0x134   : > { %11033 = vmatmul.mubr.msk.bf16.gmra.mxu1 %vm580_vm3, %v17284_v55  ;;  %v2226_v48 = vsel %vm11882_vm4, %v2217_v61, %v2225_v2  ;;  %v9977_v46 = vrot.slane %v17288_v50, 10  ;;  %v2465_v51 = vrot.slane %v12456_v42, 6  ;;  %v17290_v1 = vcombine.low %v12469_v4, %v17289_v11  ;;  %v17292_v42 = vld [vmem:[#allocation23_spill] sm:$0xff]  ;;  %v12851_v61 = vld [vmem:[%s11862_s17 + $0x34] sm:$0xf]  ;;  %v17296_v50 = vld [vmem:[#allocation30_spill] sm:$0xff] }
 0x135   : > { %11056 = vmatprep.mubr.msk.bf16.mxu1 %vm580_vm3, %v17287_v43  ;;  %v2235_v34 = vrot.slane %v2234_v16, 4  ;;  %v2245_v7 = vrot.slane %v12814_v26, 4  ;;  %v2253_v25 = vor.u32 %v2252_v29, %v2249_v19  ;;  %v2454_v39 = vrot.slane %v17291_v49, 6  ;;  %v12868_v55 = vld [vmem:[%s11862_s17 + $0x30] sm:$0xe] }
 0x136   : > { %11051 = vmatmul.mubr.msk.bf16.gmra.mxu0 %vm580_vm3, %v17290_v1  ;;  %v2453_v52 = vrot.slane %v2451_v62, 4  ;;  %v2263_v22 = vrot.slane %v2262_v60, 4  ;;  %v2273_v24 = vrot.slane %v12821_v59, 4  ;;  %v9978_v6 = vrot.slane %v17292_v42, 10  ;;  %v12927_v49 = vld [vmem:[%s11862_s17 + $0x4c] sm:$0xf] }
 0x137   : > { %11074 = vmatprep.mubr.msk.bf16.mxu0 %vm580_vm3, %v12680_v44  ;;  %v2281_v4 = vor.u32 %v2280_v23, %v2277_v35  ;;  %v2460_v2 = vrot.slane %v2458_v14, 4  ;;  %v2461_v16 = vrot.slane %v12450_v45, 6  ;;  %v9979_v19 = vrot.slane %v12486_v33, 10  ;;  %v11676_v23 = vld [vmem:[%s16983_s3 + $0x70] sm:$0xff]  }
 0x138   : > { %v2467_v8 = vrot.slane %v2465_v51, 4  ;;  %v2468_v60 = vrot.slane %v12492_v28, 6  ;;  %v12860_v57 = vcombine.low %v2188_v56, %v2198_v12  ;;  %v12862_v10 = vcombine.low %v2216_v40, %v2226_v48  ;;  %v12889_v12 = vld [vmem:[%s11862_s17 + $0x38] sm:$0x3] }
 0x139   : > { %v2244_v45 = vsel %vm11882_vm4, %v2235_v34, %v12814_v26  ;;  %v2725_v33 = vrot.slane %v12851_v61, 5  ;;  %v2254_v35 = vsel %vm11882_vm4, %v2245_v7, %v2253_v25  ;;  %v12875_v53 = vsel %vm12238_vm9, %v9977_v46, %v2451_v62  ;;  %v10053_v26 = vld [vmem:[%s16982_s2 + $0xe] sm:$0x3]  ;;  %v17300_v7 = vld [vmem:[#allocation6_spill] sm:$0xff] }
 0x13a   : > { %v12879_v28 = vsel %vm12238_vm9, %v2453_v52, %v2454_v39  ;;  %v12883_v56 = vsel %vm12238_vm9, %v9978_v6, %v2458_v14  ;;  %v17294_v62 = vcombine.low %v12477_v41, %v12527_v38  ;;  %v2272_v43 = vsel %vm11882_vm4, %v2263_v22, %v12821_v59  ;;  %v10078_v41 = vld [vmem:[%s16982_s2 + $0x10] sm:$0x3]  ;;  %v17297_v59 = vld [vmem:[#allocation31_spill] sm:$0xff]  ;;  %v17299_v34 = vld [vmem:[#allocation28_spill] sm:$0xff] }
 0x13b   : > { %v2282_v14 = vsel %vm11882_vm4, %v2273_v24, %v2281_v4  ;;  %v12905_v40 = vsel %vm12238_vm9, %v2460_v2, %v2461_v16  ;;  %v12909_v48 = vsel %vm12238_vm9, %v9979_v19, %v2465_v51  ;;  %v17295_v38 = vld [vmem:[#allocation5_spill] sm:$0xff]  ;;  %v17298_v46 = vcombine.low %v17296_v50, %v17297_v59  ;;  %v12936_v24 = vld [vmem:[%s11862_s17 + $0x3c] sm:$0xe]  ;;  %v12952_v16 = vld [vmem:[%s11862_s17 + $0x44] sm:$0x3] }
 0x13c   : > { %11057 = vmatmul.mubr.msk.bf16.vlgmr.msra.gmra.mxu1 %vm580_vm3, %v17294_v62  ;;  %v12921_v11 = vsel %vm12238_vm9, %v2467_v8, %v2468_v60  ;;  %v10028_v1 = vrot.slane %v12868_v55, 9  ;;  %v9980_v51 = vrot.slane %v17299_v34, 10  ;;  %v2472_v25 = vrot.slane %v17300_v7, 6  ;;  %17301 = vst [vmem:[#allocation9_spill] sm:$0xff] %v12936_v24  ;;  %17302 = vst [vmem:[#allocation10_spill] sm:$0xff] %v12952_v16 }
 0x13d   : > { %11091 = vmatpush3.bf16.msra.mxu1 %v17295_v38  ;;  %11060 = vmatprep.mubr.msk.bf16.mxu1 %vm580_vm3, %v17298_v46  ;;  %v12931_v39 = vcombine.low %v2244_v45, %v2254_v35  ;;  %v2727_v52 = vrot.slane %v2725_v33, 4  ;;  %v2728_v22 = vrot.slane %v12889_v12, 5  ;;  %v2732_v42 = vrot.slane %v12892_v63, 5  ;;  %v12961_v45 = vld [vmem:[%s11862_s17 + $0x58] sm:$0xf] }
 0x13e   : > { %11075 = vmatmul.mubr.msk.bf16.vlgmr.msra.gmra.mxu0 %vm580_vm3, %v12698_v3  ;;  %11606 = vmatprep.subr.msk.bf16.mxu1 %vm605_vm0, %v10053_v26  ;;  %v12944_v6 = vcombine.low %v2272_v43, %v2282_v14  ;;  %v12949_v2 = vsel %vm605_vm0, %v10053_v26, 0  ;;  %v2479_v8 = vrot.slane %v12587_v27, 6  ;;  %v2739_v60 = vrot.slane %v12927_v49, 5  ;;  %v12973_v14 = vld [vmem:[%s11862_s17 + $0x48] sm:$0xe] }
 0x13f   : > { %11109 = vmatpush3.bf16.msra.mxu0 %v12683_v15  ;;  %11078 = vmatprep.mubr.msk.bf16.mxu0 %vm580_vm3, %v12744_v58  ;;  %v17303_v58 = vld [vmem:[#allocation29_spill] sm:$0xff]  ;;  %v12965_v35 = vsel %vm12146_vm7, %v10028_v1, %v2725_v33  ;;  %v12969_v26 = vsel %vm12238_vm9, %v9980_v51, %v2472_v25  ;;  %v2474_v62 = vrot.slane %v2472_v25, 4  ;;  %v10029_v43 = vrot.slane %v12936_v24, 9  ;;  %17304 = vst [vmem:[#allocation11_spill] sm:$0xff] %v12973_v14  ;;  %v17305_v25 = vld [vmem:[#allocation32_spill] sm:$0xff] }
 0x140   : > { %11607 = vmatprep.subr.msk.bf16.mxu0 %vm605_vm0, %v10078_v41  ;;  %v2475_v19 = vrot.slane %v17303_v58, 6  ;;  %v12976_v27 = vld [vmem:[%s11862_s17 + $0x50] sm:$0x3]  ;;  %v12980_v38 = vsel %vm12146_vm7, %v2727_v52, %v2728_v22  ;;  %v2734_v50 = vrot.slane %v2732_v42, 4  ;;  %v2735_v33 = vrot.slane %v12952_v16, 5 }
 0x141   : > { %v2486_v59 = vrot.slane %v12613_v17, 6  ;;  %v12985_v46 = vsel %vm605_vm0, %v10078_v41, 0  ;;  %v9981_v1 = vrot.slane %v12578_v37, 10  ;;  %v2482_v34 = vrot.slane %v12601_v0, 6  ;;  %v12990_v51 = vld [vmem:[%s11862_s17 + $0x54] sm:$0xe] }
 0x142   : > { %v2746_v7 = vrot.slane %v12961_v45, 5  ;;  %v17306_v52 = vld [vmem:[#allocation33_spill] sm:$0xff]  ;;  %v2481_v58 = vrot.slane %v2479_v8, 4  ;;  %v10030_v17 = vrot.slane %v12973_v14, 9  ;;  %v2741_v15 = vrot.slane %v2739_v60, 4 }
 0x143   : > { %v17307_v22 = vcombine.low %v17305_v25, %v17306_v52  ;;  %v2742_v41 = vrot.slane %v12976_v27, 5  ;;  %v13000_v4 = vld [vmem:[%s11862_s17 + $0x5c] sm:$0x3]  ;;  %v17309_v0 = vcombine.low %v12640_v21, %v12658_v5  ;;  %v13010_v25 = vsel %vm12238_vm9, %v2474_v62, %v2475_v19  ;;  %v13018_v3 = vld [vmem:[%s11862_s17 + $0x64] sm:$0xf] }
 0x144   : > { %17308 = vst [vmem:[#allocation14_spill] sm:$0xff] %v13000_v4  ;;  %v13014_v52 = vsel %vm12146_vm7, %v10029_v43, %v2732_v42  ;;  %17310 = vst [vmem:[#allocation15_spill] sm:$0xff] %v13018_v3  ;;  %v13024_v21 = vsel %vm12146_vm7, %v2734_v50, %v2735_v33  ;;  %v17311_v5 = vld [vmem:[#allocation34_spill] sm:$0xff]  ;;  %v2488_v37 = vrot.slane %v2486_v59, 4  ;;  %v17312_v19 = vld [vmem:[#allocation35_spill] sm:$0xff]  ;;  %v10031_v42 = vrot.slane %v12990_v51, 9 }
 0x145   : > { %11061 = vmatmul.mubr.msk.bf16.gmra.mxu1 %vm580_vm3, %v17307_v22  ;;  %v2493_v22 = vrot.slane %v12646_v18, 6  ;;  %v2489_v62 = vrot.slane %v17312_v19, 6  ;;  %v13032_v18 = vsel %vm12238_vm9, %v9981_v1, %v2479_v8  ;;  %v2749_v43 = vrot.slane %v13000_v4, 5  ;;  %v13037_v50 = vld [vmem:[%s11862_s17 + $0x60] sm:$0xe]  ;;  %v17315_v19 = vld [vmem:[#allocation36_spill] sm:$0xff] }
 0x146   : > { %11064 = vmatprep.mubr.msk.bf16.mxu1 %vm580_vm3, %v17309_v0  ;;  %11079 = vmatmul.mubr.msk.bf16.gmra.mxu0 %vm580_vm3, %v12755_v36  ;;  %v9982_v0 = vrot.slane %v17311_v5, 10  ;;  %17313 = vst [vmem:[#allocation21_spill] sm:$0xff] %v13032_v18  ;;  %v2748_v36 = vrot.slane %v2746_v7, 4  ;;  %v13041_v33 = vsel %vm12238_vm9, %v2481_v58, %v2482_v34  ;;  %v13045_v5 = vsel %vm12146_vm7, %v10030_v17, %v2739_v60  ;;  %v13057_v34 = vld [vmem:[%s11862_s17 + $0x68] sm:$0x3] }
 0x147   : > { %11082 = vmatprep.mubr.msk.bf16.mxu0 %vm580_vm3, %v12860_v57  ;;  %17314 = vst [vmem:[#allocation22_spill] sm:$0xff] %v13041_v33  ;;  %v13049_v57 = vsel %vm12146_vm7, %v2741_v15, %v2742_v41  ;;  %v2753_v8 = vrot.slane %v13018_v3, 5  ;;  %v9983_v29 = vrot.slane %v17315_v19, 10  ;;  %v2495_v44 = vrot.slane %v2493_v22, 4  ;;  %v13071_v41 = vld [vmem:[%s11862_s17 + $0x70] sm:$0xf] }
 0x148   : > { %v2496_v4 = vrot.slane %v12695_v32, 6  ;;  %v13063_v15 = vsel %vm12238_vm9, %v9982_v0, %v2486_v59  ;;  %v13067_v58 = vsel %vm12238_vm9, %v2488_v37, %v2489_v62  ;;  %v10032_v17 = vrot.slane %v13037_v50, 9  ;;  %17318 = vst [vmem:[#allocation16_spill] sm:$0xff] %v13071_v41  ;;  %v17319_v37 = vld [vmem:[#allocation12_spill] sm:$0xff]  ;;  %v17320_v0 = vld [vmem:[#allocation13_spill] sm:$0xff] }
 0x149   : > { %17316 = vst [vmem:[#allocation24_spill] sm:$0xff] %v13063_v15  ;;  %17317 = vst [vmem:[#allocation25_spill] sm:$0xff] %v13067_v58  ;;  %v13079_v1 = vsel %vm12146_vm7, %v10031_v42, %v2746_v7  ;;  %v13083_v59 = vsel %vm12146_vm7, %v2748_v36, %v2749_v43  ;;  %v17321_v62 = vcombine.low %v17319_v37, %v17320_v0  ;;  %v2755_v60 = vrot.slane %v2753_v8, 4  ;;  %v17322_v33 = vld [vmem:[#allocation37_spill] sm:$0xff]  ;;  %v17323_v18 = vld [vmem:[#allocation8_spill] sm:$0xff] }
 0x14a   : > { %v2756_v32 = vrot.slane %v13057_v34, 5  ;;  %v9984_v19 = vrot.slane %v17322_v33, 10  ;;  %v2500_v3 = vrot.slane %v17323_v18, 6  ;;  %v13093_v7 = vld [vmem:[%s11862_s17 + $0x6c] sm:$0xe]  ;;  %v17325_v42 = vcombine.low %v12748_v13, %v12759_v54 }
 0x14b   : > { %17324 = vst [vmem:[#allocation19_spill] sm:$0xff] %v13093_v7  ;;  %v13103_v43 = vsel %vm12238_vm9, %v9983_v29, %v2493_v22  ;;  %v13107_v37 = vsel %vm12238_vm9, %v2495_v44, %v2496_v4  ;;  %v13110_v33 = vld [vmem:[%s11862_s17 + $0x74] sm:$0x3]  ;;  %v2760_v18 = vrot.slane %v13071_v41, 5  ;;  %v13119_v54 = vsel %vm12146_vm7, %v10032_v17, %v2753_v8  ;;  %v13122_v29 = vld [vmem:[%s11862_s17 + $0x78] sm:$0xe] }
 0x14c   : > { %17326 = vst [vmem:[#allocation20_spill] sm:$0xff] %v13103_v43  ;;  %17327 = vst [vmem:[#allocation26_spill] sm:$0xff] %v13107_v37  ;;  %v13125_v22 = vld [vmem:[%s11862_s17 + $0x7c] sm:$0xf]  ;;  %v2946_v44 = vshrl.u32 %v12868_v55, 16  ;;  %v2949_v4 = vshll.u32 %v12868_v55, 16  ;;  %v13143_v36 = vsel %vm12238_vm9, %v9984_v19, %v2500_v3 }
 0x14d   : > { %11065 = vmatmul.mubr.msk.bf16.gmra.mxu1 %vm580_vm3, %v17321_v62  ;;  %17328 = vst [vmem:[#allocation27_spill] sm:$0xff] %v13110_v33  ;;  %17329 = vst [vmem:[#allocation17_spill] sm:$0xff] %v13122_v29  ;;  %v10033_v0 = vrot.slane %v13093_v7, 9  ;;  %v2955_v62 = vshrl.u32 %v12851_v61, 16  ;;  %v2958_v8 = vshll.u32 %v12851_v61, 16  ;;  %v2763_v13 = vrot.slane %v13110_v33, 5 }
 0x14e   : > { %11068 = vmatprep.mubr.msk.bf16.mxu1 %vm580_vm3, %v17325_v42  ;;  %11083 = vmatmul.mubr.msk.bf16.gmra.mxu0 %vm580_vm3, %v12862_v10  ;;  %17330 = vst [vmem:[#allocation4_spill] sm:$0xff] %v13125_v22  ;;  %v2503_v10 = vrot.slane %v12768_v30, 6  ;;  %v13139_v42 = vsel %vm12146_vm7, %v2755_v60, %v2756_v32  ;;  %v2762_v30 = vrot.slane %v2760_v18, 4  ;;  %v10034_v41 = vrot.slane %v13122_v29, 9  ;;  %v13149_v58 = vld [vmem:[%s11862_s17 + $0x80] sm:$0x3] }
 0x14f   : > { %11086 = vmatprep.mubr.msk.bf16.mxu0 %vm580_vm3, %v12931_v39  ;;  %v2502_v39 = vrot.slane %v2500_v3, 4  ;;  %v2767_v7 = vrot.slane %v13125_v22, 5  ;;  %17331 = vst [vmem:[#allocation18_spill] sm:$0xff] %v13149_v58  ;;  %v2948_v15 = vrot.slane %v2946_v44, 5  ;;  %v2951_v17 = vrot.slane %v2949_v4, 6 }
 0x150   : > { %v2965_v37 = vshrl.u32 %v12889_v12, 16  ;;  %v2968_v60 = vshll.u32 %v12889_v12, 16  ;;  %v2957_v32 = vrot.slane %v2955_v62, 5  ;;  %v2960_v43 = vrot.slane %v2958_v8, 6  ;;  %v13154_v19 = vld [vmem:[%s11862_s17 + $0x88] sm:$0xf] }
 0x151   : > { %17332 = vst [vmem:[#allocation23_spill] sm:$0xff] %v13154_v19  ;;  %v2974_v3 = vshrl.u32 %v12936_v24, 16  ;;  %v2977_v33 = vshll.u32 %v12936_v24, 16  ;;  %v17333_v22 = vcombine.low %v12806_v9, %v12818_v20  ;;  %v13164_v44 = vsel %vm12238_vm9, %v2502_v39, %v2503_v10 }
 0x152   : > { %v13168_v4 = vsel %vm12146_vm7, %v10033_v0, %v2760_v18  ;;  %v2983_v62 = vshrl.u32 %v12892_v63, 16  ;;  %v2986_v8 = vshll.u32 %v12892_v63, 16  ;;  %v17334_v29 = vcombine.low %v12875_v53, %v12879_v28  ;;  %v13188_v53 = vld [vmem:[%s11862_s17 + $0x84] sm:$0xe] }
 0x153   : > { %v13178_v9 = vsel %vm12146_vm7, %v2762_v30, %v2763_v13  ;;  %v13182_v20 = vsel %vm12146_vm7, %v10034_v41, %v2767_v7  ;;  %v2769_v18 = vrot.slane %v2767_v7, 4  ;;  %v2952_v10 = vor.u32 %v2951_v17, %v2948_v15  ;;  %v13198_v7 = vld [vmem:[%s11862_s17 + $0x8c] sm:$0x3] }
 0x154   : > { %v2967_v0 = vrot.slane %v2965_v37, 5  ;;  %v2970_v39 = vrot.slane %v2968_v60, 6  ;;  %v2774_v28 = vrot.slane %v13154_v19, 5  ;;  %v17335_v13 = vcombine.low %v12965_v35, %v12980_v38 }
 0x155   : > { %11069 = vmatmul.mubr.msk.bf16.gmra.mxu1 %vm580_vm3, %v17333_v22  ;;  %v2770_v22 = vrot.slane %v13149_v58, 5  ;;  %v13195_v41 = vor.u32 %v2960_v43, %v2957_v32  ;;  %v2979_v30 = vrot.slane %v2977_v33, 6  ;;  %v2985_v15 = vrot.slane %v2983_v62, 5 }
 0x156   : > { %11092 = vmatprep.mubr.msk.bf16.mxu1 %vm580_vm3, %v17334_v29  ;;  %11087 = vmatmul.mubr.msk.bf16.gmra.mxu0 %vm580_vm3, %v12944_v6  ;;  %v2976_v29 = vrot.slane %v2974_v3, 5  ;;  %v2993_v6 = vshrl.u32 %v12952_v16, 16  ;;  %v2988_v37 = vrot.slane %v2986_v8, 6  ;;  %v2996_v17 = vshll.u32 %v12952_v16, 16 }
 0x157   : > { %11110 = vmatprep.mubr.msk.bf16.mxu0 %vm580_vm3, %v17335_v13  ;;  %v3002_v60 = vshrl.u32 %v12973_v14, 16  ;;  %v13205_v19 = vsel %vm12146_vm7, %v2769_v18, %v2770_v22  ;;  %v3005_v35 = vshll.u32 %v12973_v14, 16  ;;  %v3011_v38 = vshrl.u32 %v12927_v49, 16 }
 0x158   : > { %v3014_v43 = vshll.u32 %v12927_v49, 16  ;;  %v13210_v32 = vrot.slane %v2952_v10, 4  ;;  %v2971_v33 = vor.u32 %v2970_v39, %v2967_v0  ;;  %v10035_v3 = vrot.slane %v13188_v53, 9 }
 0x159   : > { %v2777_v62 = vrot.slane %v13198_v7, 5  ;;  %v2963_v8 = vrot.slane %v13195_v41, 4  ;;  %v2776_v13 = vrot.slane %v2774_v28, 4  ;;  %v2980_v58 = vor.u32 %v2979_v30, %v2976_v29 }
 0x15a   : > { %v2995_v16 = vrot.slane %v2993_v6, 5  ;;  %v17336_v18 = vcombine.low %v12883_v56, %v12905_v40  ;;  %v2989_v22 = vor.u32 %v2988_v37, %v2985_v15  ;;  %v2998_v14 = vrot.slane %v2996_v17, 6 }
 0x15b   : > { %v3004_v24 = vrot.slane %v3002_v60, 5  ;;  %v3021_v10 = vshrl.u32 %v12976_v27, 16  ;;  %v17337_v0 = vcombine.low %v12909_v48, %v12921_v11  ;;  %v3007_v39 = vrot.slane %v3005_v35, 6 }
 0x15c   : > { %v3013_v29 = vrot.slane %v3011_v38, 5  ;;  %v3016_v30 = vrot.slane %v3014_v43, 6  ;;  %v3024_v6 = vshll.u32 %v12976_v27, 16  ;;  %v17338_v56 = vcombine.low %v13014_v52, %v13024_v21 }
 0x15d   : > { %11093 = vmatmul.mubr.msk.bf16.vlgmr.msra.gmra.mxu1 %vm580_vm3, %v17336_v18  ;;  %v10041_v40 = vcombine.low %v13119_v54, %v13139_v42  ;;  %v10042_v48 = vcombine.low %v13168_v4, %v13178_v9  ;;  %v10043_v11 = vcombine.low %v13182_v20, %v13205_v19  ;;  %v17339_v15 = vcombine.low %v13045_v5, %v13049_v57 }
 0x15e   : > { %11127 = vmatpush3.bf16.msra.mxu1 %v12949_v2  ;;  %11096 = vmatprep.mubr.msk.bf16.mxu1 %vm580_vm3, %v17337_v0  ;;  %v9993_v2 = vcombine.low %v13143_v36, %v13164_v44  ;;  %v2962_v52 = vsel %vm11882_vm4, %v13210_v32, %v13195_v41  ;;  %v13249_v21 = vsel %vm12146_vm7, %v10035_v3, %v2774_v28  ;;  %v2981_v42 = vrot.slane %v2980_v58, 4  ;;  %v17359_v36 = vld [vmem:[#allocation17_spill] sm:$0xff] }
 0x15f   : > { %11111 = vmatmul.mubr.msk.bf16.vlgmr.msra.gmra.mxu0 %vm580_vm3, %v17338_v56  ;;  %v13253_v54 = vsel %vm12146_vm7, %v2776_v13, %v2777_v62  ;;  %v2991_v5 = vrot.slane %v2989_v22, 4  ;;  %v2999_v57 = vor.u32 %v2998_v14, %v2995_v16  ;;  %v3008_v37 = vor.u32 %v3007_v39, %v3004_v24  ;;  %v17343_v13 = vld [vmem:[#allocation22_spill] sm:$0xff] }
 0x160   : > { %11145 = vmatpush3.bf16.msra.mxu0 %v12985_v46  ;;  %11114 = vmatprep.mubr.msk.bf16.mxu0 %vm580_vm3, %v17339_v15  ;;  %v2972_v46 = vsel %vm11882_vm4, %v2963_v8, %v2971_v33  ;;  %v13257_v17 = vor.u32 %v3016_v30, %v3013_v29  ;;  %v3023_v60 = vrot.slane %v3021_v10, 5  ;;  %v3026_v35 = vrot.slane %v3024_v6, 6  ;;  %v17341_v33 = vld [vmem:[#allocation15_spill] sm:$0xff]  ;;  %v17342_v8 = vld [vmem:[#allocation21_spill] sm:$0xff]  ;;  %v17346_v29 = vld [vmem:[#allocation14_spill] sm:$0xff] }
 0x161   : > { %v10044_v41 = vcombine.low %v13249_v21, %v13253_v54  ;;  %v10070_v28 = vrot.slane %v12868_v55, 10  ;;  %v3030_v47 = vshrl.u32 %v12990_v51, 16  ;;  %v3033_v38 = vshll.u32 %v12990_v51, 16 }
 0x162   : > { %v3039_v43 = vshrl.u32 %v12961_v45, 16  ;;  %v3042_v58 = vshll.u32 %v12961_v45, 16  ;;  %v3058_v16 = vshrl.u32 %v13037_v50, 16  ;;  %v3061_v24 = vshll.u32 %v13037_v50, 16 }
 0x163   : > { %v17340_v14 = vcombine.low %v12969_v26, %v13010_v25  ;;  %v2990_v55 = vsel %vm11882_vm4, %v2981_v42, %v2989_v22  ;;  %v3337_v32 = vrot.slane %v12851_v61, 6  ;;  %v3067_v3 = vshrl.u32 %v17341_v33, 16 }
 0x164   : > { %v3070_v62 = vshll.u32 %v17341_v33, 16  ;;  %v17344_v18 = vcombine.low %v17342_v8, %v17343_v13  ;;  %v3000_v10 = vsel %vm11882_vm4, %v2991_v5, %v2999_v57  ;;  %v3009_v26 = vrot.slane %v3008_v37, 4  ;;  %v17350_v13 = vld [vmem:[#allocation20_spill] sm:$0xff] }
 0x165   : > { %11097 = vmatmul.mubr.msk.bf16.gmra.mxu1 %vm580_vm3, %v17340_v14  ;;  %v3019_v25 = vrot.slane %v13257_v17, 4  ;;  %v3027_v0 = vor.u32 %v3026_v35, %v3023_v60  ;;  %v17345_v22 = vcombine.low %v13079_v1, %v13083_v59  ;;  %v3032_v61 = vrot.slane %v3030_v47, 5 }
 0x166   : > { %11100 = vmatprep.mubr.msk.bf16.mxu1 %vm580_vm3, %v17344_v18  ;;  %v3035_v39 = vrot.slane %v3033_v38, 6  ;;  %v3049_v30 = vshrl.u32 %v17346_v29, 16  ;;  %v3052_v6 = vshll.u32 %v17346_v29, 16  ;;  %v3041_v56 = vrot.slane %v3039_v43, 5  ;;  %v17351_v18 = vld [vmem:[#allocation26_spill] sm:$0xff] }
 0x167   : > { %11115 = vmatmul.mubr.msk.bf16.gmra.mxu0 %vm580_vm3, %v17345_v22  ;;  %v3044_v15 = vrot.slane %v3042_v58, 6  ;;  %v3060_v42 = vrot.slane %v3058_v16, 5  ;;  %v3063_v5 = vrot.slane %v3061_v24, 6  ;;  %v3069_v57 = vrot.slane %v3067_v3, 5 }
 0x168   : > { %11118 = vmatprep.mubr.msk.bf16.mxu0 %vm580_vm3, %v10041_v40  ;;  %v3072_v37 = vrot.slane %v3070_v62, 6  ;;  %v3077_v60 = vshrl.u32 %v13057_v34, 16  ;;  %v3080_v1 = vshll.u32 %v13057_v34, 16  ;;  %v10054_v59 = vcombine.low %v2962_v52, %v2972_v46  ;;  %v17347_v46 = vld [vmem:[#allocation24_spill] sm:$0xff] }
 0x169   : > { %v13293_v35 = vcombine.low %v2990_v55, %v3000_v10  ;;  %v3339_v47 = vrot.slane %v3337_v32, 4  ;;  %v3340_v38 = vrot.slane %v12889_v12, 6  ;;  %v3338_v14 = vsel %vm12238_vm9, %v10070_v28, %v3337_v32  ;;  %v17348_v55 = vld [vmem:[#allocation25_spill] sm:$0xff] }
 0x16a   : > { %v3036_v40 = vor.u32 %v3035_v39, %v3032_v61  ;;  %v3051_v43 = vrot.slane %v3049_v30, 5  ;;  %v3054_v58 = vrot.slane %v3052_v6, 6  ;;  %v3018_v16 = vsel %vm11882_vm4, %v3009_v26, %v13257_v17  ;;  %v17354_v39 = vld [vmem:[#allocation9_spill] sm:$0xff]  ;;  %v17355_v6 = vld [vmem:[#allocation10_spill] sm:$0xff] }
 0x16b   : > { %v3028_v24 = vsel %vm11882_vm4, %v3019_v25, %v3027_v0  ;;  %v3045_v3 = vor.u32 %v3044_v15, %v3041_v56  ;;  %v3344_v52 = vrot.slane %v12892_v63, 6  ;;  %v17349_v62 = vcombine.low %v17347_v46, %v17348_v55  ;;  %v17353_v63 = vld [vmem:[#allocation19_spill] sm:$0xff] }
 0x16c   : > { %v3064_v12 = vor.u32 %v3063_v5, %v3060_v42  ;;  %v3073_v28 = vor.u32 %v3072_v37, %v3069_v57  ;;  %v3079_v32 = vrot.slane %v3077_v60, 5  ;;  %v3082_v8 = vrot.slane %v3080_v1, 6  ;;  %v17356_v42 = vld [vmem:[#allocation16_spill] sm:$0xff]  ;;  %v17357_v37 = vld [vmem:[#allocation11_spill] sm:$0xff] }
 0x16d   : > { %11101 = vmatmul.mubr.msk.bf16.gmra.mxu1 %vm580_vm3, %v17349_v62  ;;  %v17352_v10 = vcombine.low %v17350_v13, %v17351_v18  ;;  %v3341_v17 = vsel %vm12238_vm9, %v3339_v47, %v3340_v38  ;;  %v3351_v26 = vrot.slane %v12927_v49, 6  ;;  %v3086_v25 = vshrl.u32 %v17353_v63, 16 }
 0x16e   : > { %v3089_v0 = vshll.u32 %v17353_v63, 16  ;;  %v3037_v22 = vrot.slane %v3036_v40, 4  ;;  %v3055_v61 = vor.u32 %v3054_v58, %v3051_v43  ;;  %v10071_v30 = vrot.slane %v17354_v39, 10 }
 0x16f   : > { %11104 = vmatprep.mubr.msk.bf16.mxu1 %vm580_vm3, %v17352_v10  ;;  %11119 = vmatmul.mubr.msk.bf16.gmra.mxu0 %vm580_vm3, %v10042_v48  ;;  %v3347_v56 = vrot.slane %v17355_v6, 6  ;;  %v3047_v49 = vrot.slane %v3045_v3, 4  ;;  %v3346_v15 = vrot.slane %v3344_v52, 4  ;;  %v3095_v5 = vshrl.u32 %v17356_v42, 16 }
 0x170   : > { %11122 = vmatprep.mubr.msk.bf16.mxu0 %vm580_vm3, %v10043_v11  ;;  %v3098_v57 = vshll.u32 %v17356_v42, 16  ;;  %v3065_v4 = vrot.slane %v3064_v12, 4  ;;  %v3075_v9 = vrot.slane %v3073_v28, 4  ;;  %v3083_v48 = vor.u32 %v3082_v8, %v3079_v32  ;;  %v17360_v8 = vld [vmem:[#allocation4_spill] sm:$0xff] }
 0x171   : > { %v10072_v60 = vrot.slane %v17357_v37, 10  ;;  %v3353_v1 = vrot.slane %v3351_v26, 4  ;;  %v3354_v47 = vrot.slane %v12976_v27, 6  ;;  %v3088_v38 = vrot.slane %v3086_v25, 5  ;;  %v17362_v37 = vld [vmem:[#allocation23_spill] sm:$0xff] }
 0x172   : > { %v3091_v40 = vrot.slane %v3089_v0, 6  ;;  %v10056_v43 = vcombine.low %v3018_v16, %v3028_v24  ;;  %v10079_v19 = vcombine.low %v3338_v14, %v3341_v17  ;;  %v3046_v20 = vsel %vm11882_vm4, %v3037_v22, %v3045_v3  ;;  %v17358_v24 = vld [vmem:[#allocation27_spill] sm:$0xff] }
 0x173   : > { %v3345_v11 = vsel %vm12238_vm9, %v10071_v30, %v3344_v52  ;;  %v3056_v58 = vsel %vm11882_vm4, %v3047_v49, %v3055_v61  ;;  %v3348_v46 = vsel %vm12238_vm9, %v3346_v15, %v3347_v56  ;;  %v3097_v55 = vrot.slane %v3095_v5, 5  ;;  %v17361_v56 = vld [vmem:[#allocation18_spill] sm:$0xff] }
 0x174   : > { %v3100_v62 = vrot.slane %v3098_v57, 6  ;;  %v3074_v27 = vsel %vm11882_vm4, %v3065_v4, %v3073_v28  ;;  %v3084_v14 = vsel %vm11882_vm4, %v3075_v9, %v3083_v48  ;;  %v3352_v16 = vsel %vm12238_vm9, %v10072_v60, %v3351_v26 }
 0x175   : > { %11105 = vmatmul.mubr.msk.bf16.gmra.mxu1 %vm580_vm3, %v9993_v2  ;;  %v3105_v3 = vshrl.u32 %v17358_v24, 16  ;;  %v3355_v52 = vsel %vm12238_vm9, %v3353_v1, %v3354_v47  ;;  %v3092_v12 = vor.u32 %v3091_v40, %v3088_v38  ;;  %v3114_v44 = vshrl.u32 %v17359_v36, 16 }
 0x176   : > { %11128 = vmatprep.mubr.msk.bf16.mxu1 %vm580_vm3, %v10054_v59  ;;  %v3117_v2 = vshll.u32 %v17359_v36, 16  ;;  %v10057_v28 = vcombine.low %v3046_v20, %v3056_v58  ;;  %v10080_v32 = vcombine.low %v3345_v11, %v3348_v46  ;;  %v3123_v13 = vshrl.u32 %v17360_v8, 16 }
 0x177   : > { %11123 = vmatmul.mubr.msk.bf16.gmra.mxu0 %vm580_vm3, %v10044_v41  ;;  %v3126_v18 = vshll.u32 %v17360_v8, 16  ;;  %v10058_v59 = vcombine.low %v3074_v27, %v3084_v14  ;;  %v13362_v10 = vor.u32 %v3100_v62, %v3097_v55  ;;  %v3108_v17 = vshll.u32 %v17358_v24, 16 }
 0x178   : > { %11146 = vmatprep.mubr.msk.bf16.mxu0 %vm580_vm3, %v10079_v19  ;;  %v3358_v26 = vrot.slane %v12961_v45, 6  ;;  %v10081_v25 = vcombine.low %v3352_v16, %v3355_v52  ;;  %v3107_v0 = vrot.slane %v3105_v3, 5  ;;  %v10073_v21 = vrot.slane %v12990_v51, 10 }
 0x179   : > { %v3365_v54 = vrot.slane %v17341_v33, 6  ;;  %v13368_v41 = vrot.slane %v3092_v12, 4  ;;  %v3361_v22 = vrot.slane %v17346_v29, 6  ;;  %v3116_v61 = vrot.slane %v3114_v44, 5 }
 0x17a   : > { %v3119_v39 = vrot.slane %v3117_v2, 6  ;;  %v3125_v30 = vrot.slane %v3123_v13, 5  ;;  %v3128_v6 = vrot.slane %v3126_v18, 6  ;;  %v3133_v49 = vshrl.u32 %v17361_v56, 16 }
 0x17b   : > { %v3136_v15 = vshll.u32 %v17361_v56, 16  ;;  %v3103_v45 = vrot.slane %v13362_v10, 4  ;;  %v3110_v5 = vrot.slane %v3108_v17, 6  ;;  %v3360_v57 = vrot.slane %v3358_v26, 4 }
 0x17c   : > { %v10074_v51 = vrot.slane %v13037_v50, 10  ;;  %v3367_v33 = vrot.slane %v3365_v54, 4  ;;  %v3368_v29 = vrot.slane %v13057_v34, 6  ;;  %v3142_v4 = vshrl.u32 %v13188_v53, 16 }
 0x17d   : > { %11129 = vmatmul.mubr.msk.bf16.vlgmr.msra.gmra.mxu1 %vm580_vm3, %v13293_v35  ;;  %v3145_v9 = vshll.u32 %v13188_v53, 16  ;;  %v3102_v48 = vsel %vm11882_vm4, %v13368_v41, %v13362_v10  ;;  %v3359_v50 = vsel %vm12238_vm9, %v10073_v21, %v3358_v26  ;;  %v3151_v60 = vshrl.u32 %v17362_v37, 16 }
 0x17e   : > { %11132 = vmatprep.mubr.msk.bf16.mxu1 %vm580_vm3, %v10056_v43  ;;  %v3154_v35 = vshll.u32 %v17362_v37, 16  ;;  %v3120_v34 = vor.u32 %v3119_v39, %v3116_v61  ;;  %v3129_v1 = vor.u32 %v3128_v6, %v3125_v30  ;;  %v3135_v47 = vrot.slane %v3133_v49, 5 }
 0x17f   : > { %11147 = vmatmul.mubr.msk.bf16.vlgmr.msra.gmra.mxu0 %vm580_vm3, %v10080_v32  ;;  %v3138_v38 = vrot.slane %v3136_v15, 6  ;;  %v3111_v40 = vor.u32 %v3110_v5, %v3107_v0  ;;  %v3362_v43 = vsel %vm12238_vm9, %v3360_v57, %v3361_v22  ;;  %v3366_v19 = vsel %vm12238_vm9, %v10074_v51, %v3365_v54 }
 0x180   : > { %11150 = vmatprep.mubr.msk.bf16.mxu0 %vm580_vm3, %v10081_v25  ;;  %v3372_v20 = vrot.slane %v17356_v42, 6  ;;  %v3369_v11 = vsel %vm12238_vm9, %v3367_v33, %v3368_v29  ;;  %v3144_v58 = vrot.slane %v3142_v4, 5  ;;  %v3147_v46 = vrot.slane %v3145_v9, 6  ;;  %v11675_v4 = vld [vmem:[%s16983_s3 + $0x78] sm:$0xff]   ;;  %v10148_v9 = vld [vmem:[%s16982_s2 + $0x14] sm:$0x3] }
 0x181   : > { %v3379_v55 = vrot.slane %v17360_v8, 6  ;;  %v3153_v62 = vrot.slane %v3151_v60, 5  ;;  %v3156_v27 = vrot.slane %v3154_v35, 6  ;;  %v3161_v14 = vshrl.u32 %v13198_v7, 16  ;;  %11162 = vmatprep.subr.bf16.mxu1 %v11675_v4  ;;  %11608 = vmatprep.subr.msk.bf16.mxu0 %vm605_vm0, %v10148_v9  ;;  %v11677_v35 = vld [vmem:[%s16983_s3 + $0x68] sm:$0xff]  }
 0x182   : > { %v3164_v16 = vshll.u32 %v13198_v7, 16  ;;  %v10082_v3 = vcombine.low %v3359_v50, %v3362_v43  ;;  %v3121_v52 = vrot.slane %v3120_v34, 4  ;;  %v3131_v12 = vrot.slane %v3129_v1, 4  ;;  %11163 = vmatpush3.bf16.msra.mxu1 %v11675_v4 }
 0x183   : > { %v3139_v44 = vor.u32 %v3138_v38, %v3135_v47  ;;  %v10083_v2 = vcombine.low %v3366_v19, %v3369_v11  ;;  %v10075_v42 = vrot.slane %v17353_v63, 10  ;;  %v3374_v32 = vrot.slane %v3372_v20, 4  ;;  %11164 = vmatprep.subr.bf16.mxu1 %v11676_v23  ;;  %v11678_v47 = vld [vmem:[%s16983_s3 + $0x60] sm:$0xff]   ;;  %v10123_v11 = vld [vmem:[%s11862_s17 + $0xc] sm:$0xf] }
 0x184   : > { %v3375_v13 = vrot.slane %v17358_v24, 6  ;;  %v3112_v8 = vsel %vm11882_vm4, %v3103_v45, %v3111_v40  ;;  %v10076_v18 = vrot.slane %v17359_v36, 10  ;;  %v3381_v10 = vrot.slane %v3379_v55, 4 }
 0x185   : > { %11133 = vmatmul.mubr.msk.bf16.gmra.mxu1 %vm580_vm3, %v10057_v28  ;;  %v3382_v17 = vrot.slane %v17361_v56, 6  ;;  %v3148_v26 = vor.u32 %v3147_v46, %v3144_v58  ;;  %v3157_v25 = vor.u32 %v3156_v27, %v3153_v62  ;;  %v3163_v0 = vrot.slane %v3161_v14, 5  ;;  %v10124_v58 = vld [vmem:[%s11862_s17 + $0x10] sm:$0xf] }
 0x186   : > { %11136 = vmatprep.mubr.msk.bf16.mxu1 %vm580_vm3, %v10058_v59  ;;  %v3166_v21 = vrot.slane %v3164_v16, 6  ;;  %v3130_v63 = vsel %vm11882_vm4, %v3121_v52, %v3129_v1  ;;  %v3140_v24 = vsel %vm11882_vm4, %v3131_v12, %v3139_v44  ;;  %v3373_v36 = vsel %vm12238_vm9, %v10075_v42, %v3372_v20  ;;  %11165 = vmatpush3.bf16.msra.mxu1 %v11676_v23  ;;  %v11679_v20 = vld [vmem:[%s16983_s3 + $0x58] sm:$0xff]   ;;  %v13494_v52 = vld [vmem:[%s11862_s17 + $0x14] sm:$0x7] }
 0x187   : > { %11151 = vmatmul.mubr.msk.bf16.gmra.mxu0 %vm580_vm3, %v10082_v3  ;;  %v3376_v28 = vsel %vm12238_vm9, %v3374_v32, %v3375_v13  ;;  %v3386_v59 = vrot.slane %v17362_v37, 6  ;;  %v10059_v54 = vcombine.low %v3102_v48, %v3112_v8  ;;  %v3380_v41 = vsel %vm12238_vm9, %v10076_v18, %v3379_v55  ;;  %11166 = vmatprep.subr.bf16.mxu1 %v11677_v35  ;;  %v10126_v3 = vld [vmem:[%s11862_s17 + $0x18] sm:$0xf]  ;;  %v10127_v12 = vld [vmem:[%s11862_s17 + $0x1c] sm:$0xf]  ;;  %v11680_v42 = vld [vmem:[%s16983_s3 + $0x50] sm:$0xff]  }
 0x188   : > { %11154 = vmatprep.mubr.msk.bf16.mxu0 %vm580_vm3, %v10083_v2  ;;  %v3383_v22 = vsel %vm12238_vm9, %v3381_v10, %v3382_v17  ;;  %v10060_v61 = vcombine.low %v3130_v63, %v3140_v24  ;;  %v3149_v39 = vrot.slane %v3148_v26, 4  ;;  %v3159_v30 = vrot.slane %v3157_v25, 4  ;;  %v13513_v26 = vld [vmem:[%s11862_s17 + $0x20] sm:$0x7] }
 0x189   : > { %v3167_v6 = vor.u32 %v3166_v21, %v3163_v0  ;;  %v10084_v56 = vcombine.low %v3373_v36, %v3376_v28  ;;  %v10085_v49 = vcombine.low %v3380_v41, %v3383_v22  ;;  %v10077_v15 = vrot.slane %v13188_v53, 10 }
 0x18a   : > { %v3388_v45 = vrot.slane %v3386_v59, 4  ;;  %v3389_v5 = vrot.slane %v13198_v7, 6  ;;  %v3158_v57 = vsel %vm11882_vm4, %v3149_v39, %v3157_v25  ;;  %v4211_v50 = vsel %vm605_vm0, %v10148_v9, 0  ;;  %11167 = vmatpush3.bf16.msra.mxu1 %v11677_v35  ;;  %v11681_v39 = vld [vmem:[%s16983_s3 + $0x48] sm:$0xff]  }
 0x18b   : > { %v3168_v51 = vsel %vm11882_vm4, %v3159_v30, %v3167_v6  ;;  %v3387_v53 = vsel %vm12238_vm9, %v10077_v15, %v3386_v59  ;;  %11195 = vmatpush3.bf16.msra.mxu0 %v4211_v50  ;;  %11168 = vmatprep.subr.bf16.mxu1 %v11678_v47  ;;  %v13484_v62 = vshrl.u32 %v10123_v11, 16  ;;  %v13486_v27 = vshll.u32 %v10123_v11, 16  ;;  %v10130_v9 = vld [vmem:[%s11862_s17 + $0x28] sm:$0xf]  ;;  %v13555_v35 = vld [vmem:[%s11862_s17 + $0x2c] sm:$0x7] }
 0x18c   : > { %v3390_v7 = vsel %vm12238_vm9, %v3388_v45, %v3389_v5  ;;  %v10061_v33 = vcombine.low %v3158_v57, %v3168_v51  ;;  %v13488_v14 = vshll.u32 %v10124_v58, 16  ;;  %v13490_v16 = vshrl.u32 %v10124_v58, 16  ;;  %v10129_v57 = vld [vmem:[%s11862_s17 + $0x24] sm:$0xf] }
 0x18d   : > { %11137 = vmatmul.mubr.msk.bf16.gmra.mxu1 %vm580_vm3, %v10059_v54  ;;  %v10086_v29 = vcombine.low %v3387_v53, %v3390_v7  ;;  %v13505_v32 = vshll.u32 %v13494_v52, 16  ;;  %v4040_v13 = vrot.slane %v13484_v62, 5  ;;  %v4041_v8 = vrot.slane %v13486_v27, 6  ;;  %v11682_v58 = vld [vmem:[%s16983_s3 + $0x40] sm:$0xff]  }
 0x18e   : > { %11140 = vmatprep.mubr.msk.bf16.mxu1 %vm580_vm3, %v10060_v61  ;;  %11169 = vmatpush3.bf16.msra.mxu1 %v11678_v47  ;;  %v4044_v18 = vrot.slane %v13490_v16, 5  ;;  %v4045_v10 = vrot.slane %v13488_v14, 6  ;;  %v17051_v17 = vshrl.u32 %v13494_v52, 16  ;;  %v13515_v25 = vshrl.u32 %v10126_v3, 16 }
 0x18f   : > { %11155 = vmatmul.mubr.msk.bf16.gmra.mxu0 %vm580_vm3, %v10084_v56  ;;  %11170 = vmatprep.subr.bf16.mxu1 %v11679_v20  ;;  %v4042_v21 = vor.u32 %v4041_v8, %v4040_v13  ;;  %v4052_v63 = vrot.slane %v13505_v32, 6  ;;  %v13520_v24 = vshll.u32 %v10126_v3, 16  ;;  %v13522_v36 = vshll.u32 %v10127_v12, 16 }
 0x190   : > { %11158 = vmatprep.mubr.msk.bf16.mxu0 %vm580_vm3, %v10085_v49  ;;  %v4046_v28 = vor.u32 %v4045_v10, %v4044_v18  ;;  %v4051_v59 = vrot.slane %v17051_v17, 5  ;;  %v13526_v54 = vshrl.u32 %v10127_v12, 16  ;;  %v13529_v41 = vshll.u32 %v13513_v26, 16 }
 0x191   : > { %v4043_v30 = vrot.slane %v4042_v21, 4  ;;  %v4055_v6 = vrot.slane %v13515_v25, 5  ;;  %v4056_v56 = vrot.slane %v13520_v24, 6  ;;  %v4060_v49 = vrot.slane %v13522_v36, 6 }
 0x192   : > { %11171 = vmatpush3.bf16.msra.mxu1 %v11679_v20  ;;  %v4048_v15 = vrot.slane %v4046_v28, 4  ;;  %v4053_v45 = vor.u32 %v4052_v63, %v4051_v59  ;;  %v4059_v5 = vrot.slane %v13526_v54, 5  ;;  %v4067_v4 = vrot.slane %v13529_v41, 6 }
 0x193   : > { %11172 = vmatprep.subr.bf16.mxu1 %v11680_v42  ;;  %v4047_v7 = vsel %vm11882_vm4, %v4043_v30, %v4046_v28  ;;  %v13557_v47 = vshrl.u32 %v10129_v57, 16  ;;  %v13568_v13 = vshll.u32 %v10129_v57, 16  ;;  %v13570_v18 = vshll.u32 %v10130_v9, 16 }
 0x194   : > { %v4054_v23 = vsel %vm11882_vm4, %v4048_v15, %v4053_v45  ;;  %v4061_v50 = vor.u32 %v4060_v49, %v4059_v5  ;;  %v13572_v10 = vshrl.u32 %v10130_v9, 16  ;;  %v10133_v15 = vld [vmem:[%s11862_s17 + $0x34] sm:$0xf] }
 0x195   : > { %11141 = vmatmul.mubr.msk.bf16.gmra.mxu1 %vm580_vm3, %v10061_v33  ;;  %v4057_v33 = vor.u32 %v4056_v56, %v4055_v6  ;;  %v10149_v3 = vcombine.low %v4047_v7, %v4054_v23  ;;  %v4070_v30 = vrot.slane %v13557_v47, 5  ;;  %v10132_v6 = vld [vmem:[%s11862_s17 + $0x30] sm:$0xf]  ;;  %v4071_v56 = vrot.slane %v13568_v13, 6 }
 0x196   : > { %11173 = vmatpush3.bf16.msra.mxu1 %v11680_v42  ;;  %v4063_v8 = vrot.slane %v4061_v50, 4  ;;  %v4074_v49 = vrot.slane %v13572_v10, 5  ;;  %v4075_v57 = vrot.slane %v13570_v18, 6  ;;  %v17053_v7 = vshrl.u32 %v13555_v35, 16  ;;  %v10147_v23 = vld [vmem:[%s16982_s2 + $0x12] sm:$0x3] }
 0x197   : > { %11159 = vmatmul.mubr.msk.bf16.gmra.mxu0 %vm580_vm3, %v10086_v29  ;;  %11174 = vmatprep.subr.bf16.mxu1 %v11681_v39  ;;  %v17052_v29 = vshrl.u32 %v13513_v26, 16  ;;  %v4058_v12 = vrot.slane %v4057_v33, 4 }
 0x198   : > { %11196 = vmatprep.mubr.msk.bf16.mxu0 %vm580_vm3, %v10149_v3  ;;  %v13602_v3 = vshll.u32 %v10132_v6, 16 }
 0x199   : > { %v4066_v42 = vrot.slane %v17052_v29, 5  ;;  %v4062_v28 = vsel %vm11882_vm4, %v4058_v12, %v4061_v50  ;;  %v4072_v50 = vor.u32 %v4071_v56, %v4070_v30  ;;  %v10181_v30 = vld [vmem:[%s16982_s2 + $0x16] sm:$0x3] }
 0x19a   : > { %11175 = vmatpush3.bf16.msra.mxu1 %v11681_v39  ;;  %v13582_v39 = vshll.u32 %v13555_v35, 16  ;;  %11610 = vmatprep.subr.msk.bf16.mxu0 %vm605_vm0, %v10181_v30 }
 0x19b   : > { %11176 = vmatprep.subr.bf16.mxu1 %v11682_v58  ;;  %v4068_v59 = vor.u32 %v4067_v4, %v4066_v42  ;;  %v10134_v4 = vld [vmem:[%s11862_s17 + $0x38] sm:$0x7] }
 0x19c   : > { %v4082_v33 = vrot.slane %v13582_v39, 6  ;;  %v13619_v56 = vshll.u32 %v10134_v4, 16 }
 0x19d   : > { %v4069_v5 = vsel %vm11882_vm4, %v4063_v8, %v4068_v59  ;;  %v4076_v8 = vor.u32 %v4075_v57, %v4074_v49  ;;  %v13611_v59 = vshll.u32 %v10133_v15, 16 }
 0x19e   : > { %11177 = vmatpush3.bf16.msra.mxu1 %v11682_v58  ;;  %v10150_v9 = vcombine.low %v4062_v28, %v4069_v5  ;;  %v13600_v58 = vshrl.u32 %v10132_v6, 16  ;;  %v4081_v28 = vrot.slane %v17053_v7, 5  ;;  %v13613_v5 = vshrl.u32 %v10133_v15, 16  ;;  %17377 = vst [vmem:[#allocation37_spill] sm:$0xff] %v13619_v56  ;;  %v10135_v7 = vld [vmem:[%s11862_s17 + $0x3c] sm:$0xf] }
 0x19f   : > { %11609 = vmatprep.subr.msk.bf16.mxu1 %vm605_vm0, %v10147_v23  ;;  %17376 = vst [vmem:[#allocation13_spill] sm:$0xff] %v13611_v59  ;;  %v4073_v6 = vrot.slane %v4072_v50, 4  ;;  %v4078_v49 = vrot.slane %v4076_v8, 4 }
 0x1a0   : > { %11197 = vmatmul.mubr.msk.bf16.vlgmr.msra.gmra.mxu0 %vm580_vm3, %v10150_v9  ;;  %v4083_v57 = vor.u32 %v4082_v33, %v4081_v28  ;;  %v4085_v15 = vrot.slane %v13600_v58, 5  ;;  %v4086_v9 = vrot.slane %v13602_v3, 6 }
 0x1a1   : > { %v4077_v50 = vsel %vm11882_vm4, %v4073_v6, %v4076_v8  ;;  %v4097_v6 = vrot.slane %v13619_v56, 6 }
 0x1a2   : > { %v4084_v33 = vsel %vm11882_vm4, %v4078_v49, %v4083_v57  ;;  %v4087_v28 = vor.u32 %v4086_v9, %v4085_v15  ;;  %v13656_v49 = vsel %vm605_vm0, %v10147_v23, 0  ;;  %v13661_v9 = vshll.u32 %v10135_v7, 16 }
 0x1a3   : > { %v10151_v8 = vcombine.low %v4077_v50, %v4084_v33  ;;  %17383 = vst [vmem:[#allocation14_spill] sm:$0xff] %v13656_v49 }
 0x1a4   : > { %17385 = vst [vmem:[#allocation25_spill] sm:$0xff] %v13661_v9 }
 0x1a5   : > { %11200 = vmatprep.mubr.msk.bf16.mxu0 %vm580_vm3, %v10151_v8 }
 0x1b4   : > { %v13446_v48 = vpop.f32.mrf.mxu0 }
 0x1b5   : > { %17363 = vst [vmem:[#allocation7_spill] sm:$0xff] %v13446_v48 }
 0x1b6   : > { %v13453_v37 = vpop.f32.mrf.mxu0 }
 0x1b7   : > { %17364 = vst [vmem:[#allocation5_spill] sm:$0xff] %v13453_v37 }
 0x1b8   : > { %v13455_v60 = vpop.f32.mrf.mxu0 }
 0x1b9   : > { %17365 = vst [vmem:[#allocation30_spill] sm:$0xff] %v13455_v60 }
 0x1ba   : > { %v13460_v34 = vpop.f32.mrf.mxu0 }
 0x1bb   : > { %17366 = vst [vmem:[#allocation31_spill] sm:$0xff] %v13460_v34 }
 0x1bc   : > { %v13462_v1 = vpop.f32.mrf.mxu0 }
 0x1be   : > { %v13467_v38 = vpop.f32.mrf.mxu1  ;;  %v13469_v40 = vpop.f32.mrf.mxu0 }
 0x1bf   : > { %17367 = vst [vmem:[#allocation28_spill] sm:$0xff] %v13467_v38  ;;  %v10138_v38 = vld [vmem:[%s11862_s17 + $0x48] sm:$0xf] }
 0x1c0   : > { %v13471_v43 = vpop.f32.mrf.mxu1  ;;  %v13473_v19 = vpop.f32.mrf.mxu0 }
 0x1c1   : > { %17368 = vst [vmem:[#allocation6_spill] sm:$0xff] %v13471_v43 }
 0x1c2   : > { %v13480_v46 = vpop.f32.mrf.mxu1  ;;  %v13482_v55 = vpop.f32.mrf.mxu0 }
 0x1c3   : > { %17369 = vst [vmem:[#allocation29_spill] sm:$0xff] %v13480_v46  ;;  %v13647_v46 = vld [vmem:[%s11862_s17 + $0x44] sm:$0x7] }
 0x1c4   : > { %v13497_v44 = vpop.f32.mrf.mxu1  ;;  %v13499_v2 = vpop.f32.mrf.mxu0 }
 0x1c5   : > { %17370 = vst [vmem:[#allocation32_spill] sm:$0xff] %v13497_v44  ;;  %v4089_v44 = vrot.slane %v13613_v5, 5 }
 0x1c6   : > { %v13517_v0 = vpop.f32.mrf.mxu0 }
 0x1c8   : > { %v13531_v22 = vpop.f32.mrf.mxu1  ;;  %v13533_v61 = vpop.f32.mrf.mxu0 }
 0x1c9   : > { %17371 = vst [vmem:[#allocation33_spill] sm:$0xff] %v13531_v22 }
 0x1ca   : > { %v13543_v51 = vpop.f32.mrf.mxu1  ;;  %v13545_v53 = vpop.f32.mrf.mxu0 }
 0x1cb   : > { %17372 = vst [vmem:[#allocation34_spill] sm:$0xff] %v13543_v51  ;;  %v10136_v51 = vld [vmem:[%s11862_s17 + $0x40] sm:$0xf] }
 0x1cc   : > { %v13559_v20 = vpop.f32.mrf.mxu1  ;;  %v13561_v11 = vpop.f32.mrf.mxu0  ;;  %v13663_v50 = vshll.u32 %v10136_v51, 16  ;;  %v13665_v33 = vshrl.u32 %v10136_v51, 16  ;;  %v4101_v51 = vrot.slane %v13661_v9, 6 }
 0x1cd   : > { %17373 = vst [vmem:[#allocation35_spill] sm:$0xff] %v13559_v20  ;;  %v4094_v20 = vshrl.u32 %v10134_v4, 16  ;;  %v4088_v4 = vrot.slane %v4087_v28, 4  ;;  %v13672_v28 = vshll.u32 %v13647_v46, 16 }
 0x1ce   : > { %v13574_v21 = vpop.f32.mrf.mxu1  ;;  %v13576_v63 = vpop.f32.mrf.mxu0  ;;  %17386 = vst [vmem:[#allocation20_spill] sm:$0xff] %v13663_v50  ;;  %17387 = vst [vmem:[#allocation26_spill] sm:$0xff] %v13665_v33  ;;  %v4104_v8 = vrot.slane %v13665_v33, 5  ;;  %v10140_v33 = vld [vmem:[%s11862_s17 + $0x50] sm:$0x7] }
 0x1cf   : > { %17374 = vst [vmem:[#allocation36_spill] sm:$0xff] %v13574_v21  ;;  %v4616_v21 = vsel %vm605_vm0, %v10181_v30, 0  ;;  %v17380_v30 = vshrl.u32 %v13513_v26, 16  ;;  %v4096_v15 = vrot.slane %v4094_v20, 5  ;;  %v13659_v26 = vrot.slane %v4094_v20, 6  ;;  %17388 = vst [vmem:[#allocation19_spill] sm:$0xff] %v13672_v28 }
 0x1d0   : > { %v13589_v45 = vpop.f32.mrf.mxu0  ;;  %11231 = vmatpush3.bf16.msra.mxu0 %v4616_v21 }
 0x1d1   : > { %v13643_v22 = vrot.slane %v17380_v30, 6  ;;  %17384 = vst [vmem:[#allocation24_spill] sm:$0xff] %v13659_v26 }
 0x1d2   : > { %v13604_v12 = vpop.f32.mrf.mxu1  ;;  %v13606_v42 = vpop.f32.mrf.mxu0 }
 0x1d3   : > { %17375 = vst [vmem:[#allocation12_spill] sm:$0xff] %v13604_v12  ;;  %v4090_v12 = vrot.slane %v13611_v59, 6 }
 0x1d4   : > { %v13621_v17 = vpop.f32.mrf.mxu1  ;;  %v13623_v29 = vpop.f32.mrf.mxu0 }
 0x1d5   : > { %17378 = vst [vmem:[#allocation8_spill] sm:$0xff] %v13621_v17  ;;  %v4091_v57 = vor.u32 %v4090_v12, %v4089_v44  ;;  %v4098_v12 = vor.u32 %v4097_v6, %v4096_v15  ;;  %v4105_v6 = vrot.slane %v13663_v50, 6  ;;  %v4112_v15 = vrot.slane %v13672_v28, 6 }
 0x1d6   : > { %v13633_v34 = vpop.f32.mrf.mxu1  ;;  %v13635_v17 = vpop.f32.mrf.mxu0  ;;  %v13693_v50 = vshll.u32 %v10138_v38, 16 }
 0x1d7   : > { %17379 = vst [vmem:[#allocation15_spill] sm:$0xff] %v13633_v34  ;;  %v13649_v34 = vshrl.u32 %v10135_v7, 16  ;;  %v4092_v23 = vsel %vm11882_vm4, %v4088_v4, %v4091_v57  ;;  %v4093_v44 = vrot.slane %v4091_v57, 4  ;;  %v17068_v57 = vshrl.u32 %v13647_v46, 16 }
 0x1d8   : > { %v13651_v21 = vpop.f32.mrf.mxu1  ;;  %v13653_v43 = vpop.f32.mrf.mxu0  ;;  %v4106_v56 = vor.u32 %v4105_v6, %v4104_v8  ;;  %17390 = vst [vmem:[#allocation10_spill] sm:$0xff] %v13693_v50  ;;  %v13703_v8 = vshll.u32 %v10140_v33, 16 }
 0x1d9   : > { %17381 = vst [vmem:[#allocation21_spill] sm:$0xff] %v13649_v34  ;;  %17382 = vst [vmem:[#allocation22_spill] sm:$0xff] %v13651_v21  ;;  %v4100_v7 = vrot.slane %v13649_v34, 5  ;;  %v4099_v4 = vsel %vm11882_vm4, %v4093_v44, %v4098_v12  ;;  %v4111_v44 = vrot.slane %v17068_v57, 5  ;;  %v13691_v12 = vshrl.u32 %v10138_v38, 16 }
 0x1da   : > { %v11022_v30 = vpop.f32.mrf.mxu1  ;;  %v13667_v21 = vpop.f32.mrf.mxu0  ;;  %v10152_v49 = vcombine.low %v4092_v23, %v4099_v4  ;;  %17393 = vst [vmem:[#allocation27_spill] sm:$0xff] %v13703_v8 }
 0x1db   : > { %v1510_v20 = vadd.f32 %v11022_v30, %v13462_v1  ;;  %v10139_v1 = vld [vmem:[%s11862_s17 + $0x4c] sm:$0xf]  ;;  %v4102_v9 = vor.u32 %v4101_v51, %v4100_v7  ;;  %17389 = vst [vmem:[#allocation9_spill] sm:$0xff] %v13691_v12  ;;  %v4113_v7 = vor.u32 %v4112_v15, %v4111_v44  ;;  %v4116_v15 = vrot.slane %v13693_v50, 6 }
 0x1dc   : > { %v1501_v60 = vpop.f32.mrf.mxu1  ;;  %v11040_v37 = vpop.f32.mrf.mxu0  ;;  %11201 = vmatmul.mubr.msk.bf16.gmra.mxu0 %vm580_vm3, %v10152_v49  ;;  %v13701_v51 = vshrl.u32 %v10139_v1, 16  ;;  %v10141_v49 = vld [vmem:[%s11862_s17 + $0x54] sm:$0xf]  ;;  %v4124_v44 = vshrl.u32 %v10140_v33, 16 }
 0x1dd   : > { %v1502_v30 = vadd.f32 %v1501_v60, %v13469_v40  ;;  %v13686_v48 = vadd.f32 %v11040_v37, %v1510_v20  ;;  %v4103_v37 = vrot.slane %v4102_v9, 4  ;;  %v13699_v60 = vshll.u32 %v10139_v1, 16 }
 0x1de   : > { %v11023_v34 = vpop.f32.mrf.mxu1  ;;  %v1710_v26 = vpop.f32.mrf.mxu0  ;;  %v4108_v20 = vrot.slane %v4106_v56, 4  ;;  %17392 = vst [vmem:[#allocation11_spill] sm:$0xff] %v13701_v51  ;;  %v4119_v1 = vrot.slane %v13701_v51, 5 }
 0x1df   : > { %v1513_v28 = vadd.f32 %v11023_v34, %v13473_v19  ;;  %v13696_v59 = vadd.f32 %v1710_v26, %v1502_v30  ;;  %17391 = vst [vmem:[#allocation16_spill] sm:$0xff] %v13699_v60  ;;  %v4107_v34 = vsel %vm11882_vm4, %v4103_v37, %v4106_v56  ;;  %v4115_v19 = vrot.slane %v13691_v12, 5  ;;  %v10142_v37 = vld [vmem:[%s11862_s17 + $0x58] sm:$0xf] }
 0x1e0   : > { %v1504_v40 = vpop.f32.mrf.mxu1  ;;  %v11041_v23 = vpop.f32.mrf.mxu0  ;;  %v4114_v6 = vsel %vm11882_vm4, %v4108_v20, %v4113_v7  ;;  %v4120_v30 = vrot.slane %v13699_v60, 6  ;;  %v4127_v20 = vrot.slane %v13703_v8, 6  ;;  %v13722_v7 = vshrl.u32 %v10141_v49, 16 }
 0x1e1   : > { %v1505_v38 = vadd.f32 %v1504_v40, %v13482_v55  ;;  %v13706_v4 = vadd.f32 %v11041_v23, %v1513_v28  ;;  %v10153_v56 = vcombine.low %v4107_v34, %v4114_v6  ;;  %v4117_v57 = vor.u32 %v4116_v15, %v4115_v19  ;;  %v13731_v34 = vld [vmem:[%s11862_s17 + $0x5c] sm:$0x7] }
 0x1e2   : > { %v11026_v26 = vpop.f32.mrf.mxu1  ;;  %v1713_v9 = vpop.f32.mrf.mxu0  ;;  %v4121_v12 = vor.u32 %v4120_v30, %v4119_v1  ;;  %17394 = vst [vmem:[#allocation17_spill] sm:$0xff] %v13722_v7  ;;  %17396 = vst [vmem:[#allocation18_spill] sm:$0xff] %v13731_v34  ;;  %v13733_v6 = vshll.u32 %v10141_v49, 16  ;;  %v13735_v15 = vshll.u32 %v10142_v37, 16  ;;  %v4130_v49 = vrot.slane %v13722_v7, 5 }
 0x1e3   : > { %v1526_v55 = vadd.f32 %v11026_v26, %v13499_v2  ;;  %v13718_v28 = vadd.f32 %v1713_v9, %v1505_v38  ;;  %11204 = vmatprep.mubr.msk.bf16.mxu0 %vm580_vm3, %v10153_v56  ;;  %v4126_v2 = vrot.slane %v4124_v44, 5  ;;  %v13728_v38 = vrot.slane %v4124_v44, 6 }
 0x1e4   : > { %v1517_v40 = vpop.f32.mrf.mxu1  ;;  %v11044_v23 = vpop.f32.mrf.mxu0  ;;  %v4118_v19 = vrot.slane %v4117_v57, 4  ;;  %v4123_v9 = vrot.slane %v4121_v12, 4  ;;  %17397 = vst [vmem:[#allocation23_spill] sm:$0xff] %v13733_v6  ;;  %17398 = vst [vmem:[#allocation38_spill] sm:$0xff] %v13735_v15  ;;  %v13745_v57 = vshll.u32 %v13731_v34, 16  ;;  %v17085_v7 = vshrl.u32 %v13731_v34, 16 }
 0x1e5   : > { %v1518_v51 = vadd.f32 %v1517_v40, %v13517_v0  ;;  %v13725_v50 = vadd.f32 %v11044_v23, %v1526_v55  ;;  %17395 = vst [vmem:[#allocation4_spill] sm:$0xff] %v13728_v38  ;;  %v4128_v30 = vor.u32 %v4127_v20, %v4126_v2  ;;  %v13740_v55 = vshrl.u32 %v10142_v37, 16 }
 0x1e6   : > { %v11027_v33 = vpop.f32.mrf.mxu1  ;;  %v1726_v26 = vpop.f32.mrf.mxu0  ;;  %v4122_v40 = vsel %vm11882_vm4, %v4118_v19, %v4121_v12  ;;  %17399 = vst [vmem:[#allocation39_spill] sm:$0xff] %v13745_v57  ;;  %v4131_v23 = vrot.slane %v13733_v6, 6  ;;  %v4135_v38 = vrot.slane %v13735_v15, 6  ;;  %v10145_v6 = vld [vmem:[%s11862_s17 + $0x64] sm:$0xf] }
 0x1e7   : > { %v1529_v0 = vadd.f32 %v11027_v33, %v13533_v61  ;;  %v13738_v1 = vadd.f32 %v1726_v26, %v1518_v51  ;;  %v10144_v61 = vld [vmem:[%s11862_s17 + $0x60] sm:$0xf]  ;;  %v4129_v37 = vsel %vm11882_vm4, %v4123_v9, %v4128_v30  ;;  %v4134_v2 = vrot.slane %v13740_v55, 5 }
 0x1e8   : > { %v1520_v56 = vpop.f32.mrf.mxu1  ;;  %v11045_v44 = vpop.f32.mrf.mxu0  ;;  %v10154_v26 = vcombine.low %v4122_v40, %v4129_v37  ;;  %v4132_v19 = vor.u32 %v4131_v23, %v4130_v49  ;;  %v13766_v9 = vshrl.u32 %v10144_v61, 16  ;;  %v4141_v49 = vrot.slane %v17085_v7, 5 }
 0x1e9   : > { %v1521_v51 = vadd.f32 %v1520_v56, %v13545_v53  ;;  %v13751_v20 = vadd.f32 %v11045_v44, %v1529_v0  ;;  %v4142_v53 = vrot.slane %v13745_v57, 6  ;;  %v13764_v0 = vld [vmem:[%s11862_s17 + $0x68] sm:$0x7]  ;;  %v4136_v40 = vor.u32 %v4135_v38, %v4134_v2 }
 0x1ea   : > { %v1729_v12 = vpop.f32.mrf.mxu0  ;;  %17400 = vst [vmem:[#allocation40_spill] sm:$0xff] %v13766_v9  ;;  %11205 = vmatmul.mubr.msk.bf16.gmra.mxu0 %vm580_vm3, %v10154_v26  ;;  %v4133_v44 = vrot.slane %v4132_v19, 4  ;;  %v13771_v23 = vshll.u32 %v10144_v61, 16  ;;  %v13776_v37 = vshll.u32 %v10145_v6, 16  ;;  %v13783_v2 = vshll.u32 %v13764_v0, 16 }
 0x1eb   : > { %v11030_v33 = vpop.f32.mrf.mxu1  ;;  %v13760_v60 = vadd.f32 %v1729_v12, %v1521_v51  ;;  %v4138_v19 = vrot.slane %v4136_v40, 4  ;;  %v4143_v38 = vor.u32 %v4142_v53, %v4141_v49 }
 0x1ec   : > { %v1542_v8 = vadd.f32 %v11030_v33, %v13561_v11  ;;  %17401 = vst [vmem:[#allocation41_spill] sm:$0xff] %v13771_v23  ;;  %17402 = vst [vmem:[#allocation42_spill] sm:$0xff] %v13776_v37  ;;  %v13778_v33 = vshrl.u32 %v10145_v6, 16  ;;  %v4137_v26 = vsel %vm11882_vm4, %v4133_v44, %v4136_v40  ;;  %v4145_v6 = vrot.slane %v13766_v9, 5 }
 0x1ed   : > { %v1533_v30 = vpop.f32.mrf.mxu1  ;;  %v11048_v56 = vpop.f32.mrf.mxu0  ;;  %v4144_v44 = vsel %vm11882_vm4, %v4138_v19, %v4143_v38  ;;  %v4150_v49 = vrot.slane %v13776_v37, 6  ;;  %v4157_v19 = vrot.slane %v13783_v2, 6 }
 0x1ee   : > { %v1534_v11 = vadd.f32 %v1533_v30, %v13576_v63  ;;  %v13774_v51 = vadd.f32 %v11048_v56, %v1542_v8  ;;  %v13788_v63 = vld [vmem:[%s16982_s2 + $0x1a] sm:$0x3]  ;;  %v4146_v30 = vrot.slane %v13771_v23, 6  ;;  %v4149_v40 = vrot.slane %v13778_v33, 5 }
 0x1ef   : > { %v11031_v12 = vpop.f32.mrf.mxu1  ;;  %v1742_v57 = vpop.f32.mrf.mxu0  ;;  %11612 = vmatprep.subr.msk.bf16.mxu0 %vm605_vm0, %v13788_v63 }
 0x1f0   : > { %v1545_v8 = vadd.f32 %v11031_v12, %v13589_v45  ;;  %v13791_v61 = vadd.f32 %v1742_v57, %v1534_v11  ;;  %v17095_v45 = vshrl.u32 %v13764_v0, 16  ;;  %v10155_v12 = vcombine.low %v4137_v26, %v4144_v44 }
 0x1f1   : > { %v1536_v53 = vpop.f32.mrf.mxu1  ;;  %v11049_v56 = vpop.f32.mrf.mxu0  ;;  %v4147_v7 = vor.u32 %v4146_v30, %v4145_v6  ;;  %v4151_v34 = vor.u32 %v4150_v49, %v4149_v40 }
 0x1f2   : > { %v1537_v57 = vadd.f32 %v1536_v53, %v13606_v42  ;;  %v13803_v11 = vadd.f32 %v11049_v56, %v1545_v8  ;;  %v4156_v15 = vrot.slane %v17095_v45, 5  ;;  %11208 = vmatprep.mubr.msk.bf16.mxu0 %vm580_vm3, %v10155_v12  ;;  %v4461_v53 = vrot.slane %v13484_v62, 6 }
 0x1f3   : > { %v1745_v9 = vpop.f32.mrf.mxu0  ;;  %v4148_v42 = vrot.slane %v4147_v7, 4  ;;  %v4153_v6 = vrot.slane %v4151_v34, 4  ;;  %v4462_v56 = vrot.slane %v13486_v27, 7  ;;  %v17403_v12 = vshrl.u32 %v13494_v52, 16 }
 0x1f4   : > { %v11034_v23 = vpop.f32.mrf.mxu1  ;;  %v13809_v37 = vadd.f32 %v1745_v9, %v1537_v57  ;;  %v4158_v30 = vor.u32 %v4157_v19, %v4156_v15  ;;  %v4465_v9 = vrot.slane %v13490_v16, 6  ;;  %v4466_v15 = vrot.slane %v13488_v14, 7 }
 0x1f5   : > { %v1558_v38 = vadd.f32 %v11034_v23, %v13623_v29  ;;  %v4152_v29 = vsel %vm11882_vm4, %v4148_v42, %v4151_v34  ;;  %v4463_v57 = vor.u32 %v4462_v56, %v4461_v53  ;;  %v4470_v19 = vrot.slane %v17403_v12, 6 }
 0x1f6   : > { %v1549_v8 = vpop.f32.mrf.mxu1  ;;  %v11052_v26 = vpop.f32.mrf.mxu0  ;;  %v4159_v49 = vsel %vm11882_vm4, %v4153_v6, %v4158_v30  ;;  %v17404_v34 = vmov 0  ;;  %v4471_v42 = vrot.slane %v13505_v32, 7  ;;  %v4467_v53 = vor.u32 %v4466_v15, %v4465_v9 }
 0x1f7   : > { %v1550_v44 = vadd.f32 %v1549_v8, %v13635_v17  ;;  %v13815_v40 = vadd.f32 %v11052_v26, %v1558_v38  ;;  %v10156_v8 = vcombine.low %v4152_v29, %v4159_v49  ;;  %v17405_v34 = vsel %vm13830_vm12, 4294967295, %v17404_v34 }
 0x1f8   : > { %v11035_v23 = vpop.f32.mrf.mxu1  ;;  %v1758_v7 = vpop.f32.mrf.mxu0  ;;  %17406 = vst [vmem:[#allocation43_spill] sm:$0xff] %v17405_v34  ;;  %v4464_v30 = vrot.slane %v4463_v57, 4  ;;  %v4474_v52 = vrot.slane %v13515_v25, 6  ;;  %v4475_v56 = vrot.slane %v13520_v24, 7  ;;  %v4472_v29 = vor.u32 %v4471_v42, %v4470_v19 }
 0x1f9   : > { %v1561_v17 = vadd.f32 %v11035_v23, %v13653_v43  ;;  %v13826_v38 = vadd.f32 %v1758_v7, %v1550_v44  ;;  %11209 = vmatmul.mubr.msk.bf16.gmra.mxu0 %vm580_vm3, %v10156_v8  ;;  %v4478_v23 = vrot.slane %v13526_v54, 6  ;;  %v4469_v57 = vrot.slane %v4467_v53, 4 }
 0x1fa   : > { %v1552_v26 = vpop.f32.mrf.mxu1  ;;  %v11053_v6 = vpop.f32.mrf.mxu0  ;;  %v4468_v12 = vsel %vm13830_vm12, %v4464_v30, %v4467_v53  ;;  %v4476_v9 = vor.u32 %v4475_v56, %v4474_v52  ;;  %v4479_v15 = vrot.slane %v13522_v36, 7 }
 0x1fb   : > { %v1553_v43 = vadd.f32 %v1552_v26, %v13667_v21  ;;  %v13838_v44 = vadd.f32 %v11053_v6, %v1561_v17  ;;  %v4484_v21 = vrot.slane %v13529_v41, 7  ;;  %v4473_v8 = vsel %vm13830_vm12, %v4469_v57, %v4472_v29 }
 0x1fc   : > { %v11058_v7 = vpop.f32.mrf.mxu1  ;;  %v1761_v49 = vpop.f32.mrf.mxu0  ;;  %v4477_v42 = vrot.slane %v4476_v9, 4  ;;  %v4480_v26 = vor.u32 %v4479_v15, %v4478_v23  ;;  %v10182_v53 = vcombine.low %v4468_v12, %v4473_v8  ;;  %v3852_v29 = vrot.slane %v13486_v27, 5 }
 0x1fd   : > { %v2045_v45 = vadd.f32 %v11058_v7, %v13686_v48  ;;  %v13846_v31 = vadd.f32 %v1761_v49, %v1553_v43  ;;  %v4485_v48 = vor.u32 %v4484_v21, %v13643_v22  ;;  %v3849_v49 = vrot.slane %v13484_v62, 4 }
 0x1fe   : > { %v1980_v17 = vpop.f32.mrf.mxu1  ;;  %v11076_v19 = vpop.f32.mrf.mxu0  ;;  %v4481_v43 = vsel %vm13830_vm12, %v4477_v42, %v4480_v26  ;;  %v4482_v7 = vrot.slane %v4480_v26, 4  ;;  %11232 = vmatprep.mubr.msk.bf16.mxu0 %vm580_vm3, %v10182_v53  ;;  %v3862_v22 = vrot.slane %v13490_v16, 4  ;;  %v3868_v62 = vrot.slane %v13505_v32, 5 }
 0x1ff   : > { %v2043_v6 = vadd.f32 %v1980_v17, %v13696_v59  ;;  %v13852_v30 = vadd.f32 %v11076_v19, %v2045_v45  ;;  %v3858_v59 = vrot.slane %v13488_v14, 5  ;;  %v3853_v15 = vor.u32 %v3852_v29, %v3849_v49  ;;  %v13881_v19 = vld [vmem:[%s16982_s2 + $0x18] sm:$0x3] }
 0x200   : > { %v11059_v52 = vpop.f32.mrf.mxu1  ;;  %v2370_v56 = vpop.f32.mrf.mxu0  ;;  %v4486_v9 = vsel %vm13830_vm12, %v4482_v7, %v4485_v48  ;;  %v3873_v27 = vrot.slane %v13515_v25, 4  ;;  %v3882_v42 = vrot.slane %v13522_v36, 5  ;;  %v3886_v26 = vrot.slane %v13526_v54, 4 }
 0x201   : > { %v2046_v23 = vadd.f32 %v11059_v52, %v13706_v4  ;;  %v13860_v57 = vadd.f32 %v2370_v56, %v2043_v6  ;;  %v10183_v17 = vcombine.low %v4481_v43, %v4486_v9  ;;  %v3863_v16 = vor.u32 %v3862_v22, %v3858_v59 }
 0x202   : > { %v1983_v45 = vpop.f32.mrf.mxu1  ;;  %v11077_v12 = vpop.f32.mrf.mxu0  ;;  %v3854_v25 = vrot.slane %v3853_v15, 4  ;;  %v3892_v52 = vrot.slane %v13529_v41, 5  ;;  %v3887_v49 = vor.u32 %v3886_v26, %v3882_v42  ;;  %v13897_v36 = vsel %vm605_vm0, %v13881_v19, 0 }
 0x203   : > { %v2044_v4 = vadd.f32 %v1983_v45, %v13718_v28  ;;  %v13870_v21 = vadd.f32 %v11077_v12, %v2046_v23  ;;  %v3876_v28 = vrot.slane %v13520_v24, 5  ;;  %11233 = vmatmul.mubr.msk.bf16.vlgmr.msra.gmra.mxu0 %vm580_vm3, %v10183_v17  ;;  %v3864_v48 = vrot.slane %v3863_v16, 4 }
 0x204   : > { %v2373_v8 = vpop.f32.mrf.mxu0  ;;  %v13893_v7 = vsel %vm13874_vm15, %v3854_v25, %v3858_v59  ;;  %v5284_v41 = vsel %vm605_vm0, %v13788_v63, 0  ;;  %v3888_v12 = vrot.slane %v3887_v49, 4  ;;  %v4487_v9 = vrot.slane %v13557_v47, 6 }
 0x205   : > { %v11062_v32 = vpop.f32.mrf.mxu1  ;;  %v13887_v53 = vadd.f32 %v2373_v8, %v2044_v4  ;;  %v3877_v24 = vor.u32 %v3876_v28, %v3873_v27  ;;  %v13904_v29 = vsel %vm13874_vm15, %v3864_v48, %v3868_v62  ;;  %11267 = vmatpush3.bf16.msra.mxu0 %v5284_v41  ;;  %v4488_v62 = vrot.slane %v13568_v13, 7 }
 0x206   : > { %v2049_v6 = vadd.f32 %v11062_v32, %v13725_v50  ;;  %v11080_v43 = vpop.f32.mrf.mxu0  ;;  %v4491_v27 = vrot.slane %v13572_v10, 6  ;;  %v13922_v16 = vsel %vm13874_vm15, %v3888_v12, %v3892_v52  ;;  %v4492_v32 = vrot.slane %v13570_v18, 7 }
 0x207   : > { %v1996_v56 = vpop.f32.mrf.mxu1  ;;  %v3878_v45 = vrot.slane %v3877_v24, 4  ;;  %v4500_v52 = vrot.slane %v13600_v58, 6  ;;  %v4501_v24 = vrot.slane %v13602_v3, 7 }
 0x208   : > { %v2047_v54 = vadd.f32 %v1996_v56, %v13738_v1  ;;  %v13900_v50 = vadd.f32 %v11080_v43, %v2049_v6  ;;  %v2386_v59 = vpop.f32.mrf.mxu0  ;;  %v4489_v6 = vor.u32 %v4488_v62, %v4487_v9  ;;  %v4493_v56 = vor.u32 %v4492_v32, %v4491_v27  ;;  %v17410_v9 = vld [vmem:[#allocation13_spill] sm:$0xff] }
 0x209   : > { %v11063_v23 = vpop.f32.mrf.mxu1  ;;  %v13918_v17 = vsel %vm13874_vm15, %v3878_v45, %v3882_v42  ;;  %v4497_v43 = vrot.slane %v13582_v39, 7  ;;  %v4502_v12 = vor.u32 %v4501_v24, %v4500_v52  ;;  %v17412_v52 = vld [vmem:[#allocation24_spill] sm:$0xff] }
 0x20a   : > { %v2050_v1 = vadd.f32 %v11063_v23, %v13751_v20  ;;  %v13912_v15 = vadd.f32 %v2386_v59, %v2047_v54  ;;  %v11081_v63 = vpop.f32.mrf.mxu0  ;;  %v17409_v20 = vshrl.u32 %v13555_v35, 16  ;;  %v4504_v54 = vrot.slane %v13613_v5, 6 }
 0x20b   : > { %v1999_v4 = vpop.f32.mrf.mxu1  ;;  %v4495_v59 = vrot.slane %v4493_v56, 4 }
 0x20c   : > { %v4496_v8 = vrot.slane %v17409_v20, 6  ;;  %v2048_v25 = vadd.f32 %v1999_v4, %v13760_v60  ;;  %v13928_v28 = vadd.f32 %v11081_v63, %v2050_v1  ;;  %v2389_v42 = vpop.f32.mrf.mxu0  ;;  %v4490_v60 = vrot.slane %v4489_v6, 4 }
 0x20d   : > { %v11066_v48 = vpop.f32.mrf.mxu1  ;;  %v4505_v1 = vrot.slane %v17410_v9, 7  ;;  %v4503_v6 = vrot.slane %v4502_v12, 4  ;;  %v3916_v12 = vrot.slane %v13582_v39, 5 }
 0x20e   : > { %v2053_v35 = vadd.f32 %v11066_v48, %v13774_v51  ;;  %v13936_v49 = vadd.f32 %v2389_v42, %v2048_v25  ;;  %v11084_v23 = vpop.f32.mrf.mxu0  ;;  %v4498_v45 = vor.u32 %v4497_v43, %v4496_v8  ;;  %v4494_v4 = vsel %vm13830_vm12, %v4490_v60, %v4493_v56  ;;  %v17411_v51 = vld [vmem:[#allocation37_spill] sm:$0xff] }
 0x20f   : > { %v2012_v41 = vpop.f32.mrf.mxu1  ;;  %v4510_v63 = vrot.slane %v17411_v51, 7  ;;  %v4506_v48 = vor.u32 %v4505_v1, %v4504_v54  ;;  %v3897_v8 = vrot.slane %v13557_v47, 4 }
 0x210   : > { %v2051_v62 = vadd.f32 %v2012_v41, %v13791_v61  ;;  %v13941_v27 = vadd.f32 %v11084_v23, %v2053_v35  ;;  %v2402_v20 = vpop.f32.mrf.mxu0  ;;  %v4499_v25 = vsel %vm13830_vm12, %v4495_v59, %v4498_v45  ;;  %v13952_v61 = vld [vmem:[%s16982_s2 + $0x1e] sm:$0x3]  ;;  %v3900_v41 = vrot.slane %v13568_v13, 5 }
 0x211   : > { %v11067_v32 = vpop.f32.mrf.mxu1  ;;  %v10184_v56 = vcombine.low %v4494_v4, %v4499_v25  ;;  %v4511_v24 = vor.u32 %v4510_v63, %v17412_v52  ;;  %11614 = vmatprep.subr.msk.bf16.mxu0 %vm605_vm0, %v13952_v61  ;;  %v4507_v47 = vsel %vm13830_vm12, %v4503_v6, %v4506_v48  ;;  %v4508_v54 = vrot.slane %v4506_v48, 4 }
 0x212   : > { %v2054_v42 = vadd.f32 %v11067_v32, %v13803_v11  ;;  %v13955_v43 = vadd.f32 %v2402_v20, %v2051_v62  ;;  %v11085_v60 = vpop.f32.mrf.mxu0  ;;  %v3906_v23 = vrot.slane %v13570_v18, 5  ;;  %v3910_v45 = vrot.slane %v13572_v10, 4 }
 0x213   : > { %v2015_v35 = vpop.f32.mrf.mxu1  ;;  %11236 = vmatprep.mubr.msk.bf16.mxu0 %vm580_vm3, %v10184_v56  ;;  %v4512_v4 = vsel %vm13830_vm12, %v4508_v54, %v4511_v24  ;;  %v3901_v63 = vor.u32 %v3900_v41, %v3897_v8  ;;  %v3921_v13 = vrot.slane %v13600_v58, 4  ;;  %v3924_v18 = vrot.slane %v13602_v3, 5 }
 0x214   : > { %v2052_v11 = vadd.f32 %v2015_v35, %v13809_v37  ;;  %v13965_v59 = vadd.f32 %v11085_v60, %v2054_v42  ;;  %v2405_v62 = vpop.f32.mrf.mxu0  ;;  %v10185_v20 = vcombine.low %v4507_v47, %v4512_v4  ;;  %v3911_v25 = vor.u32 %v3910_v45, %v3906_v23 }
 0x215   : > { %v11070_v1 = vpop.f32.mrf.mxu1  ;;  %v3902_v48 = vrot.slane %v3901_v63, 4  ;;  %v3925_v39 = vor.u32 %v3924_v18, %v3921_v13  ;;  %v3930_v42 = vrot.slane %v17410_v9, 5  ;;  %v3934_v56 = vrot.slane %v13613_v5, 4  ;;  %v17413_v9 = vld [vmem:[#allocation21_spill] sm:$0xff]  ;;  %v17417_v63 = vld [vmem:[#allocation26_spill] sm:$0xff] }
 0x216   : > { %v2057_v37 = vadd.f32 %v11070_v1, %v13815_v40  ;;  %v13975_v32 = vadd.f32 %v2405_v62, %v2052_v11  ;;  %v11088_v10 = vpop.f32.mrf.mxu0  ;;  %11237 = vmatmul.mubr.msk.bf16.gmra.mxu0 %vm580_vm3, %v10185_v20  ;;  %v3912_v58 = vrot.slane %v3911_v25, 4  ;;  %v3940_v3 = vrot.slane %v17411_v51, 5  ;;  %v17415_v11 = vld [vmem:[#allocation25_spill] sm:$0xff] }
 0x217   : > { %v2028_v6 = vpop.f32.mrf.mxu1  ;;  %v13986_v35 = vsel %vm13874_vm15, %v3902_v48, %v3906_v23  ;;  %v3926_v60 = vrot.slane %v3925_v39, 4  ;;  %v3935_v47 = vor.u32 %v3934_v56, %v3930_v42  ;;  %v4513_v54 = vrot.slane %v17413_v9, 6  ;;  %v17425_v23 = vld [vmem:[#allocation16_spill] sm:$0xff] }
 0x218   : > { %v2055_v8 = vadd.f32 %v2028_v6, %v13826_v38  ;;  %v13980_v52 = vadd.f32 %v11088_v10, %v2057_v37  ;;  %v2418_v24 = vpop.f32.mrf.mxu0  ;;  %v13994_v41 = vsel %vm13874_vm15, %v3912_v58, %v3916_v12  ;;  %v4514_v51 = vrot.slane %v17415_v11, 7  ;;  %v17418_v37 = vld [vmem:[#allocation20_spill] sm:$0xff] }
 0x219   : > { %v11071_v40 = vpop.f32.mrf.mxu1  ;;  %17414 = vst [vmem:[#allocation13_spill] sm:$0xff] %v13994_v41  ;;  %v14001_v62 = vsel %vm13874_vm15, %v3926_v60, %v3930_v42  ;;  %v3936_v4 = vrot.slane %v3935_v47, 4  ;;  %v4518_v20 = vrot.slane %v17418_v37, 7  ;;  %v17420_v48 = vshrl.u32 %v13647_v46, 16  ;;  %v17421_v42 = vld [vmem:[#allocation19_spill] sm:$0xff] }
 0x21a   : > { %v2058_v5 = vadd.f32 %v11071_v40, %v13838_v44  ;;  %v13990_v38 = vadd.f32 %v2418_v24, %v2055_v8  ;;  %v11089_v1 = vpop.f32.mrf.mxu0  ;;  %17416 = vst [vmem:[#allocation37_spill] sm:$0xff] %v14001_v62  ;;  %v4517_v44 = vrot.slane %v17417_v63, 6  ;;  %v4515_v12 = vor.u32 %v4514_v51, %v4513_v54  ;;  %v17422_v8 = vld [vmem:[#allocation9_spill] sm:$0xff]  ;;  %v17423_v51 = vld [vmem:[#allocation10_spill] sm:$0xff]  ;;  %v17424_v46 = vld [vmem:[#allocation11_spill] sm:$0xff] }
 0x21b   : > { %v2031_v45 = vpop.f32.mrf.mxu1  ;;  %v14010_v10 = vsel %vm13874_vm15, %v3936_v4, %v3940_v3  ;;  %v4522_v39 = vrot.slane %v17420_v48, 6  ;;  %v4523_v56 = vrot.slane %v17421_v42, 7  ;;  %v4526_v58 = vrot.slane %v17422_v8, 6 }
 0x21c   : > { %v2056_v13 = vadd.f32 %v2031_v45, %v13846_v31  ;;  %v14005_v18 = vadd.f32 %v11089_v1, %v2058_v5  ;;  %v2421_v6 = vpop.f32.mrf.mxu0  ;;  %17419 = vst [vmem:[#allocation24_spill] sm:$0xff] %v14010_v10  ;;  %v4516_v60 = vrot.slane %v4515_v12, 4  ;;  %v4519_v5 = vor.u32 %v4518_v20, %v4517_v44 }
 0x21d   : > { %v11094_v25 = vpop.f32.mrf.mxu1  ;;  %v4524_v3 = vor.u32 %v4523_v56, %v4522_v39  ;;  %v4527_v45 = vrot.slane %v17423_v51, 7  ;;  %v4530_v1 = vrot.slane %v17424_v46, 6  ;;  %v3945_v20 = vrot.slane %v17413_v9, 4 }
 0x21e   : > { %v2657_v31 = vadd.f32 %v11094_v25, %v13852_v30  ;;  %v14017_v40 = vadd.f32 %v2421_v6, %v2056_v13  ;;  %v4531_v30 = vrot.slane %v17425_v23, 7  ;;  %v17426_v13 = vld [vmem:[#allocation27_spill] sm:$0xff]  ;;  %v4520_v12 = vsel %vm13830_vm12, %v4516_v60, %v4519_v5 }
 0x21f   : > { %v2592_v47 = vpop.f32.mrf.mxu1  ;;  %v11112_v54 = vpop.f32.mrf.mxu0  ;;  %v4536_v25 = vrot.slane %v17426_v13, 7  ;;  %v4521_v24 = vrot.slane %v4519_v5, 4  ;;  %v4528_v44 = vor.u32 %v4527_v45, %v4526_v58  ;;  %v3948_v41 = vrot.slane %v17415_v11, 5 }
 0x220   : > { %v2655_v4 = vadd.f32 %v2592_v47, %v13860_v57  ;;  %v14024_v48 = vadd.f32 %v11112_v54, %v2657_v31  ;;  %v4532_v57 = vor.u32 %v4531_v30, %v4530_v1  ;;  %v17427_v31 = vld [vmem:[#allocation4_spill] sm:$0xff]  ;;  %v3954_v60 = vrot.slane %v17418_v37, 5 }
 0x221   : > { %v11095_v6 = vpop.f32.mrf.mxu1  ;;  %v2866_v26 = vpop.f32.mrf.mxu0  ;;  %v4537_v47 = vor.u32 %v4536_v25, %v17427_v31  ;;  %v4525_v10 = vsel %vm13830_vm12, %v4521_v24, %v4524_v3  ;;  %v4529_v62 = vrot.slane %v4528_v44, 4  ;;  %v3958_v30 = vrot.slane %v17417_v63, 4 }
 0x222   : > { %v2658_v39 = vadd.f32 %v11095_v6, %v13870_v21  ;;  %v14032_v56 = vadd.f32 %v2866_v26, %v2655_v4  ;;  %v10186_v21 = vcombine.low %v4520_v12, %v4525_v10  ;;  %v4534_v26 = vrot.slane %v4532_v57, 4 }
 0x223   : > { %v2595_v54 = vpop.f32.mrf.mxu1  ;;  %v11113_v22 = vpop.f32.mrf.mxu0  ;;  %v4533_v1 = vsel %vm13830_vm12, %v4529_v62, %v4532_v57  ;;  %v3949_v4 = vor.u32 %v3948_v41, %v3945_v20  ;;  %v3964_v24 = vrot.slane %v17421_v42, 5  ;;  %v3959_v41 = vor.u32 %v3958_v30, %v3954_v60 }
 0x224   : > { %v2656_v58 = vadd.f32 %v2595_v54, %v13887_v53  ;;  %v14040_v9 = vadd.f32 %v11113_v22, %v2658_v39  ;;  %11240 = vmatprep.mubr.msk.bf16.mxu0 %vm580_vm3, %v10186_v21  ;;  %v4538_v53 = vsel %vm13830_vm12, %v4534_v26, %v4537_v47  ;;  %v3969_v22 = vrot.slane %v17422_v8, 4 }
 0x225   : > { %v11098_v5 = vpop.f32.mrf.mxu1  ;;  %v2869_v45 = vpop.f32.mrf.mxu0  ;;  %v10187_v25 = vcombine.low %v4533_v1, %v4538_v53  ;;  %v3950_v62 = vrot.slane %v3949_v4, 4  ;;  %v3972_v63 = vrot.slane %v17423_v51, 5  ;;  %v3982_v12 = vrot.slane %v17424_v46, 4 }
 0x226   : > { %v2661_v11 = vadd.f32 %v11098_v5, %v13900_v50  ;;  %v14047_v3 = vadd.f32 %v2869_v45, %v2656_v58  ;;  %v3978_v50 = vrot.slane %v17425_v23, 5  ;;  %v3960_v39 = vrot.slane %v3959_v41, 4  ;;  %v17428_v23 = vld [vmem:[#allocation17_spill] sm:$0xff] }
 0x227   : > { %v2608_v37 = vpop.f32.mrf.mxu1  ;;  %v11116_v10 = vpop.f32.mrf.mxu0  ;;  %11241 = vmatmul.mubr.msk.bf16.gmra.mxu0 %vm580_vm3, %v10187_v25  ;;  %v14062_v8 = vsel %vm13874_vm15, %v3950_v62, %v3954_v60  ;;  %v3973_v57 = vor.u32 %v3972_v63, %v3969_v22  ;;  %v3988_v51 = vrot.slane %v17426_v13, 5  ;;  %v4539_v54 = vrot.slane %v17428_v23, 6  ;;  %v17429_v60 = vld [vmem:[#allocation23_spill] sm:$0xff]  ;;  %v17430_v22 = vld [vmem:[#allocation38_spill] sm:$0xff] }
 0x228   : > { %v2659_v42 = vadd.f32 %v2608_v37, %v13912_v15  ;;  %v14055_v6 = vadd.f32 %v11116_v10, %v2661_v11  ;;  %v3983_v47 = vor.u32 %v3982_v12, %v3978_v50  ;;  %v14071_v21 = vsel %vm13874_vm15, %v3960_v39, %v3964_v24  ;;  %v17431_v10 = vld [vmem:[#allocation18_spill] sm:$0xff] }
 0x229   : > { %v11099_v44 = vpop.f32.mrf.mxu1  ;;  %v2882_v20 = vpop.f32.mrf.mxu0  ;;  %v3974_v26 = vrot.slane %v3973_v57, 4  ;;  %v4540_v5 = vrot.slane %v17429_v60, 7  ;;  %v4543_v45 = vrot.slane %v13740_v55, 6  ;;  %v4544_v37 = vrot.slane %v17430_v22, 7 }
 0x22a   : > { %v2662_v15 = vadd.f32 %v11099_v44, %v13928_v28  ;;  %v14066_v31 = vadd.f32 %v2882_v20, %v2659_v42  ;;  %v3984_v4 = vrot.slane %v3983_v47, 4  ;;  %v17432_v25 = vshrl.u32 %v17431_v10, 16  ;;  %v17433_v42 = vld [vmem:[#allocation39_spill] sm:$0xff] }
 0x22b   : > { %v2611_v46 = vpop.f32.mrf.mxu1  ;;  %v11117_v58 = vpop.f32.mrf.mxu0  ;;  %v14082_v53 = vsel %vm13874_vm15, %v3974_v26, %v3978_v50  ;;  %v4541_v24 = vor.u32 %v4540_v5, %v4539_v54  ;;  %v4549_v12 = vrot.slane %v17433_v42, 7  ;;  %v4545_v57 = vor.u32 %v4544_v37, %v4543_v45 }
 0x22c   : > { %v2660_v13 = vadd.f32 %v2611_v46, %v13936_v49  ;;  %v14076_v1 = vadd.f32 %v11117_v58, %v2662_v15  ;;  %v4548_v62 = vrot.slane %v17432_v25, 6  ;;  %v14092_v63 = vsel %vm13874_vm15, %v3984_v4, %v3988_v51  ;;  %v17434_v15 = vld [vmem:[#allocation40_spill] sm:$0xff]  ;;  %v17435_v58 = vld [vmem:[#allocation41_spill] sm:$0xff] }
 0x22d   : > { %v11102_v30 = vpop.f32.mrf.mxu1  ;;  %v2885_v11 = vpop.f32.mrf.mxu0  ;;  %v4542_v39 = vrot.slane %v4541_v24, 4  ;;  %v4552_v47 = vrot.slane %v17434_v15, 6  ;;  %v4553_v26 = vrot.slane %v17435_v58, 7  ;;  %v4547_v4 = vrot.slane %v4545_v57, 4 }
 0x22e   : > { %v2665_v49 = vadd.f32 %v11102_v30, %v13941_v27  ;;  %v14088_v41 = vadd.f32 %v2885_v11, %v2660_v13  ;;  %v4550_v46 = vor.u32 %v4549_v12, %v4548_v62  ;;  %v4556_v30 = vrot.slane %v13778_v33, 6  ;;  %v17436_v11 = vld [vmem:[#allocation42_spill] sm:$0xff] }
 0x22f   : > { %v2624_v44 = vpop.f32.mrf.mxu1  ;;  %v11120_v20 = vpop.f32.mrf.mxu0  ;;  %v4546_v13 = vsel %vm13830_vm12, %v4542_v39, %v4545_v57  ;;  %v4557_v24 = vrot.slane %v17436_v11, 7  ;;  %v17437_v10 = vshrl.u32 %v13764_v0, 16  ;;  %v3993_v39 = vrot.slane %v17428_v23, 4 }
 0x230   : > { %v2663_v54 = vadd.f32 %v2624_v44, %v13955_v43  ;;  %v14099_v27 = vadd.f32 %v11120_v20, %v2665_v49  ;;  %v4554_v43 = vor.u32 %v4553_v26, %v4552_v47  ;;  %v4551_v12 = vsel %vm13830_vm12, %v4547_v4, %v4550_v46 }
 0x231   : > { %v11103_v51 = vpop.f32.mrf.mxu1  ;;  %v2898_v5 = vpop.f32.mrf.mxu0  ;;  %v4561_v25 = vrot.slane %v17437_v10, 6  ;;  %v4558_v44 = vor.u32 %v4557_v24, %v4556_v30  ;;  %v4562_v20 = vrot.slane %v13783_v2, 7  ;;  %v4002_v10 = vrot.slane %v17430_v22, 5 }
 0x232   : > { %v2666_v45 = vadd.f32 %v11103_v51, %v13965_v59  ;;  %v14107_v37 = vadd.f32 %v2898_v5, %v2663_v54  ;;  %v10188_v59 = vcombine.low %v4546_v13, %v4551_v12  ;;  %v4555_v54 = vrot.slane %v4554_v43, 4 }
 0x233   : > { %v2627_v62 = vpop.f32.mrf.mxu1  ;;  %v11121_v49 = vpop.f32.mrf.mxu0  ;;  %v4560_v0 = vrot.slane %v4558_v44, 4  ;;  %v4563_v51 = vor.u32 %v4562_v20, %v4561_v25  ;;  %v3996_v5 = vrot.slane %v17429_v60, 5  ;;  %v4006_v23 = vrot.slane %v13740_v55, 4 }
 0x234   : > { %v2664_v57 = vadd.f32 %v2627_v62, %v13975_v32  ;;  %v14116_v50 = vadd.f32 %v11121_v49, %v2666_v45  ;;  %11244 = vmatprep.mubr.msk.bf16.mxu0 %vm580_vm3, %v10188_v59  ;;  %v4559_v32 = vsel %vm13830_vm12, %v4555_v54, %v4558_v44  ;;  %v4012_v22 = vrot.slane %v17433_v42, 5  ;;  %v10198_v49 = vld [vmem:[%s11862_s17 + $0x24] sm:$0xf]  ;;  %v10199_v54 = vld [vmem:[%s11862_s17 + $0x28] sm:$0xf] }
 0x235   : > { %v11106_v47 = vpop.f32.mrf.mxu1  ;;  %v2901_v26 = vpop.f32.mrf.mxu0  ;;  %v4564_v24 = vsel %vm13830_vm12, %v4560_v0, %v4563_v51  ;;  %v3997_v60 = vor.u32 %v3996_v5, %v3993_v39  ;;  %v4017_v45 = vrot.slane %v17434_v15, 4  ;;  %v4007_v62 = vor.u32 %v4006_v23, %v4002_v10  ;;  %v14149_v51 = vld [vmem:[%s11862_s17 + $0x2c] sm:$0x7] }
 0x236   : > { %v2669_v46 = vadd.f32 %v11106_v47, %v13980_v52  ;;  %v14121_v4 = vadd.f32 %v2901_v26, %v2664_v57  ;;  %v10189_v25 = vcombine.low %v4559_v32, %v4564_v24  ;;  %v4020_v20 = vrot.slane %v17435_v58, 5  ;;  %17439 = vst [vmem:[#allocation25_spill] sm:$0xff] %v14149_v51 }
 0x237   : > { %v2640_v13 = vpop.f32.mrf.mxu1  ;;  %v11124_v30 = vpop.f32.mrf.mxu0  ;;  %v3998_v44 = vrot.slane %v3997_v60, 4  ;;  %v4026_v39 = vrot.slane %v17436_v11, 5  ;;  %v4030_v42 = vrot.slane %v13778_v33, 4  ;;  %v4036_v59 = vrot.slane %v13783_v2, 5 }
 0x238   : > { %v2667_v52 = vadd.f32 %v2640_v13, %v13990_v38  ;;  %v14132_v43 = vadd.f32 %v11124_v30, %v2669_v46  ;;  %11245 = vmatmul.mubr.msk.bf16.gmra.mxu0 %vm580_vm3, %v10189_v25  ;;  %v4008_v38 = vrot.slane %v4007_v62, 4  ;;  %v4021_v58 = vor.u32 %v4020_v20, %v4017_v45  ;;  %v14177_v62 = vld [vmem:[%s16984_s4 + $0x1] ss:$0 sm:$0xff] }
 0x239   : > { %v11107_v12 = vpop.f32.mrf.mxu1  ;;  %v2914_v55 = vpop.f32.mrf.mxu0  ;;  %v14146_v0 = vsel %vm13874_vm15, %v3998_v44, %v4002_v10  ;;  %v4031_v11 = vor.u32 %v4030_v42, %v4026_v39  ;;  %v14151_v33 = vshrl.u32 %v10198_v49, 16  ;;  %v14160_v46 = vshll.u32 %v10198_v49, 16  ;;  %v10201_v44 = vld [vmem:[%s11862_s17 + $0x30] sm:$0xf] }
 0x23a   : > { %v2670_v15 = vadd.f32 %v11107_v12, %v14005_v18  ;;  %v14139_v57 = vadd.f32 %v2914_v55, %v2667_v52  ;;  %17438 = vst [vmem:[#allocation21_spill] sm:$0xff] %v14146_v0  ;;  %v14158_v2 = vsel %vm13874_vm15, %v4008_v38, %v4012_v22  ;;  %v4022_v13 = vrot.slane %v4021_v58, 4 }
 0x23b   : > { %v2643_v47 = vpop.f32.mrf.mxu1  ;;  %v11125_v26 = vpop.f32.mrf.mxu0  ;;  %17440 = vst [vmem:[#allocation26_spill] sm:$0xff] %v14158_v2  ;;  %v4032_v30 = vrot.slane %v4031_v11, 4  ;;  %v14164_v24 = vshll.u32 %v10199_v54, 16  ;;  %v14169_v45 = vshrl.u32 %v10199_v54, 16  ;;  %v14172_v22 = vshll.u32 %v14149_v51, 16 }
 0x23c   : > { %v2668_v18 = vadd.f32 %v2643_v47, %v14017_v40  ;;  %v14154_v5 = vadd.f32 %v11125_v26, %v2670_v15  ;;  %v14181_v49 = vsel %vm13874_vm15, %v4022_v13, %v4026_v39  ;;  %v5113_v12 = vrot.slane %v14151_v33, 5 }
 0x23d   : > { %v11130_v32 = vpop.f32.mrf.mxu1  ;;  %v2917_v23 = vpop.f32.mrf.mxu0  ;;  %17441 = vst [vmem:[#allocation20_spill] sm:$0xff] %v14181_v49  ;;  %v5114_v55 = vrot.slane %v14160_v46, 6  ;;  %v5117_v38 = vrot.slane %v14169_v45, 5  ;;  %v17101_v26 = vshrl.u32 %v14149_v51, 16  ;;  %v5125_v58 = vrot.slane %v14172_v22, 6 }
 0x23e   : > { %v3321_v40 = vadd.f32 %v11130_v32, %v14024_v48  ;;  %v14167_v60 = vadd.f32 %v2917_v23, %v2668_v18  ;;  %v14185_v48 = vsel %vm13874_vm15, %v4032_v30, %v4036_v59  ;;  %v5118_v59 = vrot.slane %v14164_v24, 6  ;;  %v10202_v32 = vld [vmem:[%s11862_s17 + $0x34] sm:$0xf] }
 0x23f   : > { %v3256_v52 = vpop.f32.mrf.mxu1  ;;  %v11148_v25 = vpop.f32.mrf.mxu0  ;;  %17442 = vst [vmem:[#allocation19_spill] sm:$0xff] %v14185_v48  ;;  %v5115_v47 = vor.u32 %v5114_v55, %v5113_v12  ;;  %v14200_v23 = vshrl.u32 %v10201_v44, 16  ;;  %v14204_v12 = vshll.u32 %v10201_v44, 16 }
 0x240   : > { %v3319_v20 = vadd.f32 %v3256_v52, %v14032_v56  ;;  %v3543_v42 = vadd.f32 %v11148_v25, %v3321_v40  ;;  %v5119_v52 = vor.u32 %v5118_v59, %v5117_v38  ;;  %v5124_v25 = vrot.slane %v17101_v26, 5 }
 0x241   : > { %v11131_v39 = vpop.f32.mrf.mxu1  ;;  %v3478_v54 = vpop.f32.mrf.mxu0  ;;  %v5116_v40 = vrot.slane %v5115_v47, 4  ;;  %v14213_v59 = vshll.u32 %v10202_v32, 16 }
 0x242   : > { %v3322_v11 = vadd.f32 %v11131_v39, %v14040_v9  ;;  %v3567_v56 = vadd.f32 %v14177_v62, %v3543_v42  ;;  %v3541_v18 = vadd.f32 %v3478_v54, %v3319_v20  ;;  %v14209_v42 = vld [vmem:[%s11862_s17 + $0x38] sm:$0x7]  ;;  %v5121_v47 = vrot.slane %v5119_v52, 4 }
 0x243   : > { %v3259_v13 = vpop.f32.mrf.mxu1  ;;  %v11149_v30 = vpop.f32.mrf.mxu0  ;;  %v5120_v28 = vsel %vm11882_vm4, %v5116_v40, %v5119_v52  ;;  %v5126_v38 = vor.u32 %v5125_v58, %v5124_v25  ;;  %v14222_v34 = vshll.u32 %v14209_v42, 16  ;;  %v5128_v58 = vrot.slane %v14200_v23, 5 }
 0x244   : > { %v3320_v55 = vadd.f32 %v3259_v13, %v14047_v3  ;;  %v3583_v15 = vmax.f32 %v3567_v56, 0.0  ;;  %v3565_v9 = vadd.f32 %v14177_v62, %v3541_v18  ;;  %v3544_v39 = vadd.f32 %v11149_v30, %v3322_v11 }
 0x245   : > { %v11134_v20 = vpop.f32.mrf.mxu1  ;;  %v3481_v54 = vpop.f32.mrf.mxu0  ;;  %v5127_v11 = vsel %vm11882_vm4, %v5121_v47, %v5126_v38  ;;  %v14219_v30 = vshrl.u32 %v10202_v32, 16  ;;  %v5133_v32 = vrot.slane %v14213_v59, 6 }
 0x246   : > { %v3325_v44 = vadd.f32 %v11134_v20, %v14055_v6  ;;  %v3581_v26 = vmax.f32 %v3565_v9, 0.0  ;;  %v3568_v3 = vadd.f32 %v14177_v62, %v3544_v39  ;;  %v3542_v56 = vadd.f32 %v3481_v54, %v3320_v55 }
 0x247   : > { %v3272_v13 = vpop.f32.mrf.mxu1  ;;  %v11152_v18 = vpop.f32.mrf.mxu0  ;;  %v10240_v39 = vcombine.low %v5120_v28, %v5127_v11  ;;  %v5129_v20 = vrot.slane %v14204_v12, 6  ;;  %v5132_v54 = vrot.slane %v14219_v30, 5  ;;  %v17111_v28 = vshrl.u32 %v14209_v42, 16 }
 0x248   : > { %v3323_v40 = vadd.f32 %v3272_v13, %v14066_v31  ;;  %v3584_v52 = vmax.f32 %v3568_v3, 0.0  ;;  %v3566_v6 = vadd.f32 %v14177_v62, %v3542_v56  ;;  %v3547_v25 = vadd.f32 %v11152_v18, %v3325_v44 }
 0x249   : > { %v11135_v9 = vpop.f32.mrf.mxu1  ;;  %v3494_v55 = vpop.f32.mrf.mxu0  ;;  %11268 = vmatprep.mubr.msk.bf16.mxu0 %vm580_vm3, %v10240_v39  ;;  %v5130_v44 = vor.u32 %v5129_v20, %v5128_v58  ;;  %v5134_v56 = vor.u32 %v5133_v32, %v5132_v54  ;;  %v4758_v39 = vrot.slane %v14151_v33, 4  ;;  %v4761_v20 = vrot.slane %v14160_v46, 5 }
 0x24a   : > { %v3326_v47 = vadd.f32 %v11135_v9, %v14076_v1  ;;  %v3614_v38 = vpack.c.bf16 %v3584_v52, %v3583_v15  ;;  %v3582_v51 = vmax.f32 %v3566_v6, 0.0  ;;  %v3571_v48 = vadd.f32 %v14177_v62, %v3547_v25 }
 0x24b   : > { %v3275_v31 = vpop.f32.mrf.mxu1  ;;  %v3545_v3 = vadd.f32 %v3494_v55, %v3323_v40  ;;  %v11153_v13 = vpop.f32.mrf.mxu0  ;;  %v5131_v52 = vrot.slane %v5130_v44, 4  ;;  %v5136_v6 = vrot.slane %v5134_v56, 4  ;;  %v5139_v40 = vrot.slane %v17111_v28, 5 }
 0x24c   : > { %v3324_v18 = vadd.f32 %v3275_v31, %v14088_v41  ;;  %v3587_v11 = vmax.f32 %v3571_v48, 0.0  ;;  %v3548_v49 = vadd.f32 %v11153_v13, %v3326_v47  ;;  %v3613_v2 = vpack.c.bf16 %v3582_v51, %v3581_v26 }
 0x24d   : > { %v11138_v0 = vpop.f32.mrf.mxu1  ;;  %v3569_v1 = vadd.f32 %v14177_v62, %v3545_v3  ;;  %v3497_v15 = vpop.f32.mrf.mxu0  ;;  %v5140_v41 = vrot.slane %v14222_v34, 6  ;;  %v5135_v26 = vsel %vm11882_vm4, %v5131_v52, %v5134_v56  ;;  %v4762_v31 = vor.u32 %v4761_v20, %v4758_v39 }
 0x24e   : > { %v3329_v25 = vadd.f32 %v11138_v0, %v14099_v27  ;;  %v3572_v58 = vadd.f32 %v14177_v62, %v3548_v49  ;;  %v3546_v9 = vadd.f32 %v3497_v15, %v3324_v18  ;;  %11178 = vmatprep.mubr.bf16.mxu1 %v3613_v2  ;;  %v17444_v2 = vld [vmem:[#allocation14_spill] sm:$0xff]  ;;  %v4767_v3 = vrot.slane %v14164_v24, 5 }
 0x24f   : > { %v3288_v48 = vpop.f32.mrf.mxu1  ;;  %v3585_v55 = vmax.f32 %v3569_v1, 0.0  ;;  %v11156_v51 = vpop.f32.mrf.mxu0  ;;  %11179 = vmatmul.mubr.bf16.vlgmr.msra.gmra.mxu1 %v3614_v38  ;;  %v5141_v38 = vor.u32 %v5140_v41, %v5139_v40  ;;  %v4771_v13 = vrot.slane %v14169_v45, 4 }
 0x250   : > { %v3327_v54 = vadd.f32 %v3288_v48, %v14107_v37  ;;  %v3588_v27 = vmax.f32 %v3572_v58, 0.0  ;;  %v3570_v0 = vadd.f32 %v14177_v62, %v3546_v9  ;;  %v3551_v49 = vadd.f32 %v11156_v51, %v3329_v25  ;;  %11213 = vmatpush3.bf16.msra.mxu1 %v17444_v2 }
 0x251   : > { %v11139_v32 = vpop.f32.mrf.mxu1  ;;  %v3510_v47 = vpop.f32.mrf.mxu0  ;;  %11611 = vmatprep.subr.msk.bf16.mxu1 %vm605_vm0, %v13881_v19  ;;  %v5142_v25 = vsel %vm11882_vm4, %v5136_v6, %v5141_v38  ;;  %v4763_v58 = vrot.slane %v4762_v31, 4  ;;  %v4772_v19 = vor.u32 %v4771_v13, %v4767_v3 }
 0x252   : > { %v3330_v44 = vadd.f32 %v11139_v32, %v14116_v50  ;;  %v3586_v37 = vmax.f32 %v3570_v0, 0.0  ;;  %v3575_v56 = vadd.f32 %v14177_v62, %v3551_v49  ;;  %v3549_v18 = vadd.f32 %v3510_v47, %v3327_v54 }
 0x253   : > { %v3291_v1 = vpop.f32.mrf.mxu1  ;;  %v11157_v15 = vpop.f32.mrf.mxu0  ;;  %v3616_v52 = vpack.c.bf16 %v3588_v27, %v3587_v11  ;;  %v10241_v20 = vcombine.low %v5135_v26, %v5142_v25  ;;  %v14260_v54 = vsel %vm13874_vm15, %v4763_v58, %v4767_v3  ;;  %v4773_v11 = vrot.slane %v4772_v19, 4 }
 0x254   : > { %v3328_v40 = vadd.f32 %v3291_v1, %v14121_v4  ;;  %v3591_v9 = vmax.f32 %v3575_v56, 0.0  ;;  %v3573_v41 = vadd.f32 %v14177_v62, %v3549_v18  ;;  %v3552_v48 = vadd.f32 %v11157_v15, %v3330_v44 }
 0x255   : > { %v11142_v51 = vpop.f32.mrf.mxu1  ;;  %v3513_v50 = vpop.f32.mrf.mxu0  ;;  %v3615_v39 = vpack.c.bf16 %v3586_v37, %v3585_v55  ;;  %11269 = vmatmul.mubr.msk.bf16.vlgmr.msra.gmra.mxu0 %vm580_vm3, %v10241_v20  ;;  %v4777_v32 = vrot.slane %v14172_v22, 5  ;;  %v4782_v55 = vrot.slane %v14200_v23, 4  ;;  %v4785_v26 = vrot.slane %v14204_v12, 5 }
 0x256   : > { %v3333_v27 = vadd.f32 %v11142_v51, %v14132_v43  ;;  %v3589_v6 = vmax.f32 %v3573_v41, 0.0  ;;  %v3576_v0 = vadd.f32 %v14177_v62, %v3552_v48  ;;  %v3550_v49 = vadd.f32 %v3513_v50, %v3328_v40 }
 0x257   : > { %v3304_v4 = vpop.f32.mrf.mxu1  ;;  %11182 = vmatprep.mubr.bf16.mxu1 %v3615_v39  ;;  %v11160_v2 = vpop.f32.mrf.mxu0  ;;  %v4791_v47 = vrot.slane %v14213_v59, 5  ;;  %v14273_v37 = vsel %vm13874_vm15, %v4773_v11, %v4777_v32  ;;  %v4786_v56 = vor.u32 %v4785_v26, %v4782_v55  ;;  %v4795_v18 = vrot.slane %v14219_v30, 4 }
 0x258   : > { %v3331_v38 = vadd.f32 %v3304_v4, %v14139_v57  ;;  %v3592_v43 = vmax.f32 %v3576_v0, 0.0  ;;  %v3574_v31 = vadd.f32 %v14177_v62, %v3550_v49  ;;  %v3555_v3 = vadd.f32 %v11160_v2, %v3333_v27  ;;  %11183 = vmatmul.mubr.bf16.gmra.mxu1 %v3616_v52  ;;  %v14282_v52 = vld [vmem:[%s16982_s2 + $0x1c] sm:$0x3]  ;;  %v10205_v0 = vld [vmem:[%s11862_s17 + $0x40] sm:$0xf] }
 0x259   : > { %v11143_v13 = vpop.f32.mrf.mxu1  ;;  %v3526_v44 = vpop.f32.mrf.mxu0  ;;  %v4801_v1 = vrot.slane %v14222_v34, 5  ;;  %v4787_v51 = vrot.slane %v4786_v56, 4  ;;  %v4796_v50 = vor.u32 %v4795_v18, %v4791_v47  ;;  %v10204_v27 = vld [vmem:[%s11862_s17 + $0x3c] sm:$0xf]  ;;  %v14296_v32 = vsel %vm605_vm0, %v14282_v52, 0 }
 0x25a   : > { %v3334_v15 = vadd.f32 %v11143_v13, %v14154_v5  ;;  %v3590_v57 = vmax.f32 %v3574_v31, 0.0  ;;  %v3579_v25 = vadd.f32 %v14177_v62, %v3555_v3  ;;  %v3553_v58 = vadd.f32 %v3526_v44, %v3331_v38 }
 0x25b   : > { %v3307_v19 = vpop.f32.mrf.mxu1  ;;  %v11161_v40 = vpop.f32.mrf.mxu0  ;;  %v3618_v41 = vpack.c.bf16 %v3592_v43, %v3591_v9  ;;  %v14292_v2 = vsel %vm13874_vm15, %v4787_v51, %v4791_v47  ;;  %v4797_v9 = vrot.slane %v4796_v50, 4  ;;  %v14307_v47 = vld [vmem:[%s11862_s17 + $0x44] sm:$0x7]  ;;  %v14313_v31 = vshrl.u32 %v10204_v27, 16  ;;  %v14337_v50 = vld [vmem:[%s11862_s17 + $0x50] sm:$0x7] }
 0x25c   : > { %v3332_v5 = vadd.f32 %v3307_v19, %v14167_v60  ;;  %v3595_v39 = vmax.f32 %v3579_v25, 0.0  ;;  %v3577_v20 = vadd.f32 %v14177_v62, %v3553_v58  ;;  %v3556_v11 = vadd.f32 %v11161_v40, %v3334_v15  ;;  %v14301_v60 = vld [vmem:[%s16982_s2 + $0x22] sm:$0x3]  ;;  %17445 = vst [vmem:[#allocation9_spill] sm:$0xff] %v14337_v50 }
 0x25d   : > { %v3529_v49 = vpop.f32.mrf.mxu0  ;;  %v3617_v4 = vpack.c.bf16 %v3590_v57, %v3589_v6  ;;  %v5940_v6 = vsel %vm605_vm0, %v13952_v61, 0  ;;  %v14311_v43 = vsel %vm13874_vm15, %v4797_v9, %v4801_v1  ;;  %v14315_v3 = vshll.u32 %v10204_v27, 16  ;;  %v10207_v1 = vld [vmem:[%s11862_s17 + $0x48] sm:$0xf] }
 0x25e   : > { %v3593_v55 = vmax.f32 %v3577_v20, 0.0  ;;  %v3580_v26 = vadd.f32 %v14177_v62, %v3556_v11  ;;  %v3554_v38 = vadd.f32 %v3529_v49, %v3332_v5  ;;  %11303 = vmatpush3.bf16.msra.mxu0 %v5940_v6  ;;  %v14317_v13 = vshll.u32 %v10205_v0, 16 }
 0x25f   : > { %11186 = vmatprep.mubr.bf16.mxu1 %v3617_v4  ;;  %v14322_v18 = vshrl.u32 %v10205_v0, 16  ;;  %11616 = vmatprep.subr.msk.bf16.mxu0 %vm605_vm0, %v14301_v60  ;;  %v14328_v15 = vshll.u32 %v14307_v47, 16  ;;  %v5143_v57 = vrot.slane %v14313_v31, 5  ;;  %v5144_v25 = vrot.slane %v14315_v3, 6 }
 0x260   : > { %v3596_v44 = vmax.f32 %v3580_v26, 0.0  ;;  %v3578_v56 = vadd.f32 %v14177_v62, %v3554_v38  ;;  %11187 = vmatmul.mubr.bf16.gmra.mxu1 %v3618_v41  ;;  %v5148_v58 = vrot.slane %v14317_v13, 6  ;;  %v10208_v62 = vld [vmem:[%s11862_s17 + $0x4c] sm:$0xf]  ;;  %v17110_v51 = vshrl.u32 %v14307_v47, 16 }
 0x261   : > { %v5147_v41 = vrot.slane %v14322_v18, 5  ;;  %v5145_v5 = vor.u32 %v5144_v25, %v5143_v57  ;;  %v5155_v20 = vrot.slane %v14328_v15, 6  ;;  %v14340_v11 = vshrl.u32 %v10207_v1, 16 }
 0x262   : > { %v3594_v19 = vmax.f32 %v3578_v56, 0.0  ;;  %v3620_v40 = vpack.c.bf16 %v3596_v44, %v3595_v39  ;;  %v14342_v27 = vshll.u32 %v10207_v1, 16  ;;  %v5154_v4 = vrot.slane %v17110_v51, 5 }
 0x263   : > { %v5149_v49 = vor.u32 %v5148_v58, %v5147_v41  ;;  %v14346_v9 = vshll.u32 %v10208_v62, 16  ;;  %v5146_v39 = vrot.slane %v5145_v5, 4  ;;  %v14348_v26 = vshrl.u32 %v10208_v62, 16 }
 0x264   : > { %v3619_v0 = vpack.c.bf16 %v3594_v19, %v3593_v55  ;;  %v14351_v38 = vshll.u32 %v14337_v50, 16  ;;  %v5158_v6 = vrot.slane %v14340_v11, 5  ;;  %v5156_v56 = vor.u32 %v5155_v20, %v5154_v4 }
 0x265   : > { %17446 = vst [vmem:[#allocation10_spill] sm:$0xff] %v14346_v9  ;;  %17447 = vst [vmem:[#allocation11_spill] sm:$0xff] %v14348_v26  ;;  %v5151_v44 = vrot.slane %v5149_v49, 4  ;;  %v5159_v1 = vrot.slane %v14342_v27, 6  ;;  %v5163_v55 = vrot.slane %v14346_v9, 6  ;;  %v5150_v57 = vsel %vm11882_vm4, %v5146_v39, %v5149_v49 }
 0x266   : > { %17448 = vst [vmem:[#allocation16_spill] sm:$0xff] %v14351_v38  ;;  %11190 = vmatprep.mubr.bf16.mxu1 %v3619_v0  ;;  %v5162_v25 = vrot.slane %v14348_v26, 5  ;;  %v17109_v58 = vshrl.u32 %v14337_v50, 16  ;;  %v5170_v62 = vrot.slane %v14351_v38, 6  ;;  %v4806_v5 = vrot.slane %v14313_v31, 4 }
 0x267   : > { %v5157_v19 = vsel %vm11882_vm4, %v5151_v44, %v5156_v56  ;;  %v5160_v41 = vor.u32 %v5159_v1, %v5158_v6  ;;  %v4809_v20 = vrot.slane %v14315_v3, 5  ;;  %v17449_v0 = vcombine.low %v13893_v7, %v13904_v29 }
 0x268   : > { %11191 = vmatmul.mubr.bf16.gmra.mxu1 %v3620_v40  ;;  %v10242_v49 = vcombine.low %v5150_v57, %v5157_v19  ;;  %v5164_v4 = vor.u32 %v5163_v55, %v5162_v25  ;;  %v5169_v39 = vrot.slane %v17109_v58, 5  ;;  %v4815_v40 = vrot.slane %v14317_v13, 5  ;;  %v10210_v25 = vld [vmem:[%s11862_s17 + $0x54] sm:$0xf] }
 0x269   : > { %11214 = vmatprep.mubr.msk.bf16.mxu1 %vm580_vm3, %v17449_v0  ;;  %v5161_v44 = vrot.slane %v5160_v41, 4  ;;  %v4810_v6 = vor.u32 %v4809_v20, %v4806_v5  ;;  %v4819_v56 = vrot.slane %v14322_v18, 4  ;;  %v4825_v1 = vrot.slane %v14328_v15, 5  ;;  %v10211_v20 = vld [vmem:[%s11862_s17 + $0x58] sm:$0xf] }
 0x26a   : > { %11272 = vmatprep.mubr.msk.bf16.mxu0 %vm580_vm3, %v10242_v49  ;;  %v5166_v7 = vrot.slane %v5164_v4, 4  ;;  %v5171_v29 = vor.u32 %v5170_v62, %v5169_v39  ;;  %v4830_v57 = vrot.slane %v14340_v11, 4  ;;  %v4833_v55 = vrot.slane %v14342_v27, 5  ;;  %v14387_v39 = vld [vmem:[%s11862_s17 + $0x5c] sm:$0x7] }
 0x26b   : > { %v5165_v19 = vsel %vm11882_vm4, %v5161_v44, %v5164_v4  ;;  %v4811_v0 = vrot.slane %v4810_v6, 4  ;;  %v4820_v41 = vor.u32 %v4819_v56, %v4815_v40  ;;  %v4839_v5 = vrot.slane %v14346_v9, 5  ;;  %17450 = vst [vmem:[#allocation27_spill] sm:$0xff] %v14387_v39 }
 0x26c   : > { %v5172_v58 = vsel %vm11882_vm4, %v5166_v7, %v5171_v29  ;;  %v4834_v51 = vor.u32 %v4833_v55, %v4830_v57  ;;  %v4843_v49 = vrot.slane %v14348_v26, 4  ;;  %v4849_v62 = vrot.slane %v14351_v38, 5 }
 0x26d   : > { %v10243_v28 = vcombine.low %v5165_v19, %v5172_v58  ;;  %v14391_v4 = vsel %vm13874_vm15, %v4811_v0, %v4815_v40  ;;  %v4821_v44 = vrot.slane %v4820_v41, 4  ;;  %v14393_v6 = vshrl.u32 %v10210_v25, 16  ;;  %v10214_v41 = vld [vmem:[%s11862_s17 + $0x64] sm:$0xf] }
 0x26e   : > { %v4835_v56 = vrot.slane %v4834_v51, 4  ;;  %v4844_v61 = vor.u32 %v4843_v49, %v4839_v5  ;;  %v14395_v7 = vshll.u32 %v10210_v25, 16  ;;  %v14397_v29 = vshll.u32 %v10211_v20, 16  ;;  %v10213_v25 = vld [vmem:[%s11862_s17 + $0x60] sm:$0xf] }
 0x26f   : > { %17451 = vst [vmem:[#allocation4_spill] sm:$0xff] %v14393_v6  ;;  %v17454_v57 = vcombine.low %v13918_v17, %v13922_v16  ;;  %11273 = vmatmul.mubr.msk.bf16.gmra.mxu0 %vm580_vm3, %v10243_v28  ;;  %v14406_v58 = vsel %vm13874_vm15, %v4821_v44, %v4825_v1  ;;  %v14408_v40 = vshrl.u32 %v10211_v20, 16  ;;  %v14411_v51 = vshll.u32 %v14387_v39, 16  ;;  %v17457_v17 = vld [vmem:[#allocation13_spill] sm:$0xff]  ;;  %v14435_v44 = vld [vmem:[%s11862_s17 + $0x68] sm:$0x7] }
 0x270   : > { %17452 = vst [vmem:[#allocation17_spill] sm:$0xff] %v14395_v7  ;;  %17453 = vst [vmem:[#allocation23_spill] sm:$0xff] %v14397_v29  ;;  %v5173_v55 = vrot.slane %v14393_v6, 5  ;;  %v17458_v16 = vcombine.low %v13986_v35, %v17457_v17  ;;  %v14424_v1 = vsel %vm13874_vm15, %v4835_v56, %v4839_v5  ;;  %v4845_v19 = vrot.slane %v4844_v61, 4 }
 0x271   : > { %11215 = vmatmul.mubr.msk.bf16.vlgmr.msra.gmra.mxu1 %vm580_vm3, %v17454_v57  ;;  %17455 = vst [vmem:[#allocation38_spill] sm:$0xff] %v14408_v40  ;;  %17456 = vst [vmem:[#allocation18_spill] sm:$0xff] %v14411_v51  ;;  %v5174_v0 = vrot.slane %v14395_v7, 6  ;;  %v5178_v35 = vrot.slane %v14397_v29, 6  ;;  %v17113_v20 = vshrl.u32 %v14387_v39, 16  ;;  %v5185_v49 = vrot.slane %v14411_v51, 6 }
 0x272   : > { %11249 = vmatpush3.bf16.msra.mxu1 %v13897_v36  ;;  %11218 = vmatprep.mubr.msk.bf16.mxu1 %vm580_vm3, %v17458_v16  ;;  %v5177_v36 = vrot.slane %v14408_v40, 5  ;;  %17459 = vst [vmem:[#allocation39_spill] sm:$0xff] %v14435_v44  ;;  %v14439_v5 = vsel %vm13874_vm15, %v4845_v19, %v4849_v62  ;;  %v14441_v56 = vshrl.u32 %v10213_v25, 16  ;;  %v14443_v57 = vshll.u32 %v10213_v25, 16  ;;  %v17466_v39 = vld [vmem:[#allocation24_spill] sm:$0xff] }
 0x273   : > { %11613 = vmatprep.subr.msk.bf16.mxu1 %vm605_vm0, %v14282_v52  ;;  %v5175_v61 = vor.u32 %v5174_v0, %v5173_v55  ;;  %v5184_v16 = vrot.slane %v17113_v20, 5  ;;  %v14449_v28 = vshll.u32 %v10214_v41, 16  ;;  %v14451_v38 = vshrl.u32 %v10214_v41, 16  ;;  %v17465_v20 = vld [vmem:[#allocation37_spill] sm:$0xff] }
 0x274   : > { %17460 = vst [vmem:[#allocation40_spill] sm:$0xff] %v14441_v56  ;;  %17461 = vst [vmem:[#allocation41_spill] sm:$0xff] %v14443_v57  ;;  %v5179_v17 = vor.u32 %v5178_v35, %v5177_v36  ;;  %v14454_v62 = vshll.u32 %v14435_v44, 16  ;;  %v5188_v55 = vrot.slane %v14441_v56, 5  ;;  %v5189_v0 = vrot.slane %v14443_v57, 6 }
 0x275   : > { %17462 = vst [vmem:[#allocation42_spill] sm:$0xff] %v14449_v28  ;;  %v5176_v48 = vrot.slane %v5175_v61, 4  ;;  %17463 = vst [vmem:[#allocation14_spill] sm:$0xff] %v14451_v38  ;;  %v5186_v25 = vor.u32 %v5185_v49, %v5184_v16  ;;  %v5193_v52 = vrot.slane %v14449_v28, 6  ;;  %v5192_v35 = vrot.slane %v14451_v38, 5 }
 0x276   : > { %17464 = vst [vmem:[#allocation13_spill] sm:$0xff] %v14454_v62  ;;  %v5181_v19 = vrot.slane %v5179_v17, 4  ;;  %v5200_v41 = vrot.slane %v14454_v62, 6  ;;  %v17467_v50 = vcombine.low %v17465_v20, %v17466_v39  ;;  %v5190_v16 = vor.u32 %v5189_v0, %v5188_v55 }
 0x277   : > { %v5180_v36 = vsel %vm11882_vm4, %v5176_v48, %v5179_v17  ;;  %v4854_v9 = vrot.slane %v14393_v6, 4  ;;  %v4857_v48 = vrot.slane %v14395_v7, 5  ;;  %v17468_v17 = vcombine.low %v14062_v8, %v14071_v21 }
 0x278   : > { %v5187_v49 = vsel %vm11882_vm4, %v5181_v19, %v5186_v25  ;;  %v5194_v26 = vor.u32 %v5193_v52, %v5192_v35  ;;  %v17469_v39 = vshrl.u32 %v14435_v44, 16  ;;  %v5191_v19 = vrot.slane %v5190_v16, 4  ;;  %v10216_v35 = vld [vmem:[%s11862_s17 + $0x6c] sm:$0xf] }
 0x279   : > { %11219 = vmatmul.mubr.msk.bf16.gmra.mxu1 %vm580_vm3, %v17467_v50  ;;  %v10244_v61 = vcombine.low %v5180_v36, %v5187_v49  ;;  %v4863_v50 = vrot.slane %v14397_v29, 5  ;;  %v4858_v55 = vor.u32 %v4857_v48, %v4854_v9  ;;  %v4867_v25 = vrot.slane %v14408_v40, 4  ;;  %v10217_v48 = vld [vmem:[%s11862_s17 + $0x70] sm:$0xf] }
 0x27a   : > { %11222 = vmatprep.mubr.msk.bf16.mxu1 %vm580_vm3, %v17468_v17  ;;  %v5199_v20 = vrot.slane %v17469_v39, 5  ;;  %v4873_v0 = vrot.slane %v14411_v51, 5  ;;  %v5196_v8 = vrot.slane %v5194_v26, 4  ;;  %v4878_v36 = vrot.slane %v14441_v56, 4 }
 0x27b   : > { %11276 = vmatprep.mubr.msk.bf16.mxu0 %vm580_vm3, %v10244_v61  ;;  %v4881_v52 = vrot.slane %v14443_v57, 5  ;;  %v5195_v49 = vsel %vm11882_vm4, %v5191_v19, %v5194_v26  ;;  %v4859_v17 = vrot.slane %v4858_v55, 4  ;;  %v4868_v16 = vor.u32 %v4867_v25, %v4863_v50 }
 0x27c   : > { %v5201_v21 = vor.u32 %v5200_v41, %v5199_v20  ;;  %v4887_v9 = vrot.slane %v14449_v28, 5  ;;  %v4891_v61 = vrot.slane %v14451_v38, 4  ;;  %v4897_v41 = vrot.slane %v14454_v62, 5  ;;  %v14494_v20 = vld [vmem:[%s11862_s17 + $0x74] sm:$0x7] }
 0x27d   : > { %v4882_v44 = vor.u32 %v4881_v52, %v4878_v36  ;;  %17470 = vst [vmem:[#allocation37_spill] sm:$0xff] %v14494_v20  ;;  %v14498_v26 = vsel %vm13874_vm15, %v4859_v17, %v4863_v50  ;;  %v4869_v19 = vrot.slane %v4868_v16, 4  ;;  %v14500_v55 = vshrl.u32 %v10216_v35, 16  ;;  %v17472_v17 = vld [vmem:[#allocation21_spill] sm:$0xff]  ;;  %v17473_v16 = vld [vmem:[#allocation26_spill] sm:$0xff] }
 0x27e   : > { %v5202_v39 = vsel %vm11882_vm4, %v5196_v8, %v5201_v21  ;;  %v4892_v28 = vor.u32 %v4891_v61, %v4887_v9  ;;  %v14502_v8 = vshll.u32 %v10216_v35, 16  ;;  %v14504_v21 = vshll.u32 %v10217_v48, 16 }
 0x27f   : > { %v10245_v57 = vcombine.low %v5195_v49, %v5202_v39  ;;  %v4883_v25 = vrot.slane %v4882_v44, 4  ;;  %v17471_v36 = vcombine.low %v14082_v53, %v14092_v63  ;;  %v14513_v50 = vsel %vm13874_vm15, %v4869_v19, %v4873_v0  ;;  %v10219_v49 = vld [vmem:[%s11862_s17 + $0x78] sm:$0xf]  ;;  %v10220_v39 = vld [vmem:[%s11862_s17 + $0x7c] sm:$0xf] }
 0x280   : > { %v14515_v52 = vshrl.u32 %v10217_v48, 16  ;;  %v14518_v44 = vshll.u32 %v14494_v20, 16  ;;  %v5203_v35 = vrot.slane %v14500_v55, 5  ;;  %v17474_v53 = vcombine.low %v17472_v17, %v17473_v16  ;;  %v14539_v16 = vld [vmem:[%s11862_s17 + $0x80] sm:$0x7] }
 0x281   : > { %11223 = vmatmul.mubr.msk.bf16.gmra.mxu1 %vm580_vm3, %v17471_v36  ;;  %11277 = vmatmul.mubr.msk.bf16.gmra.mxu0 %vm580_vm3, %v10245_v57  ;;  %v14530_v57 = vsel %vm13874_vm15, %v4883_v25, %v4887_v9  ;;  %v4893_v0 = vrot.slane %v4892_v28, 4  ;;  %v5204_v48 = vrot.slane %v14502_v8, 6  ;;  %v5208_v19 = vrot.slane %v14504_v21, 6  ;;  %17475 = vst [vmem:[#allocation24_spill] sm:$0xff] %v14539_v16 }
 0x282   : > { %11226 = vmatprep.mubr.msk.bf16.mxu1 %vm580_vm3, %v17474_v53  ;;  %v5207_v61 = vrot.slane %v14515_v52, 5  ;;  %v17126_v36 = vshrl.u32 %v14494_v20, 16  ;;  %v5215_v17 = vrot.slane %v14518_v44, 6  ;;  %v14545_v25 = vshrl.u32 %v10219_v49, 16  ;;  %v17479_v20 = vld [vmem:[#allocation19_spill] sm:$0xff] }
 0x283   : > { %v14543_v53 = vsel %vm13874_vm15, %v4893_v0, %v4897_v41  ;;  %v5205_v9 = vor.u32 %v5204_v48, %v5203_v35  ;;  %v14547_v28 = vshll.u32 %v10219_v49, 16  ;;  %v14553_v56 = vshll.u32 %v10220_v39, 16 }
 0x284   : > { %v5209_v62 = vor.u32 %v5208_v19, %v5207_v61  ;;  %v5214_v38 = vrot.slane %v17126_v36, 5  ;;  %v14555_v29 = vshrl.u32 %v10220_v39, 16  ;;  %v14558_v41 = vshll.u32 %v14539_v16, 16  ;;  %v17478_v36 = vld [vmem:[#allocation20_spill] sm:$0xff] }
 0x285   : > { %17476 = vst [vmem:[#allocation21_spill] sm:$0xff] %v14547_v28  ;;  %17477 = vst [vmem:[#allocation26_spill] sm:$0xff] %v14553_v56  ;;  %v5206_v51 = vrot.slane %v5205_v9, 4  ;;  %v5218_v35 = vrot.slane %v14545_v25, 5  ;;  %v5219_v48 = vrot.slane %v14547_v28, 6  ;;  %v5223_v63 = vrot.slane %v14553_v56, 6 }
 0x286   : > { %v5211_v0 = vrot.slane %v5209_v62, 4  ;;  %v5216_v49 = vor.u32 %v5215_v17, %v5214_v38  ;;  %v5222_v19 = vrot.slane %v14555_v29, 5  ;;  %v5230_v39 = vrot.slane %v14558_v41, 6 }
 0x287   : > { %v5210_v61 = vsel %vm11882_vm4, %v5206_v51, %v5209_v62  ;;  %v17480_v40 = vcombine.low %v17478_v36, %v17479_v20  ;;  %v5220_v17 = vor.u32 %v5219_v48, %v5218_v35  ;;  %v4902_v7 = vrot.slane %v14500_v55, 4 }
 0x288   : > { %v5217_v38 = vsel %vm11882_vm4, %v5211_v0, %v5216_v49  ;;  %v4905_v51 = vrot.slane %v14502_v8, 5  ;;  %v17481_v62 = vcombine.low %v14260_v54, %v14273_v37  ;;  %v5224_v6 = vor.u32 %v5223_v63, %v5222_v19  ;;  %v10275_v19 = vld [vmem:[%s11862_s17 + $0x3c] sm:$0xf] }
 0x289   : > { %11227 = vmatmul.mubr.msk.bf16.gmra.mxu1 %vm580_vm3, %v17480_v40  ;;  %v10246_v9 = vcombine.low %v5210_v61, %v5217_v38  ;;  %v17482_v20 = vshrl.u32 %v14539_v16, 16  ;;  %v4911_v40 = vrot.slane %v14504_v21, 5  ;;  %v5221_v0 = vrot.slane %v5220_v17, 4  ;;  %v14598_v16 = vld [vmem:[%s11862_s17 + $0x44] sm:$0x7] }
 0x28a   : > { %11250 = vmatprep.mubr.msk.bf16.mxu1 %vm580_vm3, %v17481_v62  ;;  %v4906_v35 = vor.u32 %v4905_v51, %v4902_v7  ;;  %v4915_v49 = vrot.slane %v14515_v52, 4  ;;  %v4921_v48 = vrot.slane %v14518_v44, 5  ;;  %v5226_v54 = vrot.slane %v5224_v6, 4  ;;  %v10276_v62 = vld [vmem:[%s11862_s17 + $0x40] sm:$0xf] }
 0x28b   : > { %v5229_v36 = vrot.slane %v17482_v20, 5  ;;  %11280 = vmatprep.mubr.msk.bf16.mxu0 %vm580_vm3, %v10246_v9  ;;  %v4926_v61 = vrot.slane %v14545_v25, 4  ;;  %v4929_v63 = vrot.slane %v14547_v28, 5  ;;  %v5225_v38 = vsel %vm11882_vm4, %v5221_v0, %v5224_v6 }
 0x28c   : > { %v4907_v17 = vrot.slane %v4906_v35, 4  ;;  %v4916_v7 = vor.u32 %v4915_v49, %v4911_v40  ;;  %v4935_v51 = vrot.slane %v14553_v56, 5  ;;  %v14604_v35 = vshrl.u32 %v10275_v19, 16  ;;  %v10278_v49 = vld [vmem:[%s11862_s17 + $0x48] sm:$0xf] }
 0x28d   : > { %v5231_v37 = vor.u32 %v5230_v39, %v5229_v36  ;;  %v4930_v9 = vor.u32 %v4929_v63, %v4926_v61  ;;  %v4939_v39 = vrot.slane %v14555_v29, 4  ;;  %v4945_v36 = vrot.slane %v14558_v41, 5  ;;  %v14614_v61 = vld [vmem:[%s16982_s2 + $0x20] sm:$0x3] }
 0x28e   : > { %v14602_v6 = vsel %vm13874_vm15, %v4907_v17, %v4911_v40  ;;  %v4917_v0 = vrot.slane %v4916_v7, 4  ;;  %v17484_v63 = vcombine.low %v14292_v2, %v14311_v43  ;;  %v14629_v17 = vshll.u32 %v14598_v16, 16  ;;  %v10279_v7 = vld [vmem:[%s11862_s17 + $0x4c] sm:$0xf] }
 0x28f   : > { %v5232_v20 = vsel %vm11882_vm4, %v5226_v54, %v5231_v37  ;;  %v4931_v56 = vrot.slane %v4930_v9, 4  ;;  %v4940_v10 = vor.u32 %v4939_v39, %v4935_v51  ;;  %v14607_v54 = vshll.u32 %v10275_v19, 16  ;;  %v14648_v39 = vld [vmem:[%s11862_s17 + $0x50] sm:$0x7] }
 0x290   : > { %v10247_v28 = vcombine.low %v5225_v38, %v5232_v20  ;;  %v14609_v37 = vshll.u32 %v10276_v62, 16  ;;  %v14623_v40 = vsel %vm13874_vm15, %v4917_v0, %v4921_v48  ;;  %v5700_v19 = vrot.slane %v14604_v35, 4  ;;  %17486 = vst [vmem:[#allocation44_spill] sm:$0xff] %v14629_v17 }
 0x291   : > { %11251 = vmatmul.mubr.msk.bf16.vlgmr.msra.gmra.mxu1 %vm580_vm3, %v17484_v63  ;;  %v14626_v38 = vshrl.u32 %v10276_v62, 16  ;;  %v17487_v2 = vcombine.low %v14391_v4, %v14406_v58  ;;  %v4941_v48 = vrot.slane %v4940_v10, 4  ;;  %v5703_v62 = vrot.slane %v14607_v54, 5 }
 0x292   : > { %17483 = vst [vmem:[#allocation20_spill] sm:$0xff] %v14609_v37  ;;  %11281 = vmatmul.mubr.msk.bf16.gmra.mxu0 %vm580_vm3, %v10247_v28  ;;  %11285 = vmatpush3.bf16.msra.mxu1 %v14296_v32  ;;  %v14641_v28 = vsel %vm13874_vm15, %v4931_v56, %v4935_v51  ;;  %v5709_v20 = vrot.slane %v14609_v37, 5  ;;  %v5719_v32 = vrot.slane %v14629_v17, 5  ;;  %v14650_v4 = vshrl.u32 %v10278_v49, 16 }
 0x293   : > { %17485 = vst [vmem:[#allocation19_spill] sm:$0xff] %v14626_v38  ;;  %11254 = vmatprep.mubr.msk.bf16.mxu1 %vm580_vm3, %v17487_v2  ;;  %v5713_v9 = vrot.slane %v14626_v38, 4  ;;  %11615 = vmatprep.subr.msk.bf16.mxu1 %vm605_vm0, %v14614_v61  ;;  %v14656_v58 = vsel %vm13874_vm15, %v4941_v48, %v4945_v36  ;;  %v5704_v10 = vor.u32 %v5703_v62, %v5700_v19  ;;  %v14658_v56 = vshll.u32 %v10278_v49, 16 }
 0x294   : > { %v14660_v51 = vshll.u32 %v10279_v7, 16  ;;  %v5724_v2 = vrot.slane %v14650_v4, 4  ;;  %v14665_v43 = vshrl.u32 %v10279_v7, 16  ;;  %v14670_v36 = vshll.u32 %v14648_v39, 16 }
 0x295   : > { %v5714_v63 = vor.u32 %v5713_v9, %v5709_v20  ;;  %v5705_v17 = vrot.slane %v5704_v10, 4  ;;  %v5727_v37 = vrot.slane %v14658_v56, 5  ;;  %v5399_v48 = vrot.slane %v14151_v33, 6 }
 0x296   : > { %17488 = vst [vmem:[#allocation45_spill] sm:$0xff] %v14660_v51  ;;  %17489 = vst [vmem:[#allocation46_spill] sm:$0xff] %v14665_v43  ;;  %v5733_v38 = vrot.slane %v14660_v51, 5  ;;  %v5737_v19 = vrot.slane %v14665_v43, 4  ;;  %v5400_v62 = vrot.slane %v14160_v46, 7  ;;  %v5743_v10 = vrot.slane %v14670_v36, 5 }
 0x297   : > { %17490 = vst [vmem:[#allocation47_spill] sm:$0xff] %v14670_v36  ;;  %v5715_v49 = vrot.slane %v5714_v63, 4  ;;  %v5710_v9 = vsel %vm13874_vm15, %v5705_v17, %v5709_v20  ;;  %v5728_v7 = vor.u32 %v5727_v37, %v5724_v2  ;;  %v5403_v0 = vrot.slane %v14169_v45, 6  ;;  %v17493_v45 = vld [vmem:[#allocation25_spill] sm:$0xff] }
 0x298   : > { %v17491_v51 = vcombine.low %v14424_v1, %v14439_v5  ;;  %v5738_v43 = vor.u32 %v5737_v19, %v5733_v38  ;;  %v5401_v33 = vor.u32 %v5400_v62, %v5399_v48  ;;  %v5404_v46 = vrot.slane %v14164_v24, 7  ;;  %v10281_v62 = vld [vmem:[%s11862_s17 + $0x54] sm:$0xf] }
 0x299   : > { %v5720_v63 = vsel %vm13874_vm15, %v5715_v49, %v5719_v32  ;;  %v17492_v17 = vcombine.low %v14498_v26, %v14513_v50  ;;  %v5729_v20 = vrot.slane %v5728_v7, 4  ;;  %v17494_v2 = vshrl.u32 %v17493_v45, 16 }
 0x29a   : > { %11255 = vmatmul.mubr.msk.bf16.gmra.mxu1 %vm580_vm3, %v17491_v51  ;;  %v10300_v37 = vcombine.low %v5710_v9, %v5720_v63  ;;  %v5409_v5 = vrot.slane %v14172_v22, 7  ;;  %v5739_v51 = vrot.slane %v5738_v43, 4  ;;  %v5402_v36 = vrot.slane %v5401_v33, 4 }
 0x29b   : > { %11258 = vmatprep.mubr.msk.bf16.mxu1 %vm580_vm3, %v17492_v17  ;;  %v5408_v1 = vrot.slane %v17494_v2, 6  ;;  %v5405_v32 = vor.u32 %v5404_v46, %v5403_v0  ;;  %v5412_v49 = vrot.slane %v14200_v23, 6  ;;  %v5734_v24 = vsel %vm13874_vm15, %v5729_v20, %v5733_v38  ;;  %v14720_v46 = vld [vmem:[%s11862_s17 + $0x5c] sm:$0x7]  ;;  %v10284_v17 = vld [vmem:[%s11862_s17 + $0x60] sm:$0xf] }
 0x29c   : > { %11304 = vmatprep.mubr.msk.bf16.mxu0 %vm580_vm3, %v10300_v37  ;;  %v5413_v50 = vrot.slane %v14204_v12, 7  ;;  %v5416_v19 = vrot.slane %v14219_v30, 6  ;;  %v5744_v22 = vsel %vm13874_vm15, %v5739_v51, %v5743_v10  ;;  %v5417_v48 = vrot.slane %v14213_v59, 7  ;;  %v10282_v30 = vld [vmem:[%s11862_s17 + $0x58] sm:$0xf] }
 0x29d   : > { %v5410_v26 = vor.u32 %v5409_v5, %v5408_v1  ;;  %v14703_v0 = vsel %vm13830_vm12, %v5402_v36, %v5405_v32  ;;  %v5407_v23 = vrot.slane %v5405_v32, 4  ;;  %v10301_v9 = vcombine.low %v5734_v24, %v5744_v22  ;;  %v14737_v5 = vpop.f32.mrf.mxu0 }
 0x29e   : > { %v5414_v38 = vor.u32 %v5413_v50, %v5412_v49  ;;  %v17496_v7 = vshrl.u32 %v14209_v42, 16  ;;  %v5422_v63 = vrot.slane %v14222_v34, 7  ;;  %v5418_v10 = vor.u32 %v5417_v48, %v5416_v19  ;;  %17498 = vst [vmem:[#allocation25_spill] sm:$0xff] %v14737_v5  ;;  %v10285_v49 = vld [vmem:[%s11862_s17 + $0x64] sm:$0xf] }
 0x29f   : > { %v5411_v33 = vsel %vm13830_vm12, %v5407_v23, %v5410_v26  ;;  %v14715_v36 = vsel %vm605_vm0, %v14614_v61, 0  ;;  %v6496_v59 = vsel %vm605_vm0, %v14301_v60, 0  ;;  %11305 = vmatmul.mubr.msk.bf16.vlgmr.msra.gmra.mxu0 %vm580_vm3, %v10301_v9  ;;  %v14725_v20 = vshrl.u32 %v10281_v62, 16  ;;  %v14762_v19 = vld [vmem:[%s11862_s17 + $0x68] sm:$0x7] }
 0x2a0   : > { %v5421_v12 = vrot.slane %v17496_v7, 6  ;;  %v10257_v34 = vcombine.low %v14703_v0, %v5411_v33  ;;  %v5415_v42 = vrot.slane %v5414_v38, 4  ;;  %v17497_v45 = vcombine.low %v14530_v57, %v14543_v53  ;;  %11339 = vmatpush3.bf16.msra.mxu0 %v6496_v59 }
 0x2a1   : > { %v5420_v61 = vrot.slane %v5418_v10, 4  ;;  %v14731_v60 = vshll.u32 %v10281_v62, 16  ;;  %v14733_v2 = vshll.u32 %v10282_v30, 16  ;;  %v14735_v1 = vshrl.u32 %v10282_v30, 16 }
 0x2a2   : > { %v5423_v37 = vor.u32 %v5422_v63, %v5421_v12  ;;  %11259 = vmatmul.mubr.msk.bf16.gmra.mxu1 %vm580_vm3, %v17497_v45  ;;  %v17499_v51 = vcombine.low %v14602_v6, %v14623_v40  ;;  %v14745_v57 = vsel %vm13830_vm12, %v5415_v42, %v5418_v10  ;;  %v5748_v53 = vrot.slane %v14725_v20, 4  ;;  %v14774_v12 = vpop.f32.mrf.mxu0 }
 0x2a3   : > { %v14749_v32 = vshll.u32 %v14720_v46, 16  ;;  %v14752_v24 = vshrl.u32 %v10284_v17, 16  ;;  %v5751_v6 = vrot.slane %v14731_v60, 5  ;;  %v5757_v40 = vrot.slane %v14733_v2, 5  ;;  %17500 = vst [vmem:[#allocation43_spill] sm:$0xff] %v14774_v12 }
 0x2a4   : > { %11262 = vmatprep.mubr.msk.bf16.mxu1 %vm580_vm3, %v17499_v51  ;;  %v14756_v26 = vsel %vm13830_vm12, %v5420_v61, %v5423_v37  ;;  %v5761_v50 = vrot.slane %v14735_v1, 4  ;;  %v14768_v48 = vshll.u32 %v10284_v17, 16  ;;  %v14770_v38 = vshll.u32 %v10285_v49, 16 }
 0x2a5   : > { %v10258_v22 = vcombine.low %v14745_v57, %v14756_v26  ;;  %v5767_v0 = vrot.slane %v14749_v32, 5  ;;  %v5772_v23 = vrot.slane %v14752_v24, 4  ;;  %v5752_v62 = vor.u32 %v5751_v6, %v5748_v53 }
 0x2a6   : > { %v5762_v9 = vor.u32 %v5761_v50, %v5757_v40  ;;  %v14772_v7 = vshrl.u32 %v10285_v49, 16  ;;  %v5775_v63 = vrot.slane %v14768_v48, 5  ;;  %v14778_v30 = vshll.u32 %v14762_v19, 16 }
 0x2a7   : > { %v5425_v33 = vrot.slane %v14313_v31, 6  ;;  %v5426_v10 = vrot.slane %v14315_v3, 7  ;;  %v5753_v59 = vrot.slane %v5752_v62, 4  ;;  %v5781_v42 = vrot.slane %v14770_v38, 5 }
 0x2a8   : > { %v5763_v17 = vrot.slane %v5762_v9, 4  ;;  %v5785_v37 = vrot.slane %v14772_v7, 4  ;;  %v5776_v45 = vor.u32 %v5775_v63, %v5772_v23  ;;  %v5791_v61 = vrot.slane %v14778_v30, 5  ;;  %v14795_v23 = vpop.f32.mrf.mxu0 }
 0x2a9   : > { %v5427_v51 = vor.u32 %v5426_v10, %v5425_v33  ;;  %v5429_v53 = vrot.slane %v14322_v18, 6  ;;  %v17501_v49 = vcombine.low %v14641_v28, %v14656_v58  ;;  %v5758_v31 = vsel %vm13874_vm15, %v5753_v59, %v5757_v40  ;;  %17502 = vst [vmem:[#allocation48_spill] sm:$0xff] %v14795_v23  ;;  %v17504_v10 = vld [vmem:[#allocation11_spill] sm:$0xff] }
 0x2aa   : > { %v5768_v3 = vsel %vm13874_vm15, %v5763_v17, %v5767_v0  ;;  %v5786_v6 = vor.u32 %v5785_v37, %v5781_v42  ;;  %v5430_v50 = vrot.slane %v14317_v13, 7  ;;  %v5777_v62 = vrot.slane %v5776_v45, 4  ;;  %v17505_v17 = vld [vmem:[#allocation10_spill] sm:$0xff]  ;;  %v10287_v37 = vld [vmem:[%s11862_s17 + $0x6c] sm:$0xf] }
 0x2ab   : > { %11263 = vmatmul.mubr.msk.bf16.gmra.mxu1 %vm580_vm3, %v17501_v49  ;;  %v10302_v18 = vcombine.low %v5758_v31, %v5768_v3  ;;  %v5428_v9 = vrot.slane %v5427_v51, 4  ;;  %v17503_v28 = vshrl.u32 %v14307_v47, 16  ;;  %v5435_v33 = vrot.slane %v14328_v15, 7  ;;  %v14814_v49 = vpop.f32.mrf.mxu0  ;;  %v17507_v3 = vld [vmem:[#allocation9_spill] sm:$0xff] }
 0x2ac   : > { %11286 = vmatprep.mubr.msk.bf16.mxu1 %vm580_vm3, %v10257_v34  ;;  %v5787_v63 = vrot.slane %v5786_v6, 4  ;;  %v5431_v40 = vor.u32 %v5430_v50, %v5429_v53  ;;  %v5438_v0 = vrot.slane %v14340_v11, 6  ;;  %v5782_v13 = vsel %vm13874_vm15, %v5777_v62, %v5781_v42  ;;  %v10288_v53 = vld [vmem:[%s11862_s17 + $0x70] sm:$0xf]  ;;  %17506 = vst [vmem:[#allocation11_spill] sm:$0xff] %v14814_v49  ;;  %v17517_v49 = vld [vmem:[#allocation23_spill] sm:$0xff] }
 0x2ad   : > { %v5434_v58 = vrot.slane %v17503_v28, 6  ;;  %11308 = vmatprep.mubr.msk.bf16.mxu0 %vm580_vm3, %v10302_v18  ;;  %v5439_v34 = vrot.slane %v14342_v27, 7  ;;  %v5442_v59 = vrot.slane %v17504_v10, 6  ;;  %v5443_v47 = vrot.slane %v17505_v17, 7  ;;  %v10290_v18 = vld [vmem:[%s11862_s17 + $0x78] sm:$0xf] }
 0x2ae   : > { %v5792_v45 = vsel %vm13874_vm15, %v5787_v63, %v5791_v61  ;;  %v5432_v15 = vsel %vm13830_vm12, %v5428_v9, %v5431_v40  ;;  %v5433_v11 = vrot.slane %v5431_v40, 4  ;;  %v17508_v6 = vshrl.u32 %v17507_v3, 16  ;;  %v17509_v61 = vld [vmem:[#allocation16_spill] sm:$0xff]  ;;  %v14823_v63 = vld [vmem:[%s11862_s17 + $0x74] sm:$0x7] }
 0x2af   : > { %v5436_v51 = vor.u32 %v5435_v33, %v5434_v58  ;;  %v10303_v42 = vcombine.low %v5782_v13, %v5792_v45  ;;  %v5440_v31 = vor.u32 %v5439_v34, %v5438_v0  ;;  %v5444_v27 = vor.u32 %v5443_v47, %v5442_v59  ;;  %v10291_v47 = vld [vmem:[%s11862_s17 + $0x7c] sm:$0xf] }
 0x2b0   : > { %v5447_v50 = vrot.slane %v17508_v6, 6  ;;  %v5448_v28 = vrot.slane %v17509_v61, 7  ;;  %v14825_v9 = vshrl.u32 %v10287_v37, 16  ;;  %v14827_v58 = vshll.u32 %v10287_v37, 16  ;;  %v14841_v37 = vpop.f32.mrf.mxu0 }
 0x2b1   : > { %v5437_v62 = vsel %vm13830_vm12, %v5433_v11, %v5436_v51  ;;  %11309 = vmatmul.mubr.msk.bf16.gmra.mxu0 %vm580_vm3, %v10303_v42  ;;  %v5441_v33 = vrot.slane %v5440_v31, 4  ;;  %v5446_v0 = vrot.slane %v5444_v27, 4  ;;  %v14830_v13 = vshll.u32 %v10288_v53, 16  ;;  %17510 = vst [vmem:[#allocation10_spill] sm:$0xff] %v14841_v37 }
 0x2b2   : > { %v10259_v40 = vcombine.low %v5432_v15, %v5437_v62  ;;  %v5449_v34 = vor.u32 %v5448_v28, %v5447_v50  ;;  %v5796_v10 = vrot.slane %v14825_v9, 4  ;;  %v5799_v59 = vrot.slane %v14827_v58, 5  ;;  %v14868_v28 = vpop.f32.mrf.mxu0 }
 0x2b3   : > { %11287 = vmatmul.mubr.msk.bf16.vlgmr.msra.gmra.mxu1 %vm580_vm3, %v10258_v22  ;;  %v14838_v17 = vshrl.u32 %v10288_v53, 16  ;;  %v5445_v57 = vsel %vm13830_vm12, %v5441_v33, %v5444_v27  ;;  %v5805_v26 = vrot.slane %v14830_v13, 5  ;;  %v14849_v22 = vshll.u32 %v14823_v63, 16  ;;  %v14857_v53 = vld [vmem:[%s11862_s17 + $0x80] sm:$0x7]  ;;  %17512 = vst [vmem:[#allocation16_spill] sm:$0xff] %v14868_v28 }
 0x2b4   : > { %11321 = vmatpush3.bf16.msra.mxu1 %v14715_v36  ;;  %11290 = vmatprep.mubr.msk.bf16.mxu1 %vm580_vm3, %v10259_v40  ;;  %v14851_v45 = vshrl.u32 %v10290_v18, 16  ;;  %v5450_v15 = vsel %vm13830_vm12, %v5446_v0, %v5449_v34  ;;  %v5800_v11 = vor.u32 %v5799_v59, %v5796_v10  ;;  %v14859_v36 = vshll.u32 %v10290_v18, 16  ;;  %v17514_v33 = vld [vmem:[#allocation4_spill] sm:$0xff]  ;;  %v17515_v34 = vld [vmem:[#allocation17_spill] sm:$0xff]  ;;  %v17516_v28 = vld [vmem:[#allocation38_spill] sm:$0xff] }
 0x2b5   : > { %v5809_v51 = vrot.slane %v14838_v17, 4  ;;  %v10260_v42 = vcombine.low %v5445_v57, %v5450_v15  ;;  %v5815_v31 = vrot.slane %v14849_v22, 5  ;;  %v14863_v3 = vshll.u32 %v10291_v47, 16 }
 0x2b6   : > { %v5820_v27 = vrot.slane %v14851_v45, 4  ;;  %v5801_v6 = vrot.slane %v5800_v11, 4  ;;  %v5823_v62 = vrot.slane %v14859_v36, 5  ;;  %v14866_v61 = vshrl.u32 %v10291_v47, 16 }
 0x2b7   : > { %17511 = vst [vmem:[#allocation9_spill] sm:$0xff] %v14863_v3  ;;  %v5810_v50 = vor.u32 %v5809_v51, %v5805_v26  ;;  %v5829_v40 = vrot.slane %v14863_v3, 5  ;;  %v14872_v18 = vshll.u32 %v14857_v53, 16  ;;  %v5451_v0 = vrot.slane %v17514_v33, 6 }
 0x2b8   : > { %v5452_v10 = vrot.slane %v17515_v34, 7  ;;  %v5806_v59 = vsel %vm13874_vm15, %v5801_v6, %v5805_v26  ;;  %v5824_v15 = vor.u32 %v5823_v62, %v5820_v27  ;;  %v5833_v11 = vrot.slane %v14866_v61, 4  ;;  %v17518_v26 = vld [vmem:[#allocation27_spill] sm:$0xff] }
 0x2b9   : > { %17513 = vst [vmem:[#allocation49_spill] sm:$0xff] %v14872_v18  ;;  %v5811_v57 = vrot.slane %v5810_v50, 4  ;;  %v5839_v47 = vrot.slane %v14872_v18, 5  ;;  %v5455_v37 = vrot.slane %v17516_v28, 6  ;;  %v5456_v23 = vrot.slane %v17517_v49, 7  ;;  %v14887_v50 = vpop.f32.mrf.mxu0  ;;  %v17522_v18 = vld [vmem:[#allocation40_spill] sm:$0xff] }
 0x2ba   : > { %v5453_v51 = vor.u32 %v5452_v10, %v5451_v0  ;;  %v5825_v34 = vrot.slane %v5824_v15, 4  ;;  %v5834_v12 = vor.u32 %v5833_v11, %v5829_v40  ;;  %v17519_v6 = vshrl.u32 %v17518_v26, 16  ;;  %17520 = vst [vmem:[#allocation4_spill] sm:$0xff] %v14887_v50  ;;  %v17521_v10 = vld [vmem:[#allocation18_spill] sm:$0xff]  ;;  %v10293_v15 = vld [vmem:[%s11862_s17 + $0x84] sm:$0xf] }
 0x2bb   : > { %11291 = vmatmul.mubr.msk.bf16.gmra.mxu1 %vm580_vm3, %v10260_v42  ;;  %v5816_v33 = vsel %vm13874_vm15, %v5811_v57, %v5815_v31  ;;  %v5457_v0 = vor.u32 %v5456_v23, %v5455_v37  ;;  %v5461_v28 = vrot.slane %v17521_v10, 7  ;;  %v5464_v3 = vrot.slane %v17522_v18, 6  ;;  %v17523_v31 = vld [vmem:[#allocation41_spill] sm:$0xff]  ;;  %v17524_v37 = vld [vmem:[#allocation14_spill] sm:$0xff]  ;;  %v10294_v10 = vld [vmem:[%s11862_s17 + $0x88] sm:$0xf] }
 0x2bc   : > { %v5460_v27 = vrot.slane %v17519_v6, 6  ;;  %v10304_v62 = vcombine.low %v5806_v59, %v5816_v33  ;;  %v5454_v5 = vrot.slane %v5453_v51, 4  ;;  %v5830_v49 = vsel %vm13874_vm15, %v5825_v34, %v5829_v40  ;;  %v17525_v33 = vld [vmem:[#allocation42_spill] sm:$0xff]  ;;  %v17526_v34 = vld [vmem:[#allocation39_spill] sm:$0xff] }
 0x2bd   : > { %v5835_v42 = vrot.slane %v5834_v12, 4  ;;  %v5465_v57 = vrot.slane %v17523_v31, 7  ;;  %v5459_v11 = vrot.slane %v5457_v0, 4  ;;  %v5468_v51 = vrot.slane %v17524_v37, 6  ;;  %v14905_v31 = vpop.f32.mrf.mxu0 }
 0x2be   : > { %11312 = vmatprep.mubr.msk.bf16.mxu0 %vm580_vm3, %v10304_v62  ;;  %v5458_v59 = vsel %vm13830_vm12, %v5454_v5, %v5457_v0  ;;  %v5462_v23 = vor.u32 %v5461_v28, %v5460_v27  ;;  %v5469_v18 = vrot.slane %v17525_v33, 7  ;;  %v17527_v26 = vshrl.u32 %v17526_v34, 16  ;;  %17528 = vst [vmem:[#allocation17_spill] sm:$0xff] %v14905_v31  ;;  %v17529_v27 = vld [vmem:[#allocation13_spill] sm:$0xff]  ;;  %v14911_v28 = vld [vmem:[%s11862_s17 + $0x8c] sm:$0x7] }
 0x2bf   : > { %v5840_v40 = vsel %vm13874_vm15, %v5835_v42, %v5839_v47  ;;  %v5466_v12 = vor.u32 %v5465_v57, %v5464_v3  ;;  %v5474_v0 = vrot.slane %v17529_v27, 7  ;;  %v14913_v37 = vshrl.u32 %v10293_v15, 16  ;;  %v10296_v33 = vld [vmem:[%s11862_s17 + $0x90] sm:$0xf] }
 0x2c0   : > { %v5473_v6 = vrot.slane %v17527_v26, 6  ;;  %v10305_v62 = vcombine.low %v5830_v49, %v5840_v40  ;;  %v5463_v5 = vsel %vm13830_vm12, %v5459_v11, %v5462_v23  ;;  %v5470_v42 = vor.u32 %v5469_v18, %v5468_v51  ;;  %v10297_v23 = vld [vmem:[%s11862_s17 + $0x94] sm:$0xf]  ;;  %v14932_v18 = vpop.f32.mrf.mxu0 }
 0x2c1   : > { %v10261_v3 = vcombine.low %v5458_v59, %v5463_v5  ;;  %v5467_v47 = vrot.slane %v5466_v12, 4  ;;  %v14915_v57 = vshll.u32 %v10293_v15, 16  ;;  %v5844_v49 = vrot.slane %v14913_v37, 4  ;;  %17533 = vst [vmem:[#allocation18_spill] sm:$0xff] %v14932_v18 }
 0x2c2   : > { %11313 = vmatmul.mubr.msk.bf16.gmra.mxu0 %vm580_vm3, %v10305_v62  ;;  %v5475_v34 = vor.u32 %v5474_v0, %v5473_v6  ;;  %v14920_v40 = vshll.u32 %v10294_v10, 16  ;;  %v14922_v11 = vshrl.u32 %v10294_v10, 16  ;;  %v5472_v51 = vrot.slane %v5470_v42, 4  ;;  %v14937_v10 = vld [vmem:[%s11862_s17 + $0x98] sm:$0x7] }
 0x2c3   : > { %17530 = vst [vmem:[#allocation38_spill] sm:$0xff] %v14915_v57  ;;  %11294 = vmatprep.mubr.msk.bf16.mxu1 %vm580_vm3, %v10261_v3  ;;  %v5471_v59 = vsel %vm13830_vm12, %v5467_v47, %v5470_v42  ;;  %v5847_v15 = vrot.slane %v14915_v57, 5  ;;  %v14930_v12 = vshll.u32 %v14911_v28, 16  ;;  %v14939_v62 = vshrl.u32 %v10296_v33, 16 }
 0x2c4   : > { %17531 = vst [vmem:[#allocation23_spill] sm:$0xff] %v14920_v40  ;;  %17532 = vst [vmem:[#allocation27_spill] sm:$0xff] %v14922_v11  ;;  %v5853_v26 = vrot.slane %v14920_v40, 5  ;;  %v5857_v6 = vrot.slane %v14922_v11, 4  ;;  %v14941_v5 = vshll.u32 %v10296_v33, 16  ;;  %v5476_v27 = vsel %vm13830_vm12, %v5472_v51, %v5475_v34  ;;  %v14956_v34 = vpop.f32.mrf.mxu0 }
 0x2c5   : > { %v5848_v0 = vor.u32 %v5847_v15, %v5844_v49  ;;  %v5863_v3 = vrot.slane %v14930_v12, 5  ;;  %v14946_v47 = vshll.u32 %v10297_v23, 16  ;;  %v10262_v42 = vcombine.low %v5471_v59, %v5476_v27  ;;  %17538 = vst [vmem:[#allocation39_spill] sm:$0xff] %v14956_v34 }
 0x2c6   : > { %17534 = vst [vmem:[#allocation40_spill] sm:$0xff] %v14941_v5  ;;  %v5858_v18 = vor.u32 %v5857_v6, %v5853_v26  ;;  %v5868_v31 = vrot.slane %v14939_v62, 4  ;;  %v5871_v50 = vrot.slane %v14941_v5, 5  ;;  %v14951_v57 = vshrl.u32 %v10297_v23, 16 }
 0x2c7   : > { %17535 = vst [vmem:[#allocation41_spill] sm:$0xff] %v14946_v47  ;;  %v5849_v40 = vrot.slane %v5848_v0, 4  ;;  %v5877_v11 = vrot.slane %v14946_v47, 5  ;;  %v14954_v33 = vshll.u32 %v14937_v10, 16  ;;  %11295 = vmatmul.mubr.msk.bf16.gmra.mxu1 %vm580_vm3, %v10262_v42  ;;  %v5477_v59 = vrot.slane %v14500_v55, 6 }
 0x2c8   : > { %17536 = vst [vmem:[#allocation14_spill] sm:$0xff] %v14951_v57  ;;  %v5859_v49 = vrot.slane %v5858_v18, 4  ;;  %v5872_v51 = vor.u32 %v5871_v50, %v5868_v31  ;;  %v5478_v15 = vrot.slane %v14502_v8, 7  ;;  %v5881_v27 = vrot.slane %v14951_v57, 4  ;;  %v17539_v18 = vld [vmem:[#allocation37_spill] sm:$0xff] }
 0x2c9   : > { %17537 = vst [vmem:[#allocation42_spill] sm:$0xff] %v14954_v33  ;;  %v5854_v6 = vsel %vm13874_vm15, %v5849_v40, %v5853_v26  ;;  %v5887_v23 = vrot.slane %v14954_v33, 5  ;;  %v5481_v0 = vrot.slane %v14515_v52, 6  ;;  %v5482_v50 = vrot.slane %v14504_v21, 7  ;;  %v14972_v26 = vpop.f32.mrf.mxu0 }
 0x2ca   : > { %v5864_v34 = vsel %vm13874_vm15, %v5859_v49, %v5863_v3  ;;  %v5873_v47 = vrot.slane %v5872_v51, 4  ;;  %v5479_v42 = vor.u32 %v5478_v15, %v5477_v59  ;;  %v5882_v55 = vor.u32 %v5881_v27, %v5877_v11 }
 0x2cb   : > { %v10306_v31 = vcombine.low %v5854_v6, %v5864_v34  ;;  %v17540_v8 = vshrl.u32 %v17539_v18, 16  ;;  %v5487_v40 = vrot.slane %v14518_v44, 7  ;;  %v5483_v57 = vor.u32 %v5482_v50, %v5481_v0  ;;  %v17541_v34 = vld [vmem:[#allocation21_spill] sm:$0xff]  ;;  %v17542_v6 = vld [vmem:[#allocation26_spill] sm:$0xff]  ;;  %v17543_v18 = vld [vmem:[#allocation24_spill] sm:$0xff]  ;;  %v14989_v50 = vpop.f32.mrf.mxu0 }
 0x2cc   : > { %v5878_v33 = vsel %vm13874_vm15, %v5873_v47, %v5877_v11  ;;  %v5480_v52 = vrot.slane %v5479_v42, 4  ;;  %v5490_v3 = vrot.slane %v14545_v25, 6  ;;  %v5883_v49 = vrot.slane %v5882_v55, 4 }
 0x2cd   : > { %v5486_v5 = vrot.slane %v17540_v8, 6  ;;  %11316 = vmatprep.mubr.msk.bf16.mxu0 %vm580_vm3, %v10306_v31  ;;  %v5491_v51 = vrot.slane %v17541_v34, 7  ;;  %v5494_v59 = vrot.slane %v14555_v29, 6  ;;  %v5485_v15 = vrot.slane %v5483_v57, 4 }
 0x2ce   : > { %v5484_v44 = vsel %vm13830_vm12, %v5480_v52, %v5483_v57  ;;  %v5495_v27 = vrot.slane %v17542_v6, 7  ;;  %v17544_v11 = vshrl.u32 %v17543_v18, 16  ;;  %v5888_v25 = vsel %vm13874_vm15, %v5883_v49, %v5887_v23 }
 0x2cf   : > { %v5488_v21 = vor.u32 %v5487_v40, %v5486_v5  ;;  %v5492_v0 = vor.u32 %v5491_v51, %v5490_v3  ;;  %v5500_v42 = vrot.slane %v14558_v41, 7  ;;  %v6064_v5 = vshrl.u32 %v14598_v16, 16  ;;  %v17545_v41 = vld [vmem:[#allocation19_spill] sm:$0xff]  ;;  %v17546_v16 = vld [vmem:[#allocation20_spill] sm:$0xff] }
 0x2d0   : > { %v5499_v47 = vrot.slane %v17544_v11, 6  ;;  %v10307_v29 = vcombine.low %v5878_v33, %v5888_v25  ;;  %v5496_v57 = vor.u32 %v5495_v27, %v5494_v59  ;;  %v6341_v55 = vrot.slane %v14604_v35, 6  ;;  %v17547_v51 = vld [vmem:[#allocation44_spill] sm:$0xff] }
 0x2d1   : > { %v5489_v31 = vsel %vm13830_vm12, %v5485_v15, %v5488_v21  ;;  %v5493_v40 = vrot.slane %v5492_v0, 4  ;;  %v6342_v14 = vrot.slane %v14607_v54, 7  ;;  %v6345_v3 = vrot.slane %v17545_v41, 6  ;;  %v15003_v15 = vpop.f32.mrf.mxu0 }
 0x2d2   : > { %v10263_v8 = vcombine.low %v5484_v44, %v5489_v31  ;;  %v5501_v52 = vor.u32 %v5500_v42, %v5499_v47  ;;  %11317 = vmatmul.mubr.msk.bf16.gmra.mxu0 %vm580_vm3, %v10307_v29  ;;  %v5498_v23 = vrot.slane %v5496_v57, 4  ;;  %v6346_v49 = vrot.slane %v17546_v16, 7  ;;  %v17548_v42 = vld [vmem:[#allocation46_spill] sm:$0xff] }
 0x2d3   : > { %v6350_v34 = vrot.slane %v6064_v5, 6  ;;  %v5497_v33 = vsel %vm13830_vm12, %v5493_v40, %v5496_v57  ;;  %v6343_v21 = vor.u32 %v6342_v14, %v6341_v55  ;;  %v6351_v59 = vrot.slane %v17547_v51, 7  ;;  %v17549_v55 = vld [vmem:[#allocation45_spill] sm:$0xff] }
 0x2d4   : > { %11298 = vmatprep.mubr.msk.bf16.mxu1 %vm580_vm3, %v10263_v8  ;;  %v6079_v44 = vshrl.u32 %v14648_v39, 16  ;;  %v5502_v6 = vsel %vm13830_vm12, %v5498_v23, %v5501_v52  ;;  %v6347_v27 = vor.u32 %v6346_v49, %v6345_v3  ;;  %v6354_v18 = vrot.slane %v14650_v4, 6  ;;  %v17550_v52 = vld [vmem:[#allocation47_spill] sm:$0xff]  ;;  %v15017_v49 = vpop.f32.mrf.mxu0 }
 0x2d5   : > { %v6355_v11 = vrot.slane %v14658_v56, 7  ;;  %v10264_v47 = vcombine.low %v5497_v33, %v5502_v6  ;;  %v6344_v25 = vrot.slane %v6343_v21, 4  ;;  %v6352_v0 = vor.u32 %v6351_v59, %v6350_v34  ;;  %17551 = vst [vmem:[#allocation13_spill] sm:$0xff] %v15017_v49 }
 0x2d6   : > { %v6358_v29 = vrot.slane %v17548_v42, 6  ;;  %v6349_v31 = vrot.slane %v6347_v27, 4  ;;  %v6359_v8 = vrot.slane %v17549_v55, 7  ;;  %v6363_v39 = vrot.slane %v6079_v44, 6 }
 0x2d7   : > { %v6356_v57 = vor.u32 %v6355_v11, %v6354_v18  ;;  %11299 = vmatmul.mubr.msk.bf16.gmra.mxu1 %vm580_vm3, %v10264_v47  ;;  %v6348_v40 = vsel %vm13830_vm12, %v6344_v25, %v6347_v27  ;;  %v6364_v14 = vrot.slane %v17550_v52, 7  ;;  %v6055_v23 = vrot.slane %v14604_v35, 5 }
 0x2d8   : > { %v6056_v3 = vrot.slane %v14607_v54, 6  ;;  %v6353_v34 = vsel %vm13830_vm12, %v6349_v31, %v6352_v0  ;;  %v6360_v21 = vor.u32 %v6359_v8, %v6358_v29  ;;  %v6059_v59 = vrot.slane %v17545_v41, 5  ;;  %v15029_v31 = vpop.f32.mrf.mxu0 }
 0x2d9   : > { %v6357_v33 = vrot.slane %v6356_v57, 4  ;;  %v10334_v6 = vcombine.low %v6348_v40, %v6353_v34  ;;  %v6365_v18 = vor.u32 %v6364_v14, %v6363_v39  ;;  %v6060_v27 = vrot.slane %v17546_v16, 6 }
 0x2da   : > { %v6057_v11 = vor.u32 %v6056_v3, %v6055_v23  ;;  %v6362_v35 = vrot.slane %v6360_v21, 4  ;;  %v6066_v25 = vrot.slane %v6064_v5, 5  ;;  %v6067_v54 = vrot.slane %v17547_v51, 6 }
 0x2db   : > { %v6361_v47 = vsel %vm13830_vm12, %v6357_v33, %v6360_v21  ;;  %11340 = vmatprep.mubr.msk.bf16.mxu0 %vm580_vm3, %v10334_v6  ;;  %v6061_v0 = vor.u32 %v6060_v27, %v6059_v59  ;;  %v6070_v29 = vrot.slane %v14650_v4, 5  ;;  %v6071_v41 = vrot.slane %v14658_v56, 6  ;;  %v15044_v59 = vpop.f32.mrf.mxu0 }
 0x2dc   : > { %v6058_v49 = vrot.slane %v6057_v11, 4  ;;  %v6366_v16 = vsel %vm13830_vm12, %v6362_v35, %v6365_v18  ;;  %v6068_v57 = vor.u32 %v6067_v54, %v6066_v25  ;;  %v6074_v8 = vrot.slane %v17548_v42, 5 }
 0x2dd   : > { %v6075_v5 = vrot.slane %v17549_v55, 6  ;;  %v10335_v39 = vcombine.low %v6361_v47, %v6366_v16  ;;  %v6063_v14 = vrot.slane %v6061_v0, 4  ;;  %v6072_v23 = vor.u32 %v6071_v41, %v6070_v29 }
 0x2de   : > { %v6062_v40 = vsel %vm11882_vm4, %v6058_v49, %v6061_v0  ;;  %v6081_v4 = vrot.slane %v6079_v44, 5  ;;  %v6082_v56 = vrot.slane %v17550_v52, 6  ;;  %v6094_v34 = vshrl.u32 %v14720_v46, 16 }
 0x2df   : > { %v6076_v3 = vor.u32 %v6075_v5, %v6074_v8  ;;  %11341 = vmatmul.mubr.msk.bf16.vlgmr.msra.gmra.mxu0 %vm580_vm3, %v10335_v39  ;;  %v6069_v33 = vsel %vm11882_vm4, %v6063_v14, %v6068_v57  ;;  %v6073_v42 = vrot.slane %v6072_v23, 4  ;;  %v6367_v55 = vrot.slane %v14725_v20, 6  ;;  %v15057_v57 = vpop.f32.mrf.mxu0 }
 0x2e0   : > { %v6368_v21 = vrot.slane %v14731_v60, 7  ;;  %v10317_v49 = vcombine.low %v6062_v40, %v6069_v33  ;;  %v6083_v18 = vor.u32 %v6082_v56, %v6081_v4  ;;  %v6371_v44 = vrot.slane %v14735_v1, 6 }
 0x2e1   : > { %v6078_v6 = vrot.slane %v6076_v3, 4  ;;  %v6077_v46 = vsel %vm11882_vm4, %v6073_v42, %v6076_v3  ;;  %v6372_v11 = vrot.slane %v14733_v2, 7  ;;  %v6376_v27 = vrot.slane %v6094_v34, 6 }
 0x2e2   : > { %v6369_v52 = vor.u32 %v6368_v21, %v6367_v55  ;;  %11322 = vmatprep.mubr.msk.bf16.mxu1 %vm580_vm3, %v10317_v49  ;;  %v6377_v35 = vrot.slane %v14749_v32, 7  ;;  %v6109_v25 = vshrl.u32 %v14762_v19, 16  ;;  %v6380_v54 = vrot.slane %v14752_v24, 6 }
 0x2e3   : > { %v6084_v47 = vsel %vm11882_vm4, %v6078_v6, %v6083_v18  ;;  %v6373_v41 = vor.u32 %v6372_v11, %v6371_v44  ;;  %v6381_v16 = vrot.slane %v14768_v48, 7  ;;  %v6384_v5 = vrot.slane %v14772_v7, 6  ;;  %v15071_v18 = vpop.f32.mrf.mxu0 }
 0x2e4   : > { %v10318_v0 = vcombine.low %v6077_v46, %v6084_v47  ;;  %v6370_v29 = vrot.slane %v6369_v52, 4  ;;  %v6378_v8 = vor.u32 %v6377_v35, %v6376_v27  ;;  %v6385_v39 = vrot.slane %v14770_v38, 7 }
 0x2e5   : > { %v6389_v40 = vrot.slane %v6109_v25, 6  ;;  %v6375_v14 = vrot.slane %v6373_v41, 4  ;;  %v6382_v23 = vor.u32 %v6381_v16, %v6380_v54  ;;  %v6390_v3 = vrot.slane %v14778_v30, 7  ;;  %v15083_v16 = vpop.f32.mrf.mxu0 }
 0x2e6   : > { %11323 = vmatmul.mubr.msk.bf16.vlgmr.msra.gmra.mxu1 %vm580_vm3, %v10318_v0  ;;  %v6374_v19 = vsel %vm13830_vm12, %v6370_v29, %v6373_v41  ;;  %v6386_v4 = vor.u32 %v6385_v39, %v6384_v5  ;;  %v6085_v56 = vrot.slane %v14725_v20, 5  ;;  %v6086_v33 = vrot.slane %v14731_v60, 6 }
 0x2e7   : > { %v6089_v42 = vrot.slane %v14735_v1, 5  ;;  %v6379_v55 = vsel %vm13830_vm12, %v6375_v14, %v6378_v8  ;;  %v6383_v21 = vrot.slane %v6382_v23, 4  ;;  %v6391_v49 = vor.u32 %v6390_v3, %v6389_v40 }
 0x2e8   : > { %v6090_v6 = vrot.slane %v14733_v2, 6  ;;  %v10336_v44 = vcombine.low %v6374_v19, %v6379_v55  ;;  %v6388_v46 = vrot.slane %v6386_v4, 4  ;;  %v6087_v52 = vor.u32 %v6086_v33, %v6085_v56  ;;  %v15096_v56 = vpop.f32.mrf.mxu0 }
 0x2e9   : > { %v6096_v11 = vrot.slane %v6094_v34, 5  ;;  %v6387_v20 = vsel %vm13830_vm12, %v6383_v21, %v6386_v4  ;;  %v6097_v60 = vrot.slane %v14749_v32, 6  ;;  %v6100_v1 = vrot.slane %v14752_v24, 5 }
 0x2ea   : > { %v6091_v27 = vor.u32 %v6090_v6, %v6089_v42  ;;  %11344 = vmatprep.mubr.msk.bf16.mxu0 %vm580_vm3, %v10336_v44  ;;  %v6392_v47 = vsel %vm13830_vm12, %v6388_v46, %v6391_v49  ;;  %v6088_v2 = vrot.slane %v6087_v52, 4  ;;  %v6101_v35 = vrot.slane %v14768_v48, 6 }
 0x2eb   : > { %v6104_v54 = vrot.slane %v14772_v7, 5  ;;  %v10337_v0 = vcombine.low %v6387_v20, %v6392_v47  ;;  %v6098_v29 = vor.u32 %v6097_v60, %v6096_v11  ;;  %v6105_v41 = vrot.slane %v14770_v38, 6 }
 0x2ec   : > { %v6093_v34 = vrot.slane %v6091_v27, 4  ;;  %v6092_v32 = vsel %vm11882_vm4, %v6088_v2, %v6091_v27  ;;  %v6102_v24 = vor.u32 %v6101_v35, %v6100_v1  ;;  %v6111_v8 = vrot.slane %v6109_v25, 5  ;;  %v17553_v1 = vld [vmem:[#allocation9_spill] sm:$0xff]  ;;  %v15109_v35 = vpop.f32.mrf.mxu0 }
 0x2ed   : > { %v6112_v5 = vrot.slane %v14778_v30, 6  ;;  %11345 = vmatmul.mubr.msk.bf16.gmra.mxu0 %vm580_vm3, %v10337_v0  ;;  %v6106_v7 = vor.u32 %v6105_v41, %v6104_v54  ;;  %v6124_v39 = vshrl.u32 %v14823_v63, 16  ;;  %v6393_v40 = vrot.slane %v14825_v9, 6  ;;  %v17554_v54 = vld [vmem:[#allocation49_spill] sm:$0xff] }
 0x2ee   : > { %v6099_v48 = vsel %vm11882_vm4, %v6093_v34, %v6098_v29  ;;  %v6103_v19 = vrot.slane %v6102_v24, 4  ;;  %v6394_v23 = vrot.slane %v14827_v58, 7  ;;  %v6397_v25 = vrot.slane %v14838_v17, 6 }
 0x2ef   : > { %v10319_v38 = vcombine.low %v6092_v32, %v6099_v48  ;;  %v6113_v14 = vor.u32 %v6112_v5, %v6111_v8  ;;  %v6108_v3 = vrot.slane %v6106_v7, 4  ;;  %v6398_v30 = vrot.slane %v14830_v13, 7 }
 0x2f0   : > { %v6402_v4 = vrot.slane %v6124_v39, 6  ;;  %v6107_v63 = vsel %vm11882_vm4, %v6103_v19, %v6106_v7  ;;  %v6395_v33 = vor.u32 %v6394_v23, %v6393_v40  ;;  %v6403_v42 = vrot.slane %v14849_v22, 7 }
 0x2f1   : > { %11326 = vmatprep.mubr.msk.bf16.mxu1 %vm580_vm3, %v10319_v38  ;;  %v6139_v55 = vshrl.u32 %v14857_v53, 16  ;;  %v6114_v21 = vsel %vm11882_vm4, %v6108_v3, %v6113_v14  ;;  %v6399_v49 = vor.u32 %v6398_v30, %v6397_v25  ;;  %v6406_v6 = vrot.slane %v14851_v45, 6 }
 0x2f2   : > { %v6407_v44 = vrot.slane %v14859_v36, 7  ;;  %v10320_v46 = vcombine.low %v6107_v63, %v6114_v21  ;;  %v6396_v52 = vrot.slane %v6395_v33, 4  ;;  %v6404_v11 = vor.u32 %v6403_v42, %v6402_v4 }
 0x2f3   : > { %v6410_v20 = vrot.slane %v14866_v61, 6  ;;  %v6401_v27 = vrot.slane %v6399_v49, 4  ;;  %v6411_v47 = vrot.slane %v17553_v1, 7  ;;  %v6415_v2 = vrot.slane %v6139_v55, 6 }
 0x2f4   : > { %v6408_v60 = vor.u32 %v6407_v44, %v6406_v6  ;;  %11327 = vmatmul.mubr.msk.bf16.gmra.mxu1 %vm580_vm3, %v10320_v46  ;;  %v6400_v53 = vsel %vm13830_vm12, %v6396_v52, %v6399_v49  ;;  %v6416_v0 = vrot.slane %v17554_v54, 7  ;;  %v6115_v34 = vrot.slane %v14825_v9, 5  ;;  %v17555_v52 = vld [vmem:[#allocation38_spill] sm:$0xff] }
 0x2f5   : > { %v6116_v29 = vrot.slane %v14827_v58, 6  ;;  %v6405_v41 = vsel %vm13830_vm12, %v6401_v27, %v6404_v11  ;;  %v6412_v24 = vor.u32 %v6411_v47, %v6410_v20  ;;  %v6119_v8 = vrot.slane %v14838_v17, 5  ;;  %v15124_v58 = vpop.f32.mrf.mxu0 }
 0x2f6   : > { %v6409_v32 = vrot.slane %v6408_v60, 4  ;;  %v10338_v5 = vcombine.low %v6400_v53, %v6405_v41  ;;  %v6417_v48 = vor.u32 %v6416_v0, %v6415_v2  ;;  %v6120_v40 = vrot.slane %v14830_v13, 6  ;;  %v17557_v2 = vld [vmem:[#allocation23_spill] sm:$0xff] }
 0x2f7   : > { %v6117_v7 = vor.u32 %v6116_v29, %v6115_v34  ;;  %v6414_v19 = vrot.slane %v6412_v24, 4  ;;  %v6126_v14 = vrot.slane %v6124_v39, 5  ;;  %v6127_v9 = vrot.slane %v14849_v22, 6  ;;  %v15137_v6 = vpop.f32.mrf.mxu0 }
 0x2f8   : > { %v6413_v38 = vsel %vm13830_vm12, %v6409_v32, %v6412_v24  ;;  %11348 = vmatprep.mubr.msk.bf16.mxu0 %vm580_vm3, %v10338_v5  ;;  %v6121_v3 = vor.u32 %v6120_v40, %v6119_v8  ;;  %v6130_v17 = vrot.slane %v14851_v45, 5  ;;  %v6131_v25 = vrot.slane %v14859_v36, 6 }
 0x2f9   : > { %v6118_v23 = vrot.slane %v6117_v7, 4  ;;  %v6418_v13 = vsel %vm13830_vm12, %v6414_v19, %v6417_v48  ;;  %v6128_v30 = vor.u32 %v6127_v9, %v6126_v14  ;;  %v6134_v4 = vrot.slane %v14866_v61, 5  ;;  %v15154_v32 = vpop.f32.mrf.mxu0  ;;  %v17558_v48 = vld [vmem:[#allocation40_spill] sm:$0xff]  ;;  %v17560_v14 = vld [vmem:[#allocation41_spill] sm:$0xff] }
 0x2fa   : > { %v6135_v39 = vrot.slane %v17553_v1, 6  ;;  %v10339_v63 = vcombine.low %v6413_v38, %v6418_v13  ;;  %v6123_v33 = vrot.slane %v6121_v3, 4  ;;  %v6132_v42 = vor.u32 %v6131_v25, %v6130_v17  ;;  %v17559_v38 = vld [vmem:[#allocation14_spill] sm:$0xff] }
 0x2fb   : > { %v6122_v22 = vsel %vm11882_vm4, %v6118_v23, %v6121_v3  ;;  %v6141_v49 = vrot.slane %v6139_v55, 5  ;;  %v6142_v45 = vrot.slane %v17554_v54, 6  ;;  %v6154_v36 = vshrl.u32 %v14911_v28, 16  ;;  %v17556_v55 = vld [vmem:[#allocation27_spill] sm:$0xff]  ;;  %v17561_v25 = vld [vmem:[#allocation42_spill] sm:$0xff] }
 0x2fc   : > { %v6136_v21 = vor.u32 %v6135_v39, %v6134_v4  ;;  %11349 = vmatmul.mubr.msk.bf16.gmra.mxu0 %vm580_vm3, %v10339_v63  ;;  %v6129_v61 = vsel %vm11882_vm4, %v6123_v33, %v6128_v30  ;;  %v6133_v44 = vrot.slane %v6132_v42, 4  ;;  %v6419_v46 = vrot.slane %v14913_v37, 6 }
 0x2fd   : > { %v6420_v11 = vrot.slane %v17555_v52, 7  ;;  %v10321_v20 = vcombine.low %v6122_v22, %v6129_v61  ;;  %v6143_v60 = vor.u32 %v6142_v45, %v6141_v49  ;;  %v6423_v1 = vrot.slane %v17556_v55, 6  ;;  %v15166_v22 = vpop.f32.mrf.mxu0 }
 0x2fe   : > { %v6138_v27 = vrot.slane %v6136_v21, 4  ;;  %v6137_v28 = vsel %vm11882_vm4, %v6133_v44, %v6136_v21  ;;  %v6424_v53 = vrot.slane %v17557_v2, 7  ;;  %v6428_v54 = vrot.slane %v6154_v36, 6 }
 0x2ff   : > { %v6421_v47 = vor.u32 %v6420_v11, %v6419_v46  ;;  %11330 = vmatprep.mubr.msk.bf16.mxu1 %vm580_vm3, %v10321_v20  ;;  %v6429_v34 = vrot.slane %v14930_v12, 7  ;;  %v6169_v29 = vshrl.u32 %v14937_v10, 16  ;;  %v6432_v41 = vrot.slane %v14939_v62, 6 }
 0x300   : > { %v6144_v0 = vsel %vm11882_vm4, %v6138_v27, %v6143_v60  ;;  %v6425_v5 = vor.u32 %v6424_v53, %v6423_v1  ;;  %v6433_v7 = vrot.slane %v17558_v48, 7  ;;  %v6436_v19 = vrot.slane %v17559_v38, 6 }
 0x301   : > { %v10322_v24 = vcombine.low %v6137_v28, %v6144_v0  ;;  %v6422_v8 = vrot.slane %v6421_v47, 4  ;;  %v6430_v40 = vor.u32 %v6429_v34, %v6428_v54  ;;  %v6437_v9 = vrot.slane %v17560_v14, 7  ;;  %v11683_v0 = vld [vmem:[%s16983_s3 + $0xb8] sm:$0xff]  }
 0x302   : > { %v6441_v23 = vrot.slane %v6169_v29, 6  ;;  %v6427_v3 = vrot.slane %v6425_v5, 4  ;;  %v6434_v17 = vor.u32 %v6433_v7, %v6432_v41  ;;  %v6442_v13 = vrot.slane %v17561_v25, 7  ;;  %11356 = vmatprep.subr.bf16.mxu1 %v11683_v0 }
 0x303   : > { %11331 = vmatmul.mubr.msk.bf16.gmra.mxu1 %vm580_vm3, %v10322_v24  ;;  %v6426_v10 = vsel %vm13830_vm12, %v6422_v8, %v6425_v5  ;;  %v6438_v30 = vor.u32 %v6437_v9, %v6436_v19  ;;  %v6145_v4 = vrot.slane %v14913_v37, 5  ;;  %v6146_v39 = vrot.slane %v17555_v52, 6 }
 0x304   : > { %v6149_v63 = vrot.slane %v17556_v55, 5  ;;  %v6431_v33 = vsel %vm13830_vm12, %v6427_v3, %v6430_v40  ;;  %v6435_v42 = vrot.slane %v6434_v17, 4  ;;  %v6443_v21 = vor.u32 %v6442_v13, %v6441_v23  ;;  %11357 = vmatpush3.bf16.msra.mxu1 %v11683_v0  ;;  %v17562_v23 = vld [vmem:[#allocation7_spill] sm:$0xff]  ;;  %v17563_v13 = vld [vmem:[#allocation5_spill] sm:$0xff] }
 0x305   : > { %v6150_v49 = vrot.slane %v17557_v2, 6  ;;  %v10340_v45 = vcombine.low %v6426_v10, %v6431_v33  ;;  %v6440_v61 = vrot.slane %v6438_v30, 4  ;;  %v6147_v44 = vor.u32 %v6146_v39, %v6145_v4  ;;  %v17565_v33 = vld [vmem:[#allocation30_spill] sm:$0xff]  ;;  %v17576_v0 = vld [vmem:[#allocation33_spill] sm:$0xff] }
 0x306   : > { %v6156_v46 = vrot.slane %v6154_v36, 5  ;;  %v6439_v37 = vsel %vm13830_vm12, %v6435_v42, %v6438_v30  ;;  %v6157_v52 = vrot.slane %v14930_v12, 6  ;;  %v6160_v20 = vrot.slane %v14939_v62, 5  ;;  %v15180_v36 = vpop.f32.mrf.mxu0 }
 0x307   : > { %v6151_v11 = vor.u32 %v6150_v49, %v6149_v63  ;;  %11352 = vmatprep.mubr.msk.bf16.mxu0 %vm580_vm3, %v10340_v45  ;;  %v6444_v27 = vsel %vm13830_vm12, %v6440_v61, %v6443_v21  ;;  %v6148_v60 = vrot.slane %v6147_v44, 4  ;;  %v6161_v55 = vrot.slane %v17558_v48, 6  ;;  %v10379_v48 = vld [vmem:[%s16982_s2 + $0x26] sm:$0x3] }
 0x308   : > { %v6164_v1 = vrot.slane %v17559_v38, 5  ;;  %v10341_v28 = vcombine.low %v6439_v37, %v6444_v27  ;;  %v6158_v2 = vor.u32 %v6157_v52, %v6156_v46  ;;  %v6165_v12 = vrot.slane %v17560_v14, 6  ;;  %v15198_v5 = vpop.f32.mrf.mxu0  ;;  %11617 = vmatprep.subr.msk.bf16.mxu0 %vm605_vm0, %v10379_v48  ;;  %v9818_v38 = vld [vmem:[%s15196_s7] ss:$0 sm:$0xff]  ;;  %v11685_v46 = vld [vmem:[%s16983_s3 + $0xa8] sm:$0xff]   ;;  %v17570_v27 = vld [vmem:[#allocation6_spill] sm:$0xff] }
 0x309   : > { %v6153_v47 = vrot.slane %v6151_v11, 4  ;;  %v6152_v62 = vsel %vm11882_vm4, %v6148_v60, %v6151_v11  ;;  %v6162_v53 = vor.u32 %v6161_v55, %v6160_v20  ;;  %v6171_v54 = vrot.slane %v6169_v29, 5  ;;  %v17569_v37 = vld [vmem:[#allocation28_spill] sm:$0xff] }
 0x30a   : > { %v6172_v43 = vrot.slane %v17561_v25, 6  ;;  %11353 = vmatmul.mubr.msk.bf16.gmra.mxu0 %vm580_vm3, %v10341_v28  ;;  %v6166_v41 = vor.u32 %v6165_v12, %v6164_v1  ;;  %v15210_v9 = vpop.f32.mrf.mxu0  ;;  %v900_v10 = vadd.f32 %v17562_v23, %v9818_v38  ;;  %v7173_v17 = vsel %vm605_vm0, %v10379_v48, 0  ;;  %v11684_v25 = vld [vmem:[%s16983_s3 + $0xb0] sm:$0xff]  }
 0x30b   : > { %v6159_v34 = vsel %vm11882_vm4, %v6153_v47, %v6158_v2  ;;  %v6163_v29 = vrot.slane %v6162_v53, 4  ;;  %v898_v30 = vadd.f32 %v9818_v38, %v17563_v13  ;;  %11389 = vmatpush3.bf16.msra.mxu0 %v7173_v17  ;;  %11358 = vmatprep.subr.bf16.mxu1 %v11684_v25  ;;  %v901_v42 = vadd.f32 %v17565_v33, %v9818_v38  ;;  %v17572_v28 = vld [vmem:[#allocation29_spill] sm:$0xff]  ;;  %v11686_v53 = vld [vmem:[%s16983_s3 + $0xa0] sm:$0xff]   ;;  %v17584_v33 = vld [vmem:[#allocation8_spill] sm:$0xff] }
 0x30c   : > { %v10323_v24 = vcombine.low %v6152_v62, %v6159_v34  ;;  %v6173_v8 = vor.u32 %v6172_v43, %v6171_v54  ;;  %v6168_v7 = vrot.slane %v6166_v41, 4  ;;  %v15221_v39 = vpop.f32.mrf.mxu0  ;;  %11359 = vmatpush3.bf16.msra.mxu1 %v11684_v25  ;;  %v904_v11 = vadd.f32 %v17569_v37, %v9818_v38  ;;  %v17583_v25 = vld [vmem:[#allocation12_spill] sm:$0xff] }
 0x30d   : > { %v6167_v40 = vsel %vm11882_vm4, %v6163_v29, %v6166_v41  ;;  %11360 = vmatprep.subr.bf16.mxu1 %v11685_v46  ;;  %v902_v60 = vadd.f32 %v9818_v38, %v17570_v27  ;;  %v905_v47 = vadd.f32 %v17572_v28, %v9818_v38  ;;  %v908_v34 = vadd.f32 %v17576_v0, %v9818_v38  ;;  %v17577_v29 = vld [vmem:[#allocation34_spill] sm:$0xff] }
 0x30e   : > { %11334 = vmatprep.mubr.msk.bf16.mxu1 %vm580_vm3, %v10323_v24  ;;  %v6174_v19 = vsel %vm11882_vm4, %v6168_v7, %v6173_v8  ;;  %v15228_v61 = vpop.f32.mrf.mxu0  ;;  %v906_v8 = vadd.f32 %v9818_v38, %v17577_v29  ;;  %v912_v13 = vadd.f32 %v17583_v25, %v9818_v38  ;;  %v17590_v29 = vld [vmem:[#allocation25_spill] sm:$0xff] }
 0x30f   : > { %v10324_v14 = vcombine.low %v6167_v40, %v6174_v19  ;;  %v11180_v3 = vpop.f32.mrf.mxu1  ;;  %v17579_v40 = vld [vmem:[#allocation35_spill] sm:$0xff] }
 0x310   : > { %v15219_v4 = vadd.f32 %v11180_v3, %v900_v10  ;;  %v15236_v20 = vpop.f32.mrf.mxu0  ;;  %11361 = vmatpush3.bf16.msra.mxu1 %v11685_v46  ;;  %v909_v19 = vadd.f32 %v17579_v40, %v9818_v38  ;;  %v11687_v46 = vld [vmem:[%s16983_s3 + $0x98] sm:$0xff]  }
 0x311   : > { %11335 = vmatmul.mubr.msk.bf16.gmra.mxu1 %vm580_vm3, %v10324_v14  ;;  %v3720_v63 = vpop.f32.mrf.mxu1  ;;  %11362 = vmatprep.subr.bf16.mxu1 %v11686_v53 }
 0x312   : > { %17564 = vst [vmem:[#allocation37_spill] sm:$0xff] %v15219_v4  ;;  %v15224_v21 = vadd.f32 %v3720_v63, %v898_v30  ;;  %v15244_v62 = vpop.f32.mrf.mxu0  ;;  %v17610_v4 = vld [vmem:[#allocation13_spill] sm:$0xff] }
 0x313   : > { %v11181_v49 = vpop.f32.mrf.mxu1 }
 0x314   : > { %17566 = vst [vmem:[#allocation21_spill] sm:$0xff] %v15224_v21  ;;  %v15226_v45 = vadd.f32 %v11181_v49, %v901_v42  ;;  %11363 = vmatpush3.bf16.msra.mxu1 %v11686_v53  ;;  %v910_v42 = vadd.f32 %v9818_v38, %v17584_v33  ;;  %v15298_v33 = vld [vmem:[%s11862_s17] sm:$0xf]  ;;  %v15424_v21 = vld [vmem:[%s11862_s17 + $0x28] sm:$0xf] }
 0x315   : > { %v15230_v44 = vpop.f32.mrf.mxu1  ;;  %v15254_v24 = vpop.f32.mrf.mxu0  ;;  %11364 = vmatprep.subr.bf16.mxu1 %v11687_v46  ;;  %17594 = vst [vmem:[#allocation40_spill] sm:$0xff] %v15298_v33  ;;  %17609 = vst [vmem:[#allocation29_spill] sm:$0xff] %v15424_v21 }
 0x316   : > { %17567 = vst [vmem:[#allocation26_spill] sm:$0xff] %v15226_v45  ;;  %17568 = vst [vmem:[#allocation24_spill] sm:$0xff] %v15230_v44 }
 0x317   : > { %v15262_v10 = vpop.f32.mrf.mxu0 }
 0x318   : > { %v11184_v52 = vpop.f32.mrf.mxu1  ;;  %11365 = vmatpush3.bf16.msra.mxu1 %v11687_v46 }
 0x319   : > { %v15239_v55 = vadd.f32 %v11184_v52, %v904_v11  ;;  %v15269_v63 = vpop.f32.mrf.mxu0  ;;  %v17586_v11 = vld [vmem:[#allocation15_spill] sm:$0xff] }
 0x31a   : > { %v3736_v1 = vpop.f32.mrf.mxu1  ;;  %v913_v52 = vadd.f32 %v17586_v11, %v9818_v38  ;;  %v11689_v11 = vld [vmem:[%s16983_s3 + $0x88] sm:$0xff]  }
 0x31b   : > { %17571 = vst [vmem:[#allocation19_spill] sm:$0xff] %v15239_v55  ;;  %v15242_v2 = vadd.f32 %v3736_v1, %v902_v60  ;;  %v15280_v1 = vpop.f32.mrf.mxu0  ;;  %v17605_v55 = vld [vmem:[#allocation39_spill] sm:$0xff] }
 0x31c   : > { %v11185_v12 = vpop.f32.mrf.mxu1 }
 0x31d   : > { %17573 = vst [vmem:[#allocation20_spill] sm:$0xff] %v15242_v2  ;;  %v15249_v54 = vadd.f32 %v11185_v12, %v905_v47  ;;  %v11688_v12 = vld [vmem:[%s16983_s3 + $0x90] sm:$0xff]  }
 0x31e   : > { %v15251_v43 = vpop.f32.mrf.mxu1  ;;  %11366 = vmatprep.subr.bf16.mxu1 %v11688_v12 }
 0x31f   : > { %17574 = vst [vmem:[#allocation44_spill] sm:$0xff] %v15249_v54  ;;  %17575 = vst [vmem:[#allocation46_spill] sm:$0xff] %v15251_v43  ;;  %11367 = vmatpush3.bf16.msra.mxu1 %v11688_v12  ;;  %v15372_v54 = vld [vmem:[%s11862_s17 + $0x1c] sm:$0xf] }
 0x320   : > { %v11188_v41 = vpop.f32.mrf.mxu1  ;;  %11368 = vmatprep.subr.bf16.mxu1 %v11689_v11  ;;  %17604 = vst [vmem:[#allocation5_spill] sm:$0xff] %v15372_v54 }
 0x321   : > { %v15257_v48 = vadd.f32 %v11188_v41, %v908_v34 }
 0x322   : > { %v3752_v7 = vpop.f32.mrf.mxu1 }
 0x323   : > { %17578 = vst [vmem:[#allocation45_spill] sm:$0xff] %v15257_v48  ;;  %v15260_v14 = vadd.f32 %v3752_v7, %v906_v8  ;;  %v17591_v7 = vld [vmem:[#allocation43_spill] sm:$0xff]  ;;  %11369 = vmatpush3.bf16.msra.mxu1 %v11689_v11 }
 0x324   : > { %v11189_v23 = vpop.f32.mrf.mxu1 }
 0x325   : > { %17580 = vst [vmem:[#allocation47_spill] sm:$0xff] %v15260_v14  ;;  %v15264_v3 = vadd.f32 %v11189_v23, %v909_v19  ;;  %v17592_v19 = vld [vmem:[#allocation48_spill] sm:$0xff]  ;;  %v17601_v14 = vld [vmem:[#allocation17_spill] sm:$0xff] }
 0x326   : > { %v15266_v17 = vpop.f32.mrf.mxu1 }
 0x327   : > { %17581 = vst [vmem:[#allocation3_spill] sm:$0xff] %v15264_v3  ;;  %17582 = vst [vmem:[#allocation9_spill] sm:$0xff] %v15266_v17 }
 0x328   : > { %v11192_v30 = vpop.f32.mrf.mxu1 }
 0x329   : > { %v15272_v49 = vadd.f32 %v11192_v30, %v912_v13  ;;  %v17593_v13 = vld [vmem:[#allocation11_spill] sm:$0xff] }
 0x32a   : > { %v3768_v37 = vpop.f32.mrf.mxu1 }
 0x32b   : > { %17585 = vst [vmem:[#allocation49_spill] sm:$0xff] %v15272_v49  ;;  %v15278_v27 = vadd.f32 %v3768_v37, %v910_v42  ;;  %v15301_v42 = vld [vmem:[%s11862_s17 + $0x4] sm:$0xf] }
 0x32c   : > { %v11193_v60 = vpop.f32.mrf.mxu1  ;;  %17595 = vst [vmem:[#allocation14_spill] sm:$0xff] %v15301_v42  ;;  %v6908_v12 = vshrl.u32 %v15301_v42, 16 }
 0x32d   : > { %17587 = vst [vmem:[#allocation38_spill] sm:$0xff] %v15278_v27  ;;  %v15282_v28 = vadd.f32 %v11193_v60, %v913_v52  ;;  %v6899_v52 = vshrl.u32 %v15298_v33, 16  ;;  %v6902_v60 = vshll.u32 %v15298_v33, 16 }
 0x32e   : > { %v15284_v47 = vpop.f32.mrf.mxu1  ;;  %v6910_v44 = vrot.slane %v6908_v12, 5  ;;  %v17600_v12 = vld [vmem:[#allocation4_spill] sm:$0xff] }
 0x32f   : > { %17588 = vst [vmem:[#allocation27_spill] sm:$0xff] %v15282_v28  ;;  %17589 = vst [vmem:[#allocation23_spill] sm:$0xff] %v15284_v47  ;;  %v15289_v0 = vpop.f32.mrf.mxu0  ;;  %v6901_v17 = vrot.slane %v6899_v52, 5  ;;  %v6904_v43 = vrot.slane %v6902_v60, 6  ;;  %v15337_v52 = vld [vmem:[%s11862_s17 + $0x10] sm:$0xf] }
 0x330   : > { %17599 = vst [vmem:[#allocation42_spill] sm:$0xff] %v15337_v52 }
 0x331   : > { %v11216_v53 = vpop.f32.mrf.mxu1  ;;  %v15291_v41 = vpop.f32.mrf.mxu0  ;;  %v6905_v28 = vor.u32 %v6904_v43, %v6901_v17 }
 0x332   : > { %v4404_v8 = vadd.f32 %v11216_v53, %v17590_v29  ;;  %v6911_v53 = vshll.u32 %v15301_v42, 16 }
 0x333   : > { %v4395_v38 = vpop.f32.mrf.mxu1  ;;  %v15303_v37 = vpop.f32.mrf.mxu0  ;;  %v6906_v43 = vrot.slane %v6905_v28, 4 }
 0x334   : > { %v4396_v40 = vadd.f32 %v4395_v38, %v17591_v7  ;;  %v17596_v38 = vld [vmem:[#allocation10_spill] sm:$0xff]  ;;  %v15314_v29 = vadd.f32 %v15057_v57, %v4404_v8 }
 0x335   : > { %v11217_v34 = vpop.f32.mrf.mxu1 }
 0x336   : > { %v4407_v23 = vadd.f32 %v11217_v34, %v17592_v19  ;;  %v15317_v7 = vadd.f32 %v15071_v18, %v4396_v40 }
 0x337   : > { %v4398_v25 = vpop.f32.mrf.mxu1 }
 0x338   : > { %v4399_v30 = vadd.f32 %v4398_v25, %v17593_v13  ;;  %v15320_v19 = vadd.f32 %v15083_v16, %v4407_v23  ;;  %v15323_v25 = vld [vmem:[%s11862_s17 + $0x8] sm:$0x7]  ;;  %v15326_v13 = vld [vmem:[%s11862_s17 + $0xc] sm:$0xf]  ;;  %v15334_v23 = vpop.f32.mrf.mxu0 }
 0x339   : > { %v11220_v46 = vpop.f32.mrf.mxu1  ;;  %17597 = vst [vmem:[#allocation41_spill] sm:$0xff] %v15326_v13  ;;  %v6918_v16 = vshrl.u32 %v15323_v25, 16  ;;  %v6921_v8 = vshll.u32 %v15323_v25, 16  ;;  %v6927_v60 = vshrl.u32 %v15326_v13, 16 }
 0x33a   : > { %v4420_v34 = vadd.f32 %v11220_v46, %v17596_v38  ;;  %v6913_v46 = vrot.slane %v6911_v53, 6  ;;  %v17598_v38 = vld [vmem:[#allocation16_spill] sm:$0xff]  ;;  %v15330_v18 = vadd.f32 %v15096_v56, %v4399_v30 }
 0x33b   : > { %v4411_v47 = vpop.f32.mrf.mxu1  ;;  %v6920_v30 = vrot.slane %v6918_v16, 5  ;;  %v6923_v11 = vrot.slane %v6921_v8, 6 }
 0x33c   : > { %v4412_v57 = vadd.f32 %v4411_v47, %v17598_v38  ;;  %v6914_v27 = vor.u32 %v6913_v46, %v6910_v44  ;;  %v6930_v47 = vshll.u32 %v15326_v13, 16  ;;  %v15343_v56 = vadd.f32 %v15109_v35, %v4420_v34  ;;  %v15346_v38 = vld [vmem:[%s11862_s17 + $0x14] sm:$0x7]  ;;  %v11690_v44 = vld [vmem:[%s16983_s3 + $0x80] sm:$0xff]  }
 0x33d   : > { %v11221_v40 = vpop.f32.mrf.mxu1  ;;  %v6929_v46 = vrot.slane %v6927_v60, 5  ;;  %v6924_v35 = vor.u32 %v6923_v11, %v6920_v30  ;;  %v6936_v34 = vshrl.u32 %v15337_v52, 16  ;;  %11370 = vmatprep.subr.bf16.mxu1 %v11690_v44  ;;  %v6939_v60 = vshll.u32 %v15337_v52, 16 }
 0x33e   : > { %v4423_v53 = vadd.f32 %v11221_v40, %v17600_v12  ;;  %v6916_v17 = vrot.slane %v6914_v27, 4  ;;  %v6932_v3 = vrot.slane %v6930_v47, 6  ;;  %v15353_v40 = vadd.f32 %v15124_v58, %v4412_v57  ;;  %v17603_v58 = vld [vmem:[#allocation18_spill] sm:$0xff]  ;;  %11371 = vmatpush3.bf16.msra.mxu1 %v11690_v44 }
 0x33f   : > { %v4414_v49 = vpop.f32.mrf.mxu1  ;;  %v6915_v12 = vsel %vm11882_vm4, %v6906_v43, %v6914_v27  ;;  %v6946_v47 = vshrl.u32 %v15346_v38, 16  ;;  %v6938_v11 = vrot.slane %v6936_v34, 5  ;;  %v6941_v2 = vrot.slane %v6939_v60, 6  ;;  %v15391_v60 = vld [vmem:[%s11862_s17 + $0x20] sm:$0x7] }
 0x340   : > { %v4415_v48 = vadd.f32 %v4414_v49, %v17601_v14  ;;  %v6933_v28 = vor.u32 %v6932_v3, %v6929_v46  ;;  %v15363_v14 = vld [vmem:[%s11862_s17 + $0x18] sm:$0xf]  ;;  %v15367_v57 = vadd.f32 %v15137_v6, %v4423_v53  ;;  %v6925_v30 = vsel %vm11882_vm4, %v6916_v17, %v6924_v35  ;;  %17606 = vst [vmem:[#allocation30_spill] sm:$0xff] %v15391_v60 }
 0x341   : > { %v11224_v16 = vpop.f32.mrf.mxu1  ;;  %v15356_v8 = vpop.f32.mrf.mxu0  ;;  %17602 = vst [vmem:[#allocation7_spill] sm:$0xff] %v15363_v14  ;;  %v10380_v43 = vcombine.low %v6915_v12, %v6925_v30  ;;  %v6949_v6 = vshll.u32 %v15346_v38, 16  ;;  %v6955_v53 = vshrl.u32 %v15363_v14, 16  ;;  %v6942_v35 = vor.u32 %v6941_v2, %v6938_v11  ;;  %v10378_v11 = vld [vmem:[%s16982_s2 + $0x24] sm:$0x3] }
 0x342   : > { %v4436_v49 = vadd.f32 %v11224_v16, %v17603_v58  ;;  %v15375_v3 = vadd.f32 %v15154_v32, %v4415_v48  ;;  %v6934_v46 = vrot.slane %v6933_v28, 4  ;;  %v6948_v58 = vrot.slane %v6946_v47, 5  ;;  %11618 = vmatprep.subr.msk.bf16.mxu1 %vm605_vm0, %v10378_v11 }
 0x343   : > { %v4427_v27 = vpop.f32.mrf.mxu1  ;;  %v15380_v44 = vpop.f32.mrf.mxu0  ;;  %11390 = vmatprep.mubr.msk.bf16.mxu0 %vm580_vm3, %v10380_v43  ;;  %v6958_v32 = vshll.u32 %v15363_v14, 16  ;;  %v6964_v48 = vshrl.u32 %v15372_v54, 16  ;;  %v6967_v34 = vshll.u32 %v15372_v54, 16  ;;  %v6951_v28 = vrot.slane %v6949_v6, 6 }
 0x344   : > { %v4428_v16 = vadd.f32 %v4427_v27, %v17605_v55  ;;  %v15388_v55 = vadd.f32 %v15166_v22, %v4436_v49  ;;  %v6957_v47 = vrot.slane %v6955_v53, 5  ;;  %v6944_v2 = vrot.slane %v6942_v35, 4 }
 0x345   : > { %v11225_v17 = vpop.f32.mrf.mxu1  ;;  %v6960_v43 = vrot.slane %v6958_v32, 6  ;;  %v6966_v45 = vrot.slane %v6964_v48, 5  ;;  %v6943_v22 = vsel %vm11882_vm4, %v6934_v46, %v6942_v35  ;;  %v6952_v49 = vor.u32 %v6951_v28, %v6948_v58  ;;  %v15414_v58 = vld [vmem:[%s11862_s17 + $0x24] sm:$0xf] }
 0x346   : > { %v4439_v12 = vadd.f32 %v11225_v17, %v14972_v26  ;;  %v15394_v27 = vadd.f32 %v15180_v36, %v4428_v16  ;;  %v6969_v6 = vrot.slane %v6967_v34, 6  ;;  %v15403_v36 = vpop.f32.mrf.mxu0  ;;  %v10420_v17 = vld [vmem:[%s16982_s2 + $0x28] sm:$0x3]  ;;  %v6977_v46 = vshll.u32 %v15391_v60, 16  ;;  %17607 = vst [vmem:[#allocation28_spill] sm:$0xff] %v15414_v58 }
 0x347   : > { %v4430_v30 = vpop.f32.mrf.mxu1  ;;  %v6961_v32 = vor.u32 %v6960_v43, %v6957_v47  ;;  %v6953_v48 = vsel %vm11882_vm4, %v6944_v2, %v6952_v49  ;;  %11619 = vmatprep.subr.msk.bf16.mxu0 %vm605_vm0, %v10420_v17  ;;  %v15431_v2 = vld [vmem:[%s11862_s17 + $0x2c] sm:$0x7] }
 0x348   : > { %v4431_v26 = vadd.f32 %v4430_v30, %v14989_v50  ;;  %v15406_v16 = vadd.f32 %v15198_v5, %v4439_v12  ;;  %v6974_v50 = vshrl.u32 %v15391_v60, 16  ;;  %v15420_v5 = vsel %vm605_vm0, %v10378_v11, 0 }
 0x349   : > { %v11228_v53 = vpop.f32.mrf.mxu1  ;;  %17608 = vst [vmem:[#allocation6_spill] sm:$0xff] %v15420_v5  ;;  %v6970_v34 = vor.u32 %v6969_v6, %v6966_v45  ;;  %v10381_v28 = vcombine.low %v6943_v22, %v6953_v48  ;;  %v6962_v47 = vrot.slane %v6961_v32, 4  ;;  %v6979_v43 = vrot.slane %v6977_v46, 6  ;;  %v15434_v5 = vpop.f32.mrf.mxu0 }
 0x34a   : > { %v4452_v35 = vadd.f32 %v11228_v53, %v15003_v15  ;;  %v6976_v30 = vrot.slane %v6974_v50, 5  ;;  %v15428_v15 = vadd.f32 %v15210_v9, %v4431_v26  ;;  %v6983_v11 = vshrl.u32 %v15414_v58, 16 }
 0x34b   : > { %v4443_v12 = vpop.f32.mrf.mxu1  ;;  %v6972_v53 = vrot.slane %v6970_v34, 4  ;;  %11391 = vmatmul.mubr.msk.bf16.vlgmr.msra.gmra.mxu0 %vm580_vm3, %v10381_v28  ;;  %v7554_v45 = vsel %vm605_vm0, %v10420_v17, 0  ;;  %v6971_v22 = vsel %vm11882_vm4, %v6962_v47, %v6970_v34  ;;  %v6986_v9 = vshll.u32 %v15414_v58, 16  ;;  %v15451_v28 = vld [vmem:[%s11862_s17 + $0x30] sm:$0xf] }
 0x34c   : > { %v4444_v60 = vadd.f32 %v4443_v12, %v17610_v4  ;;  %v6980_v4 = vor.u32 %v6979_v43, %v6976_v30  ;;  %v15443_v6 = vadd.f32 %v15221_v39, %v4452_v35  ;;  %11425 = vmatpush3.bf16.msra.mxu0 %v7554_v45  ;;  %v6985_v32 = vrot.slane %v6983_v11, 5  ;;  %17611 = vst [vmem:[#allocation33_spill] sm:$0xff] %v15451_v28  ;;  %v15458_v30 = vld [vmem:[%s11862_s17 + $0x34] sm:$0xf] }
 0x34d   : > { %v11229_v49 = vpop.f32.mrf.mxu1  ;;  %v6992_v50 = vshrl.u32 %v15424_v21, 16  ;;  %v6988_v48 = vrot.slane %v6986_v9, 6  ;;  %v6995_v34 = vshll.u32 %v15424_v21, 16  ;;  %v7002_v12 = vshrl.u32 %v15431_v2, 16  ;;  %17612 = vst [vmem:[#allocation34_spill] sm:$0xff] %v15458_v30 }
 0x34e   : > { %v4455_v26 = vadd.f32 %v11229_v49, %v15029_v31  ;;  %v6981_v17 = vsel %vm11882_vm4, %v6972_v53, %v6980_v4  ;;  %v15455_v39 = vadd.f32 %v15228_v61, %v4444_v60  ;;  %v7005_v4 = vshll.u32 %v15431_v2, 16 }
 0x34f   : > { %v4446_v46 = vpop.f32.mrf.mxu1  ;;  %v10382_v35 = vcombine.low %v6971_v22, %v6981_v17  ;;  %v6994_v47 = vrot.slane %v6992_v50, 5  ;;  %v6989_v53 = vor.u32 %v6988_v48, %v6985_v32  ;;  %v6997_v49 = vrot.slane %v6995_v34, 6 }
 0x350   : > { %v4447_v31 = vadd.f32 %v4446_v46, %v15044_v59  ;;  %v7004_v45 = vrot.slane %v7002_v12, 5  ;;  %v15465_v59 = vadd.f32 %v15236_v20, %v4455_v26  ;;  %v7011_v61 = vshrl.u32 %v15451_v28, 16  ;;  %v15478_v20 = vld [vmem:[%s11862_s17 + $0x38] sm:$0x7] }
 0x351   : > { %v11252_v43 = vpop.f32.mrf.mxu1  ;;  %11394 = vmatprep.mubr.msk.bf16.mxu0 %vm580_vm3, %v10382_v35  ;;  %v7014_v60 = vshll.u32 %v15451_v28, 16  ;;  %v6990_v50 = vrot.slane %v6989_v53, 4  ;;  %v6998_v32 = vor.u32 %v6997_v49, %v6994_v47  ;;  %v7007_v46 = vrot.slane %v7005_v4, 6  ;;  %17613 = vst [vmem:[#allocation35_spill] sm:$0xff] %v15478_v20  ;;  %v15481_v35 = vld [vmem:[%s11862_s17 + $0x3c] sm:$0xf] }
 0x352   : > { %v15460_v11 = vpop.f32.mrf.mxu0  ;;  %v5099_v9 = vadd.f32 %v11252_v43, %v15314_v29  ;;  %v7020_v17 = vshrl.u32 %v15458_v30, 16  ;;  %v15475_v29 = vadd.f32 %v15244_v62, %v4447_v31  ;;  %v7013_v26 = vrot.slane %v7011_v61, 5  ;;  %17614 = vst [vmem:[#allocation12_spill] sm:$0xff] %v15481_v35 }
 0x353   : > { %v5034_v22 = vpop.f32.mrf.mxu1  ;;  %v7016_v12 = vrot.slane %v7014_v60, 6  ;;  %v6999_v53 = vsel %vm11882_vm4, %v6990_v50, %v6998_v32  ;;  %v7008_v49 = vor.u32 %v7007_v46, %v7004_v45  ;;  %v7023_v61 = vshll.u32 %v15458_v30, 16 }
 0x354   : > { %v5097_v48 = vadd.f32 %v5034_v22, %v15317_v7  ;;  %v15472_v34 = vpop.f32.mrf.mxu0  ;;  %v15484_v47 = vadd.f32 %v15254_v24, %v5099_v9  ;;  %v7000_v7 = vrot.slane %v6998_v32, 4  ;;  %v7022_v4 = vrot.slane %v7020_v17, 5  ;;  %v15495_v9 = vld [vmem:[%s11862_s17 + $0x40] sm:$0xf] }
 0x355   : > { %v11253_v43 = vpop.f32.mrf.mxu1  ;;  %v7017_v31 = vor.u32 %v7016_v12, %v7013_v26  ;;  %v7030_v28 = vshrl.u32 %v15478_v20, 16  ;;  %v7033_v24 = vshll.u32 %v15478_v20, 16  ;;  %17615 = vst [vmem:[#allocation8_spill] sm:$0xff] %v15495_v9  ;;  %v7039_v50 = vshrl.u32 %v15481_v35, 16  ;;  %v15508_v26 = vld [vmem:[%s11862_s17 + $0x44] sm:$0x7] }
 0x356   : > { %v5100_v62 = vadd.f32 %v11253_v43, %v15320_v19  ;;  %v7009_v60 = vsel %vm11882_vm4, %v7000_v7, %v7008_v49  ;;  %v15499_v32 = vpop.f32.mrf.mxu0  ;;  %v15502_v19 = vadd.f32 %v15262_v10, %v5097_v48  ;;  %v7025_v7 = vrot.slane %v7023_v61, 6 }
 0x357   : > { %v5037_v22 = vpop.f32.mrf.mxu1  ;;  %v10383_v17 = vcombine.low %v6999_v53, %v7009_v60  ;;  %v7018_v43 = vrot.slane %v7017_v31, 4  ;;  %v7032_v49 = vrot.slane %v7030_v28, 5  ;;  %v7035_v20 = vrot.slane %v7033_v24, 6 }
 0x358   : > { %v5098_v45 = vadd.f32 %v5037_v22, %v15330_v18  ;;  %v15505_v46 = vadd.f32 %v15269_v63, %v5100_v62  ;;  %v7041_v18 = vrot.slane %v7039_v50, 5  ;;  %v7042_v10 = vshll.u32 %v15481_v35, 16  ;;  %v15517_v61 = vpop.f32.mrf.mxu0  ;;  %v15523_v50 = vld [vmem:[%s11862_s17 + $0x48] sm:$0xf] }
 0x359   : > { %11395 = vmatmul.mubr.msk.bf16.gmra.mxu0 %vm580_vm3, %v10383_v17  ;;  %v7048_v48 = vshrl.u32 %v15495_v9, 16  ;;  %v7026_v62 = vor.u32 %v7025_v7, %v7022_v4  ;;  %v7036_v53 = vor.u32 %v7035_v20, %v7032_v49  ;;  %v7051_v22 = vshll.u32 %v15495_v9, 16  ;;  %17616 = vst [vmem:[#allocation15_spill] sm:$0xff] %v15523_v50  ;;  %v15535_v9 = vld [vmem:[%s11862_s17 + $0x4c] sm:$0xf] }
 0x35a   : > { %v11256_v12 = vpop.f32.mrf.mxu1  ;;  %v7058_v31 = vshrl.u32 %v15508_v26, 16  ;;  %v7044_v60 = vrot.slane %v7042_v10, 6  ;;  %17617 = vst [vmem:[#allocation25_spill] sm:$0xff] %v15535_v9 }
 0x35b   : > { %v5103_v30 = vadd.f32 %v11256_v12, %v15343_v56  ;;  %v7050_v24 = vrot.slane %v7048_v48, 5  ;;  %v7027_v20 = vsel %vm11882_vm4, %v7018_v43, %v7026_v62  ;;  %v7028_v4 = vrot.slane %v7026_v62, 4 }
 0x35c   : > { %v5050_v63 = vpop.f32.mrf.mxu1  ;;  %v7053_v12 = vrot.slane %v7051_v22, 6  ;;  %v7060_v7 = vrot.slane %v7058_v31, 5  ;;  %v7067_v43 = vshrl.u32 %v15523_v50, 16  ;;  %v7070_v62 = vshll.u32 %v15523_v50, 16 }
 0x35d   : > { %v5101_v28 = vadd.f32 %v5050_v63, %v15353_v40  ;;  %v15520_v56 = vadd.f32 %v15289_v0, %v5103_v30  ;;  %v7045_v0 = vor.u32 %v7044_v60, %v7041_v18  ;;  %v7061_v30 = vshll.u32 %v15508_v26, 16 }
 0x35e   : > { %v11257_v17 = vpop.f32.mrf.mxu1  ;;  %v7037_v48 = vsel %vm11882_vm4, %v7028_v4, %v7036_v53  ;;  %v7054_v63 = vor.u32 %v7053_v12, %v7050_v24  ;;  %v7072_v4 = vrot.slane %v7070_v62, 6  ;;  %v15569_v62 = vld [vmem:[%s11862_s17 + $0x58] sm:$0xf] }
 0x35f   : > { %v5104_v40 = vadd.f32 %v11257_v17, %v15367_v57  ;;  %v15529_v49 = vadd.f32 %v15291_v41, %v5101_v28  ;;  %v15539_v22 = vpop.f32.mrf.mxu0  ;;  %v15542_v57 = vadd.f32 %v15280_v1, %v5098_v45  ;;  %v10384_v18 = vcombine.low %v7027_v20, %v7037_v48  ;;  %v15548_v28 = vld [vmem:[%s11862_s17 + $0x50] sm:$0x7]  ;;  %17621 = vst [vmem:[#allocation10_spill] sm:$0xff] %v15569_v62 }
 0x360   : > { %v5053_v10 = vpop.f32.mrf.mxu1  ;;  %v7046_v31 = vrot.slane %v7045_v0, 4  ;;  %17618 = vst [vmem:[#allocation43_spill] sm:$0xff] %v15548_v28  ;;  %v7056_v60 = vrot.slane %v7054_v63, 4  ;;  %v7063_v24 = vrot.slane %v7061_v30, 6  ;;  %v7069_v17 = vrot.slane %v7067_v43, 5 }
 0x361   : > { %v15545_v41 = vadd.f32 %v15303_v37, %v5104_v40  ;;  %v5102_v12 = vadd.f32 %v5053_v10, %v15375_v3  ;;  %11398 = vmatprep.mubr.msk.bf16.mxu0 %vm580_vm3, %v10384_v18  ;;  %v7076_v37 = vshrl.u32 %v15535_v9, 16  ;;  %v7079_v0 = vshll.u32 %v15535_v9, 16  ;;  %v15559_v3 = vpop.f32.mrf.mxu0 }
 0x362   : > { %v11260_v53 = vpop.f32.mrf.mxu1  ;;  %v7055_v1 = vsel %vm11882_vm4, %v7046_v31, %v7054_v63  ;;  %v7064_v20 = vor.u32 %v7063_v24, %v7060_v7  ;;  %v7073_v40 = vor.u32 %v7072_v4, %v7069_v17  ;;  %v7086_v30 = vshrl.u32 %v15548_v28, 16  ;;  %v15566_v63 = vld [vmem:[%s11862_s17 + $0x54] sm:$0xf] }
 0x363   : > { %v5107_v50 = vadd.f32 %v11260_v53, %v15388_v55  ;;  %v7078_v10 = vrot.slane %v7076_v37, 5  ;;  %v7089_v43 = vshll.u32 %v15548_v28, 16  ;;  %17620 = vst [vmem:[#allocation11_spill] sm:$0xff] %v15566_v63  ;;  %v7081_v53 = vrot.slane %v7079_v0, 6 }
 0x364   : > { %v5066_v45 = vpop.f32.mrf.mxu1  ;;  %v7065_v18 = vsel %vm11882_vm4, %v7056_v60, %v7064_v20  ;;  %v7074_v31 = vrot.slane %v7073_v40, 4  ;;  %v7104_v28 = vshrl.u32 %v15569_v62, 16  ;;  %v15580_v60 = vpop.f32.mrf.mxu0  ;;  %v15583_v20 = vadd.f32 %v15334_v23, %v5102_v12 }
 0x365   : > { %v5105_v48 = vadd.f32 %v5066_v45, %v15394_v27  ;;  %v15562_v55 = vadd.f32 %v15356_v8, %v5107_v50  ;;  %v7088_v27 = vrot.slane %v7086_v30, 5  ;;  %v10385_v50 = vcombine.low %v7055_v1, %v7065_v18  ;;  %v15590_v1 = vld [vmem:[%s11862_s17 + $0x5c] sm:$0x7]  ;;  %v10478_v18 = vld [vmem:[%s16982_s2 + $0x2c] sm:$0x3] }
 0x366   : > { %v11261_v7 = vpop.f32.mrf.mxu1  ;;  %v7091_v17 = vrot.slane %v7089_v43, 6  ;;  %v7082_v37 = vor.u32 %v7081_v53, %v7078_v10  ;;  %v7095_v45 = vshrl.u32 %v15566_v63, 16  ;;  %v7107_v40 = vshll.u32 %v15569_v62, 16  ;;  %11621 = vmatprep.subr.msk.bf16.mxu0 %vm605_vm0, %v10478_v18 }
 0x367   : > { %17619 = vst [vmem:[#allocation48_spill] sm:$0xff] %v15562_v55  ;;  %v5108_v24 = vadd.f32 %v11261_v7, %v15406_v16  ;;  %v15575_v8 = vadd.f32 %v15380_v44, %v5105_v48  ;;  %v7098_v55 = vshll.u32 %v15566_v63, 16  ;;  %11399 = vmatmul.mubr.msk.bf16.gmra.mxu0 %vm580_vm3, %v10385_v50  ;;  %v7117_v50 = vshll.u32 %v15590_v1, 16 }
 0x368   : > { %v5069_v4 = vpop.f32.mrf.mxu1  ;;  %v7092_v44 = vor.u32 %v7091_v17, %v7088_v27  ;;  %v7083_v30 = vsel %vm11882_vm4, %v7074_v31, %v7082_v37  ;;  %v7084_v48 = vrot.slane %v7082_v37, 4  ;;  %v7097_v10 = vrot.slane %v7095_v45, 5 }
 0x369   : > { %v15586_v16 = vadd.f32 %v15403_v36, %v5108_v24  ;;  %v7100_v43 = vrot.slane %v7098_v55, 6  ;;  %v5106_v23 = vadd.f32 %v5069_v4, %v15428_v15  ;;  %v7106_v36 = vrot.slane %v7104_v28, 5 }
 0x36a   : > { %v7109_v7 = vrot.slane %v7107_v40, 6  ;;  %v7093_v27 = vsel %vm11882_vm4, %v7084_v48, %v7092_v44  ;;  %v7114_v31 = vshrl.u32 %v15590_v1, 16  ;;  %v7119_v44 = vrot.slane %v7117_v50, 6 }
 0x36b   : > { %v11264_v0 = vpop.f32.mrf.mxu1  ;;  %v7101_v24 = vor.u32 %v7100_v43, %v7097_v10  ;;  %v10386_v55 = vcombine.low %v7083_v30, %v7093_v27  ;;  %v10412_v43 = vrot.slane %v15298_v33, 11 }
 0x36c   : > { %v5111_v12 = vadd.f32 %v11264_v0, %v15443_v6  ;;  %v15606_v6 = vpop.f32.mrf.mxu0  ;;  %v7110_v17 = vor.u32 %v7109_v7, %v7106_v36  ;;  %v7116_v45 = vrot.slane %v7114_v31, 5  ;;  %v7452_v7 = vrot.slane %v15323_v25, 7 }
 0x36d   : > { %v5082_v53 = vpop.f32.mrf.mxu1  ;;  %v7102_v37 = vrot.slane %v7101_v24, 4  ;;  %11402 = vmatprep.mubr.msk.bf16.mxu0 %vm580_vm3, %v10386_v55  ;;  %v15637_v55 = vadd.f32 %v15434_v5, %v5106_v23  ;;  %v7459_v25 = vrot.slane %v15346_v38, 7 }
 0x36e   : > { %v5109_v15 = vadd.f32 %v5082_v53, %v15455_v39  ;;  %v15609_v28 = vadd.f32 %v15460_v11, %v5111_v12  ;;  %v7112_v39 = vrot.slane %v7110_v17, 4  ;;  %v7120_v30 = vor.u32 %v7119_v44, %v7116_v45 }
 0x36f   : > { %v11265_v4 = vpop.f32.mrf.mxu1  ;;  %v7111_v11 = vsel %vm11882_vm4, %v7102_v37, %v7110_v17  ;;  %v10413_v53 = vrot.slane %v15326_v13, 11  ;;  %v15643_v17 = vld [vmem:[%s16982_s2 + $0x2a] sm:$0x3] }
 0x370   : > { %v5112_v40 = vadd.f32 %v11265_v4, %v15465_v59  ;;  %v15613_v0 = vadd.f32 %v15472_v34, %v5109_v15  ;;  %v7449_v59 = vrot.slane %v15301_v42, 7  ;;  %v7121_v24 = vsel %vm11882_vm4, %v7112_v39, %v7120_v30 }
 0x371   : > { %v5085_v48 = vpop.f32.mrf.mxu1  ;;  %v11310_v12 = vpop.f32.mrf.mxu0  ;;  %v7456_v15 = vrot.slane %v15337_v52, 7  ;;  %v10414_v30 = vrot.slane %v15363_v14, 11 }
 0x372   : > { %v5110_v34 = vadd.f32 %v5085_v48, %v15475_v29  ;;  %v15626_v36 = vadd.f32 %v15499_v32, %v5112_v40  ;;  %v7450_v31 = vsel %vm15618_vm5, %v10412_v43, %v7449_v59  ;;  %v7451_v50 = vrot.slane %v7449_v59, 4 }
 0x373   : > { %v11288_v27 = vpop.f32.mrf.mxu1  ;;  %v10387_v32 = vcombine.low %v7111_v11, %v7121_v24  ;;  %v7458_v44 = vrot.slane %v7456_v15, 4  ;;  %v5992_v23 = vpop.f32.mrf.mxu0  ;;  %v7457_v40 = vsel %vm15618_vm5, %v10413_v53, %v7456_v15  ;;  %v17625_v53 = vld [vmem:[#allocation30_spill] sm:$0xff]  ;;  %v10415_v24 = vrot.slane %v15414_v58, 11 }
 0x374   : > { %v5655_v29 = vadd.f32 %v11288_v27, %v15484_v47  ;;  %v15646_v37 = vadd.f32 %v15517_v61, %v5110_v34  ;;  %v7453_v45 = vsel %vm15618_vm5, %v7451_v50, %v7452_v7  ;;  %v8150_v34 = vsel %vm605_vm0, %v10478_v18, 0 }
 0x375   : > { %v5590_v4 = vpop.f32.mrf.mxu1  ;;  %11403 = vmatmul.mubr.msk.bf16.gmra.mxu0 %vm580_vm3, %v10387_v32  ;;  %v10421_v38 = vcombine.low %v7450_v31, %v7453_v45  ;;  %v7460_v11 = vsel %vm15618_vm5, %v7458_v44, %v7459_v25  ;;  %v7466_v27 = vrot.slane %v17625_v53, 7  ;;  %v7470_v31 = vrot.slane %v15424_v21, 7  ;;  %v11311_v15 = vpop.f32.mrf.mxu0  ;;  %v15777_v44 = vld [vmem:[%s11862_s17 + $0x34] sm:$0xf] }
 0x376   : > { %v5653_v47 = vadd.f32 %v5590_v4, %v15502_v19  ;;  %v15659_v48 = vadd.f32 %v15539_v22, %v5655_v29  ;;  %v15665_v19 = vsel %vm605_vm0, %v15643_v17, 0  ;;  %v7463_v22 = vrot.slane %v15372_v54, 7 }
 0x377   : > { %v11289_v39 = vpop.f32.mrf.mxu1  ;;  %17624 = vst [vmem:[#allocation16_spill] sm:$0xff] %v15665_v19  ;;  %11426 = vmatprep.mubr.msk.bf16.mxu0 %vm580_vm3, %v10421_v38  ;;  %v7473_v50 = vrot.slane %v15431_v2, 7  ;;  %v7472_v4 = vrot.slane %v7470_v31, 4  ;;  %v17626_v38 = vld [vmem:[#allocation33_spill] sm:$0xff] }
 0x378   : > { %v5656_v43 = vadd.f32 %v11289_v39, %v15505_v46  ;;  %v15670_v59 = vadd.f32 %v15559_v3, %v5653_v47  ;;  %v10422_v3 = vcombine.low %v7457_v40, %v7460_v11  ;;  %v7464_v29 = vsel %vm15618_vm5, %v10414_v30, %v7463_v22  ;;  %v17627_v30 = vld [vmem:[#allocation34_spill] sm:$0xff] }
 0x379   : > { %v5593_v7 = vpop.f32.mrf.mxu1  ;;  %v7465_v32 = vrot.slane %v7463_v22, 4  ;;  %v7471_v47 = vsel %vm15618_vm5, %v10415_v24, %v7470_v31  ;;  %v10416_v40 = vrot.slane %v17626_v38, 11  ;;  %v7474_v11 = vsel %vm15618_vm5, %v7472_v4, %v7473_v50  ;;  %v17628_v22 = vld [vmem:[#allocation35_spill] sm:$0xff] }
 0x37a   : > { %v5654_v46 = vadd.f32 %v5593_v7, %v15542_v57  ;;  %v15683_v25 = vadd.f32 %v15580_v60, %v5656_v43  ;;  %v7477_v43 = vrot.slane %v17627_v30, 7  ;;  %v7480_v7 = vrot.slane %v17628_v22, 7  ;;  %v17631_v22 = vld [vmem:[#allocation43_spill] sm:$0xff] }
 0x37b   : > { %v11292_v18 = vpop.f32.mrf.mxu1  ;;  %v7467_v57 = vsel %vm15618_vm5, %v7465_v32, %v7466_v27  ;;  %v10417_v24 = vrot.slane %v15481_v35, 11  ;;  %v17629_v32 = vld [vmem:[#allocation8_spill] sm:$0xff]  ;;  %v7487_v4 = vrot.slane %v15508_v26, 7 }
 0x37c   : > { %v5659_v2 = vadd.f32 %v11292_v18, %v15520_v56  ;;  %v10423_v60 = vcombine.low %v7464_v29, %v7467_v57  ;;  %v5995_v56 = vpop.f32.mrf.mxu0  ;;  %v15701_v18 = vadd.f32 %v15606_v6, %v5654_v46  ;;  %v7478_v50 = vsel %vm15618_vm5, %v10416_v40, %v7477_v43 }
 0x37d   : > { %v5606_v39 = vpop.f32.mrf.mxu1  ;;  %11427 = vmatmul.mubr.msk.bf16.vlgmr.msra.gmra.mxu0 %vm580_vm3, %v10422_v3  ;;  %v7479_v29 = vrot.slane %v7477_v43, 4  ;;  %v7491_v43 = vrot.slane %v15535_v9, 7 }
 0x37e   : > { %v5657_v53 = vadd.f32 %v5606_v39, %v15529_v49  ;;  %v15703_v27 = vadd.f32 %v11310_v12, %v5659_v2  ;;  %11461 = vmatpush3.bf16.msra.mxu0 %v8150_v34  ;;  %11430 = vmatprep.mubr.msk.bf16.mxu0 %vm580_vm3, %v10423_v60  ;;  %v7484_v49 = vrot.slane %v17629_v32, 7  ;;  %v10424_v12 = vcombine.low %v7471_v47, %v7474_v11  ;;  %v17630_v39 = vld [vmem:[#allocation15_spill] sm:$0xff]  ;;  %v15750_v34 = vld [vmem:[%s11862_s17 + $0x2c] sm:$0x7] }
 0x37f   : > { %v11293_v31 = vpop.f32.mrf.mxu1  ;;  %v7481_v57 = vsel %vm15618_vm5, %v7479_v29, %v7480_v7  ;;  %v10418_v26 = vrot.slane %v17630_v39, 11  ;;  %v7494_v7 = vrot.slane %v17631_v22, 7  ;;  %v15734_v29 = vld [vmem:[%s11862_s17 + $0x24] sm:$0xf]  ;;  %v7898_v46 = vshll.u32 %v15750_v34, 16 }
 0x380   : > { %v5660_v6 = vadd.f32 %v11293_v31, %v15545_v41  ;;  %v15717_v2 = vadd.f32 %v5992_v23, %v5657_v53  ;;  %v7486_v40 = vrot.slane %v7484_v49, 4  ;;  %v10425_v47 = vcombine.low %v7478_v50, %v7481_v57  ;;  %v15843_v32 = vld [vmem:[%s11862_s17 + $0x4c] sm:$0xf] }
 0x381   : > { %v5609_v3 = vpop.f32.mrf.mxu1  ;;  %v15725_v11 = vsel %vm15618_vm5, %v10417_v24, %v7484_v49  ;;  %v10419_v53 = vrot.slane %v15566_v63, 11  ;;  %v7498_v31 = vrot.slane %v15569_v62, 7  ;;  %v7492_v24 = vsel %vm15618_vm5, %v10418_v26, %v7491_v43 }
 0x382   : > { %v11314_v60 = vpop.f32.mrf.mxu0  ;;  %v5658_v41 = vadd.f32 %v5609_v3, %v15583_v20  ;;  %v7488_v23 = vsel %vm15618_vm5, %v7486_v40, %v7487_v4  ;;  %v15736_v20 = vadd.f32 %v11311_v15, %v5660_v6  ;;  %v7493_v49 = vrot.slane %v7491_v43, 4  ;;  %v15743_v3 = vld [vmem:[%s11862_s17 + $0x28] sm:$0xf] }
 0x383   : > { %v10426_v4 = vcombine.low %v15725_v11, %v7488_v23  ;;  %v7500_v57 = vrot.slane %v7498_v31, 4  ;;  %v7501_v40 = vrot.slane %v15590_v1, 7  ;;  %v7876_v26 = vshrl.u32 %v15734_v29, 16  ;;  %v15767_v23 = vld [vmem:[%s11862_s17 + $0x30] sm:$0xf] }
 0x384   : > { %v15738_v50 = vadd.f32 %v5995_v56, %v5658_v41  ;;  %v6008_v15 = vpop.f32.mrf.mxu0  ;;  %v7495_v56 = vsel %vm15618_vm5, %v7493_v49, %v7494_v7  ;;  %v7879_v41 = vshll.u32 %v15734_v29, 16  ;;  %v15762_v11 = vsel %vm15618_vm5, %v10419_v53, %v7498_v31 }
 0x385   : > { %11431 = vmatmul.mubr.msk.bf16.gmra.mxu0 %vm580_vm3, %v10424_v12  ;;  %v10427_v1 = vcombine.low %v7492_v24, %v7495_v56  ;;  %v7885_v12 = vshrl.u32 %v15743_v3, 16  ;;  %v7888_v43 = vshll.u32 %v15743_v3, 16  ;;  %v15771_v49 = vsel %vm15618_vm5, %v7500_v57, %v7501_v40  ;;  %v17632_v24 = vld [vmem:[#allocation48_spill] sm:$0xff] }
 0x386   : > { %11434 = vmatprep.mubr.msk.bf16.mxu0 %vm580_vm3, %v10425_v47  ;;  %v7878_v6 = vrot.slane %v7876_v26, 5  ;;  %v7881_v22 = vrot.slane %v7879_v41, 6  ;;  %v7895_v47 = vshrl.u32 %v15750_v34, 16  ;;  %v11315_v45 = vpop.f32.mrf.mxu0  ;;  %v7904_v57 = vshrl.u32 %v15767_v23, 16 }
 0x387   : > { %v11296_v7 = vpop.f32.mrf.mxu1  ;;  %v7887_v53 = vrot.slane %v7885_v12, 5  ;;  %v7890_v31 = vrot.slane %v7888_v43, 6  ;;  %v7907_v40 = vshll.u32 %v15767_v23, 16  ;;  %v10428_v41 = vcombine.low %v15762_v11, %v15771_v49  ;;  %v15785_v43 = vld [vmem:[%s11862_s17 + $0x38] sm:$0x7] }
 0x388   : > { %v5663_v56 = vadd.f32 %v11296_v7, %v17632_v24  ;;  %v7882_v5 = vor.u32 %v7881_v22, %v7878_v6  ;;  %v7897_v62 = vrot.slane %v7895_v47, 5  ;;  %v7900_v12 = vrot.slane %v7898_v46, 6  ;;  %v10546_v6 = vld [vmem:[%s16982_s2 + $0x30] sm:$0x3]  ;;  %v6011_v46 = vpop.f32.mrf.mxu0 }
 0x389   : > { %v5622_v61 = vpop.f32.mrf.mxu1  ;;  %v7891_v7 = vor.u32 %v7890_v31, %v7887_v53  ;;  %v7906_v9 = vrot.slane %v7904_v57, 5  ;;  %v7909_v39 = vrot.slane %v7907_v40, 6  ;;  %v7913_v22 = vshrl.u32 %v15777_v44, 16  ;;  %11623 = vmatprep.subr.msk.bf16.mxu0 %vm605_vm0, %v10546_v6 }
 0x38a   : > { %v5661_v26 = vadd.f32 %v5622_v61, %v15575_v8  ;;  %v7883_v63 = vrot.slane %v7882_v5, 4  ;;  %v15792_v8 = vadd.f32 %v11314_v60, %v5663_v56  ;;  %v7901_v11 = vor.u32 %v7900_v12, %v7897_v62 }
 0x38b   : > { %v11297_v24 = vpop.f32.mrf.mxu1  ;;  %v7893_v61 = vrot.slane %v7891_v7, 4  ;;  %v7910_v53 = vor.u32 %v7909_v39, %v7906_v9  ;;  %v7915_v31 = vrot.slane %v7913_v22, 5  ;;  %v7916_v57 = vshll.u32 %v15777_v44, 16 }
 0x38c   : > { %v5664_v47 = vadd.f32 %v11297_v24, %v15586_v16  ;;  %v7892_v5 = vsel %vm11882_vm4, %v7883_v63, %v7891_v7  ;;  %v15800_v60 = vadd.f32 %v6008_v15, %v5661_v26  ;;  %v15809_v63 = vld [vmem:[%s16982_s2 + $0x2e] sm:$0x3]  ;;  %v15815_v15 = vld [vmem:[%s11862_s17 + $0x3c] sm:$0xf]  ;;  %v15825_v24 = vld [vmem:[%s11862_s17 + $0x44] sm:$0x7] }
 0x38d   : > { %v5625_v49 = vpop.f32.mrf.mxu1  ;;  %11435 = vmatmul.mubr.msk.bf16.gmra.mxu0 %vm580_vm3, %v10426_v4  ;;  %v7902_v62 = vsel %vm11882_vm4, %v7893_v61, %v7901_v11  ;;  %v7923_v4 = vshrl.u32 %v15785_v43, 16  ;;  %17633 = vst [vmem:[#allocation4_spill] sm:$0xff] %v15809_v63  ;;  %v7918_v56 = vrot.slane %v7916_v57, 6  ;;  %v7911_v40 = vrot.slane %v7910_v53, 4 }
 0x38e   : > { %v5662_v16 = vadd.f32 %v5625_v49, %v15637_v55  ;;  %11438 = vmatprep.mubr.msk.bf16.mxu0 %vm580_vm3, %v10427_v1  ;;  %v15811_v9 = vadd.f32 %v11315_v45, %v5664_v47  ;;  %v10479_v39 = vcombine.low %v7892_v5, %v7902_v62  ;;  %v7926_v55 = vshll.u32 %v15785_v43, 16  ;;  %v15818_v1 = vld [vmem:[%s11862_s17 + $0x40] sm:$0xf]  ;;  %v15838_v62 = vld [vmem:[%s11862_s17 + $0x48] sm:$0xf] }
 0x38f   : > { %v7925_v26 = vrot.slane %v7923_v4, 5  ;;  %v7919_v47 = vor.u32 %v7918_v56, %v7915_v31  ;;  %v15831_v11 = vsel %vm605_vm0, %v15809_v63, 0  ;;  %v7932_v49 = vshrl.u32 %v15815_v15, 16 }
 0x390   : > { %v15827_v22 = vadd.f32 %v6011_v46, %v5662_v16  ;;  %v7928_v61 = vrot.slane %v7926_v55, 6  ;;  %17634 = vst [vmem:[#allocation17_spill] sm:$0xff] %v15831_v11  ;;  %v7935_v5 = vshll.u32 %v15815_v15, 16  ;;  %v7941_v53 = vshrl.u32 %v15818_v1, 16 }
 0x391   : > { %v7944_v57 = vshll.u32 %v15818_v1, 16  ;;  %v7921_v46 = vrot.slane %v7919_v47, 4  ;;  %v8590_v31 = vsel %vm605_vm0, %v10546_v6, 0  ;;  %v7951_v56 = vshrl.u32 %v15825_v24, 16 }
 0x392   : > { %v11318_v45 = vpop.f32.mrf.mxu0  ;;  %v7929_v16 = vor.u32 %v7928_v61, %v7925_v26  ;;  %v7934_v55 = vrot.slane %v7932_v49, 5  ;;  %v7937_v12 = vrot.slane %v7935_v5, 6  ;;  %v7943_v7 = vrot.slane %v7941_v53, 5 }
 0x393   : > { %v7946_v11 = vrot.slane %v7944_v57, 6  ;;  %v7920_v35 = vsel %vm11882_vm4, %v7911_v40, %v7919_v47  ;;  %v7953_v30 = vrot.slane %v7951_v56, 5  ;;  %v7954_v38 = vshll.u32 %v15825_v24, 16  ;;  %v15856_v40 = vld [vmem:[%s11862_s17 + $0x50] sm:$0x7] }
 0x394   : > { %v6024_v4 = vpop.f32.mrf.mxu0  ;;  %v7960_v26 = vshrl.u32 %v15838_v62, 16  ;;  %v7930_v49 = vsel %vm11882_vm4, %v7921_v46, %v7929_v16  ;;  %v7938_v5 = vor.u32 %v7937_v12, %v7934_v55  ;;  %v7963_v57 = vshll.u32 %v15838_v62, 16 }
 0x395   : > { %11439 = vmatmul.mubr.msk.bf16.gmra.mxu0 %vm580_vm3, %v10428_v41  ;;  %v7947_v53 = vor.u32 %v7946_v11, %v7943_v7  ;;  %v7956_v21 = vrot.slane %v7954_v38, 6  ;;  %v7969_v56 = vshrl.u32 %v15843_v32, 16  ;;  %v10480_v7 = vcombine.low %v7920_v35, %v7930_v49  ;;  %v15873_v35 = vld [vmem:[%s11862_s17 + $0x54] sm:$0xf] }
 0x396   : > { %v11319_v61 = vpop.f32.mrf.mxu0  ;;  %11462 = vmatprep.mubr.msk.bf16.mxu0 %vm580_vm3, %v10479_v39  ;;  %v7962_v47 = vrot.slane %v7960_v26, 5  ;;  %v7939_v63 = vrot.slane %v7938_v5, 4  ;;  %v7965_v14 = vrot.slane %v7963_v57, 6  ;;  %v7972_v39 = vshll.u32 %v15843_v32, 16 }
 0x397   : > { %v11300_v6 = vpop.f32.mrf.mxu1  ;;  %v7949_v54 = vrot.slane %v7947_v53, 4  ;;  %v7957_v11 = vor.u32 %v7956_v21, %v7953_v30  ;;  %v7971_v46 = vrot.slane %v7969_v56, 5 }
 0x398   : > { %v5667_v41 = vadd.f32 %v11300_v6, %v15609_v28  ;;  %v15861_v16 = vpop.f32.mrf.mxu0  ;;  %v7948_v38 = vsel %vm11882_vm4, %v7939_v63, %v7947_v53  ;;  %v7966_v55 = vor.u32 %v7965_v14, %v7962_v47  ;;  %v7974_v26 = vrot.slane %v7972_v39, 6  ;;  %v15876_v53 = vld [vmem:[%s11862_s17 + $0x58] sm:$0xf]  ;;  %v15887_v47 = vld [vmem:[%s11862_s17 + $0x5c] sm:$0x7] }
 0x399   : > { %v5638_v58 = vpop.f32.mrf.mxu1  ;;  %v7979_v6 = vshrl.u32 %v15856_v40, 16  ;;  %v7958_v21 = vsel %vm11882_vm4, %v7949_v54, %v7957_v11 }
 0x39a   : > { %v5665_v12 = vadd.f32 %v5638_v58, %v15613_v0  ;;  %v15867_v57 = vadd.f32 %v11318_v45, %v5667_v41  ;;  %v7982_v58 = vshll.u32 %v15856_v40, 16  ;;  %v10481_v30 = vcombine.low %v7948_v38, %v7958_v21 }
 0x39b   : > { %v11301_v28 = vpop.f32.mrf.mxu1  ;;  %v7967_v49 = vrot.slane %v7966_v55, 4  ;;  %v7975_v63 = vor.u32 %v7974_v26, %v7971_v46  ;;  %v7981_v14 = vrot.slane %v7979_v6, 5  ;;  %v8000_v55 = vshll.u32 %v15876_v53, 16 }
 0x39c   : > { %v5668_v5 = vadd.f32 %v11301_v28, %v15626_v36  ;;  %17635 = vst [vmem:[#allocation18_spill] sm:$0xff] %v15867_v57  ;;  %v15881_v45 = vadd.f32 %v6024_v4, %v5665_v12  ;;  %v7984_v54 = vrot.slane %v7982_v58, 6  ;;  %v7988_v4 = vshrl.u32 %v15873_v35, 16  ;;  %v15896_v12 = vld [vmem:[%s11862_s17 + $0x60] sm:$0xf] }
 0x39d   : > { %v5641_v0 = vpop.f32.mrf.mxu1  ;;  %11463 = vmatmul.mubr.msk.bf16.vlgmr.msra.gmra.mxu0 %vm580_vm3, %v10480_v7  ;;  %v7977_v11 = vrot.slane %v7975_v63, 4  ;;  %v7976_v7 = vsel %vm11882_vm4, %v7967_v49, %v7975_v63  ;;  %v7997_v28 = vshrl.u32 %v15876_v53, 16  ;;  %v8007_v26 = vshrl.u32 %v15887_v47, 16 }
 0x39e   : > { %v15879_v36 = vadd.f32 %v5641_v0, %v15646_v37  ;;  %17636 = vst [vmem:[#allocation39_spill] sm:$0xff] %v15881_v45  ;;  %v15889_v39 = vadd.f32 %v11319_v61, %v5668_v5  ;;  %11497 = vmatpush3.bf16.msra.mxu0 %v8590_v31  ;;  %11466 = vmatprep.mubr.msk.bf16.mxu0 %vm580_vm3, %v10481_v30  ;;  %v7991_v61 = vshll.u32 %v15873_v35, 16  ;;  %v7990_v38 = vrot.slane %v7988_v4, 5  ;;  %v15906_v5 = vld [vmem:[%s11862_s17 + $0x64] sm:$0xf] }
 0x39f   : > { %v11342_v56 = vpop.f32.mrf.mxu0  ;;  %v7985_v46 = vor.u32 %v7984_v54, %v7981_v14  ;;  %v8010_v6 = vshll.u32 %v15887_v47, 16  ;;  %v7999_v0 = vrot.slane %v7997_v28, 5  ;;  %v15911_v30 = vld [vmem:[%s11862_s17 + $0x68] sm:$0x7]  ;;  %v8016_v49 = vshrl.u32 %v15896_v12, 16 }
 0x3a0   : > { %17637 = vst [vmem:[#allocation13_spill] sm:$0xff] %v15889_v39  ;;  %v7993_v58 = vrot.slane %v7991_v61, 6  ;;  %v8002_v14 = vrot.slane %v8000_v55, 6  ;;  %v8009_v54 = vrot.slane %v8007_v26, 5  ;;  %v8019_v19 = vshll.u32 %v15896_v12, 16 }
 0x3a1   : > { %v6532_v31 = vpop.f32.mrf.mxu0  ;;  %v7986_v21 = vsel %vm11882_vm4, %v7977_v11, %v7985_v46  ;;  %v8012_v4 = vrot.slane %v8010_v6, 6  ;;  %v8018_v41 = vrot.slane %v8016_v49, 5  ;;  %v8025_v52 = vshrl.u32 %v15906_v5, 16  ;;  %v15923_v26 = vld [vmem:[%s16984_s4 + $0x2] ss:$0 sm:$0xff] }
 0x3a2   : > { %v10482_v63 = vcombine.low %v7976_v7, %v7986_v21  ;;  %v7994_v37 = vor.u32 %v7993_v58, %v7990_v38  ;;  %v8003_v33 = vor.u32 %v8002_v14, %v7999_v0  ;;  %v8028_v46 = vshll.u32 %v15906_v5, 16  ;;  %v15977_v39 = vld [vmem:[%s11862_s17 + $0x80] sm:$0x7] }
 0x3a3   : > { %v11343_v42 = vpop.f32.mrf.mxu0  ;;  %v8013_v11 = vor.u32 %v8012_v4, %v8009_v54  ;;  %v8035_v61 = vshrl.u32 %v15911_v30, 16  ;;  %v8021_v55 = vrot.slane %v8019_v19, 6  ;;  %v8027_v38 = vrot.slane %v8025_v52, 5 }
 0x3a4   : > { %v7995_v7 = vrot.slane %v7994_v37, 4  ;;  %v8005_v21 = vrot.slane %v8003_v33, 4  ;;  %v8030_v58 = vrot.slane %v8028_v46, 6  ;;  %v8038_v49 = vshll.u32 %v15911_v30, 16 }
 0x3a5   : > { %11467 = vmatmul.mubr.msk.bf16.gmra.mxu0 %vm580_vm3, %v10482_v63  ;;  %v8037_v0 = vrot.slane %v8035_v61, 5  ;;  %v8022_v19 = vor.u32 %v8021_v55, %v8018_v41  ;;  %v6535_v52 = vpop.f32.mrf.mxu0  ;;  %v17702_v51 = vcombine.low %v15896_v12, %v15906_v5 }
 0x3a6   : > { %v11324_v13 = vpop.f32.mrf.mxu1  ;;  %v8014_v63 = vsel %vm11882_vm4, %v8005_v21, %v8013_v11  ;;  %v8031_v54 = vor.u32 %v8030_v58, %v8027_v38  ;;  %v8040_v4 = vrot.slane %v8038_v49, 6  ;;  %v15949_v49 = vld [vmem:[%s16982_s2 + $0x34] sm:$0x3] }
 0x3a7   : > { %v6327_v28 = vadd.f32 %v11324_v13, %v15659_v48  ;;  %v8004_v48 = vsel %vm11882_vm4, %v7995_v7, %v8003_v33  ;;  %v8023_v41 = vrot.slane %v8022_v19, 4  ;;  %11625 = vmatprep.subr.msk.bf16.mxu0 %vm605_vm0, %v15949_v49 }
 0x3a8   : > { %v6262_v6 = vpop.f32.mrf.mxu1  ;;  %v8033_v7 = vrot.slane %v8031_v54, 4  ;;  %v8041_v55 = vor.u32 %v8040_v4, %v8037_v0 }
 0x3a9   : > { %v6597_v14 = vadd.f32 %v11342_v56, %v6327_v28  ;;  %v6325_v13 = vadd.f32 %v6262_v6, %v15670_v59  ;;  %v10483_v28 = vcombine.low %v8004_v48, %v8014_v63  ;;  %v15936_v6 = vld [vmem:[%s11862_s17 + $0x6c] sm:$0xf] }
 0x3aa   : > { %v11325_v37 = vpop.f32.mrf.mxu1  ;;  %v8047_v48 = vshll.u32 %v15936_v6, 16 }
 0x3ab   : > { %v6621_v61 = vadd.f32 %v15923_v26, %v6597_v14  ;;  %v6595_v56 = vadd.f32 %v6532_v31, %v6325_v13  ;;  %v6328_v59 = vadd.f32 %v11325_v37, %v15683_v25  ;;  %11470 = vmatprep.mubr.msk.bf16.mxu0 %vm580_vm3, %v10483_v28  ;;  %v15944_v25 = vld [vmem:[%s11862_s17 + $0x70] sm:$0xf]  ;;  %v8032_v14 = vsel %vm11882_vm4, %v8023_v41, %v8031_v54 }
 0x3ac   : > { %v6265_v33 = vpop.f32.mrf.mxu1  ;;  %v8042_v13 = vsel %vm11882_vm4, %v8033_v7, %v8041_v55  ;;  %v8056_v28 = vshll.u32 %v15944_v25, 16 }
 0x3ad   : > { %v6637_v38 = vmax.f32 %v6621_v61, 0.0  ;;  %v6619_v21 = vadd.f32 %v15923_v26, %v6595_v56  ;;  %v6598_v58 = vadd.f32 %v11343_v42, %v6328_v59  ;;  %v6326_v31 = vadd.f32 %v6265_v33, %v15701_v18  ;;  %v11346_v0 = vpop.f32.mrf.mxu0  ;;  %v15956_v42 = vld [vmem:[%s11862_s17 + $0x74] sm:$0x7]  ;;  %v15964_v61 = vld [vmem:[%s11862_s17 + $0x78] sm:$0xf] }
 0x3ae   : > { %17638 = vst [vmem:[#allocation30_spill] sm:$0xff] %v15956_v42  ;;  %v8044_v18 = vshrl.u32 %v15936_v6, 16  ;;  %v10484_v4 = vcombine.low %v8032_v14, %v8042_v13  ;;  %v8049_v56 = vrot.slane %v8047_v48, 6  ;;  %v8053_v59 = vshrl.u32 %v15944_v25, 16  ;;  %v15973_v14 = vld [vmem:[%s11862_s17 + $0x7c] sm:$0xf] }
 0x3af   : > { %v6635_v19 = vmax.f32 %v6619_v21, 0.0  ;;  %v6622_v37 = vadd.f32 %v15923_v26, %v6598_v58  ;;  %v6596_v63 = vadd.f32 %v6535_v52, %v6326_v31  ;;  %v8063_v7 = vshrl.u32 %v15956_v42, 16  ;;  %v6548_v55 = vpop.f32.mrf.mxu0 }
 0x3b0   : > { %v8046_v54 = vrot.slane %v8044_v18, 5  ;;  %11471 = vmatmul.mubr.msk.bf16.gmra.mxu0 %vm580_vm3, %v10484_v4  ;;  %v8066_v52 = vshll.u32 %v15956_v42, 16  ;;  %v8055_v58 = vrot.slane %v8053_v59, 5  ;;  %v8058_v31 = vrot.slane %v8056_v28, 6 }
 0x3b1   : > { %v6638_v33 = vmax.f32 %v6622_v37, 0.0  ;;  %v6620_v41 = vadd.f32 %v15923_v26, %v6596_v63  ;;  %v8072_v13 = vshrl.u32 %v15964_v61, 16  ;;  %v8065_v37 = vrot.slane %v8063_v7, 5 }
 0x3b2   : > { %v8050_v21 = vor.u32 %v8049_v56, %v8046_v54  ;;  %v8068_v11 = vrot.slane %v8066_v52, 6  ;;  %v8059_v46 = vor.u32 %v8058_v31, %v8055_v58  ;;  %v8075_v45 = vshll.u32 %v15964_v61, 16 }
 0x3b3   : > { %v6668_v18 = vpack.c.bf16 %v6638_v33, %v6637_v38  ;;  %v6636_v48 = vmax.f32 %v6620_v41, 0.0  ;;  %v8074_v4 = vrot.slane %v8072_v13, 5  ;;  %v8081_v56 = vshrl.u32 %v15973_v14, 16  ;;  %v11347_v38 = vpop.f32.mrf.mxu0 }
 0x3b4   : > { %v8051_v63 = vrot.slane %v8050_v21, 4  ;;  %v11328_v42 = vpop.f32.mrf.mxu1  ;;  %v8069_v54 = vor.u32 %v8068_v11, %v8065_v37  ;;  %v8084_v59 = vshll.u32 %v15973_v14, 16  ;;  %v8061_v41 = vrot.slane %v8059_v46, 4 }
 0x3b5   : > { %v6667_v57 = vpack.c.bf16 %v6636_v48, %v6635_v19  ;;  %v6331_v28 = vadd.f32 %v11328_v42, %v15703_v27  ;;  %v8077_v7 = vrot.slane %v8075_v45, 6  ;;  %v8083_v21 = vrot.slane %v8081_v56, 5  ;;  %v17639_v45 = vld [vmem:[#allocation6_spill] sm:$0xff] }
 0x3b6   : > { %v8060_v33 = vsel %vm11882_vm4, %v8051_v63, %v8059_v46  ;;  %v6278_v52 = vpop.f32.mrf.mxu1  ;;  %v8086_v58 = vrot.slane %v8084_v59, 6  ;;  %v8091_v31 = vshrl.u32 %v15977_v39, 16  ;;  %v8094_v11 = vshll.u32 %v15977_v39, 16 }
 0x3b7   : > { %11372 = vmatprep.mubr.bf16.mxu1 %v6667_v57  ;;  %v6601_v19 = vadd.f32 %v11346_v0, %v6331_v28  ;;  %v6329_v13 = vadd.f32 %v6278_v52, %v15717_v2  ;;  %v8070_v27 = vsel %vm11882_vm4, %v8061_v41, %v8069_v54  ;;  %v8078_v42 = vor.u32 %v8077_v7, %v8074_v4  ;;  %v6551_v0 = vpop.f32.mrf.mxu0  ;;  %v15996_v4 = vld [vmem:[%s11862_s17 + $0x48] sm:$0xf]  ;;  %v15999_v54 = vld [vmem:[%s11862_s17 + $0x4c] sm:$0xf] }
 0x3b8   : > { %11373 = vmatmul.mubr.bf16.vlgmr.msra.gmra.mxu1 %v6668_v18  ;;  %v11329_v46 = vpop.f32.mrf.mxu1  ;;  %v10485_v57 = vcombine.low %v8060_v33, %v8070_v27  ;;  %v8087_v48 = vor.u32 %v8086_v58, %v8083_v21  ;;  %v8093_v37 = vrot.slane %v8091_v31, 5  ;;  %v8096_v63 = vrot.slane %v8094_v11, 6  ;;  %v16013_v58 = vld [vmem:[%s11862_s17 + $0x54] sm:$0xf]  ;;  %v16016_v31 = vld [vmem:[%s11862_s17 + $0x58] sm:$0xf] }
 0x3b9   : > { %11407 = vmatpush3.bf16.msra.mxu1 %v17639_v45  ;;  %v6625_v56 = vadd.f32 %v15923_v26, %v6601_v19  ;;  %v6599_v59 = vadd.f32 %v6548_v55, %v6329_v13  ;;  %v6332_v2 = vadd.f32 %v11329_v46, %v15736_v20  ;;  %v8079_v18 = vrot.slane %v8078_v42, 4 }
 0x3ba   : > { %11620 = vmatprep.subr.msk.bf16.mxu1 %vm605_vm0, %v15643_v17  ;;  %v6281_v28 = vpop.f32.mrf.mxu1  ;;  %11474 = vmatprep.mubr.msk.bf16.mxu0 %vm580_vm3, %v10485_v57  ;;  %v8089_v33 = vrot.slane %v8087_v48, 4  ;;  %v8097_v41 = vor.u32 %v8096_v63, %v8093_v37  ;;  %v16010_v21 = vadd.f32 %v15861_v16, %v15879_v36  ;;  %v10548_v57 = vcombine.low %v16013_v58, %v16016_v31 }
 0x3bb   : > { %v6623_v7 = vadd.f32 %v15923_v26, %v6599_v59  ;;  %v6602_v52 = vadd.f32 %v11347_v38, %v6332_v2  ;;  %v6330_v17 = vadd.f32 %v6281_v28, %v15738_v50  ;;  %v6641_v11 = vmax.f32 %v6625_v56, 0.0 }
 0x3bc   : > { %v8088_v19 = vsel %vm11882_vm4, %v8079_v18, %v8087_v48  ;;  %v8098_v13 = vsel %vm11882_vm4, %v8089_v33, %v8097_v41  ;;  %v10547_v38 = vcombine.low %v15996_v4, %v15999_v54  ;;  %v11350_v27 = vpop.f32.mrf.mxu0  ;;  %v10495_v56 = vrot.slane %v15734_v29, 11  ;;  %v16043_v41 = vld [vmem:[%s11862_s17 + $0x64] sm:$0xf]  ;;  %v16150_v48 = vld [vmem:[%s11862_s17 + $0x9c] sm:$0xf] }
 0x3bd   : > { %v6626_v50 = vadd.f32 %v15923_v26, %v6602_v52  ;;  %v6600_v16 = vadd.f32 %v6551_v0, %v6330_v17  ;;  %v10486_v36 = vcombine.low %v8088_v19, %v8098_v13  ;;  %v6639_v46 = vmax.f32 %v6623_v7, 0.0  ;;  %v16035_v0 = vld [vmem:[%s11862_s17 + $0x60] sm:$0xf] }
 0x3be   : > { %v8275_v59 = vrot.slane %v15743_v3, 7  ;;  %v8278_v2 = vrot.slane %v15750_v34, 7  ;;  %v10496_v18 = vrot.slane %v15767_v23, 11  ;;  %v8282_v28 = vrot.slane %v15777_v44, 7  ;;  %v6564_v17 = vpop.f32.mrf.mxu0 }
 0x3bf   : > { %v6642_v37 = vmax.f32 %v6626_v50, 0.0  ;;  %v6624_v63 = vadd.f32 %v15923_v26, %v6600_v16  ;;  %11475 = vmatmul.mubr.msk.bf16.gmra.mxu0 %vm580_vm3, %v10486_v36  ;;  %v8285_v33 = vrot.slane %v15785_v43, 7  ;;  %v16060_v36 = vld [vmem:[%s11862_s17 + $0x70] sm:$0xf]  ;;  %v10497_v55 = vrot.slane %v15815_v15, 11 }
 0x3c0   : > { %11498 = vmatprep.mubr.msk.bf16.mxu0 %vm580_vm3, %v10547_v38  ;;  %v16047_v19 = vsel %vm15618_vm5, %v10495_v56, %v8275_v59  ;;  %v8277_v13 = vrot.slane %v8275_v59, 4  ;;  %v16050_v38 = vld [vmem:[%s11862_s17 + $0x6c] sm:$0xf]  ;;  %v16055_v16 = vsel %vm15618_vm5, %v10496_v18, %v8282_v28  ;;  %v8284_v43 = vrot.slane %v8282_v28, 4 }
 0x3c1   : > { %v6670_v7 = vpack.c.bf16 %v6642_v37, %v6641_v11  ;;  %v6640_v52 = vmax.f32 %v6624_v63, 0.0  ;;  %v9210_v11 = vsel %vm605_vm0, %v15949_v49, 0  ;;  %v10549_v59 = vcombine.low %v16035_v0, %v16043_v41 }
 0x3c2   : > { %v16065_v56 = vsel %vm15618_vm5, %v8277_v13, %v8278_v2  ;;  %v16073_v28 = vsel %vm15618_vm5, %v8284_v43, %v8285_v33  ;;  %v16100_v43 = vld [vmem:[%s11862_s17 + $0x78] sm:$0xf]  ;;  %v10500_v50 = vrot.slane %v15896_v12, 11  ;;  %v8310_v45 = vrot.slane %v15906_v5, 7 }
 0x3c3   : > { %v11332_v34 = vpop.f32.mrf.mxu1  ;;  %v6669_v63 = vpack.c.bf16 %v6640_v52, %v6639_v46  ;;  %v11351_v52 = vpop.f32.mrf.mxu0  ;;  %v17696_v10 = vshll.u32 %v16150_v48, 16  ;;  %v17705_v12 = vcombine.low %v16047_v19, %v16065_v56 }
 0x3c4   : > { %v6335_v37 = vadd.f32 %v11332_v34, %v15792_v8  ;;  %v10550_v34 = vcombine.low %v16050_v38, %v16060_v36 }
 0x3c5   : > { %v6294_v20 = vpop.f32.mrf.mxu1  ;;  %11376 = vmatprep.mubr.bf16.mxu1 %v6669_v63  ;;  %v8292_v63 = vrot.slane %v15825_v24, 7 }
 0x3c6   : > { %v6605_v46 = vadd.f32 %v11350_v27, %v6335_v37  ;;  %v6333_v2 = vadd.f32 %v6294_v20, %v15800_v60  ;;  %11377 = vmatmul.mubr.bf16.gmra.mxu1 %v6670_v7  ;;  %v8289_v27 = vrot.slane %v15818_v1, 7 }
 0x3c7   : > { %v11333_v18 = vpop.f32.mrf.mxu1  ;;  %11499 = vmatmul.mubr.msk.bf16.vlgmr.msra.gmra.mxu0 %vm580_vm3, %v10548_v57 }
 0x3c8   : > { %v6629_v37 = vadd.f32 %v15923_v26, %v6605_v46  ;;  %v6603_v60 = vadd.f32 %v6564_v17, %v6333_v2  ;;  %v6336_v20 = vadd.f32 %v11333_v18, %v15811_v9  ;;  %11533 = vmatpush3.bf16.msra.mxu0 %v9210_v11  ;;  %11502 = vmatprep.mubr.msk.bf16.mxu0 %vm580_vm3, %v10549_v59  ;;  %v8291_v46 = vrot.slane %v8289_v27, 4  ;;  %v6567_v2 = vpop.f32.mrf.mxu0  ;;  %v16103_v59 = vld [vmem:[%s11862_s17 + $0x7c] sm:$0xf] }
 0x3c9   : > { %v6297_v7 = vpop.f32.mrf.mxu1  ;;  %v16093_v13 = vsel %vm15618_vm5, %v10497_v55, %v8289_v27  ;;  %v10498_v17 = vrot.slane %v15838_v62, 11  ;;  %v8296_v9 = vrot.slane %v15843_v32, 7 }
 0x3ca   : > { %17640 = vst [vmem:[#allocation35_spill] sm:$0xff] %v16093_v13  ;;  %v6645_v18 = vmax.f32 %v6629_v37, 0.0  ;;  %v6627_v57 = vadd.f32 %v15923_v26, %v6603_v60  ;;  %v6606_v24 = vadd.f32 %v11351_v52, %v6336_v20  ;;  %v6334_v11 = vadd.f32 %v6297_v7, %v15827_v22  ;;  %v16115_v60 = vld [vmem:[%s11862_s17 + $0x84] sm:$0xf]  ;;  %v16118_v52 = vld [vmem:[%s11862_s17 + $0x88] sm:$0xf] }
 0x3cb   : > { %v16107_v55 = vsel %vm15618_vm5, %v8291_v46, %v8292_v63  ;;  %v16111_v27 = vsel %vm15618_vm5, %v10498_v17, %v8296_v9  ;;  %v8298_v33 = vrot.slane %v8296_v9, 4  ;;  %v8299_v37 = vrot.slane %v15856_v40, 7  ;;  %v16144_v17 = vld [vmem:[%s11862_s17 + $0x94] sm:$0xf] }
 0x3cc   : > { %17641 = vst [vmem:[#allocation43_spill] sm:$0xff] %v16107_v55  ;;  %17642 = vst [vmem:[#allocation48_spill] sm:$0xff] %v16111_v27  ;;  %v6643_v22 = vmax.f32 %v6627_v57, 0.0  ;;  %v6630_v20 = vadd.f32 %v15923_v26, %v6606_v24  ;;  %v6604_v7 = vadd.f32 %v6567_v2, %v6334_v11  ;;  %v10551_v40 = vcombine.low %v16100_v43, %v16103_v59  ;;  %v11354_v57 = vpop.f32.mrf.mxu0  ;;  %v17645_v27 = vld [vmem:[#allocation18_spill] sm:$0xff] }
 0x3cd   : > { %v16125_v46 = vsel %vm15618_vm5, %v8298_v33, %v8299_v37  ;;  %v10552_v11 = vcombine.low %v16115_v60, %v16118_v52  ;;  %v16137_v33 = vld [vmem:[%s11862_s17 + $0x90] sm:$0xf]  ;;  %v10499_v9 = vrot.slane %v15873_v35, 11  ;;  %v8306_v24 = vrot.slane %v15887_v47, 7 }
 0x3ce   : > { %17643 = vst [vmem:[#allocation6_spill] sm:$0xff] %v16125_v46  ;;  %v6646_v8 = vmax.f32 %v6630_v20, 0.0  ;;  %v6628_v2 = vadd.f32 %v15923_v26, %v6604_v7  ;;  %v8303_v20 = vrot.slane %v15876_v53, 7  ;;  %v10553_v42 = vcombine.low %v16137_v33, %v16144_v17 }
 0x3cf   : > { %11503 = vmatmul.mubr.msk.bf16.gmra.mxu0 %vm580_vm3, %v10550_v34  ;;  %v6580_v34 = vpop.f32.mrf.mxu0  ;;  %v8312_v55 = vrot.slane %v8310_v45, 4 }
 0x3d0   : > { %v6672_v7 = vpack.c.bf16 %v6646_v8, %v6645_v18  ;;  %v6644_v49 = vmax.f32 %v6628_v2, 0.0  ;;  %11506 = vmatprep.mubr.msk.bf16.mxu0 %vm580_vm3, %v10551_v40  ;;  %v16155_v63 = vsel %vm15618_vm5, %v10499_v9, %v8303_v20  ;;  %v8305_v37 = vrot.slane %v8303_v20, 4  ;;  %v16160_v18 = vld [vmem:[%s11862_s17 + $0xa0] sm:$0xf]  ;;  %v17650_v40 = vld [vmem:[#allocation30_spill] sm:$0xff] }
 0x3d1   : > { %17644 = vst [vmem:[#allocation50_spill] sm:$0xff] %v16155_v63  ;;  %v8313_v8 = vrot.slane %v15911_v30, 7  ;;  %v11336_v2 = vpop.f32.mrf.mxu1  ;;  %v16173_v30 = vsel %vm15618_vm5, %v10500_v50, %v8310_v45  ;;  %v10501_v45 = vrot.slane %v15936_v6, 11  ;;  %v8320_v63 = vrot.slane %v17650_v40, 7 }
 0x3d2   : > { %v6671_v47 = vpack.c.bf16 %v6644_v49, %v6643_v22  ;;  %v6339_v9 = vadd.f32 %v11336_v2, %v17645_v27  ;;  %v16169_v20 = vsel %vm15618_vm5, %v8305_v37, %v8306_v24  ;;  %17647 = vst [vmem:[#allocation51_spill] sm:$0xff] %v16173_v30  ;;  %v10554_v22 = vcombine.low %v16150_v48, %v16160_v18  ;;  %v17648_v24 = vld [vmem:[#allocation39_spill] sm:$0xff] }
 0x3d3   : > { %17646 = vst [vmem:[#allocation18_spill] sm:$0xff] %v16169_v20  ;;  %v6310_v13 = vpop.f32.mrf.mxu1  ;;  %v16184_v50 = vsel %vm15618_vm5, %v8312_v55, %v8313_v8  ;;  %v8317_v20 = vrot.slane %v15944_v25, 7  ;;  %v8324_v8 = vrot.slane %v15973_v14, 7  ;;  %v8327_v40 = vrot.slane %v15977_v39, 7 }
 0x3d4   : > { %11380 = vmatprep.mubr.bf16.mxu1 %v6671_v47  ;;  %v6609_v2 = vadd.f32 %v11354_v57, %v6339_v9  ;;  %v6337_v37 = vadd.f32 %v6310_v13, %v17648_v24  ;;  %17649 = vst [vmem:[#allocation39_spill] sm:$0xff] %v16184_v50  ;;  %v11355_v47 = vpop.f32.mrf.mxu0  ;;  %v10502_v57 = vrot.slane %v15964_v61, 11  ;;  %v17651_v9 = vld [vmem:[#allocation13_spill] sm:$0xff]  ;;  %v10580_v50 = vrot.slane %v15996_v4, 11 }
 0x3d5   : > { %11381 = vmatmul.mubr.bf16.gmra.mxu1 %v6672_v7  ;;  %v11337_v46 = vpop.f32.mrf.mxu1  ;;  %v16198_v49 = vsel %vm15618_vm5, %v10501_v45, %v8317_v20  ;;  %v8319_v27 = vrot.slane %v8317_v20, 4  ;;  %v8326_v20 = vrot.slane %v8324_v8, 4 }
 0x3d6   : > { %v6633_v13 = vadd.f32 %v15923_v26, %v6609_v2  ;;  %v6607_v7 = vadd.f32 %v6580_v34, %v6337_v37  ;;  %v6340_v55 = vadd.f32 %v11337_v46, %v17651_v9  ;;  %v10524_v37 = vld [vmem:[%s11862_s17 + $0x50] sm:$0x7]  ;;  %v16212_v39 = vsel %vm15618_vm5, %v10502_v57, %v8324_v8 }
 0x3d7   : > { %v6313_v24 = vpop.f32.mrf.mxu1  ;;  %11507 = vmatmul.mubr.msk.bf16.gmra.mxu0 %vm580_vm3, %v10552_v11  ;;  %v6583_v11 = vpop.f32.mrf.mxu0  ;;  %v16208_v45 = vsel %vm15618_vm5, %v8319_v27, %v8320_v63  ;;  %v9108_v57 = vrot.slane %v10524_v37, 7 }
 0x3d8   : > { %v6649_v30 = vmax.f32 %v6633_v13, 0.0  ;;  %v6631_v34 = vadd.f32 %v15923_v26, %v6607_v7  ;;  %v6610_v2 = vadd.f32 %v11355_v47, %v6340_v55  ;;  %v6338_v46 = vadd.f32 %v6313_v24, %v16010_v21  ;;  %11510 = vmatprep.mubr.msk.bf16.mxu0 %vm580_vm3, %v10553_v42  ;;  %17652 = vst [vmem:[#allocation30_spill] sm:$0xff] %v16208_v45  ;;  %v10527_v42 = vld [vmem:[%s11862_s17 + $0x5c] sm:$0x7] }
 0x3d9   : > { %v9105_v13 = vrot.slane %v15999_v54, 7  ;;  %v16221_v55 = vsel %vm15618_vm5, %v8326_v20, %v8327_v40  ;;  %v9115_v40 = vrot.slane %v10527_v42, 7  ;;  %v17654_v20 = vshrl.u32 %v15996_v4, 16 }
 0x3da   : > { %v6647_v9 = vmax.f32 %v6631_v34, 0.0  ;;  %v6634_v47 = vadd.f32 %v15923_v26, %v6610_v2  ;;  %v6608_v7 = vadd.f32 %v6583_v11, %v6338_v46  ;;  %17653 = vst [vmem:[#allocation13_spill] sm:$0xff] %v16221_v55  ;;  %v10581_v2 = vrot.slane %v16013_v58, 11 }
 0x3db   : > { %v9106_v63 = vsel %vm15618_vm5, %v10580_v50, %v9105_v13  ;;  %v9107_v27 = vrot.slane %v9105_v13, 4  ;;  %v9112_v11 = vrot.slane %v16016_v31, 7  ;;  %v8708_v21 = vrot.slane %v17654_v20, 5 }
 0x3dc   : > { %v6650_v8 = vmax.f32 %v6634_v47, 0.0  ;;  %v6632_v24 = vadd.f32 %v15923_v26, %v6608_v7  ;;  %v17655_v47 = vshll.u32 %v15996_v4, 16 }
 0x3dd   : > { %v9109_v46 = vsel %vm15618_vm5, %v9107_v27, %v9108_v57  ;;  %v9113_v7 = vsel %vm15618_vm5, %v10581_v2, %v9112_v11  ;;  %v9114_v34 = vrot.slane %v9112_v11, 4  ;;  %v8715_v27 = vshrl.u32 %v15999_v54, 16 }
 0x3de   : > { %v6674_v50 = vpack.c.bf16 %v6650_v8, %v6649_v30  ;;  %v6648_v13 = vmax.f32 %v6632_v24, 0.0  ;;  %v10589_v45 = vcombine.low %v9106_v63, %v9109_v46  ;;  %v8711_v26 = vrot.slane %v17655_v47, 6 }
 0x3df   : > { %11511 = vmatmul.mubr.msk.bf16.gmra.mxu0 %vm580_vm3, %v10554_v22  ;;  %v8718_v57 = vshll.u32 %v15999_v54, 16  ;;  %v8725_v30 = vshrl.u32 %v10524_v37, 16  ;;  %v8728_v8 = vshll.u32 %v10524_v37, 16  ;;  %v9116_v4 = vsel %vm15618_vm5, %v9114_v34, %v9115_v40  ;;  %v17658_v40 = vld [vmem:[#allocation40_spill] sm:$0xff] }
 0x3e0   : > { %v6673_v55 = vpack.c.bf16 %v6648_v13, %v6647_v9  ;;  %11534 = vmatprep.mubr.msk.bf16.mxu0 %vm580_vm3, %v10589_v45  ;;  %v8712_v20 = vor.u32 %v8711_v26, %v8708_v21  ;;  %v8717_v63 = vrot.slane %v8715_v27, 5  ;;  %v17656_v22 = vshrl.u32 %v16013_v58, 16  ;;  %v17659_v13 = vld [vmem:[#allocation14_spill] sm:$0xff] }
 0x3e1   : > { %v8720_v24 = vrot.slane %v8718_v57, 6  ;;  %v10590_v46 = vcombine.low %v9113_v7, %v9116_v4  ;;  %v8727_v47 = vrot.slane %v8725_v30, 5  ;;  %v8730_v54 = vrot.slane %v8728_v8, 6  ;;  %v10530_v57 = vld [vmem:[%s11862_s17 + $0x68] sm:$0x7] }
 0x3e2   : > { %v8736_v2 = vrot.slane %v17656_v22, 5  ;;  %11384 = vmatprep.mubr.bf16.mxu1 %v6673_v55  ;;  %v8713_v11 = vrot.slane %v8712_v20, 4  ;;  %v17657_v45 = vshll.u32 %v16013_v58, 16  ;;  %v8743_v37 = vshrl.u32 %v16016_v31, 16  ;;  %v10533_v22 = vld [vmem:[%s11862_s17 + $0x74] sm:$0x7] }
 0x3e3   : > { %11385 = vmatmul.mubr.bf16.gmra.mxu1 %v6674_v50  ;;  %v8721_v9 = vor.u32 %v8720_v24, %v8717_v63  ;;  %v8746_v34 = vshll.u32 %v16016_v31, 16  ;;  %v17660_v26 = vcombine.low %v17658_v40, %v17659_v13  ;;  %v8731_v55 = vor.u32 %v8730_v54, %v8727_v47 }
 0x3e4   : > { %v8739_v21 = vrot.slane %v17657_v45, 6  ;;  %v8753_v7 = vshrl.u32 %v10527_v42, 16  ;;  %v8756_v27 = vshll.u32 %v10527_v42, 16  ;;  %v10582_v50 = vrot.slane %v16035_v0, 11 }
 0x3e5   : > { %11408 = vmatprep.mubr.msk.bf16.mxu1 %vm580_vm3, %v17660_v26  ;;  %v8722_v58 = vsel %vm11882_vm4, %v8713_v11, %v8721_v9  ;;  %v8723_v20 = vrot.slane %v8721_v9, 4  ;;  %v8745_v8 = vrot.slane %v8743_v37, 5  ;;  %v8748_v4 = vrot.slane %v8746_v34, 6 }
 0x3e6   : > { %v8740_v30 = vor.u32 %v8739_v21, %v8736_v2  ;;  %v8755_v63 = vrot.slane %v8753_v7, 5  ;;  %v8758_v31 = vrot.slane %v8756_v27, 6  ;;  %v9119_v24 = vrot.slane %v16043_v41, 7 }
 0x3e7   : > { %11535 = vmatmul.mubr.msk.bf16.vlgmr.msra.gmra.mxu0 %vm580_vm3, %v10590_v46  ;;  %v8732_v42 = vsel %vm11882_vm4, %v8723_v20, %v8731_v55  ;;  %v9122_v54 = vrot.slane %v10530_v57, 7  ;;  %v10583_v45 = vrot.slane %v16050_v38, 11  ;;  %v8749_v11 = vor.u32 %v8748_v4, %v8745_v8  ;;  %v17663_v20 = vld [vmem:[#allocation41_spill] sm:$0xff] }
 0x3e8   : > { %v8741_v47 = vrot.slane %v8740_v30, 4  ;;  %v16264_v40 = vcombine.low %v8722_v58, %v8732_v42  ;;  %v8759_v2 = vor.u32 %v8758_v31, %v8755_v63  ;;  %v9120_v9 = vsel %vm15618_vm5, %v10582_v50, %v9119_v24  ;;  %v17664_v30 = vld [vmem:[#allocation42_spill] sm:$0xff]  ;;  %v17668_v42 = vld [vmem:[#allocation5_spill] sm:$0xff] }
 0x3e9   : > { %v9121_v21 = vrot.slane %v9119_v24, 4  ;;  %v9126_v37 = vrot.slane %v16060_v36, 7  ;;  %v9129_v34 = vrot.slane %v10533_v22, 7  ;;  %v17661_v46 = vshrl.u32 %v16035_v0, 16  ;;  %v17666_v24 = vld [vmem:[#allocation16_spill] sm:$0xff] }
 0x3ea   : > { %v8750_v26 = vsel %vm11882_vm4, %v8741_v47, %v8749_v11  ;;  %v8751_v55 = vrot.slane %v8749_v11, 4  ;;  %v17662_v7 = vshll.u32 %v16035_v0, 16  ;;  %v8771_v58 = vshrl.u32 %v16043_v41, 16  ;;  %v17667_v0 = vld [vmem:[#allocation7_spill] sm:$0xff] }
 0x3eb   : > { %v8764_v13 = vrot.slane %v17661_v46, 5  ;;  %v17665_v8 = vcombine.low %v17663_v20, %v17664_v30  ;;  %v9123_v50 = vsel %vm15618_vm5, %v9121_v21, %v9122_v54  ;;  %v9127_v4 = vsel %vm15618_vm5, %v10583_v45, %v9126_v37  ;;  %v17670_v54 = vld [vmem:[#allocation4_spill] sm:$0xff] }
 0x3ec   : > { %v8767_v27 = vrot.slane %v17662_v7, 6  ;;  %v9128_v63 = vrot.slane %v9126_v37, 4  ;;  %v8774_v31 = vshll.u32 %v16043_v41, 16  ;;  %v17669_v47 = vcombine.low %v17667_v0, %v17668_v42 }
 0x3ed   : > { %11409 = vmatmul.mubr.msk.bf16.vlgmr.msra.gmra.mxu1 %vm580_vm3, %v17665_v8  ;;  %v8760_v11 = vsel %vm11882_vm4, %v8751_v55, %v8759_v2  ;;  %v10591_v46 = vcombine.low %v9120_v9, %v9123_v50  ;;  %v8773_v20 = vrot.slane %v8771_v58, 5  ;;  %v8781_v37 = vshrl.u32 %v10530_v57, 16 }
 0x3ee   : > { %11443 = vmatpush3.bf16.msra.mxu1 %v17666_v24  ;;  %11412 = vmatprep.mubr.msk.bf16.mxu1 %vm580_vm3, %v17669_v47  ;;  %v8768_v7 = vor.u32 %v8767_v27, %v8764_v13  ;;  %v16294_v45 = vcombine.low %v8750_v26, %v8760_v11  ;;  %v9130_v41 = vsel %vm15618_vm5, %v9128_v63, %v9129_v34  ;;  %v8776_v21 = vrot.slane %v8774_v31, 6  ;;  %v10536_v31 = vld [vmem:[%s11862_s17 + $0x80] sm:$0x7] }
 0x3ef   : > { %11622 = vmatprep.subr.msk.bf16.mxu1 %vm605_vm0, %v17670_v54  ;;  %11538 = vmatprep.mubr.msk.bf16.mxu0 %vm580_vm3, %v10591_v46  ;;  %v10592_v30 = vcombine.low %v9127_v4, %v9130_v41  ;;  %v8784_v24 = vshll.u32 %v10530_v57, 16  ;;  %v17671_v2 = vshrl.u32 %v16050_v38, 16  ;;  %v8783_v55 = vrot.slane %v8781_v37, 5  ;;  %v17674_v54 = vld [vmem:[#allocation29_spill] sm:$0xff] }
 0x3f0   : > { %v8769_v8 = vrot.slane %v8768_v7, 4  ;;  %v8777_v13 = vor.u32 %v8776_v21, %v8773_v20  ;;  %v17672_v27 = vshll.u32 %v16050_v38, 16  ;;  %v8799_v58 = vshrl.u32 %v16060_v36, 16  ;;  %v17673_v20 = vld [vmem:[#allocation28_spill] sm:$0xff] }
 0x3f1   : > { %v8792_v9 = vrot.slane %v17671_v2, 5  ;;  %11539 = vmatmul.mubr.msk.bf16.gmra.mxu0 %vm580_vm3, %v10592_v30  ;;  %v8786_v34 = vrot.slane %v8784_v24, 6  ;;  %v8802_v50 = vshll.u32 %v16060_v36, 16  ;;  %v8809_v63 = vshrl.u32 %v10533_v22, 16  ;;  %v10539_v30 = vld [vmem:[%s11862_s17 + $0x8c] sm:$0x7] }
 0x3f2   : > { %v8795_v26 = vrot.slane %v17672_v27, 6  ;;  %v8812_v4 = vshll.u32 %v10533_v22, 16  ;;  %v8778_v57 = vsel %vm11882_vm4, %v8769_v8, %v8777_v13  ;;  %v8779_v0 = vrot.slane %v8777_v13, 4  ;;  %v17676_v8 = vld [vmem:[#allocation33_spill] sm:$0xff]  ;;  %v17677_v24 = vld [vmem:[#allocation34_spill] sm:$0xff] }
 0x3f3   : > { %v8801_v47 = vrot.slane %v8799_v58, 5  ;;  %v8787_v11 = vor.u32 %v8786_v34, %v8783_v55  ;;  %v8804_v38 = vrot.slane %v8802_v50, 6  ;;  %v8811_v46 = vrot.slane %v8809_v63, 5 }
 0x3f4   : > { %v8796_v42 = vor.u32 %v8795_v26, %v8792_v9  ;;  %v8814_v7 = vrot.slane %v8812_v4, 6  ;;  %v17675_v41 = vcombine.low %v17673_v20, %v17674_v54  ;;  %v10584_v21 = vrot.slane %v16100_v43, 11 }
 0x3f5   : > { %v9133_v22 = vrot.slane %v16103_v59, 7  ;;  %v9136_v37 = vrot.slane %v10536_v31, 7  ;;  %v17678_v2 = vcombine.low %v17676_v8, %v17677_v24  ;;  %v8788_v9 = vsel %vm11882_vm4, %v8779_v0, %v8787_v11 }
 0x3f6   : > { %11413 = vmatmul.mubr.msk.bf16.gmra.mxu1 %vm580_vm3, %v17675_v41  ;;  %v8797_v36 = vrot.slane %v8796_v42, 4  ;;  %v8805_v13 = vor.u32 %v8804_v38, %v8801_v47  ;;  %v8815_v55 = vor.u32 %v8814_v7, %v8811_v46  ;;  %v10585_v27 = vrot.slane %v16115_v60, 11 }
 0x3f7   : > { %11416 = vmatprep.mubr.msk.bf16.mxu1 %vm580_vm3, %v17678_v2  ;;  %v16323_v26 = vcombine.low %v8778_v57, %v8788_v9  ;;  %v9134_v58 = vsel %vm15618_vm5, %v10584_v21, %v9133_v22  ;;  %v9135_v34 = vrot.slane %v9133_v22, 4  ;;  %v9140_v50 = vrot.slane %v16118_v52, 7 }
 0x3f8   : > { %v8806_v63 = vsel %vm11882_vm4, %v8797_v36, %v8805_v13  ;;  %v8807_v4 = vrot.slane %v8805_v13, 4  ;;  %v9143_v42 = vrot.slane %v10539_v30, 7  ;;  %v17679_v20 = vshrl.u32 %v16100_v43, 16  ;;  %v17681_v13 = vld [vmem:[#allocation12_spill] sm:$0xff] }
 0x3f9   : > { %v9137_v47 = vsel %vm15618_vm5, %v9135_v34, %v9136_v37  ;;  %v9141_v57 = vsel %vm15618_vm5, %v10585_v27, %v9140_v50  ;;  %v9142_v11 = vrot.slane %v9140_v50, 4  ;;  %v17680_v38 = vshll.u32 %v16100_v43, 16 }
 0x3fa   : > { %v8820_v0 = vrot.slane %v17679_v20, 5  ;;  %v8816_v7 = vsel %vm11882_vm4, %v8807_v4, %v8815_v55  ;;  %v10593_v54 = vcombine.low %v9134_v58, %v9137_v47  ;;  %v8827_v41 = vshrl.u32 %v16103_v59, 16  ;;  %v17682_v55 = vld [vmem:[#allocation8_spill] sm:$0xff]  ;;  %v17687_v20 = vld [vmem:[#allocation25_spill] sm:$0xff] }
 0x3fb   : > { %v8823_v46 = vrot.slane %v17680_v38, 6  ;;  %v8830_v36 = vshll.u32 %v16103_v59, 16  ;;  %v16342_v21 = vcombine.low %v8806_v63, %v8816_v7  ;;  %v9144_v22 = vsel %vm15618_vm5, %v9142_v11, %v9143_v42  ;;  %v17686_v42 = vld [vmem:[#allocation15_spill] sm:$0xff] }
 0x3fc   : > { %v8837_v8 = vshrl.u32 %v10536_v31, 16  ;;  %11542 = vmatprep.mubr.msk.bf16.mxu0 %vm580_vm3, %v10593_v54  ;;  %v10594_v24 = vcombine.low %v9141_v57, %v9144_v22  ;;  %v8829_v43 = vrot.slane %v8827_v41, 5  ;;  %v8840_v9 = vshll.u32 %v10536_v31, 16  ;;  %v10542_v54 = vld [vmem:[%s11862_s17 + $0x98] sm:$0x7] }
 0x3fd   : > { %v8824_v37 = vor.u32 %v8823_v46, %v8820_v0  ;;  %v8832_v2 = vrot.slane %v8830_v36, 6  ;;  %v17683_v27 = vcombine.low %v17681_v13, %v17682_v55  ;;  %v17684_v34 = vshrl.u32 %v16115_v60, 16 }
 0x3fe   : > { %v8839_v58 = vrot.slane %v8837_v8, 5  ;;  %v17685_v63 = vshll.u32 %v16115_v60, 16  ;;  %v17688_v0 = vcombine.low %v17686_v42, %v17687_v20  ;;  %11543 = vmatmul.mubr.msk.bf16.gmra.mxu0 %vm580_vm3, %v10594_v24  ;;  %v8842_v47 = vrot.slane %v8840_v9, 6  ;;  %v10545_v9 = vld [vmem:[%s11862_s17 + $0xa4] sm:$0x7] }
 0x3ff   : > { %11417 = vmatmul.mubr.msk.bf16.gmra.mxu1 %vm580_vm3, %v17683_v27  ;;  %v8825_v59 = vrot.slane %v8824_v37, 4  ;;  %v8848_v50 = vrot.slane %v17684_v34, 5  ;;  %v8833_v31 = vor.u32 %v8832_v2, %v8829_v43  ;;  %v8855_v57 = vshrl.u32 %v16118_v52, 16 }
 0x400   : > { %v8851_v4 = vrot.slane %v17685_v63, 6  ;;  %11420 = vmatprep.mubr.msk.bf16.mxu1 %vm580_vm3, %v17688_v0  ;;  %v8858_v11 = vshll.u32 %v16118_v52, 16  ;;  %v8865_v46 = vshrl.u32 %v10539_v30, 16  ;;  %v8868_v7 = vshll.u32 %v10539_v30, 16  ;;  %v17690_v0 = vld [vmem:[#allocation11_spill] sm:$0xff] }
 0x401   : > { %v10586_v60 = vrot.slane %v16137_v33, 11  ;;  %v8834_v41 = vsel %vm11882_vm4, %v8825_v59, %v8833_v31  ;;  %v8835_v36 = vrot.slane %v8833_v31, 4  ;;  %v8843_v22 = vor.u32 %v8842_v47, %v8839_v58  ;;  %v17691_v31 = vld [vmem:[#allocation10_spill] sm:$0xff] }
 0x402   : > { %v8852_v38 = vor.u32 %v8851_v4, %v8848_v50  ;;  %v8857_v37 = vrot.slane %v8855_v57, 5  ;;  %v8860_v24 = vrot.slane %v8858_v11, 6  ;;  %v8867_v43 = vrot.slane %v8865_v46, 5 }
 0x403   : > { %v8870_v2 = vrot.slane %v8868_v7, 6  ;;  %v8844_v52 = vsel %vm11882_vm4, %v8835_v36, %v8843_v22  ;;  %v9147_v13 = vrot.slane %v16144_v17, 7  ;;  %v9150_v30 = vrot.slane %v10542_v54, 7 }
 0x404   : > { %v8853_v8 = vrot.slane %v8852_v38, 4  ;;  %v10587_v55 = vrot.slane %v16150_v48, 11  ;;  %v16371_v27 = vcombine.low %v8834_v41, %v8844_v52  ;;  %v8861_v34 = vor.u32 %v8860_v24, %v8857_v37 }
 0x405   : > { %v8871_v59 = vor.u32 %v8870_v2, %v8867_v43  ;;  %v9154_v58 = vrot.slane %v16160_v18, 7  ;;  %v9148_v50 = vsel %vm15618_vm5, %v10586_v60, %v9147_v13  ;;  %v9149_v63 = vrot.slane %v9147_v13, 4 }
 0x406   : > { %v9157_v4 = vrot.slane %v10545_v9, 7  ;;  %v17689_v42 = vshrl.u32 %v16137_v33, 16  ;;  %v17692_v47 = vcombine.low %v17690_v0, %v17691_v31  ;;  %v8862_v57 = vsel %vm11882_vm4, %v8853_v8, %v8861_v34 }
 0x407   : > { %v8863_v11 = vrot.slane %v8861_v34, 4  ;;  %v9155_v38 = vsel %vm15618_vm5, %v10587_v55, %v9154_v58  ;;  %v9156_v46 = vrot.slane %v9154_v58, 4  ;;  %v17693_v7 = vcombine.low %v15734_v29, %v15743_v3 }
 0x408   : > { %v8876_v20 = vrot.slane %v17689_v42, 5  ;;  %11421 = vmatmul.mubr.msk.bf16.gmra.mxu1 %vm580_vm3, %v17692_v47  ;;  %v9151_v60 = vsel %vm15618_vm5, %v9149_v63, %v9150_v30  ;;  %v17694_v41 = vshll.u32 %v16137_v33, 16  ;;  %v8883_v22 = vshrl.u32 %v16144_v17, 16 }
 0x409   : > { %11444 = vmatprep.mubr.msk.bf16.mxu1 %vm580_vm3, %v17693_v7  ;;  %v8886_v37 = vshll.u32 %v16144_v17, 16  ;;  %v8872_v8 = vsel %vm11882_vm4, %v8863_v11, %v8871_v59  ;;  %v10595_v24 = vcombine.low %v9148_v50, %v9151_v60  ;;  %v9158_v43 = vsel %vm15618_vm5, %v9156_v46, %v9157_v4  ;;  %v17698_v7 = vld [vmem:[#allocation17_spill] sm:$0xff] }
 0x40a   : > { %v8879_v36 = vrot.slane %v17694_v41, 6  ;;  %v8893_v29 = vshrl.u32 %v10542_v54, 16  ;;  %v16400_v3 = vcombine.low %v8862_v57, %v8872_v8  ;;  %v10596_v2 = vcombine.low %v9155_v38, %v9158_v43 }
 0x40b   : > { %v8885_v13 = vrot.slane %v8883_v22, 5  ;;  %11546 = vmatprep.mubr.msk.bf16.mxu0 %vm580_vm3, %v10595_v24  ;;  %v8888_v33 = vrot.slane %v8886_v37, 6  ;;  %v8896_v55 = vshll.u32 %v10542_v54, 16  ;;  %v17695_v17 = vshrl.u32 %v16150_v48, 16  ;;  %v10563_v54 = vld [vmem:[%s16982_s2 + $0x32] sm:$0x3]  ;;  %v16429_v24 = vpop.f32.mrf.mxu0 }
 0x40c   : > { %v8880_v52 = vor.u32 %v8879_v36, %v8876_v20  ;;  %v8895_v30 = vrot.slane %v8893_v29, 5  ;;  %11547 = vmatmul.mubr.msk.bf16.gmra.mxu0 %vm580_vm3, %v10596_v2  ;;  %v8907_v58 = vrot.slane %v17696_v10, 6  ;;  %v8911_v50 = vshrl.u32 %v16160_v18, 16 }
 0x40d   : > { %v8904_v34 = vrot.slane %v17695_v17, 5  ;;  %v8914_v63 = vshll.u32 %v16160_v18, 16  ;;  %v8889_v4 = vor.u32 %v8888_v33, %v8885_v13  ;;  %v8898_v42 = vrot.slane %v8896_v55, 6  ;;  %v16433_v43 = vpop.f32.mrf.mxu0 }
 0x40e   : > { %v8881_v59 = vrot.slane %v8880_v52, 4  ;;  %v8921_v20 = vshrl.u32 %v10545_v9, 16  ;;  %v8924_v0 = vshll.u32 %v10545_v9, 16  ;;  %v8913_v47 = vrot.slane %v8911_v50, 5 }
 0x40f   : > { %v8908_v31 = vor.u32 %v8907_v58, %v8904_v34  ;;  %v8916_v57 = vrot.slane %v8914_v63, 6  ;;  %v17697_v11 = vcombine.low %v15767_v23, %v15777_v44  ;;  %v8891_v18 = vrot.slane %v8889_v4, 4  ;;  %v16443_v52 = vpop.f32.mrf.mxu0  ;;  %v17710_v34 = vld [vmem:[#allocation48_spill] sm:$0xff] }
 0x410   : > { %v8890_v48 = vsel %vm11882_vm4, %v8881_v59, %v8889_v4  ;;  %v8899_v38 = vor.u32 %v8898_v42, %v8895_v30  ;;  %v8923_v46 = vrot.slane %v8921_v20, 5  ;;  %v17699_v9 = vcombine.low %v15815_v15, %v15818_v1  ;;  %v17711_v59 = vld [vmem:[#allocation6_spill] sm:$0xff]  ;;  %v17717_v42 = vld [vmem:[#allocation51_spill] sm:$0xff] }
 0x411   : > { %11445 = vmatmul.mubr.msk.bf16.vlgmr.msra.gmra.mxu1 %vm580_vm3, %v17697_v11  ;;  %v8909_v60 = vrot.slane %v8908_v31, 4  ;;  %v8917_v41 = vor.u32 %v8916_v57, %v8913_v47  ;;  %v8926_v36 = vrot.slane %v8924_v0, 6  ;;  %v17700_v29 = vcombine.low %v15838_v62, %v15843_v32  ;;  %v16445_v13 = vpop.f32.mrf.mxu0  ;;  %v17718_v20 = vld [vmem:[#allocation39_spill] sm:$0xff] }
 0x412   : > { %11479 = vmatpush3.bf16.msra.mxu1 %v17698_v7  ;;  %11448 = vmatprep.mubr.msk.bf16.mxu1 %vm580_vm3, %v17699_v9  ;;  %v8900_v44 = vsel %vm11882_vm4, %v8891_v18, %v8899_v38  ;;  %v17701_v2 = vcombine.low %v15873_v35, %v15876_v53  ;;  %v17703_v33 = vcombine.low %v15936_v6, %v15944_v25  ;;  %v8980_v6 = vsel %vm605_vm0, %v10563_v54, 0  ;;  %v17723_v18 = vld [vmem:[#allocation13_spill] sm:$0xff] }
 0x413   : > { %11624 = vmatprep.subr.msk.bf16.mxu1 %vm605_vm0, %v10563_v54  ;;  %v10570_v23 = vcombine.low %v8890_v48, %v8900_v44  ;;  %v8918_v22 = vsel %vm11882_vm4, %v8909_v60, %v8917_v41  ;;  %v8919_v37 = vrot.slane %v8917_v41, 4  ;;  %v8927_v8 = vor.u32 %v8926_v36, %v8923_v46  ;;  %v17720_v54 = vld [vmem:[#allocation30_spill] sm:$0xff] }
 0x414   : > { %v17704_v53 = vcombine.low %v15964_v61, %v15973_v14  ;;  %v17706_v30 = vcombine.low %v16055_v16, %v16073_v28  ;;  %v17707_v61 = vld [vmem:[#allocation35_spill] sm:$0xff]  ;;  %v17712_v10 = vcombine.low %v17710_v34, %v17711_v59  ;;  %v17713_v16 = vld [vmem:[#allocation50_spill] sm:$0xff]  ;;  %v17719_v0 = vcombine.low %v17717_v42, %v17718_v20  ;;  %v17739_v42 = vld [vmem:[#allocation20_spill] sm:$0xff] }
 0x415   : > { %v8928_v15 = vsel %vm11882_vm4, %v8919_v37, %v8927_v8  ;;  %v17708_v14 = vld [vmem:[#allocation43_spill] sm:$0xff]  ;;  %v17714_v28 = vld [vmem:[#allocation18_spill] sm:$0xff]  ;;  %v17721_v31 = vcombine.low %v16198_v49, %v17720_v54  ;;  %v17724_v38 = vcombine.low %v16212_v39, %v17723_v18  ;;  %v17729_v8 = vld [vmem:[#allocation37_spill] sm:$0xff] }
 0x416   : > { %v10571_v1 = vcombine.low %v8918_v22, %v8928_v15  ;;  %v17709_v55 = vcombine.low %v17707_v61, %v17708_v14  ;;  %v17715_v58 = vcombine.low %v17713_v16, %v17714_v28  ;;  %v17736_v59 = vld [vmem:[#allocation19_spill] sm:$0xff]  ;;  %v17741_v54 = vld [vmem:[#allocation44_spill] sm:$0xff] }
 0x417   : > { %v11718_v28 = vld [vmem:[%s16983_s3 + $0xe0] sm:$0xff]  }
 0x419   : > { %11449 = vmatmul.mubr.msk.bf16.gmra.mxu1 %vm580_vm3, %v17700_v29  ;;  %v16455_v32 = vpop.f32.mrf.mxu0  ;;  %v17731_v29 = vld [vmem:[#allocation21_spill] sm:$0xff] }
 0x41a   : > { %11452 = vmatprep.mubr.msk.bf16.mxu1 %vm580_vm3, %v17701_v2 }
 0x41b   : > { %v16457_v62 = vpop.f32.mrf.mxu0 }
 0x41d   : > { %v16459_v35 = vpop.f32.mrf.mxu0 }
 0x41f   : > { %v16469_v5 = vpop.f32.mrf.mxu0 }
 0x421   : > { %11453 = vmatmul.mubr.msk.bf16.gmra.mxu1 %vm580_vm3, %v17702_v51 }
 0x422   : > { %11456 = vmatprep.mubr.msk.bf16.mxu1 %vm580_vm3, %v17703_v33  ;;  %v11715_v33 = vld [vmem:[%s16983_s3 + $0xf8] sm:$0xff]  }
 0x427   : > { %v16472_v25 = vpop.f32.mrf.mxu0 }
 0x429   : > { %11457 = vmatmul.mubr.msk.bf16.gmra.mxu1 %vm580_vm3, %v17704_v53  ;;  %v16482_v19 = vpop.f32.mrf.mxu0  ;;  %v17733_v53 = vld [vmem:[#allocation26_spill] sm:$0xff] }
 0x42a   : > { %11480 = vmatprep.mubr.msk.bf16.mxu1 %vm580_vm3, %v17705_v12 }
 0x42b   : > { %v16484_v56 = vpop.f32.mrf.mxu0 }
 0x42d   : > { %v16486_v17 = vpop.f32.mrf.mxu0 }
 0x431   : > { %11481 = vmatmul.mubr.msk.bf16.vlgmr.msra.gmra.mxu1 %vm580_vm3, %v17706_v30  ;;  %v11716_v30 = vld [vmem:[%s16983_s3 + $0xf0] sm:$0xff]  }
 0x432   : > { %11515 = vmatpush3.bf16.msra.mxu1 %v8980_v6  ;;  %11484 = vmatprep.mubr.msk.bf16.mxu1 %vm580_vm3, %v17709_v55  ;;  %v11717_v55 = vld [vmem:[%s16983_s3 + $0xe8] sm:$0xff]  }
 0x433   : > { %11550 = vmatprep.subr.bf16.mxu1 %v11715_v33 }
 0x435   : > { %v16496_v50 = vpop.f32.mrf.mxu0 }
 0x437   : > { %v16498_v63 = vpop.f32.mrf.mxu0 }
 0x439   : > { %11485 = vmatmul.mubr.msk.bf16.gmra.mxu1 %vm580_vm3, %v17712_v10  ;;  %v16500_v4 = vpop.f32.mrf.mxu0 }
 0x43a   : > { %11488 = vmatprep.mubr.msk.bf16.mxu1 %vm580_vm3, %v17715_v58  ;;  %17716 = vst [vmem:[#allocation40_spill] sm:$0xff] %v16500_v4 }
 0x43b   : > { %v16510_v47 = vpop.f32.mrf.mxu0 }
 0x43c   : > { %17722 = vst [vmem:[#allocation14_spill] sm:$0xff] %v16510_v47 }
 0x43d   : > { %v16512_v57 = vpop.f32.mrf.mxu0 }
 0x43f   : > { %v16514_v11 = vpop.f32.mrf.mxu0 }
 0x441   : > { %11489 = vmatmul.mubr.msk.bf16.gmra.mxu1 %vm580_vm3, %v17719_v0  ;;  %v16516_v48 = vpop.f32.mrf.mxu0 }
 0x442   : > { %11492 = vmatprep.mubr.msk.bf16.mxu1 %vm580_vm3, %v17721_v31 }
 0x443   : > { %v16524_v46 = vpop.f32.mrf.mxu0 }
 0x445   : > { %v16526_v49 = vpop.f32.mrf.mxu0 }
 0x447   : > { %v16528_v7 = vpop.f32.mrf.mxu0 }
 0x449   : > { %11493 = vmatmul.mubr.msk.bf16.gmra.mxu1 %vm580_vm3, %v17724_v38  ;;  %v16530_v9 = vpop.f32.mrf.mxu0  ;;  %v11719_v38 = vld [vmem:[%s16983_s3 + $0xd8] sm:$0xff]  }
 0x44a   : > { %11516 = vmatprep.mubr.msk.bf16.mxu1 %vm580_vm3, %v16264_v40 }
 0x44b   : > { %v16536_v39 = vpop.f32.mrf.mxu0 }
 0x44d   : > { %v16538_v60 = vpop.f32.mrf.mxu0 }
 0x44f   : > { %v16542_v40 = vpop.f32.mrf.mxu0 }
 0x451   : > { %11517 = vmatmul.mubr.msk.bf16.vlgmr.msra.gmra.mxu1 %vm580_vm3, %v16294_v45  ;;  %v16546_v41 = vpop.f32.mrf.mxu0 }
 0x452   : > { %11520 = vmatprep.mubr.msk.bf16.mxu1 %vm580_vm3, %v16323_v26  ;;  %11551 = vmatpush3.bf16.msra.mxu1 %v11715_v33 }
 0x453   : > { %v16550_v45 = vpop.f32.mrf.mxu0  ;;  %11552 = vmatprep.subr.bf16.mxu1 %v11716_v30 }
 0x454   : > { %17725 = vst [vmem:[#allocation41_spill] sm:$0xff] %v16550_v45 }
 0x455   : > { %v16553_v26 = vpop.f32.mrf.mxu0 }
 0x456   : > { %11553 = vmatpush3.bf16.msra.mxu1 %v11716_v30 }
 0x457   : > { %v16556_v36 = vpop.f32.mrf.mxu0  ;;  %11554 = vmatprep.subr.bf16.mxu1 %v11717_v55 }
 0x458   : > { %17726 = vst [vmem:[#allocation42_spill] sm:$0xff] %v16556_v36 }
 0x459   : > { %11521 = vmatmul.mubr.msk.bf16.gmra.mxu1 %vm580_vm3, %v16342_v21  ;;  %v16558_v21 = vpop.f32.mrf.mxu0 }
 0x45a   : > { %11524 = vmatprep.mubr.msk.bf16.mxu1 %vm580_vm3, %v16371_v27  ;;  %17727 = vst [vmem:[#allocation16_spill] sm:$0xff] %v16558_v21  ;;  %11555 = vmatpush3.bf16.msra.mxu1 %v11717_v55 }
 0x45b   : > { %v16560_v44 = vpop.f32.mrf.mxu0  ;;  %11556 = vmatprep.subr.bf16.mxu1 %v11718_v28 }
 0x45c   : > { %17728 = vst [vmem:[#allocation7_spill] sm:$0xff] %v16560_v44 }
 0x45d   : > { %v16562_v27 = vpop.f32.mrf.mxu0 }
 0x45e   : > { %11557 = vmatpush3.bf16.msra.mxu1 %v11718_v28 }
 0x45f   : > { %v16564_v22 = vpop.f32.mrf.mxu0  ;;  %11558 = vmatprep.subr.bf16.mxu1 %v11719_v38 }
 0x461   : > { %11525 = vmatmul.mubr.msk.bf16.gmra.mxu1 %vm580_vm3, %v16400_v3  ;;  %v16566_v3 = vpop.f32.mrf.mxu0 }
 0x462   : > { %11528 = vmatprep.mubr.msk.bf16.mxu1 %vm580_vm3, %v10570_v23  ;;  %11559 = vmatpush3.bf16.msra.mxu1 %v11719_v38 }
 0x463   : > { %v16574_v51 = vpop.f32.mrf.mxu0 }
 0x465   : > { %v16582_v6 = vpop.f32.mrf.mxu0 }
 0x467   : > { %v16589_v14 = vpop.f32.mrf.mxu0 }
 0x469   : > { %11529 = vmatmul.mubr.msk.bf16.gmra.mxu1 %vm580_vm3, %v10571_v1  ;;  %v16597_v16 = vpop.f32.mrf.mxu0 }
 0x46a   : > { %17738 = vst [vmem:[#allocation34_spill] sm:$0xff] %v16597_v16 }
 0x46b   : > { %v16608_v18 = vpop.f32.mrf.mxu0 }
 0x46c   : > { %17743 = vst [vmem:[#allocation15_spill] sm:$0xff] %v16608_v18 }
 0x478   : > { %v11374_v37 = vpop.f32.mrf.mxu1 }
 0x479   : > { %v16569_v15 = vadd.f32 %v11374_v37, %v17729_v8  ;;  %v16613_v37 = vpop.f32.mrf.mxu0  ;;  %v11720_v8 = vld [vmem:[%s16983_s3 + $0xd0] sm:$0xff]  }
 0x47a   : > { %v6774_v23 = vpop.f32.mrf.mxu1  ;;  %11560 = vmatprep.subr.bf16.mxu1 %v11720_v8 }
 0x47b   : > { %17730 = vst [vmem:[#allocation5_spill] sm:$0xff] %v16569_v15  ;;  %v16572_v2 = vadd.f32 %v6774_v23, %v17731_v29  ;;  %11561 = vmatpush3.bf16.msra.mxu1 %v11720_v8  ;;  %v16620_v29 = vpop.f32.mrf.mxu0 }
 0x47c   : > { %v11375_v1 = vpop.f32.mrf.mxu1  ;;  %17745 = vst [vmem:[#allocation11_spill] sm:$0xff] %v16620_v29 }
 0x47d   : > { %17732 = vst [vmem:[#allocation4_spill] sm:$0xff] %v16572_v2  ;;  %v16580_v12 = vadd.f32 %v11375_v1, %v17733_v53  ;;  %v11721_v1 = vld [vmem:[%s16983_s3 + $0xc8] sm:$0xff]   ;;  %v17746_v53 = vld [vmem:[#allocation45_spill] sm:$0xff]  ;;  %v16631_v28 = vpop.f32.mrf.mxu0 }
 0x47e   : > { %v16587_v61 = vpop.f32.mrf.mxu1  ;;  %11562 = vmatprep.subr.bf16.mxu1 %v11721_v1  ;;  %17750 = vst [vmem:[#allocation35_spill] sm:$0xff] %v16631_v28 }
 0x47f   : > { %17734 = vst [vmem:[#allocation28_spill] sm:$0xff] %v16580_v12  ;;  %17735 = vst [vmem:[#allocation29_spill] sm:$0xff] %v16587_v61  ;;  %11563 = vmatpush3.bf16.msra.mxu1 %v11721_v1  ;;  %v16639_v38 = vpop.f32.mrf.mxu0 }
 0x480   : > { %17753 = vst [vmem:[#allocation48_spill] sm:$0xff] %v16639_v38 }
 0x481   : > { %v16643_v1 = vpop.f32.mrf.mxu0 }
 0x486   : > { %v11378_v34 = vpop.f32.mrf.mxu1 }
 0x487   : > { %v16595_v10 = vadd.f32 %v11378_v34, %v17736_v59  ;;  %v17748_v34 = vld [vmem:[#allocation47_spill] sm:$0xff] }
 0x488   : > { %v6790_v58 = vpop.f32.mrf.mxu1 }
 0x489   : > { %17737 = vst [vmem:[#allocation33_spill] sm:$0xff] %v16595_v10  ;;  %v16603_v20 = vadd.f32 %v6790_v58, %v17739_v42  ;;  %v11722_v42 = vld [vmem:[%s16983_s3 + $0xc0] sm:$0xff]  }
 0x48a   : > { %v11379_v0 = vpop.f32.mrf.mxu1  ;;  %11564 = vmatprep.subr.bf16.mxu1 %v11722_v42 }
 0x48b   : > { %17740 = vst [vmem:[#allocation12_spill] sm:$0xff] %v16603_v20  ;;  %v16606_v31 = vadd.f32 %v11379_v0, %v17741_v54  ;;  %v17751_v0 = vld [vmem:[#allocation3_spill] sm:$0xff]  ;;  %11565 = vmatpush3.bf16.msra.mxu1 %v11722_v42 }
 0x48c   : > { %v16618_v23 = vpop.f32.mrf.mxu1 }
 0x48d   : > { %17742 = vst [vmem:[#allocation8_spill] sm:$0xff] %v16606_v31  ;;  %17744 = vst [vmem:[#allocation25_spill] sm:$0xff] %v16618_v23 }
 0x495   : > { %v11382_v33 = vpop.f32.mrf.mxu1 }
 0x496   : > { %v16626_v30 = vadd.f32 %v11382_v33, %v17746_v53  ;;  %v16645_v53 = vpop.f32.mrf.mxu0 }
 0x497   : > { %v6806_v55 = vpop.f32.mrf.mxu1  ;;  %17755 = vst [vmem:[#allocation50_spill] sm:$0xff] %v16645_v53 }
 0x498   : > { %17747 = vst [vmem:[#allocation10_spill] sm:$0xff] %v16626_v30  ;;  %v16629_v59 = vadd.f32 %v6806_v55, %v17748_v34  ;;  %v17756_v55 = vld [vmem:[#allocation49_spill] sm:$0xff]  ;;  %v17758_v30 = vld [vmem:[#allocation38_spill] sm:$0xff] }
 0x499   : > { %v11383_v58 = vpop.f32.mrf.mxu1 }
 0x49a   : > { %17749 = vst [vmem:[#allocation17_spill] sm:$0xff] %v16629_v59  ;;  %v16637_v54 = vadd.f32 %v11383_v58, %v17751_v0  ;;  %v16653_v0 = vpop.f32.mrf.mxu0 }
 0x49b   : > { %v16641_v8 = vpop.f32.mrf.mxu1  ;;  %17760 = vst [vmem:[#allocation39_spill] sm:$0xff] %v16653_v0 }
 0x49c   : > { %17752 = vst [vmem:[#allocation43_spill] sm:$0xff] %v16637_v54  ;;  %17754 = vst [vmem:[#allocation6_spill] sm:$0xff] %v16641_v8  ;;  %v17761_v54 = vld [vmem:[#allocation27_spill] sm:$0xff]  ;;  %v16662_v20 = vpop.f32.mrf.mxu0 }
 0x49d   : > { %17764 = vst [vmem:[#allocation37_spill] sm:$0xff] %v16662_v20 }
 0x4a3   : > { %v11386_v33 = vpop.f32.mrf.mxu1 }
 0x4a4   : > { %v16648_v34 = vadd.f32 %v11386_v33, %v17756_v55  ;;  %v16668_v55 = vpop.f32.mrf.mxu0 }
 0x4a5   : > { %v6822_v59 = vpop.f32.mrf.mxu1 }
 0x4a6   : > { %17757 = vst [vmem:[#allocation18_spill] sm:$0xff] %v16648_v34  ;;  %v16651_v31 = vadd.f32 %v6822_v59, %v17758_v30 }
 0x4a7   : > { %v11387_v58 = vpop.f32.mrf.mxu1 }
 0x4a8   : > { %17759 = vst [vmem:[#allocation51_spill] sm:$0xff] %v16651_v31  ;;  %v16656_v23 = vadd.f32 %v11387_v58, %v17761_v54  ;;  %v16672_v31 = vpop.f32.mrf.mxu0 }
 0x4a9   : > { %v16658_v42 = vpop.f32.mrf.mxu1 }
 0x4aa   : > { %17762 = vst [vmem:[#allocation30_spill] sm:$0xff] %v16656_v23  ;;  %17763 = vst [vmem:[#allocation13_spill] sm:$0xff] %v16658_v42  ;;  %v16678_v58 = vpop.f32.mrf.mxu0 }
 0x4ab   : > { %17765 = vst [vmem:[#allocation21_spill] sm:$0xff] %v16678_v58 }
 0x4ac   : > { %v16682_v12 = vpop.f32.mrf.mxu0 }
 0x4ad   : > { %v16660_v8 = vpop.f32.mrf.mxu1  ;;  %17766 = vst [vmem:[#allocation26_spill] sm:$0xff] %v16682_v12 }
 0x4ae   : > { %v16688_v15 = vpop.f32.mrf.mxu0 }
 0x4af   : > { %v16664_v10 = vpop.f32.mrf.mxu1  ;;  %17767 = vst [vmem:[#allocation19_spill] sm:$0xff] %v16688_v15 }
 0x4b0   : > { %v16692_v53 = vpop.f32.mrf.mxu0 }
 0x4b1   : > { %v16666_v33 = vpop.f32.mrf.mxu1  ;;  %17768 = vst [vmem:[#allocation20_spill] sm:$0xff] %v16692_v53 }
 0x4b2   : > { %v16698_v28 = vpop.f32.mrf.mxu0 }
 0x4b3   : > { %v16670_v30 = vpop.f32.mrf.mxu1  ;;  %17770 = vst [vmem:[#allocation45_spill] sm:$0xff] %v16698_v28 }
 0x4b4   : > { %v16702_v18 = vpop.f32.mrf.mxu0 }
 0x4b5   : > { %17772 = vst [vmem:[#allocation3_spill] sm:$0xff] %v16702_v18 }
 0x4b6   : > { %v11414_v59 = vpop.f32.mrf.mxu1  ;;  %v16705_v47 = vpop.f32.mrf.mxu0 }
 0x4b7   : > { %v7398_v12 = vadd.f32 %v11414_v59, %v16455_v32  ;;  %17773 = vst [vmem:[#allocation49_spill] sm:$0xff] %v16705_v47 }
 0x4b8   : > { %v16674_v34 = vpop.f32.mrf.mxu1  ;;  %v16710_v4 = vpop.f32.mrf.mxu0 }
 0x4b9   : > { %v7659_v53 = vadd.f32 %v16526_v49, %v7398_v12  ;;  %17774 = vst [vmem:[#allocation38_spill] sm:$0xff] %v16710_v4 }
 0x4ba   : > { %v16676_v54 = vpop.f32.mrf.mxu1  ;;  %v16720_v32 = vpop.f32.mrf.mxu0 }
 0x4bb   : > { %17775 = vst [vmem:[#allocation27_spill] sm:$0xff] %v16720_v32 }
 0x4bc   : > { %v16680_v23 = vpop.f32.mrf.mxu1  ;;  %v16725_v12 = vpop.f32.mrf.mxu0 }
 0x4bd   : > { %17776 = vst [vmem:[#allocation52_spill] sm:$0xff] %v16725_v12 }
 0x4bf   : > { %v11418_v42 = vpop.f32.mrf.mxu1 }
 0x4c1   : > { %v16684_v61 = vpop.f32.mrf.mxu1 }
 0x4c3   : > { %v16686_v2 = vpop.f32.mrf.mxu1 }
 0x4c5   : > { %v16690_v20 = vpop.f32.mrf.mxu1 }
 0x4c8   : > { %v11422_v0 = vpop.f32.mrf.mxu1 }
 0x4ca   : > { %v16694_v38 = vpop.f32.mrf.mxu1 }
 0x4cc   : > { %v16696_v44 = vpop.f32.mrf.mxu1 }
 0x4cd   : > { %17769 = vst [vmem:[#allocation44_spill] sm:$0xff] %v16696_v44 }
 0x4ce   : > { %v16700_v29 = vpop.f32.mrf.mxu1 }
 0x4cf   : > { %17771 = vst [vmem:[#allocation47_spill] sm:$0xff] %v16700_v29  ;;  %v7414_v29 = vadd.f32 %v11418_v42, %v16472_v25 }
 0x4d1   : > { %v11446_v21 = vpop.f32.mrf.mxu1  ;;  %v7663_v47 = vadd.f32 %v16538_v60, %v7414_v29 }
 0x4d3   : > { %v7796_v16 = vpop.f32.mrf.mxu1 }
 0x4d5   : > { %v11447_v15 = vpop.f32.mrf.mxu1 }
 0x4d7   : > { %v16707_v36 = vpop.f32.mrf.mxu1 }
 0x4d9   : > { %v11450_v45 = vpop.f32.mrf.mxu1 }
 0x4da   : > { %v7865_v44 = vadd.f32 %v11450_v45, %v7659_v53  ;;  %v7430_v53 = vadd.f32 %v11422_v0, %v16496_v50 }
 0x4db   : > { %v16712_v28 = vpop.f32.mrf.mxu1 }
 0x4dc   : > { %v16716_v18 = vadd.f32 %v16582_v6, %v7865_v44  ;;  %v16735_v6 = vpop.f32.mrf.mxu0  ;;  %v7667_v32 = vadd.f32 %v16553_v26, %v7430_v53 }
 0x4dd   : > { %v16718_v58 = vpop.f32.mrf.mxu1  ;;  %17779 = vst [vmem:[#allocation55_spill] sm:$0xff] %v16735_v6 }
 0x4de   : > { %v16740_v29 = vpop.f32.mrf.mxu0 }
 0x4df   : > { %v16722_v59 = vpop.f32.mrf.mxu1  ;;  %17781 = vst [vmem:[#allocation57_spill] sm:$0xff] %v16740_v29 }
 0x4e1   : > { %v11454_v49 = vpop.f32.mrf.mxu1 }
 0x4e2   : > { %v7869_v4 = vadd.f32 %v11454_v49, %v7663_v47 }
 0x4e3   : > { %v16727_v45 = vpop.f32.mrf.mxu1 }
 0x4e4   : > { %v16731_v25 = vadd.f32 %v16613_v37, %v7869_v4  ;;  %v16749_v4 = vpop.f32.mrf.mxu0 }
 0x4e5   : > { %v16733_v44 = vpop.f32.mrf.mxu1  ;;  %17785 = vst [vmem:[#allocation61_spill] sm:$0xff] %v16749_v4 }
 0x4e6   : > { %17777 = vst [vmem:[#allocation53_spill] sm:$0xff] %v16731_v25  ;;  %17778 = vst [vmem:[#allocation54_spill] sm:$0xff] %v16733_v44  ;;  %v16753_v6 = vpop.f32.mrf.mxu0  ;;  %v7385_v44 = vadd.f32 %v16666_v33, %v16443_v52  ;;  %v7390_v52 = vadd.f32 %v16674_v34, %v16457_v62  ;;  %v7393_v62 = vadd.f32 %v16680_v23, %v16469_v5 }
 0x4e7   : > { %v16737_v42 = vpop.f32.mrf.mxu1  ;;  %17787 = vst [vmem:[#allocation63_spill] sm:$0xff] %v16753_v6 }
 0x4e8   : > { %17780 = vst [vmem:[#allocation56_spill] sm:$0xff] %v16737_v42  ;;  %v16755_v53 = vpop.f32.mrf.mxu0  ;;  %v7657_v34 = vadd.f32 %v16528_v7, %v7390_v52 }
 0x4e9   : > { %v11458_v60 = vpop.f32.mrf.mxu1 }
 0x4ea   : > { %v7873_v12 = vadd.f32 %v11458_v60, %v7667_v32  ;;  %v16757_v60 = vpop.f32.mrf.mxu0 }
 0x4eb   : > { %v16742_v47 = vpop.f32.mrf.mxu1 }
 0x4ec   : > { %17782 = vst [vmem:[#allocation58_spill] sm:$0xff] %v16742_v47  ;;  %v16745_v49 = vadd.f32 %v16643_v1, %v7873_v12  ;;  %v16763_v12 = vpop.f32.mrf.mxu0 }
 0x4ed   : > { %v16747_v50 = vpop.f32.mrf.mxu1  ;;  %17789 = vst [vmem:[#allocation65_spill] sm:$0xff] %v16763_v12 }
 0x4ee   : > { %17783 = vst [vmem:[#allocation59_spill] sm:$0xff] %v16745_v49  ;;  %17784 = vst [vmem:[#allocation60_spill] sm:$0xff] %v16747_v50  ;;  %v7382_v49 = vadd.f32 %v16660_v8, %v16429_v24  ;;  %v7374_v50 = vadd.f32 %v16664_v10, %v16433_v43  ;;  %v7377_v24 = vadd.f32 %v16670_v30, %v16445_v13 }
 0x4ef   : > { %v16751_v37 = vpop.f32.mrf.mxu1  ;;  %v7656_v10 = vadd.f32 %v16516_v48, %v7385_v44  ;;  %v7401_v48 = vadd.f32 %v16676_v54, %v16459_v35  ;;  %v7863_v35 = vadd.f32 %v16712_v28, %v7657_v34 }
 0x4f0   : > { %17786 = vst [vmem:[#allocation62_spill] sm:$0xff] %v16751_v37  ;;  %v16771_v37 = vpop.f32.mrf.mxu0 }
 0x4f1   : > { %v11482_v0 = vpop.f32.mrf.mxu1  ;;  %17792 = vst [vmem:[#allocation68_spill] sm:$0xff] %v16771_v37 }
 0x4f3   : > { %v8416_v25 = vpop.f32.mrf.mxu1 }
 0x4f5   : > { %v11483_v26 = vpop.f32.mrf.mxu1 }
 0x4f7   : > { %v8419_v29 = vpop.f32.mrf.mxu1 }
 0x4f9   : > { %v11486_v32 = vpop.f32.mrf.mxu1 }
 0x4fb   : > { %v16759_v47 = vpop.f32.mrf.mxu1 }
 0x4fd   : > { %v16761_v1 = vpop.f32.mrf.mxu1 }
 0x4fe   : > { %17788 = vst [vmem:[#allocation64_spill] sm:$0xff] %v16761_v1  ;;  %v7655_v1 = vadd.f32 %v16512_v57, %v7382_v49  ;;  %v7862_v49 = vadd.f32 %v11447_v15, %v7656_v10 }
 0x4ff   : > { %v16765_v4 = vpop.f32.mrf.mxu1 }
 0x500   : > { %17790 = vst [vmem:[#allocation66_spill] sm:$0xff] %v16765_v4  ;;  %v16782_v4 = vpop.f32.mrf.mxu0  ;;  %v7861_v8 = vadd.f32 %v11446_v21, %v7655_v1  ;;  %v17796_v1 = vld [vmem:[#allocation44_spill] sm:$0xff] }
 0x501   : > { %v16769_v6 = vpop.f32.mrf.mxu1 }
 0x502   : > { %17791 = vst [vmem:[#allocation67_spill] sm:$0xff] %v16769_v6  ;;  %v7653_v6 = vadd.f32 %v16514_v11, %v7374_v50  ;;  %v16794_v57 = vpop.f32.mrf.mxu0  ;;  %v8251_v13 = vadd.f32 %v16562_v27, %v7861_v8  ;;  %v7406_v27 = vadd.f32 %v16684_v61, %v16482_v19  ;;  %v7422_v19 = vadd.f32 %v16694_v38, %v16498_v63 }
 0x503   : > { %v16775_v42 = vpop.f32.mrf.mxu1  ;;  %v7658_v61 = vadd.f32 %v16536_v39, %v7393_v62  ;;  %v8253_v63 = vadd.f32 %v16589_v14, %v7863_v35  ;;  %v8485_v39 = vadd.f32 %v11486_v32, %v16716_v18  ;;  %v17800_v32 = vld [vmem:[#allocation47_spill] sm:$0xff] }
 0x504   : > { %v7859_v43 = vadd.f32 %v7796_v16, %v7653_v6  ;;  %v8481_v30 = vadd.f32 %v11482_v0, %v8251_v13  ;;  %v7409_v6 = vadd.f32 %v16690_v20, %v16486_v17  ;;  %v7661_v28 = vadd.f32 %v16542_v40, %v7406_v27  ;;  %v17804_v62 = vld [vmem:[#allocation15_spill] sm:$0xff] }
 0x505   : > { %v16780_v12 = vpop.f32.mrf.mxu1  ;;  %v7864_v17 = vadd.f32 %v16722_v59, %v7658_v61  ;;  %v8483_v59 = vadd.f32 %v16759_v47, %v8253_v63  ;;  %v17812_v63 = vld [vmem:[#allocation56_spill] sm:$0xff] }
 0x506   : > { %17793 = vst [vmem:[#allocation69_spill] sm:$0xff] %v16780_v12  ;;  %v7654_v12 = vadd.f32 %v16524_v46, %v7377_v24  ;;  %v8249_v16 = vadd.f32 %v16564_v22, %v7859_v43  ;;  %v16809_v46 = vpop.f32.mrf.mxu0  ;;  %v7417_v22 = vadd.f32 %v16686_v2, %v16484_v56  ;;  %v8691_v23 = vadd.f32 %v16668_v55, %v8481_v30  ;;  %v17802_v30 = vld [vmem:[#allocation54_spill] sm:$0xff] }
 0x507   : > { %v16787_v37 = vpop.f32.mrf.mxu1  ;;  %v8254_v34 = vadd.f32 %v17804_v62, %v7864_v17 }
 0x508   : > { %v7860_v11 = vadd.f32 %v16707_v36, %v7654_v12  ;;  %v8479_v44 = vadd.f32 %v8416_v25, %v8249_v16  ;;  %v8252_v36 = vadd.f32 %v16566_v3, %v7862_v49  ;;  %v7660_v3 = vadd.f32 %v16530_v9, %v7401_v48  ;;  %v16827_v2 = vpop.f32.mrf.mxu0  ;;  %v17801_v49 = vld [vmem:[#allocation26_spill] sm:$0xff] }
 0x509   : > { %v16792_v33 = vpop.f32.mrf.mxu1  ;;  %v7664_v20 = vadd.f32 %v16546_v41, %v7417_v22  ;;  %v16846_v41 = vld [vmem:[%s16984_s4 + $0x3] ss:$0 sm:$0xff]  ;;  %v17803_v16 = vld [vmem:[#allocation34_spill] sm:$0xff] }
 0x50a   : > { %v8482_v5 = vadd.f32 %v11483_v26, %v8252_v36  ;;  %v8250_v7 = vadd.f32 %v16574_v51, %v7860_v11  ;;  %v8689_v51 = vadd.f32 %v16672_v31, %v8479_v44  ;;  %v7866_v55 = vadd.f32 %v16718_v58, %v7660_v3  ;;  %v17794_v26 = vld [vmem:[#allocation21_spill] sm:$0xff]  ;;  %v17798_v58 = vld [vmem:[#allocation42_spill] sm:$0xff]  ;;  %v16848_v18 = vpop.f32.mrf.mxu0 }
 0x50b   : > { %v16798_v21 = vpop.f32.mrf.mxu1  ;;  %v17797_v31 = vld [vmem:[#allocation41_spill] sm:$0xff]  ;;  %v7665_v8 = vadd.f32 %v17798_v58, %v7422_v19  ;;  %v7867_v11 = vadd.f32 %v16727_v45, %v7661_v28  ;;  %v7870_v47 = vadd.f32 %v17802_v30, %v7664_v20  ;;  %v17809_v3 = vld [vmem:[#allocation66_spill] sm:$0xff] }
 0x50c   : > { %v8480_v25 = vadd.f32 %v8419_v29, %v8250_v7  ;;  %v8692_v40 = vadd.f32 %v17794_v26, %v8482_v5  ;;  %v17795_v29 = vld [vmem:[#allocation40_spill] sm:$0xff]  ;;  %v7662_v24 = vadd.f32 %v17797_v31, %v7409_v6  ;;  %v8256_v48 = vadd.f32 %v17803_v16, %v7866_v55  ;;  %v17805_v36 = vld [vmem:[#allocation65_spill] sm:$0xff]  ;;  %v17806_v5 = vld [vmem:[#allocation19_spill] sm:$0xff] }
 0x50d   : > { %v16807_v15 = vpop.f32.mrf.mxu1  ;;  %v7433_v12 = vadd.f32 %v17796_v1, %v17795_v29  ;;  %v8695_v7 = vadd.f32 %v17806_v5, %v8485_v39  ;;  %v17808_v6 = vld [vmem:[#allocation64_spill] sm:$0xff]  ;;  %v8484_v45 = vadd.f32 %v17809_v3, %v8254_v34  ;;  %v17813_v39 = vld [vmem:[#allocation53_spill] sm:$0xff]  ;;  %v17815_v26 = vld [vmem:[#allocation11_spill] sm:$0xff] }
 0x50e   : > { %v8690_v13 = vadd.f32 %v17801_v49, %v8480_v25  ;;  %v8486_v19 = vadd.f32 %v17808_v6, %v8256_v48  ;;  %v9278_v25 = vpop.f32.mrf.mxu0  ;;  %v17811_v55 = vld [vmem:[#allocation68_spill] sm:$0xff]  ;;  %v17816_v29 = vld [vmem:[#allocation35_spill] sm:$0xff] }
 0x50f   : > { %v16817_v54 = vpop.f32.mrf.mxu1  ;;  %v8260_v1 = vadd.f32 %v17816_v29, %v7870_v47  ;;  %v17820_v34 = vld [vmem:[#allocation7_spill] sm:$0xff]  ;;  %v17824_v3 = vld [vmem:[#allocation60_spill] sm:$0xff] }
 0x510   : > { %v11545_v16 = vpop.f32.mrf.mxu0 }
 0x511   : > { %v11518_v56 = vpop.f32.mrf.mxu1 }
 0x512   : > { %v9081_v50 = vadd.f32 %v11518_v56, %v8691_v23  ;;  %v17810_v56 = vld [vmem:[#allocation20_spill] sm:$0xff] }
 0x513   : > { %v9016_v9 = vpop.f32.mrf.mxu1  ;;  %v8693_v28 = vadd.f32 %v17810_v56, %v8483_v59 }
 0x514   : > { %v9311_v38 = vadd.f32 %v16755_v53, %v9081_v50  ;;  %v9079_v0 = vadd.f32 %v9016_v9, %v8689_v51  ;;  %v17799_v53 = vld [vmem:[#allocation14_spill] sm:$0xff]  ;;  %v7868_v9 = vadd.f32 %v17812_v63, %v7662_v24 }
 0x515   : > { %v11519_v14 = vpop.f32.mrf.mxu1  ;;  %v7425_v43 = vadd.f32 %v17800_v32, %v17799_v53  ;;  %v17817_v53 = vld [vmem:[#allocation58_spill] sm:$0xff] }
 0x516   : > { %v9309_v10 = vadd.f32 %v16757_v60, %v9079_v0  ;;  %v9082_v52 = vadd.f32 %v11519_v14, %v8692_v40  ;;  %v9335_v44 = vadd.f32 %v16846_v41, %v9311_v38  ;;  %v17807_v60 = vld [vmem:[#allocation16_spill] sm:$0xff]  ;;  %v17814_v38 = vld [vmem:[#allocation67_spill] sm:$0xff]  ;;  %v8257_v40 = vadd.f32 %v17815_v26, %v7867_v11  ;;  %v17827_v63 = vld [vmem:[#allocation62_spill] sm:$0xff] }
 0x517   : > { %v9019_v27 = vpop.f32.mrf.mxu1  ;;  %v7668_v23 = vadd.f32 %v17807_v60, %v7433_v12  ;;  %v8489_v0 = vadd.f32 %v17814_v38, %v17813_v39  ;;  %v7871_v32 = vadd.f32 %v17817_v53, %v7665_v8  ;;  %v17823_v60 = vld [vmem:[#allocation49_spill] sm:$0xff]  ;;  %v17829_v26 = vld [vmem:[#allocation59_spill] sm:$0xff] }
 0x518   : > { %v9312_v22 = vadd.f32 %v17805_v36, %v9082_v52  ;;  %v9080_v35 = vadd.f32 %v9019_v27, %v8690_v13  ;;  %v9333_v50 = vadd.f32 %v16846_v41, %v9309_v10  ;;  %v9351_v31 = vmax.f32 %v9335_v44, 0.0  ;;  %v17818_v52 = vld [vmem:[#allocation45_spill] sm:$0xff]  ;;  %v17819_v13 = vld [vmem:[#allocation3_spill] sm:$0xff] }
 0x519   : > { %v11522_v61 = vpop.f32.mrf.mxu1  ;;  %v8696_v49 = vadd.f32 %v17818_v52, %v8486_v19  ;;  %v8694_v30 = vadd.f32 %v17819_v13, %v8484_v45  ;;  %v8487_v11 = vadd.f32 %v16775_v42, %v8257_v40  ;;  %v7666_v27 = vadd.f32 %v17820_v34, %v7425_v43  ;;  %v17821_v44 = vld [vmem:[#allocation69_spill] sm:$0xff]  ;;  %v17825_v42 = vld [vmem:[#allocation50_spill] sm:$0xff] }
 0x51a   : > { %v9336_v51 = vadd.f32 %v16846_v41, %v9312_v22  ;;  %v9310_v17 = vadd.f32 %v17811_v55, %v9080_v35  ;;  %v9085_v20 = vadd.f32 %v11522_v61, %v8695_v7  ;;  %v9349_v48 = vmax.f32 %v9333_v50, 0.0  ;;  %v9281_v50 = vpop.f32.mrf.mxu0  ;;  %v17832_v13 = vld [vmem:[#allocation37_spill] sm:$0xff] }
 0x51b   : > { %v9032_v12 = vpop.f32.mrf.mxu1  ;;  %v8490_v36 = vadd.f32 %v17821_v44, %v8260_v1  ;;  %v8699_v6 = vadd.f32 %v17823_v60, %v8489_v0  ;;  %v7874_v45 = vadd.f32 %v17824_v3, %v7668_v23  ;;  %v8261_v61 = vadd.f32 %v17825_v42, %v7871_v32  ;;  %v17828_v0 = vld [vmem:[#allocation27_spill] sm:$0xff]  ;;  %v17835_v42 = vld [vmem:[#allocation61_spill] sm:$0xff] }
 0x51c   : > { %v9352_v58 = vmax.f32 %v9336_v51, 0.0  ;;  %v9334_v59 = vadd.f32 %v16846_v41, %v9310_v17  ;;  %v9083_v14 = vadd.f32 %v9032_v12, %v8693_v28  ;;  %v9315_v10 = vadd.f32 %v16782_v4, %v9085_v20  ;;  %v17822_v4 = vld [vmem:[#allocation48_spill] sm:$0xff]  ;;  %v17826_v17 = vld [vmem:[#allocation38_spill] sm:$0xff] }
 0x51d   : > { %v11523_v24 = vpop.f32.mrf.mxu1  ;;  %v8258_v5 = vadd.f32 %v17822_v4, %v7868_v9  ;;  %v8697_v20 = vadd.f32 %v17826_v17, %v8487_v11  ;;  %v7872_v9 = vadd.f32 %v17827_v63, %v7666_v27  ;;  %v8493_v40 = vadd.f32 %v16792_v33, %v17829_v26 }
 0x51e   : > { %v9382_v47 = vpack.c.bf16 %v9352_v58, %v9351_v31  ;;  %v9350_v62 = vmax.f32 %v9334_v59, 0.0  ;;  %v9313_v22 = vadd.f32 %v16794_v57, %v9083_v14  ;;  %v9086_v8 = vadd.f32 %v11523_v24, %v8696_v49  ;;  %v11548_v59 = vpop.f32.mrf.mxu0  ;;  %v17831_v49 = vld [vmem:[#allocation39_spill] sm:$0xff] }
 0x51f   : > { %v9035_v35 = vpop.f32.mrf.mxu1  ;;  %v9339_v56 = vadd.f32 %v16846_v41, %v9315_v10  ;;  %v8488_v57 = vadd.f32 %v16787_v37, %v8258_v5  ;;  %v8491_v1 = vadd.f32 %v16798_v21, %v8261_v61  ;;  %v17830_v10 = vld [vmem:[#allocation52_spill] sm:$0xff]  ;;  %v8264_v24 = vadd.f32 %v17831_v49, %v7874_v45 }
 0x520   : > { %v9084_v7 = vadd.f32 %v9035_v35, %v8694_v30  ;;  %v9381_v19 = vpack.c.bf16 %v9350_v62, %v9349_v48  ;;  %v9316_v43 = vadd.f32 %v16809_v46, %v9086_v8  ;;  %v9337_v23 = vadd.f32 %v16846_v41, %v9313_v22  ;;  %v17833_v62 = vld [vmem:[#allocation55_spill] sm:$0xff]  ;;  %v9294_v44 = vpop.f32.mrf.mxu0  ;;  %v17834_v8 = vld [vmem:[#allocation57_spill] sm:$0xff] }
 0x521   : > { %v11526_v28 = vpop.f32.mrf.mxu1  ;;  %v8700_v46 = vadd.f32 %v17828_v0, %v8490_v36  ;;  %v9355_v12 = vmax.f32 %v9339_v56, 0.0  ;;  %v8698_v52 = vadd.f32 %v17830_v10, %v8488_v57  ;;  %v8262_v33 = vadd.f32 %v17832_v13, %v7872_v9  ;;  %v17840_v13 = vld [vmem:[#allocation4_spill] sm:$0xff] }
 0x522   : > { %v9314_v51 = vadd.f32 %v16827_v2, %v9084_v7  ;;  %v9089_v55 = vadd.f32 %v11526_v28, %v8699_v6  ;;  %11566 = vmatprep.mubr.bf16.mxu1 %v9381_v19  ;;  %v9340_v39 = vadd.f32 %v16846_v41, %v9316_v43  ;;  %v9353_v30 = vmax.f32 %v9337_v23, 0.0  ;;  %v11549_v45 = vpop.f32.mrf.mxu0  ;;  %v17836_v43 = vld [vmem:[#allocation63_spill] sm:$0xff] }
 0x523   : > { %v9048_v38 = vpop.f32.mrf.mxu1  ;;  %11567 = vmatmul.mubr.bf16.vlgmr.msra.gmra.mxu1 %v9382_v47  ;;  %v8703_v34 = vadd.f32 %v17833_v62, %v8493_v40  ;;  %v8494_v27 = vadd.f32 %v16807_v15, %v8264_v24  ;;  %v8701_v35 = vadd.f32 %v17834_v8, %v8491_v1  ;;  %v17844_v8 = vld [vmem:[#allocation33_spill] sm:$0xff] }
 0x524   : > { %v9338_v37 = vadd.f32 %v16846_v41, %v9314_v51  ;;  %v9319_v2 = vadd.f32 %v16848_v18, %v9089_v55  ;;  %v9087_v29 = vadd.f32 %v9048_v38, %v8697_v20  ;;  %v9356_v31 = vmax.f32 %v9340_v39, 0.0  ;;  %v9297_v39 = vpop.f32.mrf.mxu0 }
 0x525   : > { %v11527_v58 = vpop.f32.mrf.mxu1  ;;  %v8704_v61 = vadd.f32 %v17835_v42, %v8494_v27 }
 0x526   : > { %v9354_v14 = vmax.f32 %v9338_v37, 0.0  ;;  %v9317_v53 = vadd.f32 %v9278_v25, %v9087_v29  ;;  %v9090_v32 = vadd.f32 %v11527_v58, %v8700_v46  ;;  %v9384_v11 = vpack.c.bf16 %v9356_v31, %v9355_v12 }
 0x527   : > { %v9051_v48 = vpop.f32.mrf.mxu1  ;;  %v9343_v18 = vadd.f32 %v16846_v41, %v9319_v2  ;;  %v8492_v25 = vadd.f32 %v16817_v54, %v8262_v33 }
 0x528   : > { %v9320_v47 = vadd.f32 %v11545_v16, %v9090_v32  ;;  %v9088_v21 = vadd.f32 %v9051_v48, %v8698_v52  ;;  %v9383_v22 = vpack.c.bf16 %v9354_v14, %v9353_v30  ;;  %v9341_v4 = vadd.f32 %v16846_v41, %v9317_v53  ;;  %v17838_v53 = vld [vmem:[#allocation5_spill] sm:$0xff]  ;;  %v17839_v52 = vld [vmem:[#allocation24_spill] sm:$0xff] }
 0x529   : > { %v11530_v36 = vpop.f32.mrf.mxu1  ;;  %v9359_v6 = vmax.f32 %v9343_v18, 0.0  ;;  %v8702_v28 = vadd.f32 %v17836_v43, %v8492_v25 }
 0x52a   : > { %v9344_v5 = vadd.f32 %v16846_v41, %v9320_v47  ;;  %v9318_v7 = vadd.f32 %v9281_v50, %v9088_v21  ;;  %v9093_v60 = vadd.f32 %v11530_v36, %v8703_v34  ;;  %11570 = vmatprep.mubr.bf16.mxu1 %v9383_v22  ;;  %v9357_v57 = vmax.f32 %v9341_v4, 0.0  ;;  %v17842_v47 = vld [vmem:[#allocation28_spill] sm:$0xff] }
 0x52b   : > { %v9064_v16 = vpop.f32.mrf.mxu1  ;;  %11571 = vmatmul.mubr.bf16.gmra.mxu1 %v9384_v11  ;;  %v17841_v11 = vld [vmem:[#allocation29_spill] sm:$0xff]  ;;  %v17843_v36 = vld [vmem:[#allocation32_spill] sm:$0xff] }
 0x52c   : > { %v9360_v19 = vmax.f32 %v9344_v5, 0.0  ;;  %v9342_v3 = vadd.f32 %v16846_v41, %v9318_v7  ;;  %v9091_v15 = vadd.f32 %v9064_v16, %v8701_v35  ;;  %v9323_v54 = vadd.f32 %v11548_v59, %v9093_v60  ;;  %v11723_v59 = vld [vmem:[%s15196_s7] ss:$0 sm:$0xff]  ;;  %v17845_v5 = vld [vmem:[#allocation46_spill] sm:$0xff]  ;;  %v17846_v16 = vld [vmem:[#allocation12_spill] sm:$0xff] }
 0x52d   : > { %v11531_v56 = vpop.f32.mrf.mxu1  ;;  %v903_v22 = vadd.f32 %v11723_v59, %v17843_v36 }
 0x52e   : > { %v9386_v51 = vpack.c.bf16 %v9360_v19, %v9359_v6  ;;  %v9358_v55 = vmax.f32 %v9342_v3, 0.0  ;;  %v9321_v50 = vadd.f32 %v9294_v44, %v9091_v15  ;;  %v9094_v17 = vadd.f32 %v11531_v56, %v8704_v61  ;;  %v17847_v3 = vld [vmem:[#allocation25_spill] sm:$0xff] }
 0x52f   : > { %v9067_v20 = vpop.f32.mrf.mxu1  ;;  %v9347_v23 = vadd.f32 %v16846_v41, %v9323_v54  ;;  %v3788_v7 = vadd.f32 %v17845_v5, %v903_v22 }
 0x530   : > { %v9092_v63 = vadd.f32 %v9067_v20, %v8702_v28  ;;  %v9385_v9 = vpack.c.bf16 %v9358_v55, %v9357_v57  ;;  %v9324_v38 = vadd.f32 %v11549_v45, %v9094_v17  ;;  %v9345_v0 = vadd.f32 %v16846_v41, %v9321_v50  ;;  %v17848_v45 = vld [vmem:[#allocation8_spill] sm:$0xff]  ;;  %v17850_v50 = vld [vmem:[#allocation10_spill] sm:$0xff] }
 0x531   : > { %v9363_v37 = vmax.f32 %v9347_v23, 0.0  ;;  %v6842_v15 = vadd.f32 %v17847_v3, %v3788_v7  ;;  %v17849_v57 = vld [vmem:[#allocation36_spill] sm:$0xff] }
 0x532   : > { %v9322_v46 = vadd.f32 %v9297_v39, %v9092_v63  ;;  %11574 = vmatprep.mubr.bf16.mxu1 %v9385_v9  ;;  %v9348_v26 = vadd.f32 %v16846_v41, %v9324_v38  ;;  %v9361_v29 = vmax.f32 %v9345_v0, 0.0  ;;  %v17851_v63 = vld [vmem:[#allocation9_spill] sm:$0xff] }
 0x533   : > { %11575 = vmatmul.mubr.bf16.gmra.mxu1 %v9386_v51  ;;  %v907_v51 = vadd.f32 %v11723_v59, %v17849_v57  ;;  %v17852_v39 = vld [vmem:[#allocation17_spill] sm:$0xff] }
 0x534   : > { %v9346_v40 = vadd.f32 %v16846_v41, %v9322_v46  ;;  %v9364_v2 = vmax.f32 %v9348_v26, 0.0  ;;  %v17837_v41 = vld [vmem:[#allocation31_spill] sm:$0xff]  ;;  %v17853_v46 = vld [vmem:[#allocation6_spill] sm:$0xff] }
 0x535   : > { %v899_v14 = vadd.f32 %v11723_v59, %v17837_v41  ;;  %v3792_v9 = vadd.f32 %v17851_v63, %v907_v51 }
 0x536   : > { %v9362_v1 = vmax.f32 %v9346_v40, 0.0  ;;  %v9388_v12 = vpack.c.bf16 %v9364_v2, %v9363_v37  ;;  %v17854_v37 = vld [vmem:[#allocation43_spill] sm:$0xff] }
 0x537   : > { %v3784_v49 = vadd.f32 %v17839_v52, %v899_v14  ;;  %v6846_v26 = vadd.f32 %v17853_v46, %v3792_v9  ;;  %v17857_v52 = vld [vmem:[#allocation23_spill] sm:$0xff] }
 0x538   : > { %v9387_v31 = vpack.c.bf16 %v9362_v1, %v9361_v29 }
 0x539   : > { %v6838_v48 = vadd.f32 %v17841_v11, %v3784_v49  ;;  %v17859_v11 = vld [vmem:[#allocation13_spill] sm:$0xff] }
 0x53a   : > { %11578 = vmatprep.mubr.bf16.mxu1 %v9387_v31 }
 0x53b   : > { %11579 = vmatmul.mubr.bf16.gmra.mxu1 %v9388_v12 }
 0x5e3   : > { %v11568_v58 = vpop.f32.mrf.mxu1 }
 0x5e4   : > { %v9553_v32 = vadd.f32 %v11568_v58, %v17838_v53  ;;  %v17855_v58 = vld [vmem:[#allocation22_spill] sm:$0xff] }
 0x5e5   : > { %v9488_v10 = vpop.f32.mrf.mxu1  ;;  %v911_v41 = vadd.f32 %v11723_v59, %v17855_v58  ;;  %v17856_v53 = vld [vmem:[#allocation18_spill] sm:$0xff] }
 0x5e6   : > { %v9601_v24 = vmax.f32 %v9553_v32, 0.0  ;;  %v9551_v33 = vadd.f32 %v9488_v10, %v17840_v13  ;;  %v17858_v13 = vld [vmem:[#allocation51_spill] sm:$0xff] }
 0x5e7   : > { %v11569_v30 = vpop.f32.mrf.mxu1  ;;  %v3796_v49 = vadd.f32 %v17857_v52, %v911_v41 }
 0x5e8   : > { %9617 = vst [vmem:[%s16925_s28 + $0x10] sm:$0xff] %v9601_v24  ;;  %v9599_v18 = vmax.f32 %v9551_v33, 0.0  ;;  %v9554_v21 = vadd.f32 %v11569_v30, %v17842_v47  ;;  %v17860_v47 = vld [vmem:[#allocation30_spill] sm:$0xff] }
 0x5e9   : > { %v9491_v62 = vpop.f32.mrf.mxu1 }
 0x5ea   : > { %9615 = vst [vmem:[%s16925_s28] sm:$0xff] %v9599_v18  ;;  %v9602_v34 = vmax.f32 %v9554_v21, 0.0  ;;  %v9552_v27 = vadd.f32 %v9491_v62, %v6838_v48  ;;  %v6850_v48 = vadd.f32 %v17859_v11, %v3796_v49 }
 0x5eb   : > { %v11572_v44 = vpop.f32.mrf.mxu1 }
 0x5ec   : > { %9618 = vst [vmem:[%s16925_s28 + $0x18] sm:$0xff] %v9602_v34  ;;  %v9600_v25 = vmax.f32 %v9552_v27, 0.0  ;;  %v9557_v35 = vadd.f32 %v11572_v44, %v17844_v8 }
 0x5ed   : > { %v9504_v4 = vpop.f32.mrf.mxu1 }
 0x5ee   : > { %9616 = vst [vmem:[%s16925_s28 + $0x8] sm:$0xff] %v9600_v25  ;;  %v9605_v60 = vmax.f32 %v9557_v35, 0.0  ;;  %v9555_v6 = vadd.f32 %v9504_v4, %v17846_v16 }
 0x5ef   : > { %v11573_v19 = vpop.f32.mrf.mxu1 }
 0x5f0   : > { %9621 = vst [vmem:[%s16925_s28 + $0x30] sm:$0xff] %v9605_v60  ;;  %v9603_v54 = vmax.f32 %v9555_v6, 0.0  ;;  %v9558_v42 = vadd.f32 %v11573_v19, %v17848_v45 }
 0x5f1   : > { %v9507_v61 = vpop.f32.mrf.mxu1 }
 0x5f2   : > { %9619 = vst [vmem:[%s16925_s28 + $0x20] sm:$0xff] %v9603_v54  ;;  %v9606_v56 = vmax.f32 %v9558_v42, 0.0  ;;  %v9556_v43 = vadd.f32 %v9507_v61, %v6842_v15 }
 0x5f3   : > { %v11576_v28 = vpop.f32.mrf.mxu1 }
 0x5f4   : > { %9622 = vst [vmem:[%s16925_s28 + $0x38] sm:$0xff] %v9606_v56  ;;  %v9604_v55 = vmax.f32 %v9556_v43, 0.0  ;;  %v9561_v17 = vadd.f32 %v11576_v28, %v17850_v50 }
 0x5f5   : > { %v9520_v20 = vpop.f32.mrf.mxu1 }
 0x5f6   : > { %9620 = vst [vmem:[%s16925_s28 + $0x28] sm:$0xff] %v9604_v55  ;;  %v9609_v23 = vmax.f32 %v9561_v17, 0.0  ;;  %v9559_v38 = vadd.f32 %v9520_v20, %v17852_v39 }
 0x5f7   : > { %v11577_v0 = vpop.f32.mrf.mxu1 }
 0x5f8   : > { %9625 = vst [vmem:[%s16925_s28 + $0x50] sm:$0xff] %v9609_v23  ;;  %v9607_v40 = vmax.f32 %v9559_v38, 0.0  ;;  %v9562_v2 = vadd.f32 %v11577_v0, %v17854_v37 }
 0x5f9   : > { %v9523_v29 = vpop.f32.mrf.mxu1 }
 0x5fa   : > { %9623 = vst [vmem:[%s16925_s28 + $0x40] sm:$0xff] %v9607_v40  ;;  %v9610_v1 = vmax.f32 %v9562_v2, 0.0  ;;  %v9560_v12 = vadd.f32 %v9523_v29, %v6846_v26 }
 0x5fb   : > { %v11580_v31 = vpop.f32.mrf.mxu1 }
 0x5fc   : > { %9626 = vst [vmem:[%s16925_s28 + $0x58] sm:$0xff] %v9610_v1  ;;  %v9608_v14 = vmax.f32 %v9560_v12, 0.0  ;;  %v9565_v32 = vadd.f32 %v11580_v31, %v17856_v53 }
 0x5fd   : > { %v9536_v10 = vpop.f32.mrf.mxu1 }
 0x5fe   : > { %9624 = vst [vmem:[%s16925_s28 + $0x48] sm:$0xff] %v9608_v14  ;;  %v9613_v24 = vmax.f32 %v9565_v32, 0.0  ;;  %v9563_v33 = vadd.f32 %v9536_v10, %v17858_v13 }
 0x5ff   : > { %v11581_v30 = vpop.f32.mrf.mxu1 }
 0x600   : > { %9629 = vst [vmem:[%s16925_s28 + $0x70] sm:$0xff] %v9613_v24  ;;  %v9611_v18 = vmax.f32 %v9563_v33, 0.0  ;;  %v9566_v59 = vadd.f32 %v11581_v30, %v17860_v47 }
 0x601   : > { %v9539_v21 = vpop.f32.mrf.mxu1 }
 0x602   : > { %9627 = vst [vmem:[%s16925_s28 + $0x60] sm:$0xff] %v9611_v18  ;;  %v9614_v62 = vmax.f32 %v9566_v59, 0.0  ;;  %v9564_v34 = vadd.f32 %v9539_v21, %v6850_v48 }
 0x604   : > { %9630 = vst [vmem:[%s16925_s28 + $0x78] sm:$0xff] %v9614_v62  ;;  %v9612_v27 = vmax.f32 %v9564_v34, 0.0 }
 0x606   : > { %9628 = vst [vmem:[%s16925_s28 + $0x68] sm:$0xff] %v9612_v27 }
 0x607 PF: > { %s16_s25 = sadd.s32 1, %s11762_s25   ;;  %s17861_s21 = smov %s11754_s23 }
 0x608   : > { %p13_p7 = scmp.ge.s32.totalorder %s16_s25, 6   ;;  %s17862_s22 = smov %s11758_s24 }
 0x609   : > { %s17863_s23 = smov %s17866_s26  ;;  %s17864_s24 = smov %s17870_s27 }
 0x60a   :  { %15 = sbr.rel (!%p13_p7) target bundleno = 3 (0x3), region = 116 }

</bundles_post_ra>
